<compile_context>
chip_gen: v7x
topology: tpu7x:2x2x1
jax: 0.10.0
libtpu: 0.0.40
codegen_flags: <defaults>
</compile_context>

<pallas_src>
import functools

import jax
import jax.numpy as jnp
from jax import lax
from jax.experimental import pallas as pl
from jax.experimental.pallas import tpu as pltpu

_VMEM_LIMIT = 32 * 1024 * 1024  # fits v5e/v6e (128 MiB) and v7x (64 MiB) VMEM


# ---------------------------------------------------------------------------
# Fused Conv2d + BN + (residual add) + (ReLU) kernel, one batch image per step.
# ---------------------------------------------------------------------------
def _conv_bn_act_kernel(x_ref, w_ref, scale_ref, bias_ref, *rest, KH, KW, SH,
                        H_out, W_out, pad, relu, avgpool_h, has_residual,
                        m_chunk):
    """x_ref: (H, W, Cin); w_ref: (KH*KW, Cin, Cout) bf16; o_ref: (H_out, W_out, Cout)."""
    idx = 0
    if has_residual:
        res_ref = rest[idx]
        idx += 1
    o_ref = rest[idx]
    idx += 1
    if pad > 0:
        xpad_ref = rest[idx]
        idx += 1

    H_in, W_in, Cin = x_ref.shape
    Cout = o_ref.shape[-1]

    if pad > 0:
        # In-kernel zero padding: zero the scratch, overwrite the interior.
        # (Re-zeroed every grid step: scratch is per-core when the batch axis
        #  is split across TensorCores.)
        xpad_ref[...] = jnp.zeros_like(xpad_ref)
        xpad_ref[pad:pad + H_in, pad:pad + W_in, :] = x_ref[...]

    # Chunk the matmul M dimension (output rows) so the f32 accumulator and the
    # bf16 patches stay within register/VMEM budget; each chunk is stored
    # immediately so its live range ends before the next chunk starts.
    for h0 in range(0, H_out, m_chunk):
        ch = min(m_chunk, H_out - h0)
        M = ch * W_out
        acc = None
        if avgpool_h:
            # AvgPool2d(kernel=(2,1), stride=(2,1)) fused in front of the 1x1 conv.
            xa = x_ref[2 * h0:2 * (h0 + ch)].astype(jnp.float32)
            xa = xa.reshape(ch, 2, W_in, Cin)
            rows = ((xa[:, 0] + xa[:, 1]) * 0.5).astype(jnp.bfloat16)
            acc = jnp.dot(rows.reshape(M, Cin), w_ref[0],
                          preferred_element_type=jnp.float32)
        else:
            src = xpad_ref if pad > 0 else x_ref
            for kh in range(KH):
                # Row extraction (and stride-2 decimation) hoisted out of the
                # kw loop: done once per kh, not once per (kh, kw).
                if SH == 1:
                    rows = src[kh + h0:kh + h0 + ch, :, :]
                else:
                    rows = src[kh + SH * h0:kh + SH * (h0 + ch), :, :]
                    rows = rows.reshape(ch, SH, rows.shape[1], Cin)[:, 0]
                rows = rows.astype(jnp.bfloat16)        # bf16 MXU operand
                for kw in range(KW):
                    patch = rows[:, kw:kw + W_out, :]
                    d = jnp.dot(patch.reshape(M, Cin), w_ref[kh * KW + kw],
                                preferred_element_type=jnp.float32)
                    acc = d if acc is None else acc + d

        y = acc * scale_ref[...] + bias_ref[...]
        if has_residual:
            y = y + res_ref[h0:h0 + ch].astype(jnp.float32).reshape(M, Cout)
        if relu:
            y = jnp.maximum(y, 0.0)
        o_ref[h0:h0 + ch] = y.reshape(ch, W_out, Cout).astype(o_ref.dtype)


def conv_bn_act(x, p, *, stride=(1, 1), padding=0, relu=False,
                avgpool_h=False, residual=None):
    """Fused Conv2d + folded BatchNorm [+ residual] [+ ReLU] on NHWC input."""
    w, scale, bias = p["w"], p["scale"], p["bias"]
    B, H, W, Cx = x.shape
    KH, KW, Cw, Cout = w.shape
    SH, SW = stride
    assert SW == 1, "this model only uses stride 1 along W"

    # Match the (possibly already channel-padded) input: pad weight Cin with 0s.
    if Cw < Cx:
        w = jnp.pad(w, ((0, 0), (0, 0), (0, Cx - Cw), (0, 0)))
    Cin = Cx
    # Very first conv: pad tiny Cin (3) up to a sublane multiple.
    if Cin % 8 != 0:
        pc = (-Cin) % 8
        x = jnp.pad(x, ((0, 0), (0, 0), (0, 0), (0, pc)))
        w = jnp.pad(w, ((0, 0), (0, 0), (0, pc), (0, 0)))
        Cin += pc
    # Lane-dense loads/stores: zero-pad Cout up to a multiple of 128.  Padded
    # channels carry exact zeros through BN (zero scale/bias), ReLU, residual
    # adds and maxpool, and downstream layers' padded-Cin weight rows are zero,
    # so the visible math is unchanged.
    if Cout % 128 != 0:
        pc = (-Cout) % 128
        w = jnp.pad(w, ((0, 0), (0, 0), (0, 0), (0, pc)))
        scale = jnp.pad(scale, (0, pc))
        bias = jnp.pad(bias, (0, pc))
        Cout += pc

    if avgpool_h:
        assert padding == 0 and KH == 1 and KW == 1 and SH == 1 and H % 2 == 0
        H_eff = H // 2
    else:
        H_eff = H
    H_out = (H_eff + 2 * padding - KH) // SH + 1
    W_out = (W + 2 * padding - KW) + 1

    if residual is not None:
        assert residual.shape == (B, H_out, W_out, Cout), residual.shape

    w2 = w.reshape(KH * KW, Cin, Cout).astype(jnp.bfloat16)   # bf16 MXU weights
    scale2 = scale.reshape(1, Cout).astype(jnp.float32)
    bias2 = bias.reshape(1, Cout).astype(jnp.float32)

    # <=256 accumulator rows per chunk (whole output if it is already small).
    m_chunk = H_out if H_out * W_out <= 256 else max(1, 256 // W_out)

    kernel = functools.partial(
        _conv_bn_act_kernel, KH=KH, KW=KW, SH=SH, H_out=H_out, W_out=W_out,
        pad=padding, relu=relu, avgpool_h=avgpool_h,
        has_residual=residual is not None, m_chunk=m_chunk)

    in_specs = [
        pl.BlockSpec((None, H, W, Cin), lambda b: (b, 0, 0, 0)),
        # Constant index maps: weights / BN params stay VMEM-resident.
        pl.BlockSpec((KH * KW, Cin, Cout), lambda b: (0, 0, 0)),
        pl.BlockSpec((1, Cout), lambda b: (0, 0)),
        pl.BlockSpec((1, Cout), lambda b: (0, 0)),
    ]
    args = [x, w2, scale2, bias2]
    if residual is not None:
        in_specs.append(pl.BlockSpec((None, H_out, W_out, Cout),
                                     lambda b: (b, 0, 0, 0)))
        args.append(residual)

    scratch = []
    if padding > 0:
        scratch.append(pltpu.VMEM((H + 2 * padding, W + 2 * padding, Cin),
                                  jnp.float32))

    flops = 2 * B * H_out * W_out * KH * KW * Cin * Cout
    bytes_accessed = (x.size * 4 + w2.size * 2
                      + B * H_out * W_out * Cout * 4
                      + (residual.size * 4 if residual is not None else 0))

    return pl.pallas_call(
        kernel,
        out_shape=jax.ShapeDtypeStruct((B, H_out, W_out, Cout), x.dtype),
        grid=(B,),
        in_specs=in_specs,
        out_specs=pl.BlockSpec((None, H_out, W_out, Cout),
                               lambda b: (b, 0, 0, 0)),
        scratch_shapes=scratch,
        compiler_params=pltpu.CompilerParams(
            dimension_semantics=("parallel",),
            vmem_limit_bytes=_VMEM_LIMIT),
        cost_estimate=pl.CostEstimate(flops=flops, transcendentals=0,
                                      bytes_accessed=bytes_accessed),
    )(*args)


# ---------------------------------------------------------------------------
# MaxPool2d with the stride decimation done inside the kernel: only the kept
# (Ho, Wo, C) elements are ever written to HBM.  The wrapper reshapes the input
# to (B, Hq, s, Wq, s*C) (a free contiguous re-view) so every tap is a plain
# leading-dim / 128-aligned lane slice in VMEM.
# ---------------------------------------------------------------------------
def _maxpool_kernel(x_ref, o_ref, *, K, S, C):
    Ho, Wo, _ = o_ref.shape
    y = None
    for kh in range(K):
        qh, rh = divmod(kh, S)
        for kw in range(K):
            qw, rw = divmod(kw, S)
            t = x_ref[qh:qh + Ho, rh, qw:qw + Wo, rw * C:(rw + 1) * C]
            y = t if y is None else jnp.maximum(y, t)
    o_ref[...] = y


def max_pool(x, *, k, s, p):
    B, H, W, C = x.shape
    assert C % 128 == 0, "channels are padded to a lane multiple upstream"
    Ho = (H + 2 * p - k) // s + 1
    Wo = (W + 2 * p - k) // s + 1
    Hq = (k - 1) // s + Ho
    Wq = (k - 1) // s + Wo
    Hp2, Wp2 = Hq * s, Wq * s
    pad_h, pad_w = Hp2 - p - H, Wp2 - p - W
    if p > 0 or pad_h > 0 or pad_w > 0:
        x = jnp.pad(x, ((0, 0), (p, max(pad_h, 0)), (p, max(pad_w, 0)), (0, 0)),
                    constant_values=-jnp.inf)
    x = x[:, :Hp2, :Wp2, :]
    x2 = x.reshape(B, Hq, s, Wq, s * C)   # contiguous re-view, no data movement
    return pl.pallas_call(
        functools.partial(_maxpool_kernel, K=k, S=s, C=C),
        out_shape=jax.ShapeDtypeStruct((B, Ho, Wo, C), x.dtype),
        grid=(B,),
        in_specs=[pl.BlockSpec((None, Hq, s, Wq, s * C),
                               lambda b: (b, 0, 0, 0, 0))],
        out_specs=pl.BlockSpec((None, Ho, Wo, C), lambda b: (b, 0, 0, 0)),
        compiler_params=pltpu.CompilerParams(
            dimension_semantics=("parallel",),
            vmem_limit_bytes=_VMEM_LIMIT),
    )(x2)


# ---------------------------------------------------------------------------
# Pure-JAX reference path (same params, same structure) for self-checking.
# ---------------------------------------------------------------------------
def ref_conv_bn_act(x, p, *, stride=(1, 1), padding=0, relu=False,
                    avgpool_h=False, residual=None):
    w, scale, bias = p["w"], p["scale"], p["bias"]
    if avgpool_h:
        x = lax.reduce_window(x, 0.0, lax.add, (1, 2, 1, 1), (1, 2, 1, 1),
                              "VALID") * 0.5
    y = lax.conv_general_dilated(
        x, w, window_strides=stride,
        padding=[(padding, padding), (padding, padding)],
        dimension_numbers=("NHWC", "HWIO", "NHWC"))
    y = y * scale + bias
    if residual is not None:
        y = y + residual
    if relu:
        y = jnp.maximum(y, 0.0)
    return y


def ref_max_pool(x, *, k, s, p):
    return lax.reduce_window(x, -jnp.inf, lax.max, (1, k, k, 1), (1, s, s, 1),
                             [(0, 0), (p, p), (p, p), (0, 0)])


# ---------------------------------------------------------------------------
# ResNet-vd forward (matches the PyTorch module structure, layers=18).
# ---------------------------------------------------------------------------
def forward(params, x_nchw, *, use_pallas=True):
    conv = conv_bn_act if use_pallas else ref_conv_bn_act
    pool = max_pool if use_pallas else ref_max_pool

    x = jnp.transpose(x_nchw, (0, 2, 3, 1))          # NCHW -> NHWC
    for p in params["conv1"]:
        x = conv(x, p, stride=(1, 1), padding=1, relu=True)
    x = pool(x, k=3, s=2, p=1)
    for stage in params["stages"]:
        for blk in stage:
            sc_p = blk["shortcut"]
            if sc_p is None:
                sc = x
            elif sc_p["kind"] == "conv":              # ConvBNACT 1x1 shortcut
                sc = conv(x, sc_p, stride=blk["stride"], padding=0, relu=False)
            else:                                     # AvgPool(2,1) + 1x1 + BN
                sc = conv(x, sc_p, stride=(1, 1), padding=0, relu=False,
                          avgpool_h=True)
            y = conv(x, blk["conv0"], stride=blk["stride"], padding=1, relu=True)
            # conv1 (act=None) + BN + residual add + block ReLU, fused.
            y = conv(y, blk["conv1"], stride=(1, 1), padding=1, relu=True,
                     residual=sc)
            x = y
    x = pool(x, k=2, s=2, p=0)
    return jnp.transpose(x, (0, 3, 1, 2))             # NHWC -> NCHW


# ---------------------------------------------------------------------------
# Deterministic parameter construction (conv weights + folded BN stats).
# ---------------------------------------------------------------------------
def _conv_bn_params(key, cin, cout, k):
    kw_, kg, kb, km, kv = jax.random.split(key, 5)
    fan_in = k * k * cin
    w = jax.random.normal(kw_, (k, k, cin, cout), jnp.float32) * (2.0 / fan_in) ** 0.5
    gamma = 1.0 + 0.1 * jax.random.normal(kg, (cout,), jnp.float32)
    beta = 0.1 * jax.random.normal(kb, (cout,), jnp.float32)
    mean = 0.1 * jax.random.normal(km, (cout,), jnp.float32)
    var = jnp.abs(1.0 + 0.1 * jax.random.normal(kv, (cout,), jnp.float32))
    scale = gamma / jnp.sqrt(var + 1e-5)
    bias = beta - mean * scale
    return {"w": w, "scale": scale, "bias": bias}


def make_params(key, in_channels=3, layers=18):
    supported = {18: [2, 2, 2, 2], 34: [3, 4, 6, 3]}
    depth = supported[layers]
    num_filters = [64, 128, 256, 512]
    keys = iter(jax.random.split(key, 128))

    conv1 = [_conv_bn_params(next(keys), in_channels, 32, 3),
             _conv_bn_params(next(keys), 32, 32, 3),
             _conv_bn_params(next(keys), 32, 64, 3)]

    stages = []
    in_ch = 64
    for bi in range(len(depth)):
        blocks = []
        for i in range(depth[bi]):
            stride = (2, 1) if (i == 0 and bi != 0) else (1, 1)
            out_ch = num_filters[bi]
            if_first = (bi == 0 and i == 0)
            c0 = _conv_bn_params(next(keys), in_ch, out_ch, 3)
            c1 = _conv_bn_params(next(keys), out_ch, out_ch, 3)
            if in_ch != out_ch or stride[0] != 1:
                sc = _conv_bn_params(next(keys), in_ch, out_ch, 1)
                sc["kind"] = "conv" if if_first else "pool_conv"
            elif if_first:
                sc = _conv_bn_params(next(keys), in_ch, out_ch, 1)
                sc["kind"] = "conv"
            else:
                sc = None
            blocks.append({"conv0": c0, "conv1": c1, "shortcut": sc,
                           "stride": stride})
            in_ch = out_ch
        stages.append(blocks)
    return {"conv1": conv1, "stages": stages}


if __name__ == "__main__":
    root = jax.random.PRNGKey(0)
    pkey, xkey = jax.random.split(root)
    params = make_params(pkey, in_channels=3, layers=18)

    # Smallest spatial size for which the final MaxPool(2,2) is valid (H -> 1).
    B, C, H, W = 2, 3, 32, 32
    x = jax.random.normal(xkey, (B, C, H, W), dtype=jnp.float32)

    y = jax.block_until_ready(forward(params, x, use_pallas=True))
    y_ref = jax.block_until_ready(forward(params, x, use_pallas=False))

    assert y.shape == y_ref.shape == (B, 512, 1, W // 4), y.shape
    assert y.dtype == x.dtype
    assert bool(jnp.all(jnp.isfinite(y))), "non-finite values in output"
    # bf16 MXU operands vs an all-f32 reference: expect ~1e-2 relative error.
    rel_err = float(jnp.max(jnp.abs(y - y_ref)) /
                    (jnp.max(jnp.abs(y_ref)) + 1e-6))
    assert rel_err < 5e-2, f"mismatch vs reference: rel_err={rel_err}"
    print("KERNEL_OK")
</pallas_src>

<mosaic_0001>
module attributes {stable_mosaic.version = 11 : i64} {
  func.func @_conv_bn_act_kernel(%arg0: i32, %arg1: memref<1x32x32x8xf32, #tpu.memory_space<vmem>>, %arg2: memref<9x8x128xbf16, #tpu.memory_space<vmem>>, %arg3: memref<1x128xf32, #tpu.memory_space<vmem>>, %arg4: memref<1x128xf32, #tpu.memory_space<vmem>>, %arg5: memref<1x32x32x128xf32, #tpu.memory_space<vmem>>, %arg6: memref<34x34x8xf32, #tpu.memory_space<vmem>>) attributes {dimension_semantics = [#tpu.dimension_semantics<parallel>], iteration_bounds = array<i64: 2>, scalar_prefetch = 0 : i64, scratch_operands = 1 : i64, tpu.core_type = #tpu.core_type<tc>, window_params = [{transform_indices = @transform_0, window_bounds = array<i64: 1, 32, 32, 8>}, {pipeline_mode = #tpu.pipeline_mode<synchronous>, transform_indices = @transform_1, window_bounds = array<i64: 9, 8, 128>}, {pipeline_mode = #tpu.pipeline_mode<synchronous>, transform_indices = @transform_2, window_bounds = array<i64: 1, 128>}, {pipeline_mode = #tpu.pipeline_mode<synchronous>, transform_indices = @transform_3, window_bounds = array<i64: 1, 128>}, {transform_indices = @transform_4, window_bounds = array<i64: 1, 32, 32, 128>}]} {
    %cst = arith.constant 0.000000e+00 : f32
    %0 = vector.broadcast %cst : f32 to vector<34x34x8xf32>
    %c0 = arith.constant 0 : index
    %c0_0 = arith.constant 0 : index
    %c0_1 = arith.constant 0 : index
    %1 = vector.load %arg6[%c0, %c0_0, %c0_1] : memref<34x34x8xf32, #tpu.memory_space<vmem>>, vector<34x34x8xf32>
    tpu.vector_store %arg6[%c0, %c0_0, %c0_1], %0 {strides = array<i32>} : memref<34x34x8xf32, #tpu.memory_space<vmem>>, vector<34x34x8xf32>,
    %c0_2 = arith.constant 0 : index
    %c0_3 = arith.constant 0 : index
    %c0_4 = arith.constant 0 : index
    %c0_5 = arith.constant 0 : index
    %2 = vector.load %arg1[%c0_2, %c0_3, %c0_4, %c0_5] : memref<1x32x32x8xf32, #tpu.memory_space<vmem>>, vector<1x32x32x8xf32>
    %3 = vector.shape_cast %2 : vector<1x32x32x8xf32> to vector<32x32x8xf32>
    %c1 = arith.constant 1 : index
    %c1_6 = arith.constant 1 : index
    %c0_7 = arith.constant 0 : index
    %4 = vector.load %arg6[%c1, %c1_6, %c0_7] : memref<34x34x8xf32, #tpu.memory_space<vmem>>, vector<32x32x8xf32>
    tpu.vector_store %arg6[%c1, %c1_6, %c0_7], %3 {strides = array<i32>} : memref<34x34x8xf32, #tpu.memory_space<vmem>>, vector<32x32x8xf32>,
    %c0_8 = arith.constant 0 : index
    %c0_9 = arith.constant 0 : index
    %c0_10 = arith.constant 0 : index
    %5 = vector.load %arg6[%c0_8, %c0_9, %c0_10] : memref<34x34x8xf32, #tpu.memory_space<vmem>>, vector<8x34x8xf32>
    %6 = arith.truncf %5 : vector<8x34x8xf32> to vector<8x34x8xbf16>
    %7 = vector.extract_strided_slice %6 {offsets = [0, 0, 0], sizes = [8, 32, 8], strides = [1, 1, 1]} : vector<8x34x8xbf16> to vector<8x32x8xbf16>
    %8 = vector.shape_cast %7 : vector<8x32x8xbf16> to vector<256x8xbf16>
    %c0_11 = arith.constant 0 : index
    %c0_12 = arith.constant 0 : index
    %c0_13 = arith.constant 0 : index
    %9 = vector.load %arg2[%c0_11, %c0_12, %c0_13] : memref<9x8x128xbf16, #tpu.memory_space<vmem>>, vector<1x8x128xbf16>
    %10 = vector.shape_cast %9 : vector<1x8x128xbf16> to vector<8x128xbf16>
    %cst_14 = arith.constant dense<0.000000e+00> : vector<256x128xf32>
    %11 = tpu.matmul %8, %10, %cst_14 {dimension_numbers = #tpu.dot_dimension_numbers<[1], [0], [0], [1], [0, 0, 1, 1], [], []>} : vector<256x8xbf16>, vector<8x128xbf16>, vector<256x128xf32> -> vector<256x128xf32>
    %12 = vector.extract_strided_slice %6 {offsets = [0, 1, 0], sizes = [8, 32, 8], strides = [1, 1, 1]} : vector<8x34x8xbf16> to vector<8x32x8xbf16>
    %13 = vector.shape_cast %12 : vector<8x32x8xbf16> to vector<256x8xbf16>
    %c1_15 = arith.constant 1 : index
    %c0_16 = arith.constant 0 : index
    %c0_17 = arith.constant 0 : index
    %14 = vector.load %arg2[%c1_15, %c0_16, %c0_17] : memref<9x8x128xbf16, #tpu.memory_space<vmem>>, vector<1x8x128xbf16>
    %15 = vector.shape_cast %14 : vector<1x8x128xbf16> to vector<8x128xbf16>
    %cst_18 = arith.constant dense<0.000000e+00> : vector<256x128xf32>
    %16 = tpu.matmul %13, %15, %cst_18 {dimension_numbers = #tpu.dot_dimension_numbers<[1], [0], [0], [1], [0, 0, 1, 1], [], []>} : vector<256x8xbf16>, vector<8x128xbf16>, vector<256x128xf32> -> vector<256x128xf32>
    %17 = arith.addf %11, %16 : vector<256x128xf32>
    %18 = vector.extract_strided_slice %6 {offsets = [0, 2, 0], sizes = [8, 32, 8], strides = [1, 1, 1]} : vector<8x34x8xbf16> to vector<8x32x8xbf16>
    %19 = vector.shape_cast %18 : vector<8x32x8xbf16> to vector<256x8xbf16>
    %c2 = arith.constant 2 : index
    %c0_19 = arith.constant 0 : index
    %c0_20 = arith.constant 0 : index
    %20 = vector.load %arg2[%c2, %c0_19, %c0_20] : memref<9x8x128xbf16, #tpu.memory_space<vmem>>, vector<1x8x128xbf16>
    %21 = vector.shape_cast %20 : vector<1x8x128xbf16> to vector<8x128xbf16>
    %cst_21 = arith.constant dense<0.000000e+00> : vector<256x128xf32>
    %22 = tpu.matmul %19, %21, %cst_21 {dimension_numbers = #tpu.dot_dimension_numbers<[1], [0], [0], [1], [0, 0, 1, 1], [], []>} : vector<256x8xbf16>, vector<8x128xbf16>, vector<256x128xf32> -> vector<256x128xf32>
    %23 = arith.addf %17, %22 : vector<256x128xf32>
    %c1_22 = arith.constant 1 : index
    %c0_23 = arith.constant 0 : index
    %c0_24 = arith.constant 0 : index
    %24 = vector.load %arg6[%c1_22, %c0_23, %c0_24] : memref<34x34x8xf32, #tpu.memory_space<vmem>>, vector<8x34x8xf32>
    %25 = arith.truncf %24 : vector<8x34x8xf32> to vector<8x34x8xbf16>
    %26 = vector.extract_strided_slice %25 {offsets = [0, 0, 0], sizes = [8, 32, 8], strides = [1, 1, 1]} : vector<8x34x8xbf16> to vector<8x32x8xbf16>
    %27 = vector.shape_cast %26 : vector<8x32x8xbf16> to vector<256x8xbf16>
    %c3 = arith.constant 3 : index
    %c0_25 = arith.constant 0 : index
    %c0_26 = arith.constant 0 : index
    %28 = vector.load %arg2[%c3, %c0_25, %c0_26] : memref<9x8x128xbf16, #tpu.memory_space<vmem>>, vector<1x8x128xbf16>
    %29 = vector.shape_cast %28 : vector<1x8x128xbf16> to vector<8x128xbf16>
    %cst_27 = arith.constant dense<0.000000e+00> : vector<256x128xf32>
    %30 = tpu.matmul %27, %29, %cst_27 {dimension_numbers = #tpu.dot_dimension_numbers<[1], [0], [0], [1], [0, 0, 1, 1], [], []>} : vector<256x8xbf16>, vector<8x128xbf16>, vector<256x128xf32> -> vector<256x128xf32>
    %31 = arith.addf %23, %30 : vector<256x128xf32>
    %32 = vector.extract_strided_slice %25 {offsets = [0, 1, 0], sizes = [8, 32, 8], strides = [1, 1, 1]} : vector<8x34x8xbf16> to vector<8x32x8xbf16>
    %33 = vector.shape_cast %32 : vector<8x32x8xbf16> to vector<256x8xbf16>
    %c4 = arith.constant 4 : index
    %c0_28 = arith.constant 0 : index
    %c0_29 = arith.constant 0 : index
    %34 = vector.load %arg2[%c4, %c0_28, %c0_29] : memref<9x8x128xbf16, #tpu.memory_space<vmem>>, vector<1x8x128xbf16>
    %35 = vector.shape_cast %34 : vector<1x8x128xbf16> to vector<8x128xbf16>
    %cst_30 = arith.constant dense<0.000000e+00> : vector<256x128xf32>
    %36 = tpu.matmul %33, %35, %cst_30 {dimension_numbers = #tpu.dot_dimension_numbers<[1], [0], [0], [1], [0, 0, 1, 1], [], []>} : vector<256x8xbf16>, vector<8x128xbf16>, vector<256x128xf32> -> vector<256x128xf32>
    %37 = arith.addf %31, %36 : vector<256x128xf32>
    %38 = vector.extract_strided_slice %25 {offsets = [0, 2, 0], sizes = [8, 32, 8], strides = [1, 1, 1]} : vector<8x34x8xbf16> to vector<8x32x8xbf16>
    %39 = vector.shape_cast %38 : vector<8x32x8xbf16> to vector<256x8xbf16>
    %c5 = arith.constant 5 : index
    %c0_31 = arith.constant 0 : index
    %c0_32 = arith.constant 0 : index
    %40 = vector.load %arg2[%c5, %c0_31, %c0_32] : memref<9x8x128xbf16, #tpu.memory_space<vmem>>, vector<1x8x128xbf16>
    %41 = vector.shape_cast %40 : vector<1x8x128xbf16> to vector<8x128xbf16>
    %cst_33 = arith.constant dense<0.000000e+00> : vector<256x128xf32>
    %42 = tpu.matmul %39, %41, %cst_33 {dimension_numbers = #tpu.dot_dimension_numbers<[1], [0], [0], [1], [0, 0, 1, 1], [], []>} : vector<256x8xbf16>, vector<8x128xbf16>, vector<256x128xf32> -> vector<256x128xf32>
    %43 = arith.addf %37, %42 : vector<256x128xf32>
    %c2_34 = arith.constant 2 : index
    %c0_35 = arith.constant 0 : index
    %c0_36 = arith.constant 0 : index
    %44 = vector.load %arg6[%c2_34, %c0_35, %c0_36] : memref<34x34x8xf32, #tpu.memory_space<vmem>>, vector<8x34x8xf32>
    %45 = arith.truncf %44 : vector<8x34x8xf32> to vector<8x34x8xbf16>
    %46 = vector.extract_strided_slice %45 {offsets = [0, 0, 0], sizes = [8, 32, 8], strides = [1, 1, 1]} : vector<8x34x8xbf16> to vector<8x32x8xbf16>
    %47 = vector.shape_cast %46 : vector<8x32x8xbf16> to vector<256x8xbf16>
    %c6 = arith.constant 6 : index
    %c0_37 = arith.constant 0 : index
    %c0_38 = arith.constant 0 : index
    %48 = vector.load %arg2[%c6, %c0_37, %c0_38] : memref<9x8x128xbf16, #tpu.memory_space<vmem>>, vector<1x8x128xbf16>
    %49 = vector.shape_cast %48 : vector<1x8x128xbf16> to vector<8x128xbf16>
    %cst_39 = arith.constant dense<0.000000e+00> : vector<256x128xf32>
    %50 = tpu.matmul %47, %49, %cst_39 {dimension_numbers = #tpu.dot_dimension_numbers<[1], [0], [0], [1], [0, 0, 1, 1], [], []>} : vector<256x8xbf16>, vector<8x128xbf16>, vector<256x128xf32> -> vector<256x128xf32>
    %51 = arith.addf %43, %50 : vector<256x128xf32>
    %52 = vector.extract_strided_slice %45 {offsets = [0, 1, 0], sizes = [8, 32, 8], strides = [1, 1, 1]} : vector<8x34x8xbf16> to vector<8x32x8xbf16>
    %53 = vector.shape_cast %52 : vector<8x32x8xbf16> to vector<256x8xbf16>
    %c7 = arith.constant 7 : index
    %c0_40 = arith.constant 0 : index
    %c0_41 = arith.constant 0 : index
    %54 = vector.load %arg2[%c7, %c0_40, %c0_41] : memref<9x8x128xbf16, #tpu.memory_space<vmem>>, vector<1x8x128xbf16>
    %55 = vector.shape_cast %54 : vector<1x8x128xbf16> to vector<8x128xbf16>
    %cst_42 = arith.constant dense<0.000000e+00> : vector<256x128xf32>
    %56 = tpu.matmul %53, %55, %cst_42 {dimension_numbers = #tpu.dot_dimension_numbers<[1], [0], [0], [1], [0, 0, 1, 1], [], []>} : vector<256x8xbf16>, vector<8x128xbf16>, vector<256x128xf32> -> vector<256x128xf32>
    %57 = arith.addf %51, %56 : vector<256x128xf32>
    %58 = vector.extract_strided_slice %45 {offsets = [0, 2, 0], sizes = [8, 32, 8], strides = [1, 1, 1]} : vector<8x34x8xbf16> to vector<8x32x8xbf16>
    %59 = vector.shape_cast %58 : vector<8x32x8xbf16> to vector<256x8xbf16>
    %c8 = arith.constant 8 : index
    %c0_43 = arith.constant 0 : index
    %c0_44 = arith.constant 0 : index
    %60 = vector.load %arg2[%c8, %c0_43, %c0_44] : memref<9x8x128xbf16, #tpu.memory_space<vmem>>, vector<1x8x128xbf16>
    %61 = vector.shape_cast %60 : vector<1x8x128xbf16> to vector<8x128xbf16>
    %cst_45 = arith.constant dense<0.000000e+00> : vector<256x128xf32>
    %62 = tpu.matmul %59, %61, %cst_45 {dimension_numbers = #tpu.dot_dimension_numbers<[1], [0], [0], [1], [0, 0, 1, 1], [], []>} : vector<256x8xbf16>, vector<8x128xbf16>, vector<256x128xf32> -> vector<256x128xf32>
    %63 = arith.addf %57, %62 : vector<256x128xf32>
    %c0_46 = arith.constant 0 : index
    %c0_47 = arith.constant 0 : index
    %64 = vector.load %arg3[%c0_46, %c0_47] : memref<1x128xf32, #tpu.memory_space<vmem>>, vector<1x128xf32>
    %65 = vector.broadcast %64 : vector<1x128xf32> to vector<256x128xf32>
    %66 = arith.mulf %63, %65 : vector<256x128xf32>
    %c0_48 = arith.constant 0 : index
    %c0_49 = arith.constant 0 : index
    %67 = vector.load %arg4[%c0_48, %c0_49] : memref<1x128xf32, #tpu.memory_space<vmem>>, vector<1x128xf32>
    %68 = vector.broadcast %67 : vector<1x128xf32> to vector<256x128xf32>
    %69 = arith.addf %66, %68 : vector<256x128xf32>
    %cst_50 = arith.constant 0.000000e+00 : f32
    %70 = vector.broadcast %cst_50 : f32 to vector<256x128xf32>
    %71 = arith.maximumf %69, %70 : vector<256x128xf32>
    %72 = vector.shape_cast %71 : vector<256x128xf32> to vector<8x32x128xf32>
    %c0_51 = arith.constant 0 : index
    %c0_52 = arith.constant 0 : index
    %c0_53 = arith.constant 0 : index
    %c0_54 = arith.constant 0 : index
    %73 = vector.load %arg5[%c0_51, %c0_52, %c0_53, %c0_54] : memref<1x32x32x128xf32, #tpu.memory_space<vmem>>, vector<1x8x32x128xf32>
    %74 = vector.shape_cast %73 : vector<1x8x32x128xf32> to vector<8x32x128xf32>
    %75 = vector.shape_cast %72 : vector<8x32x128xf32> to vector<1x8x32x128xf32>
    tpu.vector_store %arg5[%c0_51, %c0_52, %c0_53, %c0_54], %75 {strides = array<i32>} : memref<1x32x32x128xf32, #tpu.memory_space<vmem>>, vector<1x8x32x128xf32>,
    %c8_55 = arith.constant 8 : index
    %c0_56 = arith.constant 0 : index
    %c0_57 = arith.constant 0 : index
    %76 = vector.load %arg6[%c8_55, %c0_56, %c0_57] : memref<34x34x8xf32, #tpu.memory_space<vmem>>, vector<8x34x8xf32>
    %77 = arith.truncf %76 : vector<8x34x8xf32> to vector<8x34x8xbf16>
    %78 = vector.extract_strided_slice %77 {offsets = [0, 0, 0], sizes = [8, 32, 8], strides = [1, 1, 1]} : vector<8x34x8xbf16> to vector<8x32x8xbf16>
    %79 = vector.shape_cast %78 : vector<8x32x8xbf16> to vector<256x8xbf16>
    %c0_58 = arith.constant 0 : index
    %c0_59 = arith.constant 0 : index
    %c0_60 = arith.constant 0 : index
    %80 = vector.load %arg2[%c0_58, %c0_59, %c0_60] : memref<9x8x128xbf16, #tpu.memory_space<vmem>>, vector<1x8x128xbf16>
    %81 = vector.shape_cast %80 : vector<1x8x128xbf16> to vector<8x128xbf16>
    %cst_61 = arith.constant dense<0.000000e+00> : vector<256x128xf32>
    %82 = tpu.matmul %79, %81, %cst_61 {dimension_numbers = #tpu.dot_dimension_numbers<[1], [0], [0], [1], [0, 0, 1, 1], [], []>} : vector<256x8xbf16>, vector<8x128xbf16>, vector<256x128xf32> -> vector<256x128xf32>
    %83 = vector.extract_strided_slice %77 {offsets = [0, 1, 0], sizes = [8, 32, 8], strides = [1, 1, 1]} : vector<8x34x8xbf16> to vector<8x32x8xbf16>
    %84 = vector.shape_cast %83 : vector<8x32x8xbf16> to vector<256x8xbf16>
    %c1_62 = arith.constant 1 : index
    %c0_63 = arith.constant 0 : index
    %c0_64 = arith.constant 0 : index
    %85 = vector.load %arg2[%c1_62, %c0_63, %c0_64] : memref<9x8x128xbf16, #tpu.memory_space<vmem>>, vector<1x8x128xbf16>
    %86 = vector.shape_cast %85 : vector<1x8x128xbf16> to vector<8x128xbf16>
    %cst_65 = arith.constant dense<0.000000e+00> : vector<256x128xf32>
    %87 = tpu.matmul %84, %86, %cst_65 {dimension_numbers = #tpu.dot_dimension_numbers<[1], [0], [0], [1], [0, 0, 1, 1], [], []>} : vector<256x8xbf16>, vector<8x128xbf16>, vector<256x128xf32> -> vector<256x128xf32>
    %88 = arith.addf %82, %87 : vector<256x128xf32>
    %89 = vector.extract_strided_slice %77 {offsets = [0, 2, 0], sizes = [8, 32, 8], strides = [1, 1, 1]} : vector<8x34x8xbf16> to vector<8x32x8xbf16>
    %90 = vector.shape_cast %89 : vector<8x32x8xbf16> to vector<256x8xbf16>
    %c2_66 = arith.constant 2 : index
    %c0_67 = arith.constant 0 : index
    %c0_68 = arith.constant 0 : index
    %91 = vector.load %arg2[%c2_66, %c0_67, %c0_68] : memref<9x8x128xbf16, #tpu.memory_space<vmem>>, vector<1x8x128xbf16>
    %92 = vector.shape_cast %91 : vector<1x8x128xbf16> to vector<8x128xbf16>
    %cst_69 = arith.constant dense<0.000000e+00> : vector<256x128xf32>
    %93 = tpu.matmul %90, %92, %cst_69 {dimension_numbers = #tpu.dot_dimension_numbers<[1], [0], [0], [1], [0, 0, 1, 1], [], []>} : vector<256x8xbf16>, vector<8x128xbf16>, vector<256x128xf32> -> vector<256x128xf32>
    %94 = arith.addf %88, %93 : vector<256x128xf32>
    %c9 = arith.constant 9 : index
    %c0_70 = arith.constant 0 : index
    %c0_71 = arith.constant 0 : index
    %95 = vector.load %arg6[%c9, %c0_70, %c0_71] : memref<34x34x8xf32, #tpu.memory_space<vmem>>, vector<8x34x8xf32>
    %96 = arith.truncf %95 : vector<8x34x8xf32> to vector<8x34x8xbf16>
    %97 = vector.extract_strided_slice %96 {offsets = [0, 0, 0], sizes = [8, 32, 8], strides = [1, 1, 1]} : vector<8x34x8xbf16> to vector<8x32x8xbf16>
    %98 = vector.shape_cast %97 : vector<8x32x8xbf16> to vector<256x8xbf16>
    %c3_72 = arith.constant 3 : index
    %c0_73 = arith.constant 0 : index
    %c0_74 = arith.constant 0 : index
    %99 = vector.load %arg2[%c3_72, %c0_73, %c0_74] : memref<9x8x128xbf16, #tpu.memory_space<vmem>>, vector<1x8x128xbf16>
    %100 = vector.shape_cast %99 : vector<1x8x128xbf16> to vector<8x128xbf16>
    %cst_75 = arith.constant dense<0.000000e+00> : vector<256x128xf32>
    %101 = tpu.matmul %98, %100, %cst_75 {dimension_numbers = #tpu.dot_dimension_numbers<[1], [0], [0], [1], [0, 0, 1, 1], [], []>} : vector<256x8xbf16>, vector<8x128xbf16>, vector<256x128xf32> -> vector<256x128xf32>
    %102 = arith.addf %94, %101 : vector<256x128xf32>
    %103 = vector.extract_strided_slice %96 {offsets = [0, 1, 0], sizes = [8, 32, 8], strides = [1, 1, 1]} : vector<8x34x8xbf16> to vector<8x32x8xbf16>
    %104 = vector.shape_cast %103 : vector<8x32x8xbf16> to vector<256x8xbf16>
    %c4_76 = arith.constant 4 : index
    %c0_77 = arith.constant 0 : index
    %c0_78 = arith.constant 0 : index
    %105 = vector.load %arg2[%c4_76, %c0_77, %c0_78] : memref<9x8x128xbf16, #tpu.memory_space<vmem>>, vector<1x8x128xbf16>
    %106 = vector.shape_cast %105 : vector<1x8x128xbf16> to vector<8x128xbf16>
    %cst_79 = arith.constant dense<0.000000e+00> : vector<256x128xf32>
    %107 = tpu.matmul %104, %106, %cst_79 {dimension_numbers = #tpu.dot_dimension_numbers<[1], [0], [0], [1], [0, 0, 1, 1], [], []>} : vector<256x8xbf16>, vector<8x128xbf16>, vector<256x128xf32> -> vector<256x128xf32>
    %108 = arith.addf %102, %107 : vector<256x128xf32>
    %109 = vector.extract_strided_slice %96 {offsets = [0, 2, 0], sizes = [8, 32, 8], strides = [1, 1, 1]} : vector<8x34x8xbf16> to vector<8x32x8xbf16>
    %110 = vector.shape_cast %109 : vector<8x32x8xbf16> to vector<256x8xbf16>
    %c5_80 = arith.constant 5 : index
    %c0_81 = arith.constant 0 : index
    %c0_82 = arith.constant 0 : index
    %111 = vector.load %arg2[%c5_80, %c0_81, %c0_82] : memref<9x8x128xbf16, #tpu.memory_space<vmem>>, vector<1x8x128xbf16>
    %112 = vector.shape_cast %111 : vector<1x8x128xbf16> to vector<8x128xbf16>
    %cst_83 = arith.constant dense<0.000000e+00> : vector<256x128xf32>
    %113 = tpu.matmul %110, %112, %cst_83 {dimension_numbers = #tpu.dot_dimension_numbers<[1], [0], [0], [1], [0, 0, 1, 1], [], []>} : vector<256x8xbf16>, vector<8x128xbf16>, vector<256x128xf32> -> vector<256x128xf32>
    %114 = arith.addf %108, %113 : vector<256x128xf32>
    %c10 = arith.constant 10 : index
    %c0_84 = arith.constant 0 : index
    %c0_85 = arith.constant 0 : index
    %115 = vector.load %arg6[%c10, %c0_84, %c0_85] : memref<34x34x8xf32, #tpu.memory_space<vmem>>, vector<8x34x8xf32>
    %116 = arith.truncf %115 : vector<8x34x8xf32> to vector<8x34x8xbf16>
    %117 = vector.extract_strided_slice %116 {offsets = [0, 0, 0], sizes = [8, 32, 8], strides = [1, 1, 1]} : vector<8x34x8xbf16> to vector<8x32x8xbf16>
    %118 = vector.shape_cast %117 : vector<8x32x8xbf16> to vector<256x8xbf16>
    %c6_86 = arith.constant 6 : index
    %c0_87 = arith.constant 0 : index
    %c0_88 = arith.constant 0 : index
    %119 = vector.load %arg2[%c6_86, %c0_87, %c0_88] : memref<9x8x128xbf16, #tpu.memory_space<vmem>>, vector<1x8x128xbf16>
    %120 = vector.shape_cast %119 : vector<1x8x128xbf16> to vector<8x128xbf16>
    %cst_89 = arith.constant dense<0.000000e+00> : vector<256x128xf32>
    %121 = tpu.matmul %118, %120, %cst_89 {dimension_numbers = #tpu.dot_dimension_numbers<[1], [0], [0], [1], [0, 0, 1, 1], [], []>} : vector<256x8xbf16>, vector<8x128xbf16>, vector<256x128xf32> -> vector<256x128xf32>
    %122 = arith.addf %114, %121 : vector<256x128xf32>
    %123 = vector.extract_strided_slice %116 {offsets = [0, 1, 0], sizes = [8, 32, 8], strides = [1, 1, 1]} : vector<8x34x8xbf16> to vector<8x32x8xbf16>
    %124 = vector.shape_cast %123 : vector<8x32x8xbf16> to vector<256x8xbf16>
    %c7_90 = arith.constant 7 : index
    %c0_91 = arith.constant 0 : index
    %c0_92 = arith.constant 0 : index
    %125 = vector.load %arg2[%c7_90, %c0_91, %c0_92] : memref<9x8x128xbf16, #tpu.memory_space<vmem>>, vector<1x8x128xbf16>
    %126 = vector.shape_cast %125 : vector<1x8x128xbf16> to vector<8x128xbf16>
    %cst_93 = arith.constant dense<0.000000e+00> : vector<256x128xf32>
    %127 = tpu.matmul %124, %126, %cst_93 {dimension_numbers = #tpu.dot_dimension_numbers<[1], [0], [0], [1], [0, 0, 1, 1], [], []>} : vector<256x8xbf16>, vector<8x128xbf16>, vector<256x128xf32> -> vector<256x128xf32>
    %128 = arith.addf %122, %127 : vector<256x128xf32>
    %129 = vector.extract_strided_slice %116 {offsets = [0, 2, 0], sizes = [8, 32, 8], strides = [1, 1, 1]} : vector<8x34x8xbf16> to vector<8x32x8xbf16>
    %130 = vector.shape_cast %129 : vector<8x32x8xbf16> to vector<256x8xbf16>
    %c8_94 = arith.constant 8 : index
    %c0_95 = arith.constant 0 : index
    %c0_96 = arith.constant 0 : index
    %131 = vector.load %arg2[%c8_94, %c0_95, %c0_96] : memref<9x8x128xbf16, #tpu.memory_space<vmem>>, vector<1x8x128xbf16>
    %132 = vector.shape_cast %131 : vector<1x8x128xbf16> to vector<8x128xbf16>
    %cst_97 = arith.constant dense<0.000000e+00> : vector<256x128xf32>
    %133 = tpu.matmul %130, %132, %cst_97 {dimension_numbers = #tpu.dot_dimension_numbers<[1], [0], [0], [1], [0, 0, 1, 1], [], []>} : vector<256x8xbf16>, vector<8x128xbf16>, vector<256x128xf32> -> vector<256x128xf32>
    %134 = arith.addf %128, %133 : vector<256x128xf32>
    %c0_98 = arith.constant 0 : index
    %c0_99 = arith.constant 0 : index
    %135 = vector.load %arg3[%c0_98, %c0_99] : memref<1x128xf32, #tpu.memory_space<vmem>>, vector<1x128xf32>
    %136 = vector.broadcast %135 : vector<1x128xf32> to vector<256x128xf32>
    %137 = arith.mulf %134, %136 : vector<256x128xf32>
    %c0_100 = arith.constant 0 : index
    %c0_101 = arith.constant 0 : index
    %138 = vector.load %arg4[%c0_100, %c0_101] : memref<1x128xf32, #tpu.memory_space<vmem>>, vector<1x128xf32>
    %139 = vector.broadcast %138 : vector<1x128xf32> to vector<256x128xf32>
    %140 = arith.addf %137, %139 : vector<256x128xf32>
    %cst_102 = arith.constant 0.000000e+00 : f32
    %141 = vector.broadcast %cst_102 : f32 to vector<256x128xf32>
    %142 = arith.maximumf %140, %141 : vector<256x128xf32>
    %143 = vector.shape_cast %142 : vector<256x128xf32> to vector<8x32x128xf32>
    %c0_103 = arith.constant 0 : index
    %c8_104 = arith.constant 8 : index
    %c0_105 = arith.constant 0 : index
    %c0_106 = arith.constant 0 : index
    %144 = vector.load %arg5[%c0_103, %c8_104, %c0_105, %c0_106] : memref<1x32x32x128xf32, #tpu.memory_space<vmem>>, vector<1x8x32x128xf32>
    %145 = vector.shape_cast %144 : vector<1x8x32x128xf32> to vector<8x32x128xf32>
    %146 = vector.shape_cast %143 : vector<8x32x128xf32> to vector<1x8x32x128xf32>
    tpu.vector_store %arg5[%c0_103, %c8_104, %c0_105, %c0_106], %146 {strides = array<i32>} : memref<1x32x32x128xf32, #tpu.memory_space<vmem>>, vector<1x8x32x128xf32>,
    %c16 = arith.constant 16 : index
    %c0_107 = arith.constant 0 : index
    %c0_108 = arith.constant 0 : index
    %147 = vector.load %arg6[%c16, %c0_107, %c0_108] : memref<34x34x8xf32, #tpu.memory_space<vmem>>, vector<8x34x8xf32>
    %148 = arith.truncf %147 : vector<8x34x8xf32> to vector<8x34x8xbf16>
    %149 = vector.extract_strided_slice %148 {offsets = [0, 0, 0], sizes = [8, 32, 8], strides = [1, 1, 1]} : vector<8x34x8xbf16> to vector<8x32x8xbf16>
    %150 = vector.shape_cast %149 : vector<8x32x8xbf16> to vector<256x8xbf16>
    %c0_109 = arith.constant 0 : index
    %c0_110 = arith.constant 0 : index
    %c0_111 = arith.constant 0 : index
    %151 = vector.load %arg2[%c0_109, %c0_110, %c0_111] : memref<9x8x128xbf16, #tpu.memory_space<vmem>>, vector<1x8x128xbf16>
    %152 = vector.shape_cast %151 : vector<1x8x128xbf16> to vector<8x128xbf16>
    %cst_112 = arith.constant dense<0.000000e+00> : vector<256x128xf32>
    %153 = tpu.matmul %150, %152, %cst_112 {dimension_numbers = #tpu.dot_dimension_numbers<[1], [0], [0], [1], [0, 0, 1, 1], [], []>} : vector<256x8xbf16>, vector<8x128xbf16>, vector<256x128xf32> -> vector<256x128xf32>
    %154 = vector.extract_strided_slice %148 {offsets = [0, 1, 0], sizes = [8, 32, 8], strides = [1, 1, 1]} : vector<8x34x8xbf16> to vector<8x32x8xbf16>
    %155 = vector.shape_cast %154 : vector<8x32x8xbf16> to vector<256x8xbf16>
    %c1_113 = arith.constant 1 : index
    %c0_114 = arith.constant 0 : index
    %c0_115 = arith.constant 0 : index
    %156 = vector.load %arg2[%c1_113, %c0_114, %c0_115] : memref<9x8x128xbf16, #tpu.memory_space<vmem>>, vector<1x8x128xbf16>
    %157 = vector.shape_cast %156 : vector<1x8x128xbf16> to vector<8x128xbf16>
    %cst_116 = arith.constant dense<0.000000e+00> : vector<256x128xf32>
    %158 = tpu.matmul %155, %157, %cst_116 {dimension_numbers = #tpu.dot_dimension_numbers<[1], [0], [0], [1], [0, 0, 1, 1], [], []>} : vector<256x8xbf16>, vector<8x128xbf16>, vector<256x128xf32> -> vector<256x128xf32>
    %159 = arith.addf %153, %158 : vector<256x128xf32>
    %160 = vector.extract_strided_slice %148 {offsets = [0, 2, 0], sizes = [8, 32, 8], strides = [1, 1, 1]} : vector<8x34x8xbf16> to vector<8x32x8xbf16>
    %161 = vector.shape_cast %160 : vector<8x32x8xbf16> to vector<256x8xbf16>
    %c2_117 = arith.constant 2 : index
    %c0_118 = arith.constant 0 : index
    %c0_119 = arith.constant 0 : index
    %162 = vector.load %arg2[%c2_117, %c0_118, %c0_119] : memref<9x8x128xbf16, #tpu.memory_space<vmem>>, vector<1x8x128xbf16>
    %163 = vector.shape_cast %162 : vector<1x8x128xbf16> to vector<8x128xbf16>
    %cst_120 = arith.constant dense<0.000000e+00> : vector<256x128xf32>
    %164 = tpu.matmul %161, %163, %cst_120 {dimension_numbers = #tpu.dot_dimension_numbers<[1], [0], [0], [1], [0, 0, 1, 1], [], []>} : vector<256x8xbf16>, vector<8x128xbf16>, vector<256x128xf32> -> vector<256x128xf32>
    %165 = arith.addf %159, %164 : vector<256x128xf32>
    %c17 = arith.constant 17 : index
    %c0_121 = arith.constant 0 : index
    %c0_122 = arith.constant 0 : index
    %166 = vector.load %arg6[%c17, %c0_121, %c0_122] : memref<34x34x8xf32, #tpu.memory_space<vmem>>, vector<8x34x8xf32>
    %167 = arith.truncf %166 : vector<8x34x8xf32> to vector<8x34x8xbf16>
    %168 = vector.extract_strided_slice %167 {offsets = [0, 0, 0], sizes = [8, 32, 8], strides = [1, 1, 1]} : vector<8x34x8xbf16> to vector<8x32x8xbf16>
    %169 = vector.shape_cast %168 : vector<8x32x8xbf16> to vector<256x8xbf16>
    %c3_123 = arith.constant 3 : index
    %c0_124 = arith.constant 0 : index
    %c0_125 = arith.constant 0 : index
    %170 = vector.load %arg2[%c3_123, %c0_124, %c0_125] : memref<9x8x128xbf16, #tpu.memory_space<vmem>>, vector<1x8x128xbf16>
    %171 = vector.shape_cast %170 : vector<1x8x128xbf16> to vector<8x128xbf16>
    %cst_126 = arith.constant dense<0.000000e+00> : vector<256x128xf32>
    %172 = tpu.matmul %169, %171, %cst_126 {dimension_numbers = #tpu.dot_dimension_numbers<[1], [0], [0], [1], [0, 0, 1, 1], [], []>} : vector<256x8xbf16>, vector<8x128xbf16>, vector<256x128xf32> -> vector<256x128xf32>
    %173 = arith.addf %165, %172 : vector<256x128xf32>
    %174 = vector.extract_strided_slice %167 {offsets = [0, 1, 0], sizes = [8, 32, 8], strides = [1, 1, 1]} : vector<8x34x8xbf16> to vector<8x32x8xbf16>
    %175 = vector.shape_cast %174 : vector<8x32x8xbf16> to vector<256x8xbf16>
    %c4_127 = arith.constant 4 : index
    %c0_128 = arith.constant 0 : index
    %c0_129 = arith.constant 0 : index
    %176 = vector.load %arg2[%c4_127, %c0_128, %c0_129] : memref<9x8x128xbf16, #tpu.memory_space<vmem>>, vector<1x8x128xbf16>
    %177 = vector.shape_cast %176 : vector<1x8x128xbf16> to vector<8x128xbf16>
    %cst_130 = arith.constant dense<0.000000e+00> : vector<256x128xf32>
    %178 = tpu.matmul %175, %177, %cst_130 {dimension_numbers = #tpu.dot_dimension_numbers<[1], [0], [0], [1], [0, 0, 1, 1], [], []>} : vector<256x8xbf16>, vector<8x128xbf16>, vector<256x128xf32> -> vector<256x128xf32>
    %179 = arith.addf %173, %178 : vector<256x128xf32>
    %180 = vector.extract_strided_slice %167 {offsets = [0, 2, 0], sizes = [8, 32, 8], strides = [1, 1, 1]} : vector<8x34x8xbf16> to vector<8x32x8xbf16>
    %181 = vector.shape_cast %180 : vector<8x32x8xbf16> to vector<256x8xbf16>
    %c5_131 = arith.constant 5 : index
    %c0_132 = arith.constant 0 : index
    %c0_133 = arith.constant 0 : index
    %182 = vector.load %arg2[%c5_131, %c0_132, %c0_133] : memref<9x8x128xbf16, #tpu.memory_space<vmem>>, vector<1x8x128xbf16>
    %183 = vector.shape_cast %182 : vector<1x8x128xbf16> to vector<8x128xbf16>
    %cst_134 = arith.constant dense<0.000000e+00> : vector<256x128xf32>
    %184 = tpu.matmul %181, %183, %cst_134 {dimension_numbers = #tpu.dot_dimension_numbers<[1], [0], [0], [1], [0, 0, 1, 1], [], []>} : vector<256x8xbf16>, vector<8x128xbf16>, vector<256x128xf32> -> vector<256x128xf32>
    %185 = arith.addf %179, %184 : vector<256x128xf32>
    %c18 = arith.constant 18 : index
    %c0_135 = arith.constant 0 : index
    %c0_136 = arith.constant 0 : index
    %186 = vector.load %arg6[%c18, %c0_135, %c0_136] : memref<34x34x8xf32, #tpu.memory_space<vmem>>, vector<8x34x8xf32>
    %187 = arith.truncf %186 : vector<8x34x8xf32> to vector<8x34x8xbf16>
    %188 = vector.extract_strided_slice %187 {offsets = [0, 0, 0], sizes = [8, 32, 8], strides = [1, 1, 1]} : vector<8x34x8xbf16> to vector<8x32x8xbf16>
    %189 = vector.shape_cast %188 : vector<8x32x8xbf16> to vector<256x8xbf16>
    %c6_137 = arith.constant 6 : index
    %c0_138 = arith.constant 0 : index
    %c0_139 = arith.constant 0 : index
    %190 = vector.load %arg2[%c6_137, %c0_138, %c0_139] : memref<9x8x128xbf16, #tpu.memory_space<vmem>>, vector<1x8x128xbf16>
    %191 = vector.shape_cast %190 : vector<1x8x128xbf16> to vector<8x128xbf16>
    %cst_140 = arith.constant dense<0.000000e+00> : vector<256x128xf32>
    %192 = tpu.matmul %189, %191, %cst_140 {dimension_numbers = #tpu.dot_dimension_numbers<[1], [0], [0], [1], [0, 0, 1, 1], [], []>} : vector<256x8xbf16>, vector<8x128xbf16>, vector<256x128xf32> -> vector<256x128xf32>
    %193 = arith.addf %185, %192 : vector<256x128xf32>
    %194 = vector.extract_strided_slice %187 {offsets = [0, 1, 0], sizes = [8, 32, 8], strides = [1, 1, 1]} : vector<8x34x8xbf16> to vector<8x32x8xbf16>
    %195 = vector.shape_cast %194 : vector<8x32x8xbf16> to vector<256x8xbf16>
    %c7_141 = arith.constant 7 : index
    %c0_142 = arith.constant 0 : index
    %c0_143 = arith.constant 0 : index
    %196 = vector.load %arg2[%c7_141, %c0_142, %c0_143] : memref<9x8x128xbf16, #tpu.memory_space<vmem>>, vector<1x8x128xbf16>
    %197 = vector.shape_cast %196 : vector<1x8x128xbf16> to vector<8x128xbf16>
    %cst_144 = arith.constant dense<0.000000e+00> : vector<256x128xf32>
    %198 = tpu.matmul %195, %197, %cst_144 {dimension_numbers = #tpu.dot_dimension_numbers<[1], [0], [0], [1], [0, 0, 1, 1], [], []>} : vector<256x8xbf16>, vector<8x128xbf16>, vector<256x128xf32> -> vector<256x128xf32>
    %199 = arith.addf %193, %198 : vector<256x128xf32>
    %200 = vector.extract_strided_slice %187 {offsets = [0, 2, 0], sizes = [8, 32, 8], strides = [1, 1, 1]} : vector<8x34x8xbf16> to vector<8x32x8xbf16>
    %201 = vector.shape_cast %200 : vector<8x32x8xbf16> to vector<256x8xbf16>
    %c8_145 = arith.constant 8 : index
    %c0_146 = arith.constant 0 : index
    %c0_147 = arith.constant 0 : index
    %202 = vector.load %arg2[%c8_145, %c0_146, %c0_147] : memref<9x8x128xbf16, #tpu.memory_space<vmem>>, vector<1x8x128xbf16>
    %203 = vector.shape_cast %202 : vector<1x8x128xbf16> to vector<8x128xbf16>
    %cst_148 = arith.constant dense<0.000000e+00> : vector<256x128xf32>
    %204 = tpu.matmul %201, %203, %cst_148 {dimension_numbers = #tpu.dot_dimension_numbers<[1], [0], [0], [1], [0, 0, 1, 1], [], []>} : vector<256x8xbf16>, vector<8x128xbf16>, vector<256x128xf32> -> vector<256x128xf32>
    %205 = arith.addf %199, %204 : vector<256x128xf32>
    %c0_149 = arith.constant 0 : index
    %c0_150 = arith.constant 0 : index
    %206 = vector.load %arg3[%c0_149, %c0_150] : memref<1x128xf32, #tpu.memory_space<vmem>>, vector<1x128xf32>
    %207 = vector.broadcast %206 : vector<1x128xf32> to vector<256x128xf32>
    %208 = arith.mulf %205, %207 : vector<256x128xf32>
    %c0_151 = arith.constant 0 : index
    %c0_152 = arith.constant 0 : index
    %209 = vector.load %arg4[%c0_151, %c0_152] : memref<1x128xf32, #tpu.memory_space<vmem>>, vector<1x128xf32>
    %210 = vector.broadcast %209 : vector<1x128xf32> to vector<256x128xf32>
    %211 = arith.addf %208, %210 : vector<256x128xf32>
    %cst_153 = arith.constant 0.000000e+00 : f32
    %212 = vector.broadcast %cst_153 : f32 to vector<256x128xf32>
    %213 = arith.maximumf %211, %212 : vector<256x128xf32>
    %214 = vector.shape_cast %213 : vector<256x128xf32> to vector<8x32x128xf32>
    %c0_154 = arith.constant 0 : index
    %c16_155 = arith.constant 16 : index
    %c0_156 = arith.constant 0 : index
    %c0_157 = arith.constant 0 : index
    %215 = vector.load %arg5[%c0_154, %c16_155, %c0_156, %c0_157] : memref<1x32x32x128xf32, #tpu.memory_space<vmem>>, vector<1x8x32x128xf32>
    %216 = vector.shape_cast %215 : vector<1x8x32x128xf32> to vector<8x32x128xf32>
    %217 = vector.shape_cast %214 : vector<8x32x128xf32> to vector<1x8x32x128xf32>
    tpu.vector_store %arg5[%c0_154, %c16_155, %c0_156, %c0_157], %217 {strides = array<i32>} : memref<1x32x32x128xf32, #tpu.memory_space<vmem>>, vector<1x8x32x128xf32>,
    %c24 = arith.constant 24 : index
    %c0_158 = arith.constant 0 : index
    %c0_159 = arith.constant 0 : index
    %218 = vector.load %arg6[%c24, %c0_158, %c0_159] : memref<34x34x8xf32, #tpu.memory_space<vmem>>, vector<8x34x8xf32>
    %219 = arith.truncf %218 : vector<8x34x8xf32> to vector<8x34x8xbf16>
    %220 = vector.extract_strided_slice %219 {offsets = [0, 0, 0], sizes = [8, 32, 8], strides = [1, 1, 1]} : vector<8x34x8xbf16> to vector<8x32x8xbf16>
    %221 = vector.shape_cast %220 : vector<8x32x8xbf16> to vector<256x8xbf16>
    %c0_160 = arith.constant 0 : index
    %c0_161 = arith.constant 0 : index
    %c0_162 = arith.constant 0 : index
    %222 = vector.load %arg2[%c0_160, %c0_161, %c0_162] : memref<9x8x128xbf16, #tpu.memory_space<vmem>>, vector<1x8x128xbf16>
    %223 = vector.shape_cast %222 : vector<1x8x128xbf16> to vector<8x128xbf16>
    %cst_163 = arith.constant dense<0.000000e+00> : vector<256x128xf32>
    %224 = tpu.matmul %221, %223, %cst_163 {dimension_numbers = #tpu.dot_dimension_numbers<[1], [0], [0], [1], [0, 0, 1, 1], [], []>} : vector<256x8xbf16>, vector<8x128xbf16>, vector<256x128xf32> -> vector<256x128xf32>
    %225 = vector.extract_strided_slice %219 {offsets = [0, 1, 0], sizes = [8, 32, 8], strides = [1, 1, 1]} : vector<8x34x8xbf16> to vector<8x32x8xbf16>
    %226 = vector.shape_cast %225 : vector<8x32x8xbf16> to vector<256x8xbf16>
    %c1_164 = arith.constant 1 : index
    %c0_165 = arith.constant 0 : index
    %c0_166 = arith.constant 0 : index
    %227 = vector.load %arg2[%c1_164, %c0_165, %c0_166] : memref<9x8x128xbf16, #tpu.memory_space<vmem>>, vector<1x8x128xbf16>
    %228 = vector.shape_cast %227 : vector<1x8x128xbf16> to vector<8x128xbf16>
    %cst_167 = arith.constant dense<0.000000e+00> : vector<256x128xf32>
    %229 = tpu.matmul %226, %228, %cst_167 {dimension_numbers = #tpu.dot_dimension_numbers<[1], [0], [0], [1], [0, 0, 1, 1], [], []>} : vector<256x8xbf16>, vector<8x128xbf16>, vector<256x128xf32> -> vector<256x128xf32>
    %230 = arith.addf %224, %229 : vector<256x128xf32>
    %231 = vector.extract_strided_slice %219 {offsets = [0, 2, 0], sizes = [8, 32, 8], strides = [1, 1, 1]} : vector<8x34x8xbf16> to vector<8x32x8xbf16>
    %232 = vector.shape_cast %231 : vector<8x32x8xbf16> to vector<256x8xbf16>
    %c2_168 = arith.constant 2 : index
    %c0_169 = arith.constant 0 : index
    %c0_170 = arith.constant 0 : index
    %233 = vector.load %arg2[%c2_168, %c0_169, %c0_170] : memref<9x8x128xbf16, #tpu.memory_space<vmem>>, vector<1x8x128xbf16>
    %234 = vector.shape_cast %233 : vector<1x8x128xbf16> to vector<8x128xbf16>
    %cst_171 = arith.constant dense<0.000000e+00> : vector<256x128xf32>
    %235 = tpu.matmul %232, %234, %cst_171 {dimension_numbers = #tpu.dot_dimension_numbers<[1], [0], [0], [1], [0, 0, 1, 1], [], []>} : vector<256x8xbf16>, vector<8x128xbf16>, vector<256x128xf32> -> vector<256x128xf32>
    %236 = arith.addf %230, %235 : vector<256x128xf32>
    %c25 = arith.constant 25 : index
    %c0_172 = arith.constant 0 : index
    %c0_173 = arith.constant 0 : index
    %237 = vector.load %arg6[%c25, %c0_172, %c0_173] : memref<34x34x8xf32, #tpu.memory_space<vmem>>, vector<8x34x8xf32>
    %238 = arith.truncf %237 : vector<8x34x8xf32> to vector<8x34x8xbf16>
    %239 = vector.extract_strided_slice %238 {offsets = [0, 0, 0], sizes = [8, 32, 8], strides = [1, 1, 1]} : vector<8x34x8xbf16> to vector<8x32x8xbf16>
    %240 = vector.shape_cast %239 : vector<8x32x8xbf16> to vector<256x8xbf16>
    %c3_174 = arith.constant 3 : index
    %c0_175 = arith.constant 0 : index
    %c0_176 = arith.constant 0 : index
    %241 = vector.load %arg2[%c3_174, %c0_175, %c0_176] : memref<9x8x128xbf16, #tpu.memory_space<vmem>>, vector<1x8x128xbf16>
    %242 = vector.shape_cast %241 : vector<1x8x128xbf16> to vector<8x128xbf16>
    %cst_177 = arith.constant dense<0.000000e+00> : vector<256x128xf32>
    %243 = tpu.matmul %240, %242, %cst_177 {dimension_numbers = #tpu.dot_dimension_numbers<[1], [0], [0], [1], [0, 0, 1, 1], [], []>} : vector<256x8xbf16>, vector<8x128xbf16>, vector<256x128xf32> -> vector<256x128xf32>
    %244 = arith.addf %236, %243 : vector<256x128xf32>
    %245 = vector.extract_strided_slice %238 {offsets = [0, 1, 0], sizes = [8, 32, 8], strides = [1, 1, 1]} : vector<8x34x8xbf16> to vector<8x32x8xbf16>
    %246 = vector.shape_cast %245 : vector<8x32x8xbf16> to vector<256x8xbf16>
    %c4_178 = arith.constant 4 : index
    %c0_179 = arith.constant 0 : index
    %c0_180 = arith.constant 0 : index
    %247 = vector.load %arg2[%c4_178, %c0_179, %c0_180] : memref<9x8x128xbf16, #tpu.memory_space<vmem>>, vector<1x8x128xbf16>
    %248 = vector.shape_cast %247 : vector<1x8x128xbf16> to vector<8x128xbf16>
    %cst_181 = arith.constant dense<0.000000e+00> : vector<256x128xf32>
    %249 = tpu.matmul %246, %248, %cst_181 {dimension_numbers = #tpu.dot_dimension_numbers<[1], [0], [0], [1], [0, 0, 1, 1], [], []>} : vector<256x8xbf16>, vector<8x128xbf16>, vector<256x128xf32> -> vector<256x128xf32>
    %250 = arith.addf %244, %249 : vector<256x128xf32>
    %251 = vector.extract_strided_slice %238 {offsets = [0, 2, 0], sizes = [8, 32, 8], strides = [1, 1, 1]} : vector<8x34x8xbf16> to vector<8x32x8xbf16>
    %252 = vector.shape_cast %251 : vector<8x32x8xbf16> to vector<256x8xbf16>
    %c5_182 = arith.constant 5 : index
    %c0_183 = arith.constant 0 : index
    %c0_184 = arith.constant 0 : index
    %253 = vector.load %arg2[%c5_182, %c0_183, %c0_184] : memref<9x8x128xbf16, #tpu.memory_space<vmem>>, vector<1x8x128xbf16>
    %254 = vector.shape_cast %253 : vector<1x8x128xbf16> to vector<8x128xbf16>
    %cst_185 = arith.constant dense<0.000000e+00> : vector<256x128xf32>
    %255 = tpu.matmul %252, %254, %cst_185 {dimension_numbers = #tpu.dot_dimension_numbers<[1], [0], [0], [1], [0, 0, 1, 1], [], []>} : vector<256x8xbf16>, vector<8x128xbf16>, vector<256x128xf32> -> vector<256x128xf32>
    %256 = arith.addf %250, %255 : vector<256x128xf32>
    %c26 = arith.constant 26 : index
    %c0_186 = arith.constant 0 : index
    %c0_187 = arith.constant 0 : index
    %257 = vector.load %arg6[%c26, %c0_186, %c0_187] : memref<34x34x8xf32, #tpu.memory_space<vmem>>, vector<8x34x8xf32>
    %258 = arith.truncf %257 : vector<8x34x8xf32> to vector<8x34x8xbf16>
    %259 = vector.extract_strided_slice %258 {offsets = [0, 0, 0], sizes = [8, 32, 8], strides = [1, 1, 1]} : vector<8x34x8xbf16> to vector<8x32x8xbf16>
    %260 = vector.shape_cast %259 : vector<8x32x8xbf16> to vector<256x8xbf16>
    %c6_188 = arith.constant 6 : index
    %c0_189 = arith.constant 0 : index
    %c0_190 = arith.constant 0 : index
    %261 = vector.load %arg2[%c6_188, %c0_189, %c0_190] : memref<9x8x128xbf16, #tpu.memory_space<vmem>>, vector<1x8x128xbf16>
    %262 = vector.shape_cast %261 : vector<1x8x128xbf16> to vector<8x128xbf16>
    %cst_191 = arith.constant dense<0.000000e+00> : vector<256x128xf32>
    %263 = tpu.matmul %260, %262, %cst_191 {dimension_numbers = #tpu.dot_dimension_numbers<[1], [0], [0], [1], [0, 0, 1, 1], [], []>} : vector<256x8xbf16>, vector<8x128xbf16>, vector<256x128xf32> -> vector<256x128xf32>
    %264 = arith.addf %256, %263 : vector<256x128xf32>
    %265 = vector.extract_strided_slice %258 {offsets = [0, 1, 0], sizes = [8, 32, 8], strides = [1, 1, 1]} : vector<8x34x8xbf16> to vector<8x32x8xbf16>
    %266 = vector.shape_cast %265 : vector<8x32x8xbf16> to vector<256x8xbf16>
    %c7_192 = arith.constant 7 : index
    %c0_193 = arith.constant 0 : index
    %c0_194 = arith.constant 0 : index
    %267 = vector.load %arg2[%c7_192, %c0_193, %c0_194] : memref<9x8x128xbf16, #tpu.memory_space<vmem>>, vector<1x8x128xbf16>
    %268 = vector.shape_cast %267 : vector<1x8x128xbf16> to vector<8x128xbf16>
    %cst_195 = arith.constant dense<0.000000e+00> : vector<256x128xf32>
    %269 = tpu.matmul %266, %268, %cst_195 {dimension_numbers = #tpu.dot_dimension_numbers<[1], [0], [0], [1], [0, 0, 1, 1], [], []>} : vector<256x8xbf16>, vector<8x128xbf16>, vector<256x128xf32> -> vector<256x128xf32>
    %270 = arith.addf %264, %269 : vector<256x128xf32>
    %271 = vector.extract_strided_slice %258 {offsets = [0, 2, 0], sizes = [8, 32, 8], strides = [1, 1, 1]} : vector<8x34x8xbf16> to vector<8x32x8xbf16>
    %272 = vector.shape_cast %271 : vector<8x32x8xbf16> to vector<256x8xbf16>
    %c8_196 = arith.constant 8 : index
    %c0_197 = arith.constant 0 : index
    %c0_198 = arith.constant 0 : index
    %273 = vector.load %arg2[%c8_196, %c0_197, %c0_198] : memref<9x8x128xbf16, #tpu.memory_space<vmem>>, vector<1x8x128xbf16>
    %274 = vector.shape_cast %273 : vector<1x8x128xbf16> to vector<8x128xbf16>
    %cst_199 = arith.constant dense<0.000000e+00> : vector<256x128xf32>
    %275 = tpu.matmul %272, %274, %cst_199 {dimension_numbers = #tpu.dot_dimension_numbers<[1], [0], [0], [1], [0, 0, 1, 1], [], []>} : vector<256x8xbf16>, vector<8x128xbf16>, vector<256x128xf32> -> vector<256x128xf32>
    %276 = arith.addf %270, %275 : vector<256x128xf32>
    %c0_200 = arith.constant 0 : index
    %c0_201 = arith.constant 0 : index
    %277 = vector.load %arg3[%c0_200, %c0_201] : memref<1x128xf32, #tpu.memory_space<vmem>>, vector<1x128xf32>
    %278 = vector.broadcast %277 : vector<1x128xf32> to vector<256x128xf32>
    %279 = arith.mulf %276, %278 : vector<256x128xf32>
    %c0_202 = arith.constant 0 : index
    %c0_203 = arith.constant 0 : index
    %280 = vector.load %arg4[%c0_202, %c0_203] : memref<1x128xf32, #tpu.memory_space<vmem>>, vector<1x128xf32>
    %281 = vector.broadcast %280 : vector<1x128xf32> to vector<256x128xf32>
    %282 = arith.addf %279, %281 : vector<256x128xf32>
    %cst_204 = arith.constant 0.000000e+00 : f32
    %283 = vector.broadcast %cst_204 : f32 to vector<256x128xf32>
    %284 = arith.maximumf %282, %283 : vector<256x128xf32>
    %285 = vector.shape_cast %284 : vector<256x128xf32> to vector<8x32x128xf32>
    %c0_205 = arith.constant 0 : index
    %c24_206 = arith.constant 24 : index
    %c0_207 = arith.constant 0 : index
    %c0_208 = arith.constant 0 : index
    %286 = vector.load %arg5[%c0_205, %c24_206, %c0_207, %c0_208] : memref<1x32x32x128xf32, #tpu.memory_space<vmem>>, vector<1x8x32x128xf32>
    %287 = vector.shape_cast %286 : vector<1x8x32x128xf32> to vector<8x32x128xf32>
    %288 = vector.shape_cast %285 : vector<8x32x128xf32> to vector<1x8x32x128xf32>
    tpu.vector_store %arg5[%c0_205, %c24_206, %c0_207, %c0_208], %288 {strides = array<i32>} : memref<1x32x32x128xf32, #tpu.memory_space<vmem>>, vector<1x8x32x128xf32>,
    return
  }
  func.func @transform_0(%arg0: i32) -> (i32, i32, i32, i32) {
    %c0_i32 = arith.constant 0 : i32
    %c0_i32_0 = arith.constant 0 : i32
    %c0_i32_1 = arith.constant 0 : i32
    %c0_i32_2 = arith.constant 0 : i32
    return %arg0, %c0_i32, %c0_i32_0, %c0_i32_1 : i32, i32, i32, i32
  }
  func.func @transform_1(%arg0: i32) -> (i32, i32, i32) {
    %c0_i32 = arith.constant 0 : i32
    %c0_i32_0 = arith.constant 0 : i32
    %c0_i32_1 = arith.constant 0 : i32
    %c0_i32_2 = arith.constant 0 : i32
    return %c0_i32, %c0_i32_0, %c0_i32_1 : i32, i32, i32
  }
  func.func @transform_2(%arg0: i32) -> (i32, i32) {
    %c0_i32 = arith.constant 0 : i32
    %c0_i32_0 = arith.constant 0 : i32
    %c0_i32_1 = arith.constant 0 : i32
    return %c0_i32, %c0_i32_0 : i32, i32
  }
  func.func @transform_3(%arg0: i32) -> (i32, i32) {
    %c0_i32 = arith.constant 0 : i32
    %c0_i32_0 = arith.constant 0 : i32
    %c0_i32_1 = arith.constant 0 : i32
    return %c0_i32, %c0_i32_0 : i32, i32
  }
  func.func @transform_4(%arg0: i32) -> (i32, i32, i32, i32) {
    %c0_i32 = arith.constant 0 : i32
    %c0_i32_0 = arith.constant 0 : i32
    %c0_i32_1 = arith.constant 0 : i32
    %c0_i32_2 = arith.constant 0 : i32
    return %arg0, %c0_i32, %c0_i32_0, %c0_i32_1 : i32, i32, i32, i32
  }
}

</mosaic_0001>

<bundles_post_ra>
// kernel: tpu_custom_call.1
= control target key start
LH: loop header
LB: loop body
LE: loop exit
PB: predicated region body
PF: predicated region fallthrough
CT: control target
= control target key end

     0   :  { %9 = vsyncpa [#allocation4], 0  ;;  %s20949_s0 = inlined_call_operand.vmem [shape: f32[2,32,32,8], index: 0, kind: input, shape index: {}]   ;;  %s20950_s1 = inlined_call_operand.vmem [shape: bf16[9,8,128], index: 1, kind: input, shape index: {}]   ;;  %s20951_s2 = inlined_call_operand.vmem [shape: f32[1,128], index: 2, kind: input, shape index: {}]   ;;  %s20952_s3 = inlined_call_operand.vmem [shape: f32[1,128], index: 3, kind: input, shape index: {}]   ;;  %s20953_s4 = inlined_call_operand.hbm [shape: f32[2,32,32,128], index: 4, kind: output, shape index: {}]  }
   0x1   :  { %11 = vsyncpa [#allocation4 + $0x1], 0  ;;  %s16879_s15 = smov 0   ;;  %s16881_s16 = smov 0  }
   0x2   :  { %s16883_s17 = smov 0   ;;  %s16885_s18 = smov 0  }
   0x3 LB: > { %s16900_s19 = sadd.s32 4294967295, %s16848_s18   ;;  %s13122_s20 = sadd.s32 4294967294, %s16848_s18   ;;  %s16848_s18 = sphi %s16885_s18, %s21207_s18   ;;  %s16844_s17 = sphi %s16883_s17, %s21206_s17   ;;  %s16840_s16 = sphi %s16881_s16, %s21205_s16   ;;  %s16836_s15 = sphi %s16879_s15, %s21204_s15  }
   0x4   : > { %s16904_s21 = sadd.s32 1, %s16848_s18   ;;  %s113_s22 = sadd.s32 1, %s16844_s17 }
   0x5   : > { %s110_s23 = ssub.s32 %s16848_s18, %s16904_s21  ;;  %p123_p0 = scmp.ne.s32.totalorder %s16844_s17, %s16840_s16 }
   0x6   : > { %p111_p1 = scmp.eq.s32.totalorder %s110_s23, 0  ;;  %p124_p2 = scmp.eq.s32.totalorder %s16900_s19, 1 }
   0x7   : > { %p129_p3 = scmp.ne.s32.totalorder %s16840_s16, %s16836_s15  ;;  %p130_p4 = scmp.eq.s32.totalorder %s13122_s20, 1 }
   0x8   : > { %s16915_s24 = scalar_select %p111_p1, %s16844_s17, %s113_s22  }
   0x9   : > { %p16917_p5 = por %p124_p2, %p123_p0  ;;  %p16921_p6 = por %p130_p4, %p129_p3 }
   0xa   : > { %p13125_p7 = scmp.ge.s32.totalorder %s16848_s18, 1  ;;  %p165_p8 = scmp.lt.s32.totalorder %s16848_s18, 3 }
   0xc   : > { %p166_p9 = pnand %p13125_p7, %p165_p8 }
   0xe   : > { %169 = sbr.rel (%p166_p9) target bundleno = 1505 (0x5e1), region = 36 }
  0x15   : > { %v13129_v0 = vld [vmem:[%s20950_s1 + $0x4] sm:$0xf]  ;;  %vm902_vm0 = vcmask 1043456   ;;  %vm197_vm1 = vcmask 64512   ;;  %vm202_vm2 = vcmask 58368   ;;  %v16850_v2 = vmov 0.0  }
  0x16   : > { %16708 = vmatprep.subr.msk.bf16.mxu0 %vm902_vm0, %v13129_v0  ;;  %v16932_v1 = vsel %vm902_vm0, %v13129_v0, 0  ;;  %198 = vst.msk [vmem:[#allocation2] sm:$0xff] %vm197_vm1, %v16850_v2  ;;  %199 = vst.msk [vmem:[#allocation2 + $0x8] sm:$0xff] %vm197_vm1, %v16850_v2  ;;  %v13283_v3 = vld [vmem:[%s20950_s1 + $0x4] sm:$0xf]  ;;  %p191_p10 = scmp.lt.s32.totalorder %s16900_s19, 1 }
  0x17   : > { %200 = vst.msk [vmem:[#allocation2 + $0x10] sm:$0xff] %vm197_vm1, %v16850_v2  ;;  %201 = vst.msk [vmem:[#allocation2 + $0x18] sm:$0xff] %vm197_vm1, %v16850_v2  ;;  %14461 = vmatpush3.bf16.msra.mxu0 %v16932_v1  ;;  %16717 = vmatprep.subr.msk.bf16.mxu1 %vm902_vm0, %v13283_v3  ;;  %v4013_v4 = vsel %vm902_vm0, %v13283_v3, 0  ;;  %v17284_v5 = vld [vmem:[%s20950_s1] sm:$0xf]  ;;  %vm1287_vm4 = vcmask 1046528  }
  0x18   : > { %204 = vst.msk [vmem:[#allocation2 + $0x28] sm:$0xff] %vm197_vm1, %v16850_v2  ;;  %205 = vst.msk [vmem:[#allocation2 + $0x30] sm:$0xff] %vm197_vm1, %v16850_v2  ;;  %v17289_v6 = vld [vmem:[%s20950_s1] sm:$0xf]  ;;  %14767 = vmatpush3.bf16.msra.mxu1 %v4013_v4  ;;  %16709 = vmatprep.subr.msk.bf16.mxu0 %vm902_vm0, %v17284_v5  ;;  %s192_s9 = scalar_select %p191_p10, %s16900_s19, 1  ;;  %v1100_v53 = vsel %vm902_vm0, %v17284_v5, 0 }
  0x19   : > { %206 = vst.msk [vmem:[#allocation2 + $0x38] sm:$0xff] %vm197_vm1, %v16850_v2  ;;  %207 = vst.msk [vmem:[#allocation2 + $0x40] sm:$0xff] %vm197_vm1, %v16850_v2  ;;  %16718 = vmatprep.subr.msk.bf16.mxu1 %vm902_vm0, %v17289_v6  ;;  %vm691_vm3 = vsmask.f32 7424  ;;  %v17356_v50 = vld [vmem:[%s20950_s1 + $0x8] sm:$0xf] }
  0x1a   : > { %209 = vst.msk [vmem:[#allocation2 + $0x50] sm:$0xff] %vm197_vm1, %v16850_v2  ;;  %210 = vst.msk [vmem:[#allocation2 + $0x58] sm:$0xff] %vm197_vm1, %v16850_v2  ;;  %s13846_s10 = sshll.u32 %s192_s9, 10  ;;  %s188_s12 = sand.u32 1, %s16840_s16  }
  0x1b   : > { %211 = vst.msk [vmem:[#allocation2 + $0x60] sm:$0xff] %vm197_vm1, %v16850_v2  ;;  %212 = vst.msk [vmem:[#allocation2 + $0x68] sm:$0xff] %vm197_vm1, %v16850_v2  ;;  %s17299_s13 = scalar_lea.vmem %s20949_s0, %s13846_s10  ;;  %s19454_s27 = sshll.u32 %s188_s12, 10 }
  0x1c   : > { %214 = vst.msk [vmem:[#allocation2 + $0x78] sm:$0xff] %vm197_vm1, %v16850_v2  ;;  %215 = vst.msk [vmem:[#allocation2 + $0x80] sm:$0xff] %vm197_vm1, %v16850_v2  ;;  %v397_v7 = vld [vmem:[%s17299_s13 + $0xe0] sm:$0xff]  ;;  %v398_v8 = vld [vmem:[%s17299_s13 + $0xe8] sm:$0xff]  ;;  %s19484_s28 = scalar_lea.vmem [#allocation3], %s19454_s27  ;;  %s13847_s8 = sshll.u32 %s16900_s19, 14 }
  0x1d   : > { %216 = vst.msk [vmem:[#allocation2 + $0x88] sm:$0xff] %vm197_vm1, %v16850_v2  ;;  %217 = vst.msk [vmem:[#allocation2 + $0x90] sm:$0xff] %vm197_vm1, %v16850_v2  ;;  %v399_v9 = vld [vmem:[%s17299_s13 + $0xf0] sm:$0xff]  ;;  %v626_v10 = vld [vmem:[#allocation2] sm:$0xff]  ;;  %s20899_s11 = scalar_lea.hbm %s20953_s4, %s13847_s8  ;;  %s20908_s19 = scalar_lea.sflag [#allocation4], %s188_s12 }
  0x1e   : > { %219 = vst.msk [vmem:[#allocation2 + $0xa0] sm:$0xff] %vm197_vm1, %v16850_v2  ;;  %220 = vst.msk [vmem:[#allocation2 + $0xa8] sm:$0xff] %vm197_vm1, %v16850_v2  ;;  %v627_v11 = vld [vmem:[#allocation2 + $0x8] sm:$0xff]  ;;  %v628_v12 = vld [vmem:[#allocation2 + $0x10] sm:$0xff]  ;;  %s16851_s20 = smov [#allocation3]  }
  0x1f   : > { %221 = vst.msk [vmem:[#allocation2 + $0xb0] sm:$0xff] %vm197_vm1, %v16850_v2  ;;  %222 = vst.msk [vmem:[#allocation2 + $0xb8] sm:$0xff] %vm197_vm1, %v16850_v2  ;;  %v629_v13 = vld [vmem:[#allocation2 + $0x18] sm:$0xff]  ;;  %v17307_v14 = vpack.c.bf16 %v627_v11, %v626_v10  ;;  %v369_v19 = vld [vmem:[%s17299_s13] sm:$0xff]  ;;  %v4209_v11 = vsel %vm902_vm0, %v17289_v6, 0  ;;  %s16790_s22 = sshll.u32 %s16851_s20, 4  ;;  %s16791_s22 = int_to_ptr.vmem [resolvable:$false] %s16790_s22 }
  0x20   : > { %224 = vst.msk [vmem:[#allocation2 + $0xc8] sm:$0xff] %vm197_vm1, %v16850_v2  ;;  %225 = vst.msk [vmem:[#allocation2 + $0xd0] sm:$0xff] %vm197_vm1, %v16850_v2  ;;  %v400_v16 = vld [vmem:[%s17299_s13 + $0xf8] sm:$0xff]  ;;  %v17310_v17 = vpack.c.bf16 %v629_v13, %v628_v12  ;;  %v370_v20 = vld [vmem:[%s17299_s13 + $0x8] sm:$0xff]  ;;  %s16792_s23 = scalar_lea.vmem %s16791_s22, 32768 }
  0x21   : > { %226 = vst.msk [vmem:[#allocation2 + $0xd8] sm:$0xff] %vm197_vm1, %v16850_v2  ;;  %227 = vst.msk [vmem:[#allocation2 + $0xe0] sm:$0xff] %vm197_vm1, %v16850_v2  ;;  %v371_v21 = vld [vmem:[%s17299_s13 + $0x10] sm:$0xff]  ;;  %v693_v22 = vshrl.u32 %v17307_v14, 16  ;;  %v695_v23 = vshll.u32 %v17307_v14, 16  ;;  %v372_v24 = vld [vmem:[%s17299_s13 + $0x18] sm:$0xff] }
  0x22   : > { %229 = vst.msk [vmem:[#allocation2 + $0xf0] sm:$0xff] %vm197_vm1, %v16850_v2  ;;  %230 = vst.msk [vmem:[#allocation2 + $0xf8] sm:$0xff] %vm197_vm1, %v16850_v2  ;;  %v401_v25 = vld [vmem:[%s17299_s13 + $0x100] sm:$0xff]  ;;  %v402_v26 = vld [vmem:[%s17299_s13 + $0x108] sm:$0xff]  ;;  %v700_v27 = vshll.u32 %v17310_v17, 16  ;;  %v704_v28 = vshrl.u32 %v17310_v17, 16 }
  0x23   : > { %231 = vst.msk [vmem:[#allocation2 + $0x100] sm:$0xff] %vm197_vm1, %v16850_v2  ;;  %232 = vst.msk [vmem:[#allocation2 + $0x108] sm:$0xff] %vm197_vm1, %v16850_v2  ;;  %v403_v30 = vld [vmem:[%s17299_s13 + $0x110] sm:$0xff]  ;;  %v404_v31 = vld [vmem:[%s17299_s13 + $0x118] sm:$0xff]  ;;  %v697_v32 = vrot.slane %v695_v23, 1 }
  0x24   : > { %234 = vst.msk [vmem:[#allocation2 + $0x118] sm:$0xff] %vm197_vm1, %v16850_v2  ;;  %235 = vst.msk [vmem:[#allocation2 + $0x120] sm:$0xff] %vm197_vm1, %v16850_v2  ;;  %v373_v33 = vld [vmem:[%s17299_s13 + $0x20] sm:$0xff]  ;;  %v374_v34 = vld [vmem:[%s17299_s13 + $0x28] sm:$0xff]  ;;  %v702_v36 = vrot.slane %v700_v27, 1 }
  0x25   : > { %236 = vst.msk [vmem:[#allocation2 + $0x128] sm:$0xff] %vm197_vm1, %v16850_v2  ;;  %237 = vst.msk [vmem:[#allocation2 + $0x130] sm:$0xff] %vm197_vm1, %v16850_v2  ;;  %v375_v35 = vld [vmem:[%s17299_s13 + $0x30] sm:$0xff]  ;;  %v376_v38 = vld [vmem:[%s17299_s13 + $0x38] sm:$0xff]  ;;  %v698_v41 = vor.u32 %v697_v32, %v693_v22 }
  0x26   : > { %239 = vst.msk [vmem:[#allocation2 + $0x140] sm:$0xff] %vm197_vm1, %v16850_v2  ;;  %240 = vst.msk [vmem:[#allocation2 + $0x148] sm:$0xff] %vm197_vm1, %v16850_v2  ;;  %v405_v39 = vld [vmem:[%s17299_s13 + $0x120] sm:$0xff]  ;;  %v406_v40 = vld [vmem:[%s17299_s13 + $0x128] sm:$0xff]  ;;  %v706_v45 = vor.u32 %v704_v28, %v702_v36 }
  0x27   : > { %241 = vst.msk [vmem:[#allocation2 + $0x150] sm:$0xff] %vm197_vm1, %v16850_v2  ;;  %242 = vst.msk [vmem:[#allocation2 + $0x158] sm:$0xff] %vm197_vm1, %v16850_v2  ;;  %v407_v47 = vld [vmem:[%s17299_s13 + $0x130] sm:$0xff]  ;;  %v408_v48 = vld [vmem:[%s17299_s13 + $0x138] sm:$0xff]  ;;  %v703_v51 = vsel %vm691_vm3, %v698_v41, %v702_v36 }
  0x28   : > { %244 = vst.msk [vmem:[#allocation2 + $0x168] sm:$0xff] %vm197_vm1, %v16850_v2  ;;  %245 = vst.msk [vmem:[#allocation2 + $0x170] sm:$0xff] %vm197_vm1, %v16850_v2  ;;  %v377_v49 = vld [vmem:[%s17299_s13 + $0x40] sm:$0xff]  ;;  %v378_v55 = vld [vmem:[%s17299_s13 + $0x48] sm:$0xff]  ;;  %14462 = vmatprep.mubr.msk.bf16.mxu0 %vm197_vm1, %v703_v51 }
  0x29   : > { %246 = vst.msk [vmem:[#allocation2 + $0x178] sm:$0xff] %vm197_vm1, %v16850_v2  ;;  %247 = vst.msk [vmem:[#allocation2 + $0x180] sm:$0xff] %vm197_vm1, %v16850_v2  ;;  %v379_v41 = vld [vmem:[%s17299_s13 + $0x50] sm:$0xff] }
  0x2a   : > { %249 = vst.msk [vmem:[#allocation2 + $0x190] sm:$0xff] %vm197_vm1, %v16850_v2  ;;  %250 = vst.msk [vmem:[#allocation2 + $0x198] sm:$0xff] %vm197_vm1, %v16850_v2 }
  0x2b   : > { %251 = vst.msk [vmem:[#allocation2 + $0x1a0] sm:$0xff] %vm197_vm1, %v16850_v2  ;;  %252 = vst.msk [vmem:[#allocation2 + $0x1a8] sm:$0xff] %vm197_vm1, %v16850_v2 }
  0x2c   : > { %254 = vst.msk [vmem:[#allocation2 + $0x1b8] sm:$0xff] %vm197_vm1, %v16850_v2  ;;  %255 = vst.msk [vmem:[#allocation2 + $0x1c0] sm:$0xff] %vm197_vm1, %v16850_v2 }
  0x2d   : > { %256 = vst.msk [vmem:[#allocation2 + $0x1c8] sm:$0xff] %vm197_vm1, %v16850_v2  ;;  %257 = vst.msk [vmem:[#allocation2 + $0x1d0] sm:$0xff] %vm197_vm1, %v16850_v2 }
  0x2e   : > { %259 = vst.msk [vmem:[#allocation2 + $0x1e0] sm:$0xff] %vm197_vm1, %v16850_v2  ;;  %260 = vst.msk [vmem:[#allocation2 + $0x1e8] sm:$0xff] %vm197_vm1, %v16850_v2 }
  0x2f   : > { %261 = vst.msk [vmem:[#allocation2 + $0x1f0] sm:$0xff] %vm197_vm1, %v16850_v2  ;;  %262 = vst.msk [vmem:[#allocation2 + $0x1f8] sm:$0xff] %vm197_vm1, %v16850_v2 }
  0x30   : > { %264 = vst.msk [vmem:[#allocation2 + $0x208] sm:$0xff] %vm197_vm1, %v16850_v2  ;;  %265 = vst.msk [vmem:[#allocation2 + $0x210] sm:$0xff] %vm197_vm1, %v16850_v2 }
  0x31   : > { %266 = vst.msk [vmem:[#allocation2 + $0x218] sm:$0xff] %vm197_vm1, %v16850_v2  ;;  %267 = vst.msk [vmem:[#allocation2 + $0x220] sm:$0xff] %vm197_vm1, %v16850_v2 }
  0x32   : > { %269 = vst.msk [vmem:[#allocation2 + $0x230] sm:$0xff] %vm197_vm1, %v16850_v2  ;;  %270 = vst.msk [vmem:[#allocation2 + $0x238] sm:$0xff] %vm197_vm1, %v16850_v2 }
  0x33   : > { %271 = vst.msk [vmem:[#allocation2 + $0x240] sm:$0xff] %vm197_vm1, %v16850_v2  ;;  %272 = vst.msk [vmem:[#allocation2 + $0x248] sm:$0xff] %vm197_vm1, %v16850_v2 }
  0x34   : > { %274 = vst.msk [vmem:[#allocation2 + $0x258] sm:$0xff] %vm197_vm1, %v16850_v2  ;;  %275 = vst.msk [vmem:[#allocation2 + $0x260] sm:$0xff] %vm197_vm1, %v16850_v2 }
  0x35   : > { %276 = vst.msk [vmem:[#allocation2 + $0x268] sm:$0xff] %vm197_vm1, %v16850_v2  ;;  %277 = vst.msk [vmem:[#allocation2 + $0x270] sm:$0xff] %vm197_vm1, %v16850_v2 }
  0x36   : > { %279 = vst.msk [vmem:[#allocation2 + $0x280] sm:$0xff] %vm197_vm1, %v16850_v2  ;;  %280 = vst.msk [vmem:[#allocation2 + $0x288] sm:$0xff] %vm197_vm1, %v16850_v2 }
  0x37   : > { %281 = vst.msk [vmem:[#allocation2 + $0x290] sm:$0xff] %vm197_vm1, %v16850_v2  ;;  %282 = vst.msk [vmem:[#allocation2 + $0x298] sm:$0xff] %vm197_vm1, %v16850_v2 }
  0x38   : > { %284 = vst.msk [vmem:[#allocation2 + $0x2a8] sm:$0xff] %vm197_vm1, %v16850_v2  ;;  %285 = vst.msk [vmem:[#allocation2 + $0x2b0] sm:$0xff] %vm197_vm1, %v16850_v2 }
  0x39   : > { %286 = vst.msk [vmem:[#allocation2 + $0x2b8] sm:$0xff] %vm197_vm1, %v16850_v2  ;;  %287 = vst.msk [vmem:[#allocation2 + $0x2c0] sm:$0xff] %vm197_vm1, %v16850_v2 }
  0x3a   : > { %289 = vst.msk [vmem:[#allocation2 + $0x2d0] sm:$0xff] %vm197_vm1, %v16850_v2  ;;  %290 = vst.msk [vmem:[#allocation2 + $0x2d8] sm:$0xff] %vm197_vm1, %v16850_v2 }
  0x3b   : > { %291 = vst.msk [vmem:[#allocation2 + $0x2e0] sm:$0xff] %vm197_vm1, %v16850_v2  ;;  %292 = vst.msk [vmem:[#allocation2 + $0x2e8] sm:$0xff] %vm197_vm1, %v16850_v2 }
  0x3c   : > { %294 = vst.msk [vmem:[#allocation2 + $0x2f8] sm:$0xff] %vm197_vm1, %v16850_v2  ;;  %295 = vst.msk [vmem:[#allocation2 + $0x300] sm:$0xff] %vm197_vm1, %v16850_v2 }
  0x3d   : > { %296 = vst.msk [vmem:[#allocation2 + $0x308] sm:$0xff] %vm197_vm1, %v16850_v2  ;;  %297 = vst.msk [vmem:[#allocation2 + $0x310] sm:$0xff] %vm197_vm1, %v16850_v2 }
  0x3e   : > { %299 = vst.msk [vmem:[#allocation2 + $0x320] sm:$0xff] %vm197_vm1, %v16850_v2  ;;  %300 = vst.msk [vmem:[#allocation2 + $0x328] sm:$0xff] %vm197_vm1, %v16850_v2 }
  0x3f   : > { %301 = vst.msk [vmem:[#allocation2 + $0x330] sm:$0xff] %vm197_vm1, %v16850_v2  ;;  %302 = vst.msk [vmem:[#allocation2 + $0x338] sm:$0xff] %vm197_vm1, %v16850_v2 }
  0x40   : > { %304 = vst.msk [vmem:[#allocation2 + $0x348] sm:$0xff] %vm197_vm1, %v16850_v2  ;;  %305 = vst.msk [vmem:[#allocation2 + $0x350] sm:$0xff] %vm197_vm1, %v16850_v2 }
  0x41   : > { %306 = vst.msk [vmem:[#allocation2 + $0x358] sm:$0xff] %vm197_vm1, %v16850_v2  ;;  %307 = vst.msk [vmem:[#allocation2 + $0x360] sm:$0xff] %vm197_vm1, %v16850_v2 }
  0x42   : > { %309 = vst.msk [vmem:[#allocation2 + $0x370] sm:$0xff] %vm197_vm1, %v16850_v2  ;;  %310 = vst.msk [vmem:[#allocation2 + $0x378] sm:$0xff] %vm197_vm1, %v16850_v2 }
  0x43   : > { %311 = vst.msk [vmem:[#allocation2 + $0x380] sm:$0xff] %vm197_vm1, %v16850_v2  ;;  %312 = vst.msk [vmem:[#allocation2 + $0x388] sm:$0xff] %vm197_vm1, %v16850_v2 }
  0x44   : > { %314 = vst.msk [vmem:[#allocation2 + $0x398] sm:$0xff] %vm197_vm1, %v16850_v2  ;;  %315 = vst.msk [vmem:[#allocation2 + $0x3a0] sm:$0xff] %vm197_vm1, %v16850_v2 }
  0x45   : > { %316 = vst.msk [vmem:[#allocation2 + $0x3a8] sm:$0xff] %vm197_vm1, %v16850_v2  ;;  %317 = vst.msk [vmem:[#allocation2 + $0x3b0] sm:$0xff] %vm197_vm1, %v16850_v2 }
  0x46   : > { %319 = vst.msk [vmem:[#allocation2 + $0x3c0] sm:$0xff] %vm197_vm1, %v16850_v2  ;;  %320 = vst.msk [vmem:[#allocation2 + $0x3c8] sm:$0xff] %vm197_vm1, %v16850_v2 }
  0x47   : > { %321 = vst.msk [vmem:[#allocation2 + $0x3d0] sm:$0xff] %vm197_vm1, %v16850_v2  ;;  %322 = vst.msk [vmem:[#allocation2 + $0x3d8] sm:$0xff] %vm197_vm1, %v16850_v2 }
  0x48   : > { %324 = vst.msk [vmem:[#allocation2 + $0x3e8] sm:$0xff] %vm197_vm1, %v16850_v2  ;;  %325 = vst.msk [vmem:[#allocation2 + $0x3f0] sm:$0xff] %vm197_vm1, %v16850_v2 }
  0x49   : > { %326 = vst.msk [vmem:[#allocation2 + $0x3f8] sm:$0xff] %vm197_vm1, %v16850_v2  ;;  %327 = vst.msk [vmem:[#allocation2 + $0x400] sm:$0xff] %vm197_vm1, %v16850_v2 }
  0x4a   : > { %329 = vst.msk [vmem:[#allocation2 + $0x410] sm:$0xff] %vm197_vm1, %v16850_v2  ;;  %330 = vst.msk [vmem:[#allocation2 + $0x418] sm:$0xff] %vm197_vm1, %v16850_v2 }
  0x4b   : > { %331 = vst.msk [vmem:[#allocation2 + $0x420] sm:$0xff] %vm197_vm1, %v16850_v2  ;;  %332 = vst.msk [vmem:[#allocation2 + $0x428] sm:$0xff] %vm197_vm1, %v16850_v2 }
  0x4c   : > { %334 = vst.msk [vmem:[#allocation2 + $0x438] sm:$0xff] %vm197_vm1, %v16850_v2  ;;  %335 = vst.msk [vmem:[#allocation2 + $0x440] sm:$0xff] %vm197_vm1, %v16850_v2 }
  0x4d   : > { %336 = vst.msk [vmem:[#allocation2 + $0x448] sm:$0xff] %vm197_vm1, %v16850_v2  ;;  %337 = vst.msk [vmem:[#allocation2 + $0x450] sm:$0xff] %vm197_vm1, %v16850_v2 }
  0x4e   : > { %339 = vst.msk [vmem:[#allocation2 + $0x460] sm:$0xff] %vm197_vm1, %v16850_v2  ;;  %340 = vst.msk [vmem:[#allocation2 + $0x468] sm:$0xff] %vm197_vm1, %v16850_v2 }
  0x4f   : > { %341 = vst.msk [vmem:[#allocation2 + $0x470] sm:$0xff] %vm197_vm1, %v16850_v2  ;;  %342 = vst.msk [vmem:[#allocation2 + $0x478] sm:$0xff] %vm197_vm1, %v16850_v2 }
  0x50   : > { %344 = vst.msk [vmem:[#allocation2 + $0x488] sm:$0xff] %vm197_vm1, %v16850_v2  ;;  %345 = vst.msk [vmem:[#allocation2 + $0x490] sm:$0xff] %vm197_vm1, %v16850_v2 }
  0x51   : > { %346 = vst.msk [vmem:[#allocation2 + $0x498] sm:$0xff] %vm197_vm1, %v16850_v2  ;;  %347 = vst.msk [vmem:[#allocation2 + $0x4a0] sm:$0xff] %vm197_vm1, %v16850_v2 }
  0x52   : > { %349 = vst.msk [vmem:[#allocation2 + $0x4b0] sm:$0xff] %vm197_vm1, %v16850_v2  ;;  %350 = vst.msk [vmem:[#allocation2 + $0x4b8] sm:$0xff] %vm197_vm1, %v16850_v2 }
  0x53   : > { %351 = vst.msk [vmem:[#allocation2 + $0x4c0] sm:$0xff] %vm197_vm1, %v16850_v2  ;;  %352 = vst.msk [vmem:[#allocation2 + $0x4c8] sm:$0xff] %vm197_vm1, %v16850_v2 }
  0x54   : > { %354 = vst.msk [vmem:[#allocation2 + $0x4d8] sm:$0xff] %vm197_vm1, %v16850_v2  ;;  %355 = vst.msk [vmem:[#allocation2 + $0x4e0] sm:$0xff] %vm197_vm1, %v16850_v2 }
  0x55   : > { %356 = vst.msk [vmem:[#allocation2 + $0x4e8] sm:$0xff] %vm197_vm1, %v16850_v2  ;;  %357 = vst.msk [vmem:[#allocation2 + $0x4f0] sm:$0xff] %vm197_vm1, %v16850_v2 }
  0x56   : > { %359 = vst.msk [vmem:[#allocation2 + $0x500] sm:$0xff] %vm197_vm1, %v16850_v2  ;;  %360 = vst.msk [vmem:[#allocation2 + $0x508] sm:$0xff] %vm197_vm1, %v16850_v2 }
  0x57   : > { %361 = vst.msk [vmem:[#allocation2 + $0x510] sm:$0xff] %vm197_vm1, %v16850_v2  ;;  %362 = vst.msk [vmem:[#allocation2 + $0x518] sm:$0xff] %vm197_vm1, %v16850_v2 }
  0x58   : > { %364 = vst.msk [vmem:[#allocation2 + $0x528] sm:$0xff] %vm197_vm1, %v16850_v2  ;;  %365 = vst.msk [vmem:[#allocation2 + $0x530] sm:$0xff] %vm197_vm1, %v16850_v2 }
  0x59   : > { %366 = vst.msk [vmem:[#allocation2 + $0x538] sm:$0xff] %vm197_vm1, %v16850_v2  ;;  %367 = vst.msk [vmem:[#allocation2 + $0x540] sm:$0xff] %vm197_vm1, %v16850_v2 }
  0x5a   : > { %203 = vst.msk [vmem:[#allocation2 + $0x20] sm:$0x3] %vm202_vm2, %v16850_v2  ;;  %208 = vst.msk [vmem:[#allocation2 + $0x48] sm:$0x3] %vm202_vm2, %v16850_v2 }
  0x5b   : > { %213 = vst.msk [vmem:[#allocation2 + $0x70] sm:$0x3] %vm202_vm2, %v16850_v2  ;;  %218 = vst.msk [vmem:[#allocation2 + $0x98] sm:$0x3] %vm202_vm2, %v16850_v2 }
  0x5c   : > { %223 = vst.msk [vmem:[#allocation2 + $0xc0] sm:$0x3] %vm202_vm2, %v16850_v2  ;;  %228 = vst.msk [vmem:[#allocation2 + $0xe8] sm:$0x3] %vm202_vm2, %v16850_v2 }
  0x5d   : > { %233 = vst.msk [vmem:[#allocation2 + $0x110] sm:$0x3] %vm202_vm2, %v16850_v2  ;;  %238 = vst.msk [vmem:[#allocation2 + $0x138] sm:$0x3] %vm202_vm2, %v16850_v2 }
  0x5e   : > { %243 = vst.msk [vmem:[#allocation2 + $0x160] sm:$0x3] %vm202_vm2, %v16850_v2  ;;  %248 = vst.msk [vmem:[#allocation2 + $0x188] sm:$0x3] %vm202_vm2, %v16850_v2 }
  0x5f   : > { %253 = vst.msk [vmem:[#allocation2 + $0x1b0] sm:$0x3] %vm202_vm2, %v16850_v2  ;;  %258 = vst.msk [vmem:[#allocation2 + $0x1d8] sm:$0x3] %vm202_vm2, %v16850_v2 }
  0x60   : > { %263 = vst.msk [vmem:[#allocation2 + $0x200] sm:$0x3] %vm202_vm2, %v16850_v2  ;;  %268 = vst.msk [vmem:[#allocation2 + $0x228] sm:$0x3] %vm202_vm2, %v16850_v2 }
  0x61   : > { %273 = vst.msk [vmem:[#allocation2 + $0x250] sm:$0x3] %vm202_vm2, %v16850_v2  ;;  %278 = vst.msk [vmem:[#allocation2 + $0x278] sm:$0x3] %vm202_vm2, %v16850_v2  ;;  %v630_v15 = vld [vmem:[#allocation2 + $0x20] sm:$0x3] }
  0x62   : > { %283 = vst.msk [vmem:[#allocation2 + $0x2a0] sm:$0x3] %vm202_vm2, %v16850_v2  ;;  %288 = vst.msk [vmem:[#allocation2 + $0x2c8] sm:$0x3] %vm202_vm2, %v16850_v2  ;;  %v17312_v18 = vpack.c.bf16 %v630_v15, %v630_v15 }
  0x63   : > { %293 = vst.msk [vmem:[#allocation2 + $0x2f0] sm:$0x3] %vm202_vm2, %v16850_v2  ;;  %298 = vst.msk [vmem:[#allocation2 + $0x318] sm:$0x3] %vm202_vm2, %v16850_v2 }
  0x64   : > { %303 = vst.msk [vmem:[#allocation2 + $0x340] sm:$0x3] %vm202_vm2, %v16850_v2  ;;  %308 = vst.msk [vmem:[#allocation2 + $0x368] sm:$0x3] %vm202_vm2, %v16850_v2  ;;  %v708_v29 = vshll.u32 %v17312_v18, 16 }
  0x65   : > { %313 = vst.msk [vmem:[#allocation2 + $0x390] sm:$0x3] %vm202_vm2, %v16850_v2  ;;  %318 = vst.msk [vmem:[#allocation2 + $0x3b8] sm:$0x3] %vm202_vm2, %v16850_v2 }
  0x66   : > { %323 = vst.msk [vmem:[#allocation2 + $0x3e0] sm:$0x3] %vm202_vm2, %v16850_v2  ;;  %328 = vst.msk [vmem:[#allocation2 + $0x408] sm:$0x3] %vm202_vm2, %v16850_v2  ;;  %v710_v37 = vrot.slane %v708_v29, 1 }
  0x67   : > { %333 = vst.msk [vmem:[#allocation2 + $0x430] sm:$0x3] %vm202_vm2, %v16850_v2  ;;  %338 = vst.msk [vmem:[#allocation2 + $0x458] sm:$0x3] %vm202_vm2, %v16850_v2 }
  0x68   : > { %343 = vst.msk [vmem:[#allocation2 + $0x480] sm:$0x3] %vm202_vm2, %v16850_v2  ;;  %348 = vst.msk [vmem:[#allocation2 + $0x4a8] sm:$0x3] %vm202_vm2, %v16850_v2  ;;  %v711_v56 = vsel %vm691_vm3, %v706_v45, %v710_v37 }
  0x69   : > { %353 = vst.msk [vmem:[#allocation2 + $0x4d0] sm:$0x3] %vm202_vm2, %v16850_v2  ;;  %358 = vst.msk [vmem:[#allocation2 + $0x4f8] sm:$0x3] %vm202_vm2, %v16850_v2  ;;  %14463 = vmatmul.mubr.msk.bf16.vlgmr.msra.gmra.mrb[0].mxu0 %vm197_vm1, %v711_v56 }
  0x6a   : > { %363 = vst.msk [vmem:[#allocation2 + $0x520] sm:$0x3] %vm202_vm2, %v16850_v2  ;;  %368 = vst.msk [vmem:[#allocation2 + $0x548] sm:$0x3] %vm202_vm2, %v16850_v2  ;;  %14495 = vmatpush3.bf16.msra.mxu0 %v1100_v53 }
  0x6b   : > { %526 = vst.msk [vmem:[#allocation2 + $0x141] sm:$0xff] %vm197_vm1, %v397_v7  ;;  %527 = vst.msk [vmem:[#allocation2 + $0x149] sm:$0xff] %vm197_vm1, %v398_v8  ;;  %16710 = vmatprep.subr.msk.bf16.mxu0 %vm902_vm0, %v17356_v50 }
  0x6c   : > { %528 = vst.msk [vmem:[#allocation2 + $0x151] sm:$0xff] %vm197_vm1, %v399_v9  ;;  %529 = vst.msk [vmem:[#allocation2 + $0x159] sm:$0xff] %vm197_vm1, %v400_v16 }
  0x6d   : > { %498 = vst.msk [vmem:[#allocation2 + $0x29] sm:$0xff] %vm197_vm1, %v369_v19  ;;  %499 = vst.msk [vmem:[#allocation2 + $0x31] sm:$0xff] %vm197_vm1, %v370_v20 }
  0x6e   : > { %500 = vst.msk [vmem:[#allocation2 + $0x39] sm:$0xff] %vm197_vm1, %v371_v21  ;;  %501 = vst.msk [vmem:[#allocation2 + $0x41] sm:$0xff] %vm197_vm1, %v372_v24 }
  0x6f   : > { %530 = vst.msk [vmem:[#allocation2 + $0x169] sm:$0xff] %vm197_vm1, %v401_v25  ;;  %531 = vst.msk [vmem:[#allocation2 + $0x171] sm:$0xff] %vm197_vm1, %v402_v26 }
  0x70   : > { %532 = vst.msk [vmem:[#allocation2 + $0x179] sm:$0xff] %vm197_vm1, %v403_v30  ;;  %533 = vst.msk [vmem:[#allocation2 + $0x181] sm:$0xff] %vm197_vm1, %v404_v31 }
  0x71   : > { %502 = vst.msk [vmem:[#allocation2 + $0x51] sm:$0xff] %vm197_vm1, %v373_v33  ;;  %503 = vst.msk [vmem:[#allocation2 + $0x59] sm:$0xff] %vm197_vm1, %v374_v34  ;;  %v17399_v34 = vld [vmem:[%s20950_s1 + $0x8] sm:$0xf] }
  0x72   : > { %504 = vst.msk [vmem:[#allocation2 + $0x61] sm:$0xff] %vm197_vm1, %v375_v35  ;;  %v3738_v42 = vld [vmem:[#allocation2 + $0x140] sm:$0xff]  ;;  %v3739_v43 = vld [vmem:[#allocation2 + $0x148] sm:$0xff]  ;;  %505 = vst.msk [vmem:[#allocation2 + $0x69] sm:$0xff] %vm197_vm1, %v376_v38 }
  0x73   : > { %v3740_v44 = vld [vmem:[#allocation2 + $0x150] sm:$0xff]  ;;  %534 = vst.msk [vmem:[#allocation2 + $0x191] sm:$0xff] %vm197_vm1, %v405_v39  ;;  %535 = vst.msk [vmem:[#allocation2 + $0x199] sm:$0xff] %vm197_vm1, %v406_v40  ;;  %v17348_v46 = vpack.c.bf16 %v3739_v43, %v3738_v42  ;;  %v3741_v52 = vld [vmem:[#allocation2 + $0x158] sm:$0xff] }
  0x74   : > { %v3742_v54 = vld [vmem:[#allocation2 + $0x160] sm:$0x3]  ;;  %536 = vst.msk [vmem:[#allocation2 + $0x1a1] sm:$0xff] %vm197_vm1, %v407_v47  ;;  %537 = vst.msk [vmem:[#allocation2 + $0x1a9] sm:$0xff] %vm197_vm1, %v408_v48  ;;  %v17367_v57 = vpack.c.bf16 %v3741_v52, %v3740_v44  ;;  %v631_v60 = vld [vmem:[#allocation2 + $0x28] sm:$0xff] }
  0x75   : > { %506 = vst.msk [vmem:[#allocation2 + $0x79] sm:$0xff] %vm197_vm1, %v377_v49  ;;  %v3804_v58 = vshrl.u32 %v17348_v46, 16  ;;  %v3806_v59 = vshll.u32 %v17348_v46, 16  ;;  %v632_v61 = vld [vmem:[#allocation2 + $0x30] sm:$0xff]  ;;  %v633_v62 = vld [vmem:[#allocation2 + $0x38] sm:$0xff]  ;;  %507 = vst.msk [vmem:[#allocation2 + $0x81] sm:$0xff] %vm197_vm1, %v378_v55  ;;  %v17373_v63 = vpack.c.bf16 %v3742_v54, %v3742_v54 }
  0x76   : > { %v634_v0 = vld [vmem:[#allocation2 + $0x40] sm:$0xff]  ;;  %v17375_v1 = vpack.c.bf16 %v632_v61, %v631_v60  ;;  %v635_v2 = vld [vmem:[#allocation2 + $0x48] sm:$0x3]  ;;  %v3811_v4 = vshll.u32 %v17367_v57, 16  ;;  %v3815_v5 = vshrl.u32 %v17367_v57, 16  ;;  %v3744_v9 = vld [vmem:[#allocation2 + $0x170] sm:$0xff] }
  0x77   : > { %v3808_v3 = vrot.slane %v3806_v59, 1  ;;  %v17379_v7 = vpack.c.bf16 %v634_v0, %v633_v62  ;;  %v3743_v8 = vld [vmem:[#allocation2 + $0x168] sm:$0xff]  ;;  %v3819_v10 = vshll.u32 %v17373_v63, 16  ;;  %v17389_v20 = vpack.c.bf16 %v635_v2, %v635_v2  ;;  %v3745_v21 = vld [vmem:[#allocation2 + $0x178] sm:$0xff]  ;;  %v3746_v22 = vld [vmem:[#allocation2 + $0x180] sm:$0xff]  ;;  %508 = vst.msk [vmem:[#allocation2 + $0x89] sm:$0xff] %vm197_vm1, %v379_v41 }
  0x78   : > { %v713_v12 = vshrl.u32 %v17375_v1, 16  ;;  %v715_v13 = vshll.u32 %v17375_v1, 16  ;;  %v3813_v16 = vrot.slane %v3811_v4, 1  ;;  %v17392_v6 = vpack.c.bf16 %v3744_v9, %v3743_v8  ;;  %v3747_v26 = vld [vmem:[#allocation2 + $0x188] sm:$0x3]  ;;  %v636_v31 = vld [vmem:[#allocation2 + $0x50] sm:$0xff] }
  0x79   : > { %v3809_v15 = vor.u32 %v3808_v3, %v3804_v58  ;;  %v720_v19 = vshll.u32 %v17379_v7, 16  ;;  %v3821_v23 = vrot.slane %v3819_v10, 1  ;;  %v724_v25 = vshrl.u32 %v17379_v7, 16  ;;  %v637_v32 = vld [vmem:[#allocation2 + $0x58] sm:$0xff]  ;;  %v638_v33 = vld [vmem:[#allocation2 + $0x60] sm:$0xff]  ;;  %v639_v39 = vld [vmem:[#allocation2 + $0x68] sm:$0xff] }
  0x7a   : > { %v717_v24 = vrot.slane %v715_v13, 1  ;;  %v3817_v28 = vor.u32 %v3815_v5, %v3813_v16  ;;  %v728_v30 = vshll.u32 %v17389_v20, 16  ;;  %v17402_v36 = vpack.c.bf16 %v3746_v22, %v3745_v21  ;;  %v640_v40 = vld [vmem:[#allocation2 + $0x70] sm:$0x3]  ;;  %v3749_v48 = vld [vmem:[#allocation2 + $0x198] sm:$0xff]  ;;  %v409_v58 = vld [vmem:[%s17299_s13 + $0x140] sm:$0xff] }
  0x7b   : > { %v3814_v27 = vsel %vm691_vm3, %v3809_v15, %v3813_v16  ;;  %v722_v29 = vrot.slane %v720_v19, 1  ;;  %v3824_v37 = vshrl.u32 %v17392_v6, 16  ;;  %v3826_v38 = vshll.u32 %v17392_v6, 16  ;;  %v3748_v47 = vld [vmem:[#allocation2 + $0x190] sm:$0xff]  ;;  %v380_v49 = vld [vmem:[%s17299_s13 + $0x58] sm:$0xff]  ;;  %v3750_v55 = vld [vmem:[#allocation2 + $0x1a0] sm:$0xff] }
  0x7c   : > { %14768 = vmatprep.mubr.msk.bf16.mxu1 %vm197_vm1, %v3814_v27  ;;  %v718_v35 = vor.u32 %v717_v24, %v713_v12  ;;  %v3822_v42 = vsel %vm691_vm3, %v3817_v28, %v3821_v23  ;;  %v730_v44 = vrot.slane %v728_v30, 1  ;;  %v17408_v45 = vpack.c.bf16 %v3747_v26, %v3747_v26  ;;  %v3751_v56 = vld [vmem:[#allocation2 + $0x1a8] sm:$0xff]  ;;  %509 = vst.msk [vmem:[#allocation2 + $0x91] sm:$0xff] %vm197_vm1, %v380_v49  ;;  %v411_v60 = vld [vmem:[%s17299_s13 + $0x150] sm:$0xff]  ;;  %v412_v4 = vld [vmem:[%s17299_s13 + $0x158] sm:$0xff] }
  0x7d   : > { %v726_v43 = vor.u32 %v724_v25, %v722_v29  ;;  %14769 = vmatmul.mubr.msk.bf16.vlgmr.msra.gmra.mrb[0].mxu1 %vm197_vm1, %v3822_v42  ;;  %v3828_v52 = vrot.slane %v3826_v38, 1  ;;  %v3831_v53 = vshll.u32 %v17402_v36, 16  ;;  %v3835_v54 = vshrl.u32 %v17402_v36, 16  ;;  %v410_v59 = vld [vmem:[%s17299_s13 + $0x148] sm:$0xff]  ;;  %v3752_v3 = vld [vmem:[#allocation2 + $0x1b0] sm:$0x3] }
  0x7e   : > { %v723_v51 = vsel %vm691_vm3, %v718_v35, %v722_v29  ;;  %14801 = vmatpush3.bf16.msra.mxu1 %v4209_v11  ;;  %v3839_v62 = vshll.u32 %v17408_v45, 16  ;;  %v17423_v0 = vpack.c.bf16 %v637_v32, %v636_v31  ;;  %v17425_v2 = vpack.c.bf16 %v639_v39, %v638_v33  ;;  %538 = vst.msk [vmem:[#allocation2 + $0x1b9] sm:$0xff] %vm197_vm1, %v409_v58  ;;  %v381_v5 = vld [vmem:[%s17299_s13 + $0x60] sm:$0xff]  ;;  %v382_v8 = vld [vmem:[%s17299_s13 + $0x68] sm:$0xff]  ;;  %v383_v13 = vld [vmem:[%s17299_s13 + $0x70] sm:$0xff] }
  0x7f   : > { %14466 = vmatprep.mubr.msk.bf16.mxu0 %vm197_vm1, %v723_v51  ;;  %v731_v61 = vsel %vm691_vm3, %v726_v43, %v730_v44  ;;  %539 = vst.msk [vmem:[#allocation2 + $0x1c1] sm:$0xff] %vm197_vm1, %v410_v59  ;;  %540 = vst.msk [vmem:[#allocation2 + $0x1c9] sm:$0xff] %vm197_vm1, %v411_v60  ;;  %v3829_v9 = vor.u32 %v3828_v52, %v3824_v37  ;;  %v3833_v10 = vrot.slane %v3831_v53, 1  ;;  %v384_v15 = vld [vmem:[%s17299_s13 + $0x78] sm:$0xff]  ;;  %v413_v16 = vld [vmem:[%s17299_s13 + $0x160] sm:$0xff]  ;;  %16719 = vmatprep.subr.msk.bf16.mxu1 %vm902_vm0, %v17399_v34 }
  0x80   : > { %14467 = vmatmul.mubr.msk.bf16.gmra.mrb[4].mxu0 %vm197_vm1, %v731_v61  ;;  %v17434_v11 = vpack.c.bf16 %v640_v40, %v640_v40  ;;  %v17436_v12 = vpack.c.bf16 %v3749_v48, %v3748_v47  ;;  %541 = vst.msk [vmem:[#allocation2 + $0x1d1] sm:$0xff] %vm197_vm1, %v412_v4  ;;  %510 = vst.msk [vmem:[#allocation2 + $0xa1] sm:$0xff] %vm197_vm1, %v381_v5  ;;  %v3841_v19 = vrot.slane %v3839_v62, 1  ;;  %v733_v21 = vshrl.u32 %v17423_v0, 16  ;;  %v641_v24 = vld [vmem:[#allocation2 + $0x78] sm:$0xff]  ;;  %v642_v25 = vld [vmem:[#allocation2 + $0x80] sm:$0xff] }
  0x81   : > { %511 = vst.msk [vmem:[#allocation2 + $0xa9] sm:$0xff] %vm197_vm1, %v382_v8  ;;  %v735_v22 = vshll.u32 %v17423_v0, 16  ;;  %v740_v23 = vshll.u32 %v17425_v2, 16  ;;  %512 = vst.msk [vmem:[#allocation2 + $0xb1] sm:$0xff] %vm197_vm1, %v383_v13  ;;  %v414_v26 = vld [vmem:[%s17299_s13 + $0x168] sm:$0xff]  ;;  %v415_v27 = vld [vmem:[%s17299_s13 + $0x170] sm:$0xff]  ;;  %v3834_v28 = vsel %vm691_vm3, %v3829_v9, %v3833_v10  ;;  %v3837_v29 = vor.u32 %v3835_v54, %v3833_v10 }
  0x82   : > { %513 = vst.msk [vmem:[#allocation2 + $0xb9] sm:$0xff] %vm197_vm1, %v384_v15  ;;  %542 = vst.msk [vmem:[#allocation2 + $0x1e1] sm:$0xff] %vm197_vm1, %v413_v16  ;;  %v744_v30 = vshrl.u32 %v17425_v2, 16  ;;  %v748_v31 = vshll.u32 %v17434_v11, 16  ;;  %v416_v32 = vld [vmem:[%s17299_s13 + $0x178] sm:$0xff]  ;;  %v385_v33 = vld [vmem:[%s17299_s13 + $0x80] sm:$0xff]  ;;  %14772 = vmatprep.mubr.msk.bf16.mxu1 %vm197_vm1, %v3834_v28  ;;  %v17463_v39 = vpack.c.bf16 %v3751_v56, %v3750_v55  ;;  %v17474_v49 = vpack.c.bf16 %v3752_v3, %v3752_v3 }
  0x83   : > { %543 = vst.msk [vmem:[#allocation2 + $0x1e9] sm:$0xff] %vm197_vm1, %v414_v26  ;;  %544 = vst.msk [vmem:[#allocation2 + $0x1f1] sm:$0xff] %vm197_vm1, %v415_v27  ;;  %v386_v35 = vld [vmem:[%s17299_s13 + $0x88] sm:$0xff]  ;;  %v737_v37 = vrot.slane %v735_v22, 1  ;;  %v742_v38 = vrot.slane %v740_v23, 1  ;;  %v3844_v40 = vshrl.u32 %v17436_v12, 16  ;;  %v3842_v44 = vsel %vm691_vm3, %v3837_v29, %v3841_v19 }
  0x84   : > { %545 = vst.msk [vmem:[#allocation2 + $0x1f9] sm:$0xff] %vm197_vm1, %v416_v32  ;;  %v387_v41 = vld [vmem:[%s17299_s13 + $0x90] sm:$0xff]  ;;  %v388_v42 = vld [vmem:[%s17299_s13 + $0x98] sm:$0xff]  ;;  %514 = vst.msk [vmem:[#allocation2 + $0xc9] sm:$0xff] %vm197_vm1, %v385_v33  ;;  %v750_v47 = vrot.slane %v748_v31, 1  ;;  %v3846_v48 = vshll.u32 %v17436_v12, 16  ;;  %v17488_v4 = vpack.c.bf16 %v642_v25, %v641_v24 }
  0x85   : > { %515 = vst.msk [vmem:[#allocation2 + $0xd1] sm:$0xff] %vm197_vm1, %v386_v35  ;;  %v417_v43 = vld [vmem:[%s17299_s13 + $0x180] sm:$0xff]  ;;  %v643_v51 = vld [vmem:[#allocation2 + $0x88] sm:$0xff]  ;;  %516 = vst.msk [vmem:[#allocation2 + $0xd9] sm:$0xff] %vm197_vm1, %v387_v41  ;;  %v738_v54 = vor.u32 %v737_v37, %v733_v21  ;;  %v746_v55 = vor.u32 %v744_v30, %v742_v38  ;;  %v3851_v56 = vshll.u32 %v17463_v39, 16  ;;  %v3855_v58 = vshrl.u32 %v17463_v39, 16  ;;  %14773 = vmatmul.mubr.msk.bf16.gmra.mrb[4].mxu1 %vm197_vm1, %v3842_v44 }
  0x86   : > { %517 = vst.msk [vmem:[#allocation2 + $0xe1] sm:$0xff] %vm197_vm1, %v388_v42  ;;  %v418_v52 = vld [vmem:[%s17299_s13 + $0x188] sm:$0xff]  ;;  %v419_v53 = vld [vmem:[%s17299_s13 + $0x190] sm:$0xff]  ;;  %546 = vst.msk [vmem:[#allocation2 + $0x209] sm:$0xff] %vm197_vm1, %v417_v43  ;;  %v3848_v62 = vrot.slane %v3846_v48, 1  ;;  %v3859_v3 = vshll.u32 %v17474_v49, 16 }
  0x87   : > { %v644_v59 = vld [vmem:[#allocation2 + $0x90] sm:$0xff]  ;;  %v645_v60 = vld [vmem:[#allocation2 + $0x98] sm:$0x3]  ;;  %547 = vst.msk [vmem:[#allocation2 + $0x211] sm:$0xff] %vm197_vm1, %v418_v52  ;;  %548 = vst.msk [vmem:[#allocation2 + $0x219] sm:$0xff] %vm197_vm1, %v419_v53  ;;  %v743_v9 = vsel %vm691_vm3, %v738_v54, %v742_v38  ;;  %v751_v10 = vsel %vm691_vm3, %v746_v55, %v750_v47  ;;  %v3853_v13 = vrot.slane %v3851_v56, 1 }
  0x88   : > { %v420_v61 = vld [vmem:[%s17299_s13 + $0x198] sm:$0xff]  ;;  %v17490_v5 = vpack.c.bf16 %v644_v59, %v643_v51  ;;  %v17495_v15 = vpack.c.bf16 %v645_v60, %v645_v60  ;;  %v3754_v16 = vld [vmem:[#allocation2 + $0x1c0] sm:$0xff]  ;;  %v3755_v19 = vld [vmem:[#allocation2 + $0x1c8] sm:$0xff]  ;;  %14470 = vmatprep.mubr.msk.bf16.mxu0 %vm197_vm1, %v743_v9  ;;  %v3849_v22 = vor.u32 %v3848_v62, %v3844_v40  ;;  %v3861_v23 = vrot.slane %v3859_v3, 1 }
  0x89   : > { %v3753_v8 = vld [vmem:[#allocation2 + $0x1b8] sm:$0xff]  ;;  %549 = vst.msk [vmem:[#allocation2 + $0x221] sm:$0xff] %vm197_vm1, %v420_v61  ;;  %v3756_v21 = vld [vmem:[#allocation2 + $0x1d0] sm:$0xff]  ;;  %v753_v24 = vshrl.u32 %v17488_v4, 16  ;;  %v755_v25 = vshll.u32 %v17488_v4, 16  ;;  %14471 = vmatmul.mubr.msk.bf16.gmra.mrb[8].mxu0 %vm197_vm1, %v751_v10  ;;  %v3857_v27 = vor.u32 %v3855_v58, %v3853_v13  ;;  %v646_v37 = vld [vmem:[#allocation2 + $0xa0] sm:$0xff] }
  0x8a   : > { %v3757_v26 = vld [vmem:[#allocation2 + $0x1d8] sm:$0x3]  ;;  %v760_v28 = vshll.u32 %v17490_v5, 16  ;;  %v764_v29 = vshrl.u32 %v17490_v5, 16  ;;  %v768_v30 = vshll.u32 %v17495_v15, 16  ;;  %v3854_v31 = vsel %vm691_vm3, %v3849_v22, %v3853_v13  ;;  %v647_v38 = vld [vmem:[#allocation2 + $0xa8] sm:$0xff] }
  0x8b   : > { %v757_v32 = vrot.slane %v755_v25, 1  ;;  %v17505_v33 = vpack.c.bf16 %v3754_v16, %v3753_v8  ;;  %v17507_v35 = vpack.c.bf16 %v3756_v21, %v3755_v19  ;;  %14776 = vmatprep.mubr.msk.bf16.mxu1 %vm197_vm1, %v3854_v31  ;;  %v3862_v40 = vsel %vm691_vm3, %v3857_v27, %v3861_v23  ;;  %v648_v44 = vld [vmem:[#allocation2 + $0xb0] sm:$0xff]  ;;  %v649_v47 = vld [vmem:[#allocation2 + $0xb8] sm:$0xff]  ;;  %v650_v59 = vld [vmem:[#allocation2 + $0xc0] sm:$0x3] }
  0x8c   : > { %v762_v41 = vrot.slane %v760_v28, 1  ;;  %v770_v42 = vrot.slane %v768_v30, 1  ;;  %v17511_v43 = vpack.c.bf16 %v3757_v26, %v3757_v26  ;;  %v17520_v58 = vpack.c.bf16 %v647_v38, %v646_v37  ;;  %v3758_v60 = vld [vmem:[#allocation2 + $0x1e0] sm:$0xff]  ;;  %v3759_v61 = vld [vmem:[#allocation2 + $0x1e8] sm:$0xff]  ;;  %v3760_v10 = vld [vmem:[#allocation2 + $0x1f0] sm:$0xff] }
  0x8d   : > { %v758_v48 = vor.u32 %v757_v32, %v753_v24  ;;  %v3864_v51 = vshrl.u32 %v17505_v33, 16  ;;  %v3866_v52 = vshll.u32 %v17505_v33, 16  ;;  %v3871_v53 = vshll.u32 %v17507_v35, 16  ;;  %14777 = vmatmul.mubr.msk.bf16.gmra.mrb[8].mxu1 %vm197_vm1, %v3862_v40  ;;  %v3761_v13 = vld [vmem:[#allocation2 + $0x1f8] sm:$0xff]  ;;  %v389_v16 = vld [vmem:[%s17299_s13 + $0xa0] sm:$0xff]  ;;  %v390_v25 = vld [vmem:[%s17299_s13 + $0xa8] sm:$0xff] }
  0x8e   : > { %v17516_v54 = vor.u32 %v764_v29, %v762_v41  ;;  %v3875_v55 = vshrl.u32 %v17507_v35, 16  ;;  %v3879_v56 = vshll.u32 %v17511_v43, 16  ;;  %v17526_v9 = vpack.c.bf16 %v649_v47, %v648_v44  ;;  %v3762_v24 = vld [vmem:[#allocation2 + $0x200] sm:$0x3]  ;;  %v391_v26 = vld [vmem:[%s17299_s13 + $0xb0] sm:$0xff]  ;;  %v392_v27 = vld [vmem:[%s17299_s13 + $0xb8] sm:$0xff] }
  0x8f   : > { %v17524_v62 = vsel %vm691_vm3, %v758_v48, %v762_v41  ;;  %v3868_v3 = vrot.slane %v3866_v52, 1  ;;  %v3873_v8 = vrot.slane %v3871_v53, 1  ;;  %v773_v22 = vshrl.u32 %v17520_v58, 16  ;;  %518 = vst.msk [vmem:[#allocation2 + $0xf1] sm:$0xff] %vm197_vm1, %v389_v16  ;;  %v651_v32 = vld [vmem:[#allocation2 + $0xc8] sm:$0xff]  ;;  %v652_v37 = vld [vmem:[#allocation2 + $0xd0] sm:$0xff] }
  0x90   : > { %21042 = vst [vmem:[#allocation6_spill] sm:$0xff] %v17516_v54  ;;  %21043 = vst [vmem:[#allocation7_spill] sm:$0xff] %v17524_v62  ;;  %14474 = vmatprep.mubr.msk.bf16.mxu0 %vm197_vm1, %v17524_v62  ;;  %v771_v19 = vsel %vm691_vm3, %v17516_v54, %v770_v42  ;;  %v3881_v21 = vrot.slane %v3879_v56, 1  ;;  %v775_v23 = vshll.u32 %v17520_v58, 16  ;;  %v780_v30 = vshll.u32 %v17526_v9, 16  ;;  %v421_v38 = vld [vmem:[%s17299_s13 + $0x1a0] sm:$0xff] }
  0x91   : > { %v3869_v28 = vor.u32 %v3868_v3, %v3864_v51  ;;  %v17539_v29 = vor.u32 %v3875_v55, %v3873_v8  ;;  %v17542_v31 = vpack.c.bf16 %v650_v59, %v650_v59  ;;  %519 = vst.msk [vmem:[#allocation2 + $0xf9] sm:$0xff] %vm197_vm1, %v390_v25  ;;  %520 = vst.msk [vmem:[#allocation2 + $0x101] sm:$0xff] %vm197_vm1, %v391_v26  ;;  %v422_v40 = vld [vmem:[%s17299_s13 + $0x1a8] sm:$0xff]  ;;  %v423_v41 = vld [vmem:[%s17299_s13 + $0x1b0] sm:$0xff]  ;;  %14475 = vmatmul.mubr.msk.bf16.gmra.mrb[12].mxu0 %vm197_vm1, %v771_v19 }
  0x92   : > { %521 = vst.msk [vmem:[#allocation2 + $0x109] sm:$0xff] %vm197_vm1, %v392_v27  ;;  %v777_v42 = vrot.slane %v775_v23, 1  ;;  %v784_v44 = vshrl.u32 %v17526_v9, 16  ;;  %v17552_v47 = vpack.c.bf16 %v3759_v61, %v3758_v60  ;;  %v17554_v48 = vpack.c.bf16 %v3761_v13, %v3760_v10  ;;  %v653_v51 = vld [vmem:[#allocation2 + $0xd8] sm:$0xff]  ;;  %v654_v52 = vld [vmem:[#allocation2 + $0xe0] sm:$0xff]  ;;  %550 = vst.msk [vmem:[#allocation2 + $0x231] sm:$0xff] %vm197_vm1, %v421_v38 }
  0x93   : > { %21044 = vst [vmem:[#allocation8_spill] sm:$0xff] %v17539_v29  ;;  %21045 = vst [vmem:[#allocation9_spill] sm:$0xff] %v17542_v31  ;;  %v655_v53 = vld [vmem:[#allocation2 + $0xe8] sm:$0x3]  ;;  %v424_v55 = vld [vmem:[%s17299_s13 + $0x1b8] sm:$0xff]  ;;  %v17563_v60 = vsel %vm691_vm3, %v3869_v28, %v3873_v8  ;;  %v3882_v61 = vsel %vm691_vm3, %v17539_v29, %v3881_v21  ;;  %v782_v3 = vrot.slane %v780_v30, 1 }
  0x94   : > { %551 = vst.msk [vmem:[#allocation2 + $0x239] sm:$0xff] %vm197_vm1, %v422_v40  ;;  %552 = vst.msk [vmem:[#allocation2 + $0x241] sm:$0xff] %vm197_vm1, %v423_v41  ;;  %v393_v56 = vld [vmem:[%s17299_s13 + $0xc0] sm:$0xff]  ;;  %v394_v59 = vld [vmem:[%s17299_s13 + $0xc8] sm:$0xff]  ;;  %v788_v10 = vshll.u32 %v17542_v31, 16  ;;  %14780 = vmatprep.mubr.msk.bf16.mxu1 %vm197_vm1, %v17563_v60  ;;  %v778_v8 = vor.u32 %v777_v42, %v773_v22  ;;  %v3884_v21 = vshrl.u32 %v17552_v47, 16  ;;  %v17587_v40 = vpack.c.bf16 %v3762_v24, %v3762_v24 }
  0x95   : > { %21046 = vst [vmem:[#allocation10_spill] sm:$0xff] %v17563_v60  ;;  %553 = vst.msk [vmem:[#allocation2 + $0x249] sm:$0xff] %vm197_vm1, %v424_v55  ;;  %v395_v13 = vld [vmem:[%s17299_s13 + $0xd0] sm:$0xff]  ;;  %v396_v16 = vld [vmem:[%s17299_s13 + $0xd8] sm:$0xff]  ;;  %v3886_v23 = vshll.u32 %v17552_v47, 16  ;;  %v3891_v25 = vshll.u32 %v17554_v48, 16  ;;  %v17585_v30 = vor.u32 %v784_v44, %v782_v3  ;;  %14781 = vmatmul.mubr.msk.bf16.gmra.mrb[12].mxu1 %vm197_vm1, %v3882_v61 }
  0x96   : > { %522 = vst.msk [vmem:[#allocation2 + $0x119] sm:$0xff] %vm197_vm1, %v393_v56  ;;  %523 = vst.msk [vmem:[#allocation2 + $0x121] sm:$0xff] %vm197_vm1, %v394_v59  ;;  %v425_v19 = vld [vmem:[%s17299_s13 + $0x1c0] sm:$0xff]  ;;  %v426_v26 = vld [vmem:[%s17299_s13 + $0x1c8] sm:$0xff]  ;;  %v790_v38 = vrot.slane %v788_v10, 1  ;;  %v3895_v22 = vshrl.u32 %v17554_v48, 16  ;;  %v17594_v41 = vsel %vm691_vm3, %v778_v8, %v782_v3  ;;  %v17596_v56 = vpack.c.bf16 %v652_v37, %v651_v32 }
  0x97   : > { %524 = vst.msk [vmem:[#allocation2 + $0x129] sm:$0xff] %vm197_vm1, %v395_v13  ;;  %525 = vst.msk [vmem:[#allocation2 + $0x131] sm:$0xff] %vm197_vm1, %v396_v16  ;;  %v427_v27 = vld [vmem:[%s17299_s13 + $0x1d0] sm:$0xff]  ;;  %v428_v28 = vld [vmem:[%s17299_s13 + $0x1d8] sm:$0xff]  ;;  %v3888_v42 = vrot.slane %v3886_v23, 1  ;;  %v3893_v55 = vrot.slane %v3891_v25, 1  ;;  %14478 = vmatprep.mubr.msk.bf16.mxu0 %vm197_vm1, %v17594_v41  ;;  %v17604_v10 = vpack.c.bf16 %v654_v52, %v653_v51  ;;  %v17606_v13 = vpack.c.bf16 %v655_v53, %v655_v53 }
  0x98   : > { %554 = vst.msk [vmem:[#allocation2 + $0x259] sm:$0xff] %vm197_vm1, %v425_v19  ;;  %21047 = vst [vmem:[#allocation11_spill] sm:$0xff] %v17585_v30  ;;  %v3763_v44 = vld [vmem:[#allocation2 + $0x208] sm:$0xff]  ;;  %v791_v24 = vsel %vm691_vm3, %v17585_v30, %v790_v38  ;;  %v3899_v59 = vshll.u32 %v17587_v40, 16  ;;  %v3764_v3 = vld [vmem:[#allocation2 + $0x210] sm:$0xff]  ;;  %v793_v61 = vshrl.u32 %v17596_v56, 16 }
  0x99   : > { %21048 = vst [vmem:[#allocation12_spill] sm:$0xff] %v17587_v40  ;;  %555 = vst.msk [vmem:[#allocation2 + $0x261] sm:$0xff] %vm197_vm1, %v426_v26  ;;  %v3765_v16 = vld [vmem:[#allocation2 + $0x218] sm:$0xff]  ;;  %v3766_v19 = vld [vmem:[#allocation2 + $0x220] sm:$0xff]  ;;  %v3889_v32 = vor.u32 %v3888_v42, %v3884_v21  ;;  %v17608_v37 = vor.u32 %v3895_v22, %v3893_v55  ;;  %v795_v8 = vshll.u32 %v17596_v56, 16  ;;  %v800_v26 = vshll.u32 %v17604_v10, 16  ;;  %14479 = vmatmul.mubr.msk.bf16.gmra.mrb[16].mxu0 %vm197_vm1, %v791_v24 }
  0x9a   : > { %556 = vst.msk [vmem:[#allocation2 + $0x269] sm:$0xff] %vm197_vm1, %v427_v27  ;;  %557 = vst.msk [vmem:[#allocation2 + $0x271] sm:$0xff] %vm197_vm1, %v428_v28  ;;  %v3767_v23 = vld [vmem:[#allocation2 + $0x228] sm:$0x3]  ;;  %v3901_v25 = vrot.slane %v3899_v59, 1  ;;  %v804_v27 = vshrl.u32 %v17604_v10, 16  ;;  %v17619_v21 = vpack.c.bf16 %v3764_v3, %v3763_v44  ;;  %v17621_v28 = vpack.c.bf16 %v3766_v19, %v3765_v16 }
  0x9b   : > { %21049 = vst [vmem:[#allocation13_spill] sm:$0xff] %v17594_v41  ;;  %21050 = vst [vmem:[#allocation14_spill] sm:$0xff] %v17606_v13  ;;  %v808_v51 = vshll.u32 %v17606_v13, 16  ;;  %v17617_v52 = vsel %vm691_vm3, %v3889_v32, %v3893_v55  ;;  %v797_v53 = vrot.slane %v795_v8, 1  ;;  %v656_v38 = vld [vmem:[#allocation2 + $0xf0] sm:$0xff]  ;;  %v657_v22 = vld [vmem:[#allocation2 + $0xf8] sm:$0xff]  ;;  %v17627_v29 = vpack.c.bf16 %v3767_v23, %v3767_v23 }
  0x9c   : > { %21051 = vst [vmem:[#allocation15_spill] sm:$0xff] %v17608_v37  ;;  %21052 = vst [vmem:[#allocation16_spill] sm:$0xff] %v17617_v52  ;;  %14784 = vmatprep.mubr.msk.bf16.mxu1 %vm197_vm1, %v17617_v52  ;;  %v3902_v42 = vsel %vm691_vm3, %v17608_v37, %v3901_v25  ;;  %v802_v59 = vrot.slane %v800_v26, 1  ;;  %v658_v24 = vld [vmem:[#allocation2 + $0x100] sm:$0xff]  ;;  %v659_v55 = vld [vmem:[#allocation2 + $0x108] sm:$0xff]  ;;  %v3904_v44 = vshrl.u32 %v17619_v21, 16  ;;  %v17636_v25 = vpack.c.bf16 %v657_v22, %v656_v38 }
  0x9d   : > { %v810_v30 = vrot.slane %v808_v51, 1  ;;  %21053 = vst [vmem:[#allocation17_spill] sm:$0xff] %v17627_v29  ;;  %v798_v32 = vor.u32 %v797_v53, %v793_v61  ;;  %v3906_v3 = vshll.u32 %v17619_v21, 16  ;;  %v3911_v16 = vshll.u32 %v17621_v28, 16  ;;  %v660_v26 = vld [vmem:[#allocation2 + $0x110] sm:$0x3]  ;;  %14785 = vmatmul.mubr.msk.bf16.gmra.mrb[16].mxu1 %vm197_vm1, %v3902_v42 }
  0x9e   : > { %v17632_v19 = vor.u32 %v804_v27, %v802_v59  ;;  %v3915_v8 = vshrl.u32 %v17621_v28, 16  ;;  %v3919_v52 = vshll.u32 %v17627_v29, 16  ;;  %v3768_v23 = vld [vmem:[#allocation2 + $0x230] sm:$0xff]  ;;  %v17641_v37 = vpack.c.bf16 %v659_v55, %v658_v24  ;;  %v3769_v41 = vld [vmem:[#allocation2 + $0x238] sm:$0xff]  ;;  %v3770_v60 = vld [vmem:[#allocation2 + $0x240] sm:$0xff] }
  0x9f   : > { %v17639_v51 = vsel %vm691_vm3, %v798_v32, %v802_v59  ;;  %v3908_v61 = vrot.slane %v3906_v3, 1  ;;  %v3913_v53 = vrot.slane %v3911_v16, 1  ;;  %v3771_v54 = vld [vmem:[#allocation2 + $0x248] sm:$0xff]  ;;  %v813_v22 = vshrl.u32 %v17636_v25, 16  ;;  %v3773_v29 = vld [vmem:[#allocation2 + $0x258] sm:$0xff] }
  0xa0   : > { %21054 = vst [vmem:[#allocation18_spill] sm:$0xff] %v17632_v19  ;;  %21055 = vst [vmem:[#allocation19_spill] sm:$0xff] %v17639_v51  ;;  %14482 = vmatprep.mubr.msk.bf16.mxu0 %vm197_vm1, %v17639_v51  ;;  %v811_v27 = vsel %vm691_vm3, %v17632_v19, %v810_v30  ;;  %v3921_v38 = vrot.slane %v3919_v52, 1  ;;  %v815_v59 = vshll.u32 %v17636_v25, 16  ;;  %v820_v24 = vshll.u32 %v17641_v37, 16  ;;  %v663_v19 = vld [vmem:[#allocation2 + $0x128] sm:$0xff] }
  0xa1   : > { %v3909_v32 = vor.u32 %v3908_v61, %v3904_v44  ;;  %v17650_v3 = vor.u32 %v3915_v8, %v3913_v53  ;;  %v17653_v55 = vpack.c.bf16 %v660_v26, %v660_v26  ;;  %v824_v42 = vshrl.u32 %v17641_v37, 16  ;;  %v3772_v30 = vld [vmem:[#allocation2 + $0x250] sm:$0x3]  ;;  %14483 = vmatmul.mubr.msk.bf16.gmra.mrb[20].mxu0 %vm197_vm1, %v811_v27  ;;  %v661_v61 = vld [vmem:[#allocation2 + $0x118] sm:$0xff]  ;;  %v3774_v40 = vld [vmem:[#allocation2 + $0x260] sm:$0xff] }
  0xa2   : > { %v817_v16 = vrot.slane %v815_v59, 1  ;;  %v17656_v62 = vpack.c.bf16 %v3769_v41, %v3768_v23  ;;  %v17658_v51 = vpack.c.bf16 %v3771_v54, %v3770_v60  ;;  %v822_v8 = vrot.slane %v820_v24, 1  ;;  %v662_v59 = vld [vmem:[#allocation2 + $0x120] sm:$0xff]  ;;  %v665_v27 = vld [vmem:[#allocation2 + $0x138] sm:$0x3] }
  0xa3   : > { %21056 = vst [vmem:[#allocation20_spill] sm:$0xff] %v17650_v3  ;;  %21057 = vst [vmem:[#allocation21_spill] sm:$0xff] %v17653_v55  ;;  %v17662_v52 = vsel %vm691_vm3, %v3909_v32, %v3913_v53  ;;  %v3922_v44 = vsel %vm691_vm3, %v17650_v3, %v3921_v38  ;;  %v828_v26 = vshll.u32 %v17653_v55, 16  ;;  %v664_v53 = vld [vmem:[#allocation2 + $0x130] sm:$0xff]  ;;  %v17674_v24 = vpack.c.bf16 %v3772_v30, %v3772_v30 }
  0xa4   : > { %21058 = vst [vmem:[#allocation22_spill] sm:$0xff] %v17662_v52  ;;  %14788 = vmatprep.mubr.msk.bf16.mxu1 %vm197_vm1, %v17662_v52  ;;  %v818_v54 = vor.u32 %v817_v16, %v813_v22  ;;  %v3924_v60 = vshrl.u32 %v17656_v62, 16  ;;  %v3926_v41 = vshll.u32 %v17656_v62, 16  ;;  %v3931_v23 = vshll.u32 %v17658_v51, 16 }
  0xa5   : > { %v17672_v32 = vor.u32 %v824_v42, %v822_v8  ;;  %v830_v38 = vrot.slane %v828_v26, 1  ;;  %21060 = vst [vmem:[#allocation24_spill] sm:$0xff] %v17674_v24  ;;  %v3935_v3 = vshrl.u32 %v17658_v51, 16  ;;  %v17680_v16 = vpack.c.bf16 %v662_v59, %v661_v61  ;;  %14789 = vmatmul.mubr.msk.bf16.gmra.mrb[20].mxu1 %vm197_vm1, %v3922_v44 }
  0xa6   : > { %v17678_v55 = vsel %vm691_vm3, %v818_v54, %v822_v8  ;;  %v3928_v52 = vrot.slane %v3926_v41, 1  ;;  %v3933_v22 = vrot.slane %v3931_v23, 1  ;;  %v3939_v26 = vshll.u32 %v17674_v24, 16  ;;  %v3775_v8 = vld [vmem:[#allocation2 + $0x268] sm:$0xff]  ;;  %v3776_v54 = vld [vmem:[#allocation2 + $0x270] sm:$0xff] }
  0xa7   : > { %21059 = vst [vmem:[#allocation23_spill] sm:$0xff] %v17672_v32  ;;  %21061 = vst [vmem:[#allocation25_spill] sm:$0xff] %v17678_v55  ;;  %14486 = vmatprep.mubr.msk.bf16.mxu0 %vm197_vm1, %v17678_v55  ;;  %v831_v42 = vsel %vm691_vm3, %v17672_v32, %v830_v38  ;;  %v17687_v30 = vpack.c.bf16 %v664_v53, %v663_v19  ;;  %v17689_v13 = vpack.c.bf16 %v665_v27, %v665_v27  ;;  %v3777_v55 = vld [vmem:[#allocation2 + $0x278] sm:$0x3] }
  0xa8   : > { %v3929_v61 = vor.u32 %v3928_v52, %v3924_v60  ;;  %v17692_v59 = vor.u32 %v3935_v3, %v3933_v22  ;;  %v833_v41 = vshrl.u32 %v17680_v16, 16  ;;  %v835_v23 = vshll.u32 %v17680_v16, 16 }
  0xa9   : > { %21062 = vst [vmem:[#allocation26_spill] sm:$0xff] %v17689_v13  ;;  %v3941_v38 = vrot.slane %v3939_v26, 1  ;;  %v840_v32 = vshll.u32 %v17687_v30, 16  ;;  %v844_v19 = vshrl.u32 %v17687_v30, 16  ;;  %v848_v53 = vshll.u32 %v17689_v13, 16  ;;  %14487 = vmatmul.mubr.msk.bf16.gmra.mrb[24].mxu0 %vm197_vm1, %v831_v42 }
  0xaa   : > { %v17700_v27 = vsel %vm691_vm3, %v3929_v61, %v3933_v22  ;;  %v837_v24 = vrot.slane %v835_v23, 1  ;;  %v17702_v44 = vpack.c.bf16 %v3774_v40, %v3773_v29  ;;  %v17704_v3 = vpack.c.bf16 %v3776_v54, %v3775_v8 }
  0xab   : > { %14792 = vmatprep.mubr.msk.bf16.mxu1 %vm197_vm1, %v17700_v27  ;;  %v842_v52 = vrot.slane %v840_v32, 1  ;;  %v850_v60 = vrot.slane %v848_v53, 1  ;;  %v17709_v26 = vpack.c.bf16 %v3777_v55, %v3777_v55  ;;  %v3942_v29 = vsel %vm691_vm3, %v17692_v59, %v3941_v38  ;;  %v13179_v53 = vld [vmem:[%s20950_s1 + $0xc] sm:$0xf] }
  0xac   : > { %v838_v31 = vor.u32 %v837_v24, %v833_v41  ;;  %v3944_v13 = vshrl.u32 %v17702_v44, 16  ;;  %v3946_v22 = vshll.u32 %v17702_v44, 16  ;;  %v3951_v61 = vshll.u32 %v17704_v3, 16 }
  0xad   : > { %v17716_v40 = vor.u32 %v844_v19, %v842_v52  ;;  %v3955_v42 = vshrl.u32 %v17704_v3, 16  ;;  %v3959_v8 = vshll.u32 %v17709_v26, 16  ;;  %14793 = vmatmul.mubr.msk.bf16.gmra.mrb[24].mxu1 %vm197_vm1, %v3942_v29  ;;  %v431_v29 = vld [vmem:[%s17299_s13 + $0x1f0] sm:$0xff] }
  0xae   : > { %v17721_v32 = vsel %vm691_vm3, %v838_v31, %v842_v52  ;;  %v3948_v55 = vrot.slane %v3946_v22, 1  ;;  %v3953_v24 = vrot.slane %v3951_v61, 1  ;;  %v4486_v52 = vsel %vm902_vm0, %v17399_v34, 0  ;;  %v429_v22 = vld [vmem:[%s17299_s13 + $0x1e0] sm:$0xff]  ;;  %v430_v61 = vld [vmem:[%s17299_s13 + $0x1e8] sm:$0xff]  ;;  %560 = vst.msk [vmem:[#allocation2 + $0x291] sm:$0xff] %vm197_vm1, %v431_v29 }
  0xaf   : > { %14490 = vmatprep.mubr.msk.bf16.mxu0 %vm197_vm1, %v17721_v32  ;;  %v851_v54 = vsel %vm691_vm3, %v17716_v40, %v850_v60  ;;  %v3961_v38 = vrot.slane %v3959_v8, 1  ;;  %v1288_v34 = vrot.slane %v17307_v14, 1  ;;  %v1289_v60 = vrot.slane %v17310_v17, 1  ;;  %558 = vst.msk [vmem:[#allocation2 + $0x281] sm:$0xff] %vm197_vm1, %v429_v22  ;;  %559 = vst.msk [vmem:[#allocation2 + $0x289] sm:$0xff] %vm197_vm1, %v430_v61 }
  0xb0   : > { %v3949_v41 = vor.u32 %v3948_v55, %v3944_v13  ;;  %v17728_v23 = vor.u32 %v3955_v42, %v3953_v24  ;;  %v1379_v13 = vsel %vm902_vm0, %v17356_v50, 0  ;;  %v17758_v50 = vld [vmem:[%s20950_s1 + $0xc] sm:$0xf]  ;;  %v432_v42 = vld [vmem:[%s17299_s13 + $0x1f8] sm:$0xff]  ;;  %v4397_v8 = vrot.slane %v17367_v57, 1 }
  0xb1   : > { %14491 = vmatmul.mubr.msk.bf16.gmra.mrb[28].mxu0 %vm197_vm1, %v851_v54  ;;  %561 = vst.msk [vmem:[#allocation2 + $0x299] sm:$0xff] %vm197_vm1, %v432_v42  ;;  %v1291_v55 = vrot.slane %v17312_v18, 1  ;;  %v1294_v54 = vrot.slane %v17379_v7, 1  ;;  %v1301_v22 = vrot.slane %v17434_v11, 1  ;;  %v1303_v29 = vrot.slane %v17488_v4, 1 }
  0xb2   : > { %v17731_v19 = vsel %vm691_vm3, %v3949_v41, %v3953_v24  ;;  %14496 = vmatprep.mubr.msk.bf16.mxu0 %vm197_vm1, %v17307_v14  ;;  %v3962_v31 = vsel %vm691_vm3, %v17728_v23, %v3961_v38  ;;  %v1290_v14 = vsel %vm1287_vm4, %v1288_v34, %v1289_v60  ;;  %v1293_v24 = vrot.slane %v17375_v1, 1  ;;  %v17862_v34 = vld [vmem:[%s20950_s1 + $0x10] sm:$0xf] }
  0xb3   : > { %14796 = vmatprep.mubr.msk.bf16.mxu1 %vm197_vm1, %v17731_v19  ;;  %v1689_v38 = vsel %vm902_vm0, %v13179_v53, 0  ;;  %v4409_v42 = vrot.slane %v17474_v49, 1  ;;  %v1308_v49 = vrot.slane %v17520_v58, 1 }
  0xb4   : > { %v1295_v18 = vsel %vm1287_vm4, %v1293_v24, %v1294_v54  ;;  %v17901_v24 = vrot.slane %v17526_v9, 1 }
  0xb5   : > { %14797 = vmatmul.mubr.msk.bf16.gmra.mrb[28].mxu1 %vm197_vm1, %v3962_v31  ;;  %v4401_v31 = vrot.slane %v17392_v6, 1 }
  0xb6   : > { %14802 = vmatprep.mubr.msk.bf16.mxu1 %vm197_vm1, %v17348_v46 }
  0xb9   : > { %14497 = vmatmul.mubr.msk.bf16.vlgmr.msra.gmra.mrb[0].mxu0 %vm197_vm1, %v17310_v17  ;;  %v4396_v17 = vrot.slane %v17348_v46, 1  ;;  %v1292_v46 = vsel %vm1287_vm4, %v1289_v60, %v1291_v55  ;;  %v4407_v60 = vrot.slane %v17463_v39, 1 }
  0xba   : > { %14529 = vmatpush3.bf16.msra.mxu0 %v1379_v13  ;;  %14500 = vmatprep.mubr.msk.bf16.mxu0 %vm197_vm1, %v17375_v1  ;;  %v4402_v1 = vrot.slane %v17402_v36, 1 }
  0xbb   : > { %16711 = vmatprep.subr.msk.bf16.mxu0 %vm902_vm0, %v13179_v53  ;;  %v4398_v41 = vsel %vm1287_vm4, %v4396_v17, %v4397_v8  ;;  %v1298_v53 = vrot.slane %v17423_v0, 1  ;;  %v17892_v17 = vrot.slane %v17507_v35, 1  ;;  %v4410_v55 = vsel %vm1287_vm4, %v4407_v60, %v4409_v42 }
  0xbd   : > { %14803 = vmatmul.mubr.msk.bf16.vlgmr.msra.gmra.mrb[0].mxu1 %vm197_vm1, %v17367_v57  ;;  %v4399_v57 = vrot.slane %v17373_v63, 1  ;;  %v1296_v63 = vrot.slane %v17389_v20, 1 }
  0xbe   : > { %14835 = vmatpush3.bf16.msra.mxu1 %v4486_v52  ;;  %14806 = vmatprep.mubr.msk.bf16.mxu1 %vm197_vm1, %v17392_v6  ;;  %v1299_v6 = vrot.slane %v17425_v2, 1  ;;  %v4403_v52 = vsel %vm1287_vm4, %v4401_v31, %v4402_v1 }
  0xbf   : > { %16720 = vmatprep.subr.msk.bf16.mxu1 %vm902_vm0, %v17758_v50  ;;  %v4400_v13 = vsel %vm1287_vm4, %v4397_v8, %v4399_v57  ;;  %v1297_v20 = vsel %vm1287_vm4, %v1294_v54, %v1296_v63  ;;  %v1306_v8 = vrot.slane %v17495_v15, 1  ;;  %v4414_v15 = vrot.slane %v17511_v43, 1 }
  0xc0   : > { %v4416_v57 = vrot.slane %v17552_v47, 1  ;;  %v1313_v43 = vrot.slane %v17596_v56, 1  ;;  %v17929_v63 = vrot.slane %v17604_v10, 1 }
  0xc1   : > { %14501 = vmatmul.mubr.msk.bf16.gmra.mrb[4].mxu0 %vm197_vm1, %v17379_v7  ;;  %v17846_v7 = vld [vmem:[%s20950_s1 + $0x10] sm:$0xf] }
  0xc2   : > { %14504 = vmatprep.mubr.msk.bf16.mxu0 %vm197_vm1, %v17423_v0  ;;  %v4404_v0 = vrot.slane %v17408_v45, 1  ;;  %v17879_v45 = vrot.slane %v17490_v5, 1 }
  0xc4   : > { %v4405_v61 = vsel %vm1287_vm4, %v4402_v1, %v4404_v0  ;;  %v17888_v11 = vsel %vm1287_vm4, %v1303_v29, %v17879_v45  ;;  %v4415_v1 = vsel %vm1287_vm4, %v17892_v17, %v4414_v15  ;;  %v17947_v0 = vrot.slane %v17621_v28, 1 }
  0xc5   : > { %14807 = vmatmul.mubr.msk.bf16.gmra.mrb[4].mxu1 %vm197_vm1, %v17402_v36  ;;  %v4796_v36 = vsel %vm902_vm0, %v17758_v50, 0  ;;  %v4406_v50 = vrot.slane %v17436_v12, 1 }
  0xc6   : > { %14810 = vmatprep.mubr.msk.bf16.mxu1 %vm197_vm1, %v17436_v12 }
  0xc7   : > { %v4408_v12 = vsel %vm1287_vm4, %v4406_v50, %v4407_v60 }
  0xc9   : > { %14505 = vmatmul.mubr.msk.bf16.gmra.mrb[8].mxu0 %vm197_vm1, %v17425_v2  ;;  %v1300_v2 = vsel %vm1287_vm4, %v1298_v53, %v1299_v6 }
  0xca   : > { %14508 = vmatprep.mubr.msk.bf16.mxu0 %vm197_vm1, %v17488_v4 }
  0xcd   : > { %14811 = vmatmul.mubr.msk.bf16.gmra.mrb[8].mxu1 %vm197_vm1, %v17463_v39  ;;  %v1302_v39 = vsel %vm1287_vm4, %v1299_v6, %v1301_v22  ;;  %v21064_v6 = vld [vmem:[#allocation12_spill] sm:$0xff]  ;;  %v1318_v22 = vrot.slane %v17636_v25, 1 }
  0xce   : > { %14814 = vmatprep.mubr.msk.bf16.mxu1 %vm197_vm1, %v17505_v33 }
  0xd1   : > { %14509 = vmatmul.mubr.msk.bf16.gmra.mrb[12].mxu0 %vm197_vm1, %v17490_v5 }
  0xd2   : > { %14512 = vmatprep.mubr.msk.bf16.mxu0 %vm197_vm1, %v17520_v58 }
  0xd5   : > { %14815 = vmatmul.mubr.msk.bf16.gmra.mrb[12].mxu1 %vm197_vm1, %v17507_v35 }
  0xd6   : > { %14818 = vmatprep.mubr.msk.bf16.mxu1 %vm197_vm1, %v17552_v47 }
  0xd9   : > { %14513 = vmatmul.mubr.msk.bf16.gmra.mrb[16].mxu0 %vm197_vm1, %v17526_v9 }
  0xda   : > { %14516 = vmatprep.mubr.msk.bf16.mxu0 %vm197_vm1, %v17596_v56 }
  0xdd   : > { %14819 = vmatmul.mubr.msk.bf16.gmra.mrb[16].mxu1 %vm197_vm1, %v17554_v48 }
  0xde   : > { %14822 = vmatprep.mubr.msk.bf16.mxu1 %vm197_vm1, %v17619_v21 }
  0xe1   : > { %14517 = vmatmul.mubr.msk.bf16.gmra.mrb[20].mxu0 %vm197_vm1, %v17604_v10 }
  0xe2   : > { %14520 = vmatprep.mubr.msk.bf16.mxu0 %vm197_vm1, %v17636_v25 }
  0xe5   : > { %14823 = vmatmul.mubr.msk.bf16.gmra.mrb[20].mxu1 %vm197_vm1, %v17621_v28 }
  0xe6   : > { %14826 = vmatprep.mubr.msk.bf16.mxu1 %vm197_vm1, %v17656_v62 }
  0xe9   : > { %14521 = vmatmul.mubr.msk.bf16.gmra.mrb[24].mxu0 %vm197_vm1, %v17641_v37 }
  0xea   : > { %14524 = vmatprep.mubr.msk.bf16.mxu0 %vm197_vm1, %v17680_v16 }
  0xed   : > { %14827 = vmatmul.mubr.msk.bf16.gmra.mrb[24].mxu1 %vm197_vm1, %v17658_v51 }
  0xee   : > { %14830 = vmatprep.mubr.msk.bf16.mxu1 %vm197_vm1, %v17702_v44 }
  0xf1   : > { %14525 = vmatmul.mubr.msk.bf16.gmra.mrb[28].mxu0 %vm197_vm1, %v17687_v30 }
  0xf2   : > { %14530 = vmatprep.mubr.msk.bf16.mxu0 %vm197_vm1, %v1290_v14  ;;  %v4411_v14 = vrot.slane %v17505_v33, 1 }
  0xf4   : > { %v17905_v54 = vsel %vm1287_vm4, %v4411_v14, %v17892_v17 }
  0xf5   : > { %14831 = vmatmul.mubr.msk.bf16.gmra.mrb[28].mxu1 %vm197_vm1, %v17704_v3 }
  0xf6   : > { %14836 = vmatprep.mubr.msk.bf16.mxu1 %vm197_vm1, %v4398_v41  ;;  %v1307_v41 = vsel %vm1287_vm4, %v17879_v45, %v1306_v8  ;;  %v4426_v8 = vrot.slane %v17656_v62, 1 }
  0xf9   : > { %14531 = vmatmul.mubr.msk.bf16.vlgmr.msra.gmra.mrb[0].mxu0 %vm197_vm1, %v1292_v46  ;;  %v17915_v46 = vsel %vm1287_vm4, %v1308_v49, %v17901_v24  ;;  %v21068_v49 = vld [vmem:[#allocation21_spill] sm:$0xff] }
  0xfa   : > { %14563 = vmatpush3.bf16.msra.mxu0 %v1689_v38  ;;  %14534 = vmatprep.mubr.msk.bf16.mxu0 %vm197_vm1, %v1295_v18  ;;  %v17919_v38 = vrot.slane %v17554_v48, 1  ;;  %v21063_v18 = vld [vmem:[#allocation9_spill] sm:$0xff] }
  0xfb   : > { %16712 = vmatprep.subr.msk.bf16.mxu0 %vm902_vm0, %v17846_v7  ;;  %v1311_v31 = vrot.slane %v21063_v18, 1  ;;  %v17985_v18 = vrot.slane %v17687_v30, 1 }
  0xfd   : > { %14837 = vmatmul.mubr.msk.bf16.vlgmr.msra.gmra.mrb[0].mxu1 %vm197_vm1, %v4400_v13  ;;  %v17933_v13 = vsel %vm1287_vm4, %v4416_v57, %v17919_v38  ;;  %v1312_v53 = vsel %vm1287_vm4, %v17901_v24, %v1311_v31  ;;  %v1323_v57 = vrot.slane %v17680_v16, 1  ;;  %21069 = vst [vmem:[#allocation12_spill] sm:$0xff] %v17985_v18 }
  0xfe   : > { %14869 = vmatpush3.bf16.msra.mxu1 %v4796_v36  ;;  %14840 = vmatprep.mubr.msk.bf16.mxu1 %vm197_vm1, %v4403_v52  ;;  %v4419_v36 = vrot.slane %v21064_v6, 1  ;;  %v17943_v52 = vsel %vm1287_vm4, %v1313_v43, %v17929_v63  ;;  %v21070_v43 = vld [vmem:[#allocation24_spill] sm:$0xff] }
  0xff   : > { %16721 = vmatprep.subr.msk.bf16.mxu1 %vm902_vm0, %v17862_v34  ;;  %v17999_v6 = vsel %vm1287_vm4, %v1323_v57, %v17985_v18  ;;  %v1576_v57 = vld [vmem:[#allocation2 + $0x38] sm:$0xff] }
 0x100   : > { %v4420_v60 = vsel %vm1287_vm4, %v17919_v38, %v4419_v36  ;;  %v4431_v36 = vrot.slane %v17702_v44, 1 }
 0x101   : > { %14535 = vmatmul.mubr.msk.bf16.gmra.mrb[4].mxu0 %vm197_vm1, %v1297_v20  ;;  %v4421_v20 = vrot.slane %v17619_v21, 1 }
 0x102   : > { %14538 = vmatprep.mubr.msk.bf16.mxu0 %vm197_vm1, %v1300_v2  ;;  %v21065_v2 = vld [vmem:[#allocation14_spill] sm:$0xff] }
 0x103   : > { %v1316_v50 = vrot.slane %v21065_v2, 1  ;;  %v17961_v29 = vsel %vm1287_vm4, %v4421_v20, %v17947_v0  ;;  %21071 = vst [vmem:[#allocation14_spill] sm:$0xff] %v17999_v6  ;;  %v18003_v20 = vrot.slane %v17704_v3, 1  ;;  %v21073_v2 = vld [vmem:[#allocation26_spill] sm:$0xff] }
 0x105   : > { %14841 = vmatmul.mubr.msk.bf16.gmra.mrb[4].mxu1 %vm197_vm1, %v4405_v61  ;;  %v17957_v61 = vrot.slane %v17641_v37, 1 }
 0x106   : > { %14844 = vmatprep.mubr.msk.bf16.mxu1 %vm197_vm1, %v4408_v12  ;;  %v1317_v12 = vsel %vm1287_vm4, %v17929_v63, %v1316_v50  ;;  %v1326_v50 = vrot.slane %v21073_v2, 1  ;;  %v1580_v2 = vld [vmem:[#allocation2 + $0x58] sm:$0xff] }
 0x107   : > { %v17971_v14 = vsel %vm1287_vm4, %v1318_v22, %v17957_v61  ;;  %v1574_v22 = vld [vmem:[#allocation2 + $0x28] sm:$0xff] }
 0x109   : > { %14539 = vmatmul.mubr.msk.bf16.gmra.mrb[8].mxu0 %vm197_vm1, %v1302_v39  ;;  %v21066_v39 = vld [vmem:[#allocation17_spill] sm:$0xff] }
 0x10a   : > { %14542 = vmatprep.mubr.msk.bf16.mxu0 %vm197_vm1, %v17888_v11  ;;  %v4424_v42 = vrot.slane %v21066_v39, 1  ;;  %21072 = vst [vmem:[#allocation17_spill] sm:$0xff] %v18003_v20  ;;  %v18013_v39 = vsel %vm1287_vm4, %v4431_v36, %v18003_v20  ;;  %v1579_v36 = vld [vmem:[#allocation2 + $0x50] sm:$0xff] }
 0x10b   : > { %21074 = vst [vmem:[#allocation21_spill] sm:$0xff] %v18013_v39 }
 0x10c   : > { %v4425_v15 = vsel %vm1287_vm4, %v17947_v0, %v4424_v42  ;;  %v1327_v42 = vsel %vm1287_vm4, %v17985_v18, %v1326_v50 }
 0x10d   : > { %14845 = vmatmul.mubr.msk.bf16.gmra.mrb[8].mxu1 %vm197_vm1, %v4410_v55  ;;  %v17975_v55 = vrot.slane %v17658_v51, 1 }
 0x10e   : > { %14848 = vmatprep.mubr.msk.bf16.mxu1 %vm197_vm1, %v17905_v54 }
 0x10f   : > { %21067 = vst [vmem:[#allocation9_spill] sm:$0xff] %v17975_v55  ;;  %v17989_v31 = vsel %vm1287_vm4, %v4426_v8, %v17975_v55 }
 0x111   : > { %14543 = vmatmul.mubr.msk.bf16.gmra.mrb[12].mxu0 %vm197_vm1, %v1307_v41  ;;  %v1321_v41 = vrot.slane %v21068_v49, 1  ;;  %v4434_v49 = vrot.slane %v17709_v26, 1  ;;  %v18033_v26 = vpack.c.bf16 %v1580_v2, %v1579_v36  ;;  %v18061_v2 = vld [vmem:[%s20950_s1 + $0x14] sm:$0xf] }
 0x112   : > { %14546 = vmatprep.mubr.msk.bf16.mxu0 %vm197_vm1, %v17915_v46 }
 0x115   : > { %14849 = vmatmul.mubr.msk.bf16.gmra.mrb[12].mxu1 %vm197_vm1, %v4415_v1  ;;  %v1322_v1 = vsel %vm1287_vm4, %v17957_v61, %v1321_v41  ;;  %v4682_v41 = vld [vmem:[#allocation2 + $0x168] sm:$0xff] }
 0x116   : > { %14852 = vmatprep.mubr.msk.bf16.mxu1 %vm197_vm1, %v17933_v13 }
 0x119   : > { %14547 = vmatmul.mubr.msk.bf16.gmra.mrb[16].mxu0 %vm197_vm1, %v1312_v53  ;;  %v4429_v53 = vrot.slane %v21070_v43, 1  ;;  %v4435_v43 = vsel %vm1287_vm4, %v18003_v20, %v4434_v49  ;;  %v4688_v49 = vld [vmem:[#allocation2 + $0x198] sm:$0xff] }
 0x11a   : > { %14550 = vmatprep.mubr.msk.bf16.mxu0 %vm197_vm1, %v17943_v52 }
 0x11d   : > { %14853 = vmatmul.mubr.msk.bf16.gmra.mrb[16].mxu1 %vm197_vm1, %v4420_v60  ;;  %v4430_v60 = vsel %vm1287_vm4, %v17975_v55, %v4429_v53 }
 0x11e   : > { %14856 = vmatprep.mubr.msk.bf16.mxu1 %vm197_vm1, %v17961_v29 }
 0x121   : > { %14551 = vmatmul.mubr.msk.bf16.gmra.mrb[20].mxu0 %vm197_vm1, %v1317_v12  ;;  %v1575_v12 = vld [vmem:[#allocation2 + $0x30] sm:$0xff] }
 0x122   : > { %14554 = vmatprep.mubr.msk.bf16.mxu0 %vm197_vm1, %v17971_v14  ;;  %v18018_v8 = vpack.c.bf16 %v1575_v12, %v1574_v22  ;;  %v4684_v22 = vld [vmem:[#allocation2 + $0x178] sm:$0xff]  ;;  %v4685_v12 = vld [vmem:[#allocation2 + $0x180] sm:$0xff] }
 0x125   : > { %14857 = vmatmul.mubr.msk.bf16.gmra.mrb[20].mxu1 %vm197_vm1, %v4425_v15  ;;  %v4683_v15 = vld [vmem:[#allocation2 + $0x170] sm:$0xff] }
 0x126   : > { %14860 = vmatprep.mubr.msk.bf16.mxu1 %vm197_vm1, %v17989_v31  ;;  %v18028_v53 = vpack.c.bf16 %v4683_v15, %v4682_v41  ;;  %v18042_v41 = vld [vmem:[%s20950_s1 + $0x14] sm:$0xf]  ;;  %v18046_v15 = vpack.c.bf16 %v4685_v12, %v4684_v22  ;;  %v4690_v22 = vld [vmem:[#allocation2 + $0x1a8] sm:$0xff]  ;;  %v1904_v12 = vshll.u32 %v18033_v26, 16 }
 0x129   : > { %14555 = vmatmul.mubr.msk.bf16.gmra.mrb[24].mxu0 %vm197_vm1, %v1322_v1  ;;  %v1577_v1 = vld [vmem:[#allocation2 + $0x40] sm:$0xff] }
 0x12a   : > { %14558 = vmatprep.mubr.msk.bf16.mxu0 %vm197_vm1, %v17999_v6  ;;  %v18030_v50 = vpack.c.bf16 %v1577_v1, %v1576_v57  ;;  %v1581_v57 = vld [vmem:[#allocation2 + $0x60] sm:$0xff] }
 0x12b   : > { %v4721_v6 = vld [vmem:[#allocation2 + $0x2a0] sm:$0x3] }
 0x12d   : > { %14861 = vmatmul.mubr.msk.bf16.gmra.mrb[24].mxu1 %vm197_vm1, %v4430_v60  ;;  %v2079_v60 = vsel %vm902_vm0, %v17846_v7, 0  ;;  %v1582_v7 = vld [vmem:[#allocation2 + $0x68] sm:$0xff] }
 0x12e   : > { %14864 = vmatprep.mubr.msk.bf16.mxu1 %vm197_vm1, %v18013_v39  ;;  %v18056_v36 = vpack.c.bf16 %v1582_v7, %v1581_v57  ;;  %v4997_v57 = vshll.u32 %v18046_v15, 16  ;;  %v1894_v7 = vshrl.u32 %v18030_v50, 16 }
 0x131   : > { %14559 = vmatmul.mubr.msk.bf16.gmra.mrb[28].mxu0 %vm197_vm1, %v1327_v42  ;;  %v4687_v42 = vld [vmem:[#allocation2 + $0x190] sm:$0xff] }
 0x132   : > { %14564 = vmatprep.mubr.msk.bf16.mxu0 %vm197_vm1, %v18018_v8  ;;  %v18050_v1 = vpack.c.bf16 %v4688_v49, %v4687_v42  ;;  %v4991_v42 = vshrl.u32 %v18028_v53, 16 }
 0x134   : > { %v5009_v20 = vshrl.u32 %v18050_v1, 16 }
 0x135   : > { %14865 = vmatmul.mubr.msk.bf16.gmra.mrb[28].mxu1 %vm197_vm1, %v4435_v43  ;;  %v5185_v43 = vsel %vm902_vm0, %v17862_v34, 0 }
 0x136   : > { %14870 = vmatprep.mubr.msk.bf16.mxu1 %vm197_vm1, %v18028_v53 }
 0x139   : > { %14565 = vmatmul.mubr.msk.bf16.vlgmr.msra.gmra.mrb[0].mxu0 %vm197_vm1, %v18030_v50 }
 0x13a   : > { %14597 = vmatpush3.bf16.msra.mxu0 %v2079_v60  ;;  %14568 = vmatprep.mubr.msk.bf16.mxu0 %vm197_vm1, %v18033_v26  ;;  %v4689_v60 = vld [vmem:[#allocation2 + $0x1a0] sm:$0xff] }
 0x13b   : > { %16713 = vmatprep.subr.msk.bf16.mxu0 %vm902_vm0, %v18042_v41  ;;  %v18071_v34 = vpack.c.bf16 %v4690_v22, %v4689_v60  ;;  %v4719_v22 = vld [vmem:[#allocation2 + $0x290] sm:$0xff] }
 0x13d   : > { %14871 = vmatmul.mubr.msk.bf16.vlgmr.msra.gmra.mrb[0].mxu1 %vm197_vm1, %v18046_v15 }
 0x13e   : > { %14903 = vmatpush3.bf16.msra.mxu1 %v5185_v43  ;;  %14874 = vmatprep.mubr.msk.bf16.mxu1 %vm197_vm1, %v18050_v1 }
 0x13f   : > { %16722 = vmatprep.subr.msk.bf16.mxu1 %vm902_vm0, %v18061_v2 }
 0x141   : > { %14569 = vmatmul.mubr.msk.bf16.gmra.mrb[4].mxu0 %vm197_vm1, %v18056_v36 }
 0x142   : > { %14572 = vmatprep.mubr.msk.bf16.mxu0 %vm197_vm1, %v17488_v4  ;;  %v1609_v4 = vld [vmem:[#allocation2 + $0x140] sm:$0xff] }
 0x145   : > { %14875 = vmatmul.mubr.msk.bf16.gmra.mrb[4].mxu1 %vm197_vm1, %v18071_v34 }
 0x146   : > { %14878 = vmatprep.mubr.msk.bf16.mxu1 %vm197_vm1, %v17505_v33  ;;  %v1886_v33 = vshll.u32 %v18018_v8, 16 }
 0x149   : > { %14573 = vmatmul.mubr.msk.bf16.gmra.mrb[8].mxu0 %vm197_vm1, %v17490_v5  ;;  %v1610_v5 = vld [vmem:[#allocation2 + $0x148] sm:$0xff] }
 0x14a   : > { %14576 = vmatprep.mubr.msk.bf16.mxu0 %vm197_vm1, %v17520_v58  ;;  %v1578_v58 = vld [vmem:[#allocation2 + $0x48] sm:$0x3] }
 0x14d   : > { %14879 = vmatmul.mubr.msk.bf16.gmra.mrb[8].mxu1 %vm197_vm1, %v17507_v35  ;;  %v18110_v35 = vpack.c.bf16 %v1610_v5, %v1609_v4  ;;  %v4720_v4 = vld [vmem:[#allocation2 + $0x298] sm:$0xff] }
 0x14e   : > { %14882 = vmatprep.mubr.msk.bf16.mxu1 %vm197_vm1, %v17552_v47  ;;  %v1890_v47 = vshll.u32 %v18030_v50, 16 }
 0x14f   : > { %21075 = vst [vmem:[#allocation24_spill] sm:$0xff] %v18110_v35 }
 0x151   : > { %14577 = vmatmul.mubr.msk.bf16.gmra.mrb[12].mxu0 %vm197_vm1, %v17526_v9  ;;  %v1888_v9 = vrot.slane %v1886_v33, 1  ;;  %v1902_v33 = vshrl.u32 %v18033_v26, 16 }
 0x152   : > { %14580 = vmatprep.mubr.msk.bf16.mxu0 %vm197_vm1, %v17596_v56  ;;  %v4718_v56 = vld [vmem:[#allocation2 + $0x288] sm:$0xff] }
 0x155   : > { %14883 = vmatmul.mubr.msk.bf16.gmra.mrb[12].mxu1 %vm197_vm1, %v17554_v48  ;;  %v4717_v48 = vld [vmem:[#allocation2 + $0x280] sm:$0xff] }
 0x156   : > { %14886 = vmatprep.mubr.msk.bf16.mxu1 %vm197_vm1, %v17619_v21  ;;  %v1611_v21 = vld [vmem:[#allocation2 + $0x150] sm:$0xff] }
 0x159   : > { %14581 = vmatmul.mubr.msk.bf16.gmra.mrb[16].mxu0 %vm197_vm1, %v17604_v10  ;;  %v4993_v10 = vshll.u32 %v18028_v53, 16 }
 0x15a   : > { %14584 = vmatprep.mubr.msk.bf16.mxu0 %vm197_vm1, %v17636_v25  ;;  %v4686_v25 = vld [vmem:[#allocation2 + $0x188] sm:$0x3] }
 0x15b   : > { %v4995_v49 = vrot.slane %v4993_v10, 1  ;;  %v18132_v60 = vpack.c.bf16 %v4686_v25, %v4686_v25  ;;  %v18146_v25 = vpack.c.bf16 %v4720_v4, %v4719_v22  ;;  %v2389_v22 = vsel %vm902_vm0, %v18042_v41, 0 }
 0x15c   : > { %v1912_v4 = vshrl.u32 %v18056_v36, 16 }
 0x15d   : > { %14887 = vmatmul.mubr.msk.bf16.gmra.mrb[16].mxu1 %vm197_vm1, %v17621_v28  ;;  %v1612_v28 = vld [vmem:[#allocation2 + $0x158] sm:$0xff] }
 0x15e   : > { %14890 = vmatprep.mubr.msk.bf16.mxu1 %vm197_vm1, %v17656_v62  ;;  %v1884_v62 = vshrl.u32 %v18018_v8, 16 }
 0x161   : > { %14585 = vmatmul.mubr.msk.bf16.gmra.mrb[20].mxu0 %vm197_vm1, %v17641_v37  ;;  %v18119_v37 = vpack.c.bf16 %v1578_v58, %v1578_v58  ;;  %v1906_v58 = vrot.slane %v1904_v12, 1 }
 0x162   : > { %14588 = vmatprep.mubr.msk.bf16.mxu0 %vm197_vm1, %v17680_v16  ;;  %v1889_v16 = vor.u32 %v1888_v9, %v1884_v62  ;;  %v1908_v62 = vshll.u32 %v18056_v36, 16  ;;  %v1583_v9 = vld [vmem:[#allocation2 + $0x70] sm:$0x3] }
 0x163   : > { %v1898_v43 = vshll.u32 %v18119_v37, 16  ;;  %v1907_v12 = vor.u32 %v1906_v58, %v1902_v33  ;;  %v1588_v58 = vld [vmem:[#allocation2 + $0x98] sm:$0x3] }
 0x165   : > { %14891 = vmatmul.mubr.msk.bf16.gmra.mrb[20].mxu1 %vm197_vm1, %v17658_v51  ;;  %v18123_v51 = vpack.c.bf16 %v4718_v56, %v4717_v48  ;;  %v4999_v48 = vrot.slane %v4997_v57, 1  ;;  %v5011_v56 = vshll.u32 %v18050_v1, 16  ;;  %v1900_v10 = vrot.slane %v1898_v43, 1 }
 0x166   : > { %14894 = vmatprep.mubr.msk.bf16.mxu1 %vm197_vm1, %v17702_v44  ;;  %v1892_v44 = vrot.slane %v1890_v47, 1  ;;  %v4996_v47 = vor.u32 %v4995_v49, %v4991_v42  ;;  %v1910_v42 = vrot.slane %v1908_v62, 1  ;;  %v4691_v49 = vld [vmem:[#allocation2 + $0x1b0] sm:$0x3] }
 0x167   : > { %v5013_v39 = vrot.slane %v5011_v56, 1  ;;  %v18161_v33 = vpack.c.bf16 %v4691_v49, %v4691_v49  ;;  %v18174_v56 = vpack.c.bf16 %v1588_v58, %v1588_v58  ;;  %v5119_v55 = vshll.u32 %v18123_v51, 16 }
 0x168   : > { %v1893_v5 = vsel %vm691_vm3, %v1889_v16, %v1892_v44  ;;  %v18149_v16 = vpack.c.bf16 %v1583_v9, %v1583_v9  ;;  %v5000_v57 = vsel %vm691_vm3, %v4996_v47, %v4999_v48  ;;  %v18165_v62 = vsel %vm691_vm3, %v1907_v12, %v1910_v42 }
 0x169   : > { %14589 = vmatmul.mubr.msk.bf16.gmra.mrb[24].mxu0 %vm197_vm1, %v17687_v30  ;;  %v18128_v30 = vpack.c.bf16 %v1612_v28, %v1611_v21  ;;  %v5001_v21 = vshrl.u32 %v18046_v15, 16  ;;  %v5005_v28 = vshll.u32 %v18132_v60, 16  ;;  %21076 = vst [vmem:[#allocation26_spill] sm:$0xff] %v18165_v62  ;;  %v5014_v9 = vor.u32 %v5013_v39, %v5009_v20 }
 0x16a   : > { %14592 = vmatprep.mubr.msk.bf16.mxu0 %vm197_vm1, %v18110_v35  ;;  %v5019_v20 = vshrl.u32 %v18071_v34, 16  ;;  %v5023_v39 = vshll.u32 %v18161_v33, 16  ;;  %v1934_v12 = vshll.u32 %v18174_v56, 16 }
 0x16b   : > { %v5003_v43 = vor.u32 %v5001_v21, %v4999_v48  ;;  %v5007_v18 = vrot.slane %v5005_v28, 1  ;;  %v18170_v48 = vld [vmem:[%s20950_s1 + $0x18] sm:$0xf]  ;;  %v5494_v21 = vsel %vm902_vm0, %v18061_v2, 0 }
 0x16c   : > { %v4696_v28 = vld [vmem:[#allocation2 + $0x1d8] sm:$0x3] }
 0x16d   : > { %14895 = vmatmul.mubr.msk.bf16.gmra.mrb[24].mxu1 %vm197_vm1, %v17704_v3  ;;  %v1896_v3 = vor.u32 %v1894_v7, %v1892_v44  ;;  %v5015_v44 = vshll.u32 %v18071_v34, 16  ;;  %v5008_v41 = vsel %vm691_vm3, %v5003_v43, %v5007_v18  ;;  %v1936_v43 = vrot.slane %v1934_v12, 1 }
 0x16e   : > { %14898 = vmatprep.mubr.msk.bf16.mxu1 %vm197_vm1, %v18123_v51 }
 0x16f   : > { %v1901_v7 = vsel %vm691_vm3, %v1896_v3, %v1900_v10  ;;  %v5017_v47 = vrot.slane %v5015_v44, 1  ;;  %v18178_v3 = vor.u32 %v1912_v4, %v1910_v42  ;;  %v18193_v42 = vld [vmem:[%s20950_s1 + $0x18] sm:$0xf]  ;;  %v18200_v44 = vpack.c.bf16 %v4696_v28, %v4696_v28  ;;  %v21082_v28 = vld [vmem:[#allocation10_spill] sm:$0xff] }
 0x171   : > { %14593 = vmatmul.mubr.msk.bf16.gmra.mrb[28].mxu0 %vm197_vm1, %v18128_v30  ;;  %21077 = vst [vmem:[#allocation27_spill] sm:$0xff] %v18178_v3  ;;  %v18187_v18 = vsel %vm691_vm3, %v5014_v9, %v5017_v47  ;;  %v18198_v2 = vor.u32 %v5019_v20, %v5017_v47  ;;  %v5041_v4 = vshll.u32 %v18200_v44, 16  ;;  %v4701_v9 = vld [vmem:[#allocation2 + $0x200] sm:$0x3]  ;;  %v21081_v47 = vld [vmem:[#allocation6_spill] sm:$0xff] }
 0x172   : > { %14598 = vmatprep.mubr.msk.bf16.mxu0 %vm197_vm1, %v1893_v5  ;;  %v1916_v5 = vshll.u32 %v18149_v16, 16  ;;  %21078 = vst [vmem:[#allocation28_spill] sm:$0xff] %v18187_v18 }
 0x173   : > { %21079 = vst [vmem:[#allocation29_spill] sm:$0xff] %v18198_v2 }
 0x174   : > { %v1918_v10 = vrot.slane %v1916_v5, 1 }
 0x175   : > { %14899 = vmatmul.mubr.msk.bf16.gmra.mrb[28].mxu1 %vm197_vm1, %v18146_v25 }
 0x176   : > { %14904 = vmatprep.mubr.msk.bf16.mxu1 %vm197_vm1, %v5000_v57  ;;  %v1919_v49 = vsel %vm691_vm3, %v18178_v3, %v1918_v10  ;;  %v5025_v57 = vrot.slane %v5023_v39, 1  ;;  %v5043_v10 = vrot.slane %v5041_v4, 1  ;;  %v18218_v39 = vpack.c.bf16 %v4701_v9, %v4701_v9  ;;  %v4706_v4 = vld [vmem:[#allocation2 + $0x228] sm:$0x3]  ;;  %v21085_v9 = vld [vmem:[#allocation11_spill] sm:$0xff] }
 0x178   : > { %v5026_v58 = vsel %vm691_vm3, %v18198_v2, %v5025_v57  ;;  %v21087_v2 = vld [vmem:[#allocation19_spill] sm:$0xff] }
 0x179   : > { %14599 = vmatmul.mubr.msk.bf16.vlgmr.msra.gmra.mrb[0].mxu0 %vm197_vm1, %v1901_v7  ;;  %v1593_v7 = vld [vmem:[#allocation2 + $0xc0] sm:$0x3] }
 0x17a   : > { %14631 = vmatpush3.bf16.msra.mxu0 %v2389_v22  ;;  %14602 = vmatprep.mubr.msk.bf16.mxu0 %vm197_vm1, %v18165_v62  ;;  %v21080_v22 = vld [vmem:[#allocation7_spill] sm:$0xff]  ;;  %v18210_v5 = vpack.c.bf16 %v1593_v7, %v1593_v7  ;;  %v5059_v7 = vshll.u32 %v18218_v39, 16 }
 0x17b   : > { %16714 = vmatprep.subr.msk.bf16.mxu0 %vm902_vm0, %v18170_v48 }
 0x17c   : > { %v1952_v20 = vshll.u32 %v18210_v5, 16 }
 0x17d   : > { %14905 = vmatmul.mubr.msk.bf16.vlgmr.msra.gmra.mrb[0].mxu1 %vm197_vm1, %v5008_v41  ;;  %v1937_v41 = vsel %vm691_vm3, %v21081_v47, %v1936_v43  ;;  %v21084_v43 = vld [vmem:[#allocation8_spill] sm:$0xff] }
 0x17e   : > { %14937 = vmatpush3.bf16.msra.mxu1 %v5494_v21  ;;  %14908 = vmatprep.mubr.msk.bf16.mxu1 %vm197_vm1, %v18187_v18  ;;  %v1598_v21 = vld [vmem:[#allocation2 + $0xe8] sm:$0x3]  ;;  %v1954_v57 = vrot.slane %v1952_v20, 1  ;;  %v1603_v20 = vld [vmem:[#allocation2 + $0x110] sm:$0x3] }
 0x17f   : > { %16723 = vmatprep.subr.msk.bf16.mxu1 %vm902_vm0, %v18193_v42  ;;  %v18223_v12 = vpack.c.bf16 %v1598_v21, %v1598_v21  ;;  %v18234_v21 = vpack.c.bf16 %v4706_v4, %v4706_v4  ;;  %v21089_v4 = vld [vmem:[#allocation18_spill] sm:$0xff]  ;;  %v1608_v18 = vld [vmem:[#allocation2 + $0x138] sm:$0x3] }
 0x180   : > { %v1955_v47 = vsel %vm691_vm3, %v21085_v9, %v1954_v57 }
 0x181   : > { %14603 = vmatmul.mubr.msk.bf16.gmra.mrb[4].mxu0 %vm197_vm1, %v1919_v49  ;;  %v21083_v49 = vld [vmem:[#allocation13_spill] sm:$0xff] }
 0x182   : > { %14606 = vmatprep.mubr.msk.bf16.mxu0 %vm197_vm1, %v21080_v22  ;;  %v5044_v22 = vsel %vm691_vm3, %v21084_v43, %v5043_v10  ;;  %v5077_v10 = vshll.u32 %v18234_v21, 16  ;;  %v18242_v43 = vpack.c.bf16 %v1603_v20, %v1603_v20  ;;  %v18255_v20 = vpack.c.bf16 %v1608_v18, %v1608_v18 }
 0x184   : > { %21091 = vst [vmem:[#allocation7_spill] sm:$0xff] %v18255_v20  ;;  %v2006_v3 = vshll.u32 %v18255_v20, 16  ;;  %v5123_v20 = vshll.u32 %v18146_v25, 16 }
 0x185   : > { %14909 = vmatmul.mubr.msk.bf16.gmra.mrb[4].mxu1 %vm197_vm1, %v5026_v58  ;;  %v1970_v58 = vshll.u32 %v18223_v12, 16 }
 0x186   : > { %14912 = vmatprep.mubr.msk.bf16.mxu1 %vm197_vm1, %v21082_v28  ;;  %v21086_v28 = vld [vmem:[#allocation16_spill] sm:$0xff] }
 0x189   : > { %14607 = vmatmul.mubr.msk.bf16.gmra.mrb[8].mxu0 %vm197_vm1, %v1937_v41  ;;  %v5061_v41 = vrot.slane %v5059_v7, 1  ;;  %v4711_v7 = vld [vmem:[#allocation2 + $0x250] sm:$0x3] }
 0x18a   : > { %14610 = vmatprep.mubr.msk.bf16.mxu0 %vm197_vm1, %v21083_v49  ;;  %v1972_v49 = vrot.slane %v1970_v58, 1  ;;  %v18250_v58 = vpack.c.bf16 %v4711_v7, %v4711_v7  ;;  %v2012_v7 = vshll.u32 %v18110_v35, 16 }
 0x18c   : > { %v1973_v9 = vsel %vm691_vm3, %v21089_v4, %v1972_v49  ;;  %v5095_v49 = vshll.u32 %v18250_v58, 16  ;;  %v4716_v4 = vld [vmem:[#allocation2 + $0x278] sm:$0x3] }
 0x18d   : > { %14913 = vmatmul.mubr.msk.bf16.gmra.mrb[8].mxu1 %vm197_vm1, %v5044_v22  ;;  %v21088_v22 = vld [vmem:[#allocation15_spill] sm:$0xff]  ;;  %v18267_v62 = vpack.c.bf16 %v4716_v4, %v4716_v4 }
 0x18e   : > { %14916 = vmatprep.mubr.msk.bf16.mxu1 %vm197_vm1, %v21086_v28  ;;  %v5062_v57 = vsel %vm691_vm3, %v21088_v22, %v5061_v41  ;;  %v5079_v28 = vrot.slane %v5077_v10, 1  ;;  %v21092_v41 = vld [vmem:[#allocation25_spill] sm:$0xff] }
 0x191   : > { %14611 = vmatmul.mubr.msk.bf16.gmra.mrb[12].mxu0 %vm197_vm1, %v1955_v47  ;;  %v1988_v47 = vshll.u32 %v18242_v43, 16 }
 0x192   : > { %14614 = vmatprep.mubr.msk.bf16.mxu0 %vm197_vm1, %v21087_v2  ;;  %v21090_v2 = vld [vmem:[#allocation22_spill] sm:$0xff] }
 0x193   : > { %v1990_v22 = vrot.slane %v1988_v47, 1  ;;  %v2010_v47 = vshrl.u32 %v18110_v35, 16  ;;  %v5121_v35 = vrot.slane %v5119_v55, 1  ;;  %v18294_v55 = vpack.c.bf16 %v4721_v6, %v4721_v6 }
 0x195   : > { %14917 = vmatmul.mubr.msk.bf16.gmra.mrb[12].mxu1 %vm197_vm1, %v5062_v57  ;;  %v21093_v57 = vld [vmem:[#allocation20_spill] sm:$0xff]  ;;  %v5131_v6 = vshll.u32 %v18294_v55, 16 }
 0x196   : > { %14920 = vmatprep.mubr.msk.bf16.mxu1 %vm197_vm1, %v21090_v2  ;;  %v5080_v10 = vsel %vm691_vm3, %v21093_v57, %v5079_v28  ;;  %v21094_v2 = vld [vmem:[#allocation23_spill] sm:$0xff]  ;;  %v2016_v28 = vshll.u32 %v18128_v30, 16  ;;  %v1613_v57 = vld [vmem:[#allocation2 + $0x160] sm:$0x3] }
 0x197   : > { %v1991_v18 = vsel %vm691_vm3, %v21094_v2, %v1990_v22  ;;  %v5113_v22 = vshll.u32 %v18267_v62, 16  ;;  %v5117_v2 = vshrl.u32 %v18123_v51, 16 }
 0x199   : > { %14615 = vmatmul.mubr.msk.bf16.gmra.mrb[16].mxu0 %vm197_vm1, %v1973_v9  ;;  %v5097_v9 = vrot.slane %v5095_v49, 1  ;;  %v18278_v49 = vpack.c.bf16 %v1613_v57, %v1613_v57 }
 0x19a   : > { %14618 = vmatprep.mubr.msk.bf16.mxu0 %vm197_vm1, %v21092_v41  ;;  %v2014_v41 = vrot.slane %v2012_v7, 1  ;;  %v2018_v7 = vrot.slane %v2016_v28, 1  ;;  %v5127_v28 = vshrl.u32 %v18146_v25, 16 }
 0x19b   : > { %v2024_v57 = vshll.u32 %v18278_v49, 16 }
 0x19c   : > { %v2015_v4 = vor.u32 %v2014_v41, %v2010_v47 }
 0x19d   : > { %14921 = vmatmul.mubr.msk.bf16.gmra.mrb[16].mxu1 %vm197_vm1, %v5080_v10  ;;  %v2008_v10 = vrot.slane %v2006_v3, 1 }
 0x19e   : > { %14924 = vmatprep.mubr.msk.bf16.mxu1 %vm197_vm1, %v17700_v27  ;;  %v5098_v27 = vsel %vm691_vm3, %v17692_v59, %v5097_v9  ;;  %v18292_v59 = vsel %vm691_vm3, %v2015_v4, %v2018_v7  ;;  %v5122_v9 = vor.u32 %v5121_v35, %v5117_v2  ;;  %v2298_v35 = vrot.slane %v18018_v8, 1  ;;  %v436_v4 = vld [vmem:[%s17299_s13 + $0x218] sm:$0xff] }
 0x19f   : > { %v2009_v3 = vsel %vm691_vm3, %v17716_v40, %v2008_v10  ;;  %v5125_v40 = vrot.slane %v5123_v20, 1  ;;  %v2299_v20 = vrot.slane %v18030_v50, 1  ;;  %v433_v10 = vld [vmem:[%s17299_s13 + $0x200] sm:$0xff]  ;;  %565 = vst.msk [vmem:[#allocation2 + $0x2c1] sm:$0xff] %vm197_vm1, %v436_v4 }
 0x1a0   : > { %562 = vst.msk [vmem:[#allocation2 + $0x2a9] sm:$0xff] %vm197_vm1, %v433_v10 }
 0x1a1   : > { %14619 = vmatmul.mubr.msk.bf16.gmra.mrb[20].mxu0 %vm197_vm1, %v1991_v18  ;;  %v2020_v18 = vshrl.u32 %v18128_v30, 16  ;;  %v18323_v50 = vor.u32 %v5127_v28, %v5125_v40  ;;  %v2300_v2 = vsel %vm1287_vm4, %v2298_v35, %v2299_v20  ;;  %v5409_v28 = vrot.slane %v18050_v1, 1  ;;  %v18355_v35 = vld [vmem:[%s20950_s1 + $0x1c] sm:$0xf] }
 0x1a2   : > { %14622 = vmatprep.mubr.msk.bf16.mxu0 %vm197_vm1, %v17721_v32  ;;  %v5115_v32 = vrot.slane %v5113_v22, 1  ;;  %v434_v22 = vld [vmem:[%s17299_s13 + $0x208] sm:$0xff] }
 0x1a3   : > { %v18301_v41 = vor.u32 %v2020_v18, %v2018_v7  ;;  %563 = vst.msk [vmem:[#allocation2 + $0x2b1] sm:$0xff] %vm197_vm1, %v434_v22  ;;  %v5133_v7 = vrot.slane %v5131_v6, 1  ;;  %v2301_v18 = vrot.slane %v18119_v37, 1  ;;  %v5407_v37 = vrot.slane %v18132_v60, 1  ;;  %v18373_v22 = vld [vmem:[%s20950_s1 + $0x1c] sm:$0xf] }
 0x1a4   : > { %v5116_v47 = vsel %vm691_vm3, %v17728_v23, %v5115_v32  ;;  %v435_v23 = vld [vmem:[%s17299_s13 + $0x210] sm:$0xff]  ;;  %v5405_v32 = vrot.slane %v18046_v15, 1  ;;  %v2700_v15 = vsel %vm902_vm0, %v18170_v48, 0  ;;  %v18350_v6 = vrot.slane %v18071_v34, 1 }
 0x1a5   : > { %14925 = vmatmul.mubr.msk.bf16.gmra.mrb[20].mxu1 %vm197_vm1, %v5098_v27  ;;  %v18310_v27 = vsel %vm691_vm3, %v5122_v9, %v5125_v40  ;;  %564 = vst.msk [vmem:[#allocation2 + $0x2b9] sm:$0xff] %vm197_vm1, %v435_v23  ;;  %v2303_v9 = vrot.slane %v18033_v26, 1  ;;  %v18335_v40 = vrot.slane %v18056_v36, 1  ;;  %v2306_v60 = vrot.slane %v18149_v16, 1 }
 0x1a6   : > { %14928 = vmatprep.mubr.msk.bf16.mxu1 %vm197_vm1, %v17731_v19  ;;  %v2026_v19 = vrot.slane %v2024_v57, 1  ;;  %v5134_v57 = vsel %vm691_vm3, %v18323_v50, %v5133_v7  ;;  %v5408_v48 = vsel %vm1287_vm4, %v5405_v32, %v5407_v37  ;;  %v18368_v10 = vsel %vm1287_vm4, %v5409_v28, %v18350_v6  ;;  %v2591_v37 = vld [vmem:[#allocation2 + $0x80] sm:$0xff] }
 0x1a7   : > { %v2307_v16 = vsel %vm1287_vm4, %v18335_v40, %v2306_v60  ;;  %v2311_v23 = vrot.slane %v18174_v56, 1  ;;  %v5437_v7 = vrot.slane %v18267_v62, 1  ;;  %v5695_v60 = vld [vmem:[#allocation2 + $0x1b8] sm:$0xff] }
 0x1a8   : > { %v2027_v8 = vsel %vm691_vm3, %v18301_v41, %v2026_v19  ;;  %v18346_v19 = vsel %vm1287_vm4, %v2303_v9, %v18335_v40 }
 0x1a9   : > { %14623 = vmatmul.mubr.msk.bf16.gmra.mrb[24].mxu0 %vm197_vm1, %v2009_v3  ;;  %v5404_v3 = vrot.slane %v18028_v53, 1  ;;  %v2302_v53 = vsel %vm1287_vm4, %v2299_v20, %v2301_v18  ;;  %v5804_v20 = vsel %vm902_vm0, %v18193_v42, 0  ;;  %v5412_v42 = vrot.slane %v18161_v33, 1 }
 0x1aa   : > { %14626 = vmatprep.mubr.msk.bf16.mxu0 %vm197_vm1, %v18292_v59  ;;  %v5417_v33 = vrot.slane %v18200_v44, 1  ;;  %v21095_v44 = vld [vmem:[#allocation14_spill] sm:$0xff]  ;;  %v2336_v18 = vrot.slane %v18278_v49, 1 }
 0x1ab   : > { %v5413_v4 = vsel %vm1287_vm4, %v18350_v6, %v5412_v42  ;;  %v2595_v42 = vld [vmem:[#allocation2 + $0xa0] sm:$0xff] }
 0x1ac   : > { %v5418_v56 = vsel %vm1287_vm4, %v17892_v17, %v5417_v33  ;;  %v5697_v33 = vld [vmem:[#allocation2 + $0x1c8] sm:$0xff] }
 0x1ad   : > { %14929 = vmatmul.mubr.msk.bf16.gmra.mrb[24].mxu1 %vm197_vm1, %v5116_v47  ;;  %v5406_v47 = vsel %vm1287_vm4, %v5404_v3, %v5405_v32  ;;  %v5439_v3 = vrot.slane %v18123_v51, 1  ;;  %v18453_v32 = vrot.slane %v18146_v25, 1 }
 0x1ae   : > { %14932 = vmatprep.mubr.msk.bf16.mxu1 %vm197_vm1, %v18310_v27 }
 0x1af   : > { %21103 = vst [vmem:[#allocation13_spill] sm:$0xff] %v18453_v32  ;;  %v18463_v62 = vsel %vm1287_vm4, %v5439_v3, %v18453_v32  ;;  %v5708_v3 = vld [vmem:[#allocation2 + $0x220] sm:$0xff] }
 0x1b0   : > { %21105 = vst [vmem:[#allocation8_spill] sm:$0xff] %v18463_v62 }
 0x1b1   : > { %14627 = vmatmul.mubr.msk.bf16.gmra.mrb[28].mxu0 %vm197_vm1, %v2027_v8  ;;  %v2312_v8 = vsel %vm1287_vm4, %v17879_v45, %v2311_v23  ;;  %v6193_v23 = vsel %vm902_vm0, %v18373_v22, 0 }
 0x1b2   : > { %14632 = vmatprep.mubr.msk.bf16.mxu0 %vm197_vm1, %v2300_v2 }
 0x1b5   : > { %14933 = vmatmul.mubr.msk.bf16.gmra.mrb[28].mxu1 %vm197_vm1, %v5134_v57  ;;  %v21104_v57 = vld [vmem:[#allocation17_spill] sm:$0xff] }
 0x1b6   : > { %14938 = vmatprep.mubr.msk.bf16.mxu1 %vm197_vm1, %v5406_v47  ;;  %v5438_v9 = vsel %vm1287_vm4, %v21104_v57, %v5437_v7  ;;  %v5707_v7 = vld [vmem:[#allocation2 + $0x218] sm:$0xff] }
 0x1b7   : > { %v5711_v57 = vld [vmem:[#allocation2 + $0x238] sm:$0xff] }
 0x1b9   : > { %14633 = vmatmul.mubr.msk.bf16.vlgmr.msra.gmra.mrb[0].mxu0 %vm197_vm1, %v2302_v53  ;;  %v5442_v53 = vrot.slane %v18294_v55, 1  ;;  %v3090_v55 = vsel %vm902_vm0, %v18355_v35, 0 }
 0x1ba   : > { %14665 = vmatpush3.bf16.msra.mxu0 %v2700_v15  ;;  %14636 = vmatprep.mubr.msk.bf16.mxu0 %vm197_vm1, %v18346_v19  ;;  %v2590_v15 = vld [vmem:[#allocation2 + $0x78] sm:$0xff] }
 0x1bb   : > { %16715 = vmatprep.subr.msk.bf16.mxu0 %vm902_vm0, %v18355_v35  ;;  %v5443_v49 = vsel %vm1287_vm4, %v18453_v32, %v5442_v53  ;;  %v18477_v28 = vpack.c.bf16 %v2591_v37, %v2590_v15  ;;  %v2596_v35 = vld [vmem:[#allocation2 + $0xa8] sm:$0xff]  ;;  %v2610_v15 = vld [vmem:[#allocation2 + $0x118] sm:$0xff]  ;;  %v2611_v37 = vld [vmem:[#allocation2 + $0x120] sm:$0xff] }
 0x1bc   : > { %v2608_v53 = vld [vmem:[#allocation2 + $0x108] sm:$0xff]  ;;  %v439_v32 = vld [vmem:[%s17299_s13 + $0x230] sm:$0xff] }
 0x1bd   : > { %14939 = vmatmul.mubr.msk.bf16.vlgmr.msra.gmra.mrb[0].mxu1 %vm197_vm1, %v5408_v48  ;;  %v5696_v48 = vld [vmem:[#allocation2 + $0x1c0] sm:$0xff]  ;;  %568 = vst.msk [vmem:[#allocation2 + $0x2e1] sm:$0xff] %vm197_vm1, %v439_v32 }
 0x1be   : > { %14971 = vmatpush3.bf16.msra.mxu1 %v5804_v20  ;;  %14942 = vmatprep.mubr.msk.bf16.mxu1 %vm197_vm1, %v18368_v10  ;;  %v2592_v20 = vld [vmem:[#allocation2 + $0x88] sm:$0xff] }
 0x1bf   : > { %16724 = vmatprep.subr.msk.bf16.mxu1 %vm902_vm0, %v18373_v22  ;;  %v5701_v22 = vld [vmem:[#allocation2 + $0x1e8] sm:$0xff] }
 0x1c1   : > { %14637 = vmatmul.mubr.msk.bf16.gmra.mrb[4].mxu0 %vm197_vm1, %v2307_v16  ;;  %v2593_v16 = vld [vmem:[#allocation2 + $0x90] sm:$0xff] }
 0x1c2   : > { %14640 = vmatprep.mubr.msk.bf16.mxu0 %vm197_vm1, %v17888_v11  ;;  %v2316_v11 = vrot.slane %v18210_v5, 1 }
 0x1c4   : > { %v2317_v45 = vsel %vm1287_vm4, %v17901_v24, %v2316_v11  ;;  %v5698_v11 = vld [vmem:[#allocation2 + $0x1d0] sm:$0xff] }
 0x1c5   : > { %14943 = vmatmul.mubr.msk.bf16.gmra.mrb[4].mxu1 %vm197_vm1, %v5413_v4  ;;  %v18498_v4 = vpack.c.bf16 %v2593_v16, %v2592_v20  ;;  %v5713_v20 = vld [vmem:[#allocation2 + $0x248] sm:$0xff]  ;;  %v5715_v16 = vld [vmem:[#allocation2 + $0x258] sm:$0xff] }
 0x1c6   : > { %14946 = vmatprep.mubr.msk.bf16.mxu1 %vm197_vm1, %v17905_v54  ;;  %v5422_v54 = vrot.slane %v18218_v39, 1  ;;  %v21097_v39 = vld [vmem:[#allocation9_spill] sm:$0xff] }
 0x1c8   : > { %v5423_v17 = vsel %vm1287_vm4, %v17919_v38, %v5422_v54  ;;  %v2598_v54 = vld [vmem:[#allocation2 + $0xb8] sm:$0xff] }
 0x1c9   : > { %14641 = vmatmul.mubr.msk.bf16.gmra.mrb[8].mxu0 %vm197_vm1, %v2312_v8  ;;  %v18507_v8 = vpack.c.bf16 %v2596_v35, %v2595_v42  ;;  %v5716_v42 = vld [vmem:[#allocation2 + $0x260] sm:$0xff] }
 0x1ca   : > { %14644 = vmatprep.mubr.msk.bf16.mxu0 %vm197_vm1, %v17915_v46  ;;  %v2321_v46 = vrot.slane %v18223_v12, 1  ;;  %v21098_v12 = vld [vmem:[#allocation24_spill] sm:$0xff] }
 0x1cc   : > { %v2322_v24 = vsel %vm1287_vm4, %v17929_v63, %v2321_v46 }
 0x1cd   : > { %14947 = vmatmul.mubr.msk.bf16.gmra.mrb[8].mxu1 %vm197_vm1, %v5418_v56  ;;  %v5700_v56 = vld [vmem:[#allocation2 + $0x1e0] sm:$0xff] }
 0x1ce   : > { %14950 = vmatprep.mubr.msk.bf16.mxu1 %vm197_vm1, %v17933_v13  ;;  %v5427_v13 = vrot.slane %v18234_v21, 1  ;;  %v2333_v21 = vrot.slane %v21098_v12, 1  ;;  %v18519_v46 = vpack.c.bf16 %v5701_v22, %v5700_v56  ;;  %v5717_v22 = vld [vmem:[#allocation2 + $0x268] sm:$0xff] }
 0x1d0   : > { %v5428_v38 = vsel %vm1287_vm4, %v17947_v0, %v5427_v13 }
 0x1d1   : > { %14645 = vmatmul.mubr.msk.bf16.gmra.mrb[12].mxu0 %vm197_vm1, %v2317_v45  ;;  %v18515_v45 = vpack.c.bf16 %v5698_v11, %v5697_v33  ;;  %v2613_v33 = vld [vmem:[#allocation2 + $0x130] sm:$0xff]  ;;  %v18567_v11 = vpack.c.bf16 %v5716_v42, %v5715_v16  ;;  %v2919_v42 = vshll.u32 %v18498_v4, 16 }
 0x1d2   : > { %14648 = vmatprep.mubr.msk.bf16.mxu0 %vm197_vm1, %v17943_v52  ;;  %v2326_v52 = vrot.slane %v18242_v43, 1  ;;  %v18439_v43 = vrot.slane %v18128_v30, 1 }
 0x1d4   : > { %v2327_v63 = vsel %vm1287_vm4, %v17957_v61, %v2326_v52  ;;  %21099 = vst [vmem:[#allocation6_spill] sm:$0xff] %v18439_v43  ;;  %v21100_v61 = vld [vmem:[#allocation12_spill] sm:$0xff]  ;;  %v18449_v2 = vsel %vm1287_vm4, %v2333_v21, %v18439_v43  ;;  %v2337_v47 = vsel %vm1287_vm4, %v18439_v43, %v2336_v18  ;;  %v2605_v21 = vld [vmem:[#allocation2 + $0xf0] sm:$0xff]  ;;  %v6037_v43 = vshll.u32 %v18519_v46, 16 }
 0x1d5   : > { %14951 = vmatmul.mubr.msk.bf16.gmra.mrb[12].mxu1 %vm197_vm1, %v5423_v17  ;;  %21102 = vst [vmem:[#allocation10_spill] sm:$0xff] %v18449_v2  ;;  %v2600_v17 = vld [vmem:[#allocation2 + $0xc8] sm:$0xff]  ;;  %v5710_v18 = vld [vmem:[#allocation2 + $0x230] sm:$0xff] }
 0x1d6   : > { %14954 = vmatprep.mubr.msk.bf16.mxu1 %vm197_vm1, %v17961_v29  ;;  %v5432_v29 = vrot.slane %v18250_v58, 1  ;;  %v21101_v58 = vld [vmem:[#allocation21_spill] sm:$0xff] }
 0x1d8   : > { %v5433_v0 = vsel %vm1287_vm4, %v21097_v39, %v5432_v29  ;;  %v5705_v29 = vld [vmem:[#allocation2 + $0x208] sm:$0xff]  ;;  %v2603_v39 = vld [vmem:[#allocation2 + $0xe0] sm:$0xff] }
 0x1d9   : > { %14649 = vmatmul.mubr.msk.bf16.gmra.mrb[16].mxu0 %vm197_vm1, %v2322_v24  ;;  %v2601_v24 = vld [vmem:[#allocation2 + $0xd0] sm:$0xff] }
 0x1da   : > { %14652 = vmatprep.mubr.msk.bf16.mxu0 %vm197_vm1, %v17971_v14  ;;  %v21096_v14 = vld [vmem:[#allocation7_spill] sm:$0xff]  ;;  %v18525_v52 = vpack.c.bf16 %v2601_v24, %v2600_v17  ;;  %v2620_v17 = vld [vmem:[#allocation2 + $0x168] sm:$0xff]  ;;  %v2621_v24 = vld [vmem:[#allocation2 + $0x170] sm:$0xff] }
 0x1db   : > { %v2331_v5 = vrot.slane %v21096_v14, 1 }
 0x1dd   : > { %14955 = vmatmul.mubr.msk.bf16.gmra.mrb[16].mxu1 %vm197_vm1, %v5428_v38  ;;  %v5702_v38 = vld [vmem:[#allocation2 + $0x1f0] sm:$0xff] }
 0x1de   : > { %14958 = vmatprep.mubr.msk.bf16.mxu1 %vm197_vm1, %v17989_v31  ;;  %v2332_v31 = vsel %vm1287_vm4, %v21100_v61, %v2331_v5  ;;  %v2602_v5 = vld [vmem:[#allocation2 + $0xd8] sm:$0xff] }
 0x1df   : > { %v2606_v61 = vld [vmem:[#allocation2 + $0xf8] sm:$0xff] }
 0x1e1   : > { %14653 = vmatmul.mubr.msk.bf16.gmra.mrb[20].mxu0 %vm197_vm1, %v2327_v63  ;;  %v5703_v63 = vld [vmem:[#allocation2 + $0x1f8] sm:$0xff] }
 0x1e2   : > { %14656 = vmatprep.mubr.msk.bf16.mxu0 %vm197_vm1, %v21095_v44  ;;  %v5706_v44 = vld [vmem:[#allocation2 + $0x210] sm:$0xff]  ;;  %v18531_v14 = vpack.c.bf16 %v5703_v63, %v5702_v38  ;;  %v18583_v38 = vpack.c.bf16 %v2621_v24, %v2620_v17  ;;  %v2933_v17 = vshll.u32 %v18507_v8, 16 }
 0x1e3   : > { %v2589_v63 = vld [vmem:[#allocation2 + $0x70] sm:$0x3] }
 0x1e5   : > { %14959 = vmatmul.mubr.msk.bf16.gmra.mrb[20].mxu1 %vm197_vm1, %v5433_v0  ;;  %v18535_v0 = vpack.c.bf16 %v5706_v44, %v5705_v29  ;;  %v5725_v29 = vld [vmem:[#allocation2 + $0x2a8] sm:$0xff]  ;;  %v5726_v44 = vld [vmem:[#allocation2 + $0x2b0] sm:$0xff] }
 0x1e6   : > { %14962 = vmatprep.mubr.msk.bf16.mxu1 %vm197_vm1, %v21101_v58  ;;  %v18541_v58 = vpack.c.bf16 %v2606_v61, %v2605_v21  ;;  %v18593_v21 = vpack.c.bf16 %v5726_v44, %v5725_v29  ;;  %v2915_v61 = vshll.u32 %v18477_v28, 16  ;;  %v2921_v29 = vrot.slane %v2919_v42, 1  ;;  %v5699_v44 = vld [vmem:[#allocation2 + $0x1d8] sm:$0x3]  ;;  %v467_v42 = vld [vmem:[%s17299_s13 + $0x310] sm:$0xff] }
 0x1e7   : > { %21106 = vst [vmem:[#allocation11_spill] sm:$0xff] %v18535_v0  ;;  %596 = vst.msk [vmem:[#allocation2 + $0x3f9] sm:$0xff] %vm197_vm1, %v467_v42 }
 0x1e8   : > { %21108 = vst [vmem:[#allocation19_spill] sm:$0xff] %v18541_v58  ;;  %v2917_v16 = vrot.slane %v2915_v61, 1  ;;  %v6023_v61 = vshll.u32 %v18515_v45, 16 }
 0x1e9   : > { %14657 = vmatmul.mubr.msk.bf16.gmra.mrb[24].mxu0 %vm197_vm1, %v2332_v31  ;;  %v18537_v31 = vpack.c.bf16 %v2603_v39, %v2602_v5  ;;  %v2622_v5 = vld [vmem:[#allocation2 + $0x178] sm:$0xff]  ;;  %v2623_v39 = vld [vmem:[#allocation2 + $0x180] sm:$0xff] }
 0x1ea   : > { %14660 = vmatprep.mubr.msk.bf16.mxu0 %vm197_vm1, %v18449_v2 }
 0x1eb   : > { %21107 = vst [vmem:[#allocation16_spill] sm:$0xff] %v18537_v31 }
 0x1ed   : > { %14963 = vmatmul.mubr.msk.bf16.gmra.mrb[24].mxu1 %vm197_vm1, %v5438_v9  ;;  %v18547_v9 = vpack.c.bf16 %v5708_v3, %v5707_v7  ;;  %v5694_v7 = vld [vmem:[#allocation2 + $0x1b0] sm:$0x3]  ;;  %v461_v3 = vld [vmem:[%s17299_s13 + $0x2e0] sm:$0xff] }
 0x1ee   : > { %14966 = vmatprep.mubr.msk.bf16.mxu1 %vm197_vm1, %v18463_v62  ;;  %590 = vst.msk [vmem:[#allocation2 + $0x3c1] sm:$0xff] %vm197_vm1, %v461_v3  ;;  %v21110_v3 = vld [vmem:[#allocation27_spill] sm:$0xff] }
 0x1f1   : > { %14661 = vmatmul.mubr.msk.bf16.gmra.mrb[28].mxu0 %vm197_vm1, %v2337_v47  ;;  %v2607_v47 = vld [vmem:[#allocation2 + $0x100] sm:$0xff] }
 0x1f2   : > { %14666 = vmatprep.mubr.msk.bf16.mxu0 %vm197_vm1, %v18033_v26  ;;  %v18486_v26 = vld [vmem:[%s20950_s1 + $0x20] sm:$0xf] }
 0x1f5   : > { %14967 = vmatmul.mubr.msk.bf16.gmra.mrb[28].mxu1 %vm197_vm1, %v5443_v49  ;;  %v18551_v49 = vpack.c.bf16 %v5711_v57, %v5710_v18  ;;  %v18598_v18 = vpack.c.bf16 %v2623_v39, %v2622_v5 }
 0x1f6   : > { %14972 = vmatprep.mubr.msk.bf16.mxu1 %vm197_vm1, %v18050_v1  ;;  %v18492_v1 = vpack.c.bf16 %v5696_v48, %v5695_v60  ;;  %v18557_v60 = vpack.c.bf16 %v2611_v37, %v2610_v15  ;;  %v5712_v48 = vld [vmem:[#allocation2 + $0x240] sm:$0xff]  ;;  %v5727_v15 = vld [vmem:[#allocation2 + $0x2b8] sm:$0xff] }
 0x1f7   : > { %v18563_v35 = vpack.c.bf16 %v5713_v20, %v5712_v48  ;;  %v5728_v37 = vld [vmem:[#allocation2 + $0x2c0] sm:$0xff]  ;;  %v18611_v48 = vpack.c.bf16 %v5694_v7, %v5694_v7  ;;  %v2913_v20 = vshrl.u32 %v18477_v28, 16 }
 0x1f8   : > { %v6017_v5 = vshrl.u32 %v18492_v1, 16  ;;  %v465_v7 = vld [vmem:[%s17299_s13 + $0x300] sm:$0xff] }
 0x1f9   : > { %14667 = vmatmul.mubr.msk.bf16.vlgmr.msra.gmra.mrb[0].mxu0 %vm197_vm1, %v18056_v36  ;;  %v18503_v36 = vld [vmem:[%s20950_s1 + $0x20] sm:$0xf]  ;;  %v6013_v24 = vshll.u32 %v18611_v48, 16  ;;  %594 = vst.msk [vmem:[#allocation2 + $0x3e9] sm:$0xff] %vm197_vm1, %v465_v7  ;;  %v3400_v7 = vsel %vm902_vm0, %v18486_v26, 0 }
 0x1fa   : > { %14699 = vmatpush3.bf16.msra.mxu0 %v3090_v55  ;;  %14670 = vmatprep.mubr.msk.bf16.mxu0 %vm197_vm1, %v18477_v28  ;;  %v18553_v55 = vpack.c.bf16 %v2608_v53, %v2607_v47  ;;  %v463_v47 = vld [vmem:[%s17299_s13 + $0x2f0] sm:$0xff]  ;;  %v2594_v53 = vld [vmem:[#allocation2 + $0x98] sm:$0x3] }
 0x1fb   : > { %16716 = vmatprep.subr.msk.bf16.mxu0 %vm902_vm0, %v18486_v26  ;;  %592 = vst.msk [vmem:[#allocation2 + $0x3d1] sm:$0xff] %vm197_vm1, %v463_v47  ;;  %v440_v26 = vld [vmem:[%s17299_s13 + $0x238] sm:$0xff] }
 0x1fc   : > { %569 = vst.msk [vmem:[#allocation2 + $0x2e9] sm:$0xff] %vm197_vm1, %v440_v26  ;;  %v472_v26 = vld [vmem:[%s17299_s13 + $0x338] sm:$0xff] }
 0x1fd   : > { %14973 = vmatmul.mubr.msk.bf16.vlgmr.msra.gmra.mrb[0].mxu1 %vm197_vm1, %v18071_v34  ;;  %v2597_v34 = vld [vmem:[#allocation2 + $0xb0] sm:$0xff]  ;;  %601 = vst.msk [vmem:[#allocation2 + $0x429] sm:$0xff] %vm197_vm1, %v472_v26 }
 0x1fe   : > { %15005 = vmatpush3.bf16.msra.mxu1 %v6193_v23  ;;  %14976 = vmatprep.mubr.msk.bf16.mxu1 %vm197_vm1, %v18492_v1  ;;  %v18521_v13 = vpack.c.bf16 %v2598_v54, %v2597_v34  ;;  %v2612_v23 = vld [vmem:[#allocation2 + $0x128] sm:$0xff]  ;;  %v5718_v34 = vld [vmem:[#allocation2 + $0x270] sm:$0xff] }
 0x1ff   : > { %16725 = vmatprep.subr.msk.bf16.mxu1 %vm902_vm0, %v18503_v36  ;;  %v18569_v56 = vpack.c.bf16 %v2613_v33, %v2612_v23  ;;  %v18577_v54 = vpack.c.bf16 %v5718_v34, %v5717_v22  ;;  %v18618_v33 = vpack.c.bf16 %v2594_v53, %v2594_v53  ;;  %v18620_v22 = vpack.c.bf16 %v5728_v37, %v5727_v15  ;;  %v21109_v34 = vld [vmem:[#allocation26_spill] sm:$0xff]  ;;  %v466_v53 = vld [vmem:[%s17299_s13 + $0x308] sm:$0xff] }
 0x200   : > { %v18637_v15 = vpack.c.bf16 %v5699_v44, %v5699_v44  ;;  %v2931_v37 = vshrl.u32 %v18507_v8, 16  ;;  %595 = vst.msk [vmem:[#allocation2 + $0x3f1] sm:$0xff] %vm197_vm1, %v466_v53  ;;  %v6025_v53 = vrot.slane %v6023_v61, 1 }
 0x201   : > { %14671 = vmatmul.mubr.msk.bf16.gmra.mrb[4].mxu0 %vm197_vm1, %v18498_v4  ;;  %v2927_v47 = vshll.u32 %v18618_v33, 16 }
 0x202   : > { %14674 = vmatprep.mubr.msk.bf16.mxu0 %vm197_vm1, %v18507_v8 }
 0x205   : > { %14977 = vmatmul.mubr.msk.bf16.gmra.mrb[4].mxu1 %vm197_vm1, %v18515_v45 }
 0x206   : > { %14980 = vmatprep.mubr.msk.bf16.mxu1 %vm197_vm1, %v18519_v46 }
 0x209   : > { %14675 = vmatmul.mubr.msk.bf16.gmra.mrb[8].mxu0 %vm197_vm1, %v18521_v13 }
 0x20a   : > { %14678 = vmatprep.mubr.msk.bf16.mxu0 %vm197_vm1, %v18525_v52 }
 0x20d   : > { %14981 = vmatmul.mubr.msk.bf16.gmra.mrb[8].mxu1 %vm197_vm1, %v18531_v14 }
 0x20e   : > { %14984 = vmatprep.mubr.msk.bf16.mxu1 %vm197_vm1, %v18535_v0 }
 0x211   : > { %14679 = vmatmul.mubr.msk.bf16.gmra.mrb[12].mxu0 %vm197_vm1, %v18537_v31 }
 0x212   : > { %14682 = vmatprep.mubr.msk.bf16.mxu0 %vm197_vm1, %v18541_v58 }
 0x215   : > { %14985 = vmatmul.mubr.msk.bf16.gmra.mrb[12].mxu1 %vm197_vm1, %v18547_v9 }
 0x216   : > { %14988 = vmatprep.mubr.msk.bf16.mxu1 %vm197_vm1, %v18551_v49 }
 0x219   : > { %14683 = vmatmul.mubr.msk.bf16.gmra.mrb[16].mxu0 %vm197_vm1, %v18553_v55 }
 0x21a   : > { %14686 = vmatprep.mubr.msk.bf16.mxu0 %vm197_vm1, %v18557_v60 }
 0x21d   : > { %14989 = vmatmul.mubr.msk.bf16.gmra.mrb[16].mxu1 %vm197_vm1, %v18563_v35 }
 0x21e   : > { %14992 = vmatprep.mubr.msk.bf16.mxu1 %vm197_vm1, %v18567_v11 }
 0x221   : > { %14687 = vmatmul.mubr.msk.bf16.gmra.mrb[20].mxu0 %vm197_vm1, %v18569_v56 }
 0x222   : > { %14690 = vmatprep.mubr.msk.bf16.mxu0 %vm197_vm1, %v21098_v12  ;;  %v18589_v12 = vpack.c.bf16 %v2589_v63, %v2589_v63  ;;  %v2918_v63 = vor.u32 %v2917_v16, %v2913_v20  ;;  %v2935_v20 = vrot.slane %v2933_v17, 1  ;;  %v2937_v16 = vshll.u32 %v18521_v13, 16  ;;  %v438_v17 = vld [vmem:[%s17299_s13 + $0x228] sm:$0xff] }
 0x223   : > { %567 = vst.msk [vmem:[#allocation2 + $0x2d9] sm:$0xff] %vm197_vm1, %v438_v17  ;;  %v471_v17 = vld [vmem:[%s17299_s13 + $0x330] sm:$0xff] }
 0x224   : > { %v2909_v57 = vshll.u32 %v18589_v12, 16  ;;  %v2922_v44 = vsel %vm691_vm3, %v2918_v63, %v2921_v29  ;;  %v2929_v63 = vrot.slane %v2927_v47, 1  ;;  %v2936_v61 = vor.u32 %v2935_v20, %v2931_v37  ;;  %600 = vst.msk [vmem:[#allocation2 + $0x421] sm:$0xff] %vm197_vm1, %v471_v17  ;;  %v443_v17 = vld [vmem:[%s17299_s13 + $0x250] sm:$0xff] }
 0x225   : > { %14993 = vmatmul.mubr.msk.bf16.gmra.mrb[20].mxu1 %vm197_vm1, %v18577_v54  ;;  %v2939_v32 = vrot.slane %v2937_v16, 1  ;;  %v2951_v47 = vshll.u32 %v18525_v52, 16  ;;  %v6039_v37 = vrot.slane %v6037_v43, 1  ;;  %v6041_v20 = vshll.u32 %v18531_v14, 16  ;;  %v469_v16 = vld [vmem:[%s17299_s13 + $0x320] sm:$0xff]  ;;  %572 = vst.msk [vmem:[#allocation2 + $0x309] sm:$0xff] %vm197_vm1, %v443_v17 }
 0x226   : > { %14996 = vmatprep.mubr.msk.bf16.mxu1 %vm197_vm1, %v18123_v51  ;;  %v462_v51 = vld [vmem:[%s17299_s13 + $0x2e8] sm:$0xff]  ;;  %v2911_v23 = vrot.slane %v2909_v57, 1  ;;  %v2923_v57 = vshrl.u32 %v18498_v4, 16  ;;  %598 = vst.msk [vmem:[#allocation2 + $0x411] sm:$0xff] %vm197_vm1, %v469_v16  ;;  %v2973_v17 = vshll.u32 %v18553_v55, 16 }
 0x227   : > { %591 = vst.msk [vmem:[#allocation2 + $0x3c9] sm:$0xff] %vm197_vm1, %v462_v51  ;;  %v2940_v2 = vsel %vm691_vm3, %v2936_v61, %v2939_v32  ;;  %v441_v61 = vld [vmem:[%s17299_s13 + $0x240] sm:$0xff] }
 0x228   : > { %v2912_v51 = vsel %vm691_vm3, %v21110_v3, %v2911_v23  ;;  %v437_v23 = vld [vmem:[%s17299_s13 + $0x220] sm:$0xff]  ;;  %v6015_v3 = vrot.slane %v6013_v24, 1  ;;  %v2925_v24 = vor.u32 %v2923_v57, %v2921_v29  ;;  %570 = vst.msk [vmem:[#allocation2 + $0x2f9] sm:$0xff] %vm197_vm1, %v441_v61 }
 0x229   : > { %14691 = vmatmul.mubr.msk.bf16.gmra.mrb[24].mxu0 %vm197_vm1, %v18128_v30  ;;  %v464_v30 = vld [vmem:[%s17299_s13 + $0x2f8] sm:$0xff]  ;;  %566 = vst.msk [vmem:[#allocation2 + $0x2d1] sm:$0xff] %vm197_vm1, %v437_v23  ;;  %v5704_v57 = vld [vmem:[#allocation2 + $0x200] sm:$0x3]  ;;  %v6035_v23 = vshrl.u32 %v18519_v46, 16 }
 0x22a   : > { %14694 = vmatprep.mubr.msk.bf16.mxu0 %vm197_vm1, %v18583_v38  ;;  %593 = vst.msk [vmem:[#allocation2 + $0x3d9] sm:$0xff] %vm197_vm1, %v464_v30  ;;  %v2599_v30 = vld [vmem:[#allocation2 + $0xc0] sm:$0x3]  ;;  %v2930_v43 = vsel %vm691_vm3, %v2925_v24, %v2929_v63  ;;  %v18700_v16 = vpack.c.bf16 %v5704_v57, %v5704_v57  ;;  %v2953_v24 = vrot.slane %v2951_v47, 1 }
 0x22b   : > { %v18665_v42 = vpack.c.bf16 %v2599_v30, %v2599_v30  ;;  %v6040_v63 = vor.u32 %v6039_v37, %v6035_v23  ;;  %v2969_v23 = vshll.u32 %v18541_v58, 16  ;;  %v444_v37 = vld [vmem:[%s17299_s13 + $0x258] sm:$0xff] }
 0x22c   : > { %21114 = vst [vmem:[#allocation18_spill] sm:$0xff] %v18700_v16  ;;  %573 = vst.msk [vmem:[#allocation2 + $0x311] sm:$0xff] %vm197_vm1, %v444_v37  ;;  %v475_v37 = vld [vmem:[%s17299_s13 + $0x350] sm:$0xff] }
 0x22d   : > { %14997 = vmatmul.mubr.msk.bf16.gmra.mrb[24].mxu1 %vm197_vm1, %v18146_v25  ;;  %v6019_v25 = vshll.u32 %v18492_v1, 16  ;;  %21112 = vst [vmem:[#allocation15_spill] sm:$0xff] %v18665_v42  ;;  %604 = vst.msk [vmem:[#allocation2 + $0x449] sm:$0xff] %vm197_vm1, %v475_v37  ;;  %v477_v37 = vld [vmem:[%s17299_s13 + $0x360] sm:$0xff] }
 0x22e   : > { %15000 = vmatprep.mubr.msk.bf16.mxu1 %vm197_vm1, %v18593_v21  ;;  %606 = vst.msk [vmem:[#allocation2 + $0x461] sm:$0xff] %vm197_vm1, %v477_v37  ;;  %v451_v37 = vld [vmem:[%s17299_s13 + $0x290] sm:$0xff] }
 0x22f   : > { %v6021_v39 = vrot.slane %v6019_v25, 1  ;;  %v468_v25 = vld [vmem:[%s17299_s13 + $0x318] sm:$0xff]  ;;  %580 = vst.msk [vmem:[#allocation2 + $0x359] sm:$0xff] %vm197_vm1, %v451_v37 }
 0x230   : > { %597 = vst.msk [vmem:[#allocation2 + $0x401] sm:$0xff] %vm197_vm1, %v468_v25  ;;  %v21113_v25 = vld [vmem:[#allocation29_spill] sm:$0xff] }
 0x231   : > { %14695 = vmatmul.mubr.msk.bf16.gmra.mrb[28].mxu0 %vm197_vm1, %v18598_v18  ;;  %v6022_v62 = vor.u32 %v6021_v39, %v6017_v5  ;;  %v6027_v5 = vshrl.u32 %v18515_v45, 16  ;;  %v6031_v39 = vshll.u32 %v18637_v15, 16  ;;  %v6016_v29 = vsel %vm691_vm3, %v21113_v25, %v6015_v3 }
 0x232   : > { %14700 = vmatprep.mubr.msk.bf16.mxu0 %vm197_vm1, %v21109_v34  ;;  %v21111_v34 = vld [vmem:[#allocation28_spill] sm:$0xff]  ;;  %v2941_v3 = vshrl.u32 %v18521_v13, 16 }
 0x233   : > { %v6026_v30 = vsel %vm691_vm3, %v6022_v62, %v6025_v53  ;;  %v6029_v62 = vor.u32 %v6027_v5, %v6025_v53  ;;  %v6033_v25 = vrot.slane %v6031_v39, 1  ;;  %v2955_v53 = vshll.u32 %v18537_v31, 16 }
 0x234   : > { %v6043_v5 = vrot.slane %v6041_v20, 1  ;;  %v6055_v39 = vshll.u32 %v18535_v0, 16 }
 0x235   : > { %15001 = vmatmul.mubr.msk.bf16.gmra.mrb[28].mxu1 %vm197_vm1, %v18620_v22  ;;  %v6034_v47 = vsel %vm691_vm3, %v6029_v62, %v6033_v25  ;;  %v6059_v62 = vshll.u32 %v18547_v9, 16  ;;  %v473_v25 = vld [vmem:[%s17299_s13 + $0x340] sm:$0xff] }
 0x236   : > { %15006 = vmatprep.mubr.msk.bf16.mxu1 %vm197_vm1, %v21111_v34  ;;  %v18659_v34 = vld [vmem:[%s20950_s1 + $0x4] sm:$0xf]  ;;  %v6044_v26 = vsel %vm691_vm3, %v6040_v63, %v6043_v5  ;;  %602 = vst.msk [vmem:[#allocation2 + $0x439] sm:$0xff] %vm197_vm1, %v473_v25  ;;  %v2967_v63 = vshrl.u32 %v18541_v58, 16  ;;  %v447_v58 = vld [vmem:[%s17299_s13 + $0x270] sm:$0xff] }
 0x237   : > { %576 = vst.msk [vmem:[#allocation2 + $0x331] sm:$0xff] %vm197_vm1, %v447_v58 }
 0x239   : > { %14701 = vmatmul.mubr.msk.bf16.vlgmr.msra.gmra.mrb[0].mxu0 %vm197_vm1, %v2912_v51  ;;  %v6502_v51 = vsel %vm902_vm0, %v18503_v36, 0  ;;  %v18688_v36 = vld [vmem:[%s20950_s1 + $0x4] sm:$0xf] }
 0x23a   : > { %14733 = vmatpush3.bf16.msra.mxu0 %v3400_v7  ;;  %14704 = vmatprep.mubr.msk.bf16.mxu0 %vm197_vm1, %v2922_v44  ;;  %v470_v7 = vld [vmem:[%s17299_s13 + $0x328] sm:$0xff]  ;;  %v2945_v44 = vshll.u32 %v18665_v42, 16 }
 0x23b   : > { %16726 = vmatprep.subr.msk.bf16.mxu0 %vm902_vm0, %v18659_v34  ;;  %599 = vst.msk [vmem:[#allocation2 + $0x419] sm:$0xff] %vm197_vm1, %v470_v7  ;;  %v2604_v42 = vld [vmem:[#allocation2 + $0xe8] sm:$0x3] }
 0x23c   : > { %v2947_v57 = vrot.slane %v2945_v44, 1  ;;  %v18710_v7 = vpack.c.bf16 %v2604_v42, %v2604_v42  ;;  %v6049_v42 = vshll.u32 %v18700_v16, 16  ;;  %v5709_v44 = vld [vmem:[#allocation2 + $0x228] sm:$0x3]  ;;  %v6061_v16 = vrot.slane %v6059_v62, 1 }
 0x23d   : > { %15007 = vmatmul.mubr.msk.bf16.vlgmr.msra.gmra.mrb[0].mxu1 %vm197_vm1, %v6016_v29  ;;  %v2949_v29 = vshrl.u32 %v18525_v52, 16  ;;  %v2987_v62 = vshll.u32 %v18557_v60, 16 }
 0x23e   : > { %15039 = vmatpush3.bf16.msra.mxu1 %v6502_v51  ;;  %15010 = vmatprep.mubr.msk.bf16.mxu1 %vm197_vm1, %v6026_v30  ;;  %v442_v51 = vld [vmem:[%s17299_s13 + $0x248] sm:$0xff]  ;;  %v2943_v30 = vor.u32 %v2941_v3, %v2939_v32  ;;  %21115 = vst [vmem:[#allocation22_spill] sm:$0xff] %v18710_v7  ;;  %v6045_v32 = vshrl.u32 %v18531_v14, 16  ;;  %v2957_v3 = vrot.slane %v2955_v53, 1  ;;  %v18733_v53 = vpack.c.bf16 %v5709_v44, %v5709_v44  ;;  %v2609_v44 = vld [vmem:[#allocation2 + $0x110] sm:$0x3] }
 0x23f   : > { %16735 = vmatprep.subr.msk.bf16.mxu1 %vm902_vm0, %v18688_v36  ;;  %571 = vst.msk [vmem:[#allocation2 + $0x301] sm:$0xff] %vm197_vm1, %v442_v51  ;;  %v2954_v20 = vor.u32 %v2953_v24, %v2949_v29  ;;  %v2959_v51 = vshrl.u32 %v18537_v31, 16  ;;  %v2963_v29 = vshll.u32 %v18710_v7, 16  ;;  %v474_v24 = vld [vmem:[%s17299_s13 + $0x348] sm:$0xff]  ;;  %v6051_v7 = vrot.slane %v6049_v42, 1  ;;  %v448_v31 = vld [vmem:[%s17299_s13 + $0x278] sm:$0xff] }
 0x240   : > { %v2948_v61 = vsel %vm691_vm3, %v2943_v30, %v2947_v57  ;;  %v476_v30 = vld [vmem:[%s17299_s13 + $0x358] sm:$0xff]  ;;  %603 = vst.msk [vmem:[#allocation2 + $0x441] sm:$0xff] %vm197_vm1, %v474_v24  ;;  %v445_v57 = vld [vmem:[%s17299_s13 + $0x260] sm:$0xff]  ;;  %v6047_v25 = vor.u32 %v6045_v32, %v6043_v5  ;;  %v6073_v24 = vshll.u32 %v18551_v49, 16  ;;  %v6063_v42 = vshrl.u32 %v18547_v9, 16  ;;  %577 = vst.msk [vmem:[#allocation2 + $0x339] sm:$0xff] %vm197_vm1, %v448_v31 }
 0x241   : > { %14705 = vmatmul.mubr.msk.bf16.gmra.mrb[4].mxu0 %vm197_vm1, %v2930_v43  ;;  %v6057_v43 = vrot.slane %v6055_v39, 1  ;;  %v2971_v39 = vrot.slane %v2969_v23, 1  ;;  %605 = vst.msk [vmem:[#allocation2 + $0x451] sm:$0xff] %vm197_vm1, %v476_v30  ;;  %v446_v23 = vld [vmem:[%s17299_s13 + $0x268] sm:$0xff]  ;;  %574 = vst.msk [vmem:[#allocation2 + $0x321] sm:$0xff] %vm197_vm1, %v445_v57  ;;  %v2961_v5 = vor.u32 %v2959_v51, %v2957_v3  ;;  %v2965_v32 = vrot.slane %v2963_v29, 1 }
 0x242   : > { %14708 = vmatprep.mubr.msk.bf16.mxu0 %vm197_vm1, %v2940_v2  ;;  %v6053_v2 = vshrl.u32 %v18535_v0, 16  ;;  %575 = vst.msk [vmem:[#allocation2 + $0x329] sm:$0xff] %vm197_vm1, %v446_v23  ;;  %v6052_v58 = vsel %vm691_vm3, %v6047_v25, %v6051_v7  ;;  %v6071_v51 = vshrl.u32 %v18551_v49, 16  ;;  %v6075_v31 = vrot.slane %v6073_v24, 1  ;;  %v478_v30 = vld [vmem:[%s17299_s13 + $0x368] sm:$0xff] }
 0x243   : > { %v6077_v29 = vshll.u32 %v18563_v35, 16  ;;  %v2966_v57 = vsel %vm691_vm3, %v2961_v5, %v2965_v32  ;;  %607 = vst.msk [vmem:[#allocation2 + $0x469] sm:$0xff] %vm197_vm1, %v478_v30  ;;  %v2977_v25 = vshrl.u32 %v18553_v55, 16  ;;  %v2989_v23 = vrot.slane %v2987_v62, 1  ;;  %v2614_v5 = vld [vmem:[#allocation2 + $0x138] sm:$0x3] }
 0x244   : > { %v6058_v0 = vor.u32 %v6057_v43, %v6053_v2  ;;  %v2975_v2 = vrot.slane %v2973_v17, 1  ;;  %v18757_v43 = vpack.c.bf16 %v2609_v44, %v2609_v44  ;;  %v480_v17 = vld [vmem:[%s17299_s13 + $0x378] sm:$0xff]  ;;  %v2985_v44 = vshrl.u32 %v18557_v60, 16 }
 0x245   : > { %15011 = vmatmul.mubr.msk.bf16.gmra.mrb[4].mxu1 %vm197_vm1, %v6034_v47  ;;  %v2958_v47 = vsel %vm691_vm3, %v2954_v20, %v2957_v3  ;;  %v6067_v20 = vshll.u32 %v18733_v53, 16  ;;  %v5714_v3 = vld [vmem:[#allocation2 + $0x250] sm:$0x3]  ;;  %609 = vst.msk [vmem:[#allocation2 + $0x479] sm:$0xff] %vm197_vm1, %v480_v17  ;;  %v2991_v24 = vshll.u32 %v18569_v56, 16  ;;  %v6076_v32 = vor.u32 %v6075_v31, %v6071_v51  ;;  %v452_v31 = vld [vmem:[%s17299_s13 + $0x298] sm:$0xff] }
 0x246   : > { %15014 = vmatprep.mubr.msk.bf16.mxu1 %vm197_vm1, %v6044_v26  ;;  %v2972_v26 = vor.u32 %v2971_v39, %v2967_v63  ;;  %v6065_v63 = vor.u32 %v6063_v42, %v6061_v16  ;;  %v479_v39 = vld [vmem:[%s17299_s13 + $0x370] sm:$0xff]  ;;  %v6079_v42 = vrot.slane %v6077_v29, 1  ;;  %v2979_v62 = vor.u32 %v2977_v25, %v2975_v2  ;;  %581 = vst.msk [vmem:[#allocation2 + $0x361] sm:$0xff] %vm197_vm1, %v452_v31  ;;  %v481_v25 = vld [vmem:[%s17299_s13 + $0x380] sm:$0xff] }
 0x247   : > { %608 = vst.msk [vmem:[#allocation2 + $0x471] sm:$0xff] %vm197_vm1, %v479_v39  ;;  %v18791_v51 = vpack.c.bf16 %v2614_v5, %v2614_v5  ;;  %v6081_v29 = vshrl.u32 %v18563_v35, 16  ;;  %v2993_v39 = vrot.slane %v2991_v24, 1  ;;  %v6089_v17 = vshrl.u32 %v18567_v11, 16  ;;  %v482_v5 = vld [vmem:[%s17299_s13 + $0x388] sm:$0xff]  ;;  %610 = vst.msk [vmem:[#allocation2 + $0x489] sm:$0xff] %vm197_vm1, %v481_v25 }
 0x248   : > { %v2976_v7 = vsel %vm691_vm3, %v2972_v26, %v2975_v2  ;;  %v449_v26 = vld [vmem:[%s17299_s13 + $0x280] sm:$0xff]  ;;  %v6080_v2 = vsel %vm691_vm3, %v6076_v32, %v6079_v42  ;;  %v483_v32 = vld [vmem:[%s17299_s13 + $0x390] sm:$0xff]  ;;  %611 = vst.msk [vmem:[#allocation2 + $0x491] sm:$0xff] %vm197_vm1, %v482_v5  ;;  %v456_v5 = vld [vmem:[%s17299_s13 + $0x2b8] sm:$0xff] }
 0x249   : > { %14709 = vmatmul.mubr.msk.bf16.gmra.mrb[8].mxu0 %vm197_vm1, %v2948_v61  ;;  %v6062_v61 = vsel %vm691_vm3, %v6058_v0, %v6061_v16  ;;  %v6069_v0 = vrot.slane %v6067_v20, 1  ;;  %v18778_v16 = vpack.c.bf16 %v5714_v3, %v5714_v3  ;;  %v6091_v20 = vshll.u32 %v18567_v11, 16  ;;  %578 = vst.msk [vmem:[#allocation2 + $0x349] sm:$0xff] %vm197_vm1, %v449_v26  ;;  %v453_v26 = vld [vmem:[%s17299_s13 + $0x2a0] sm:$0xff]  ;;  %612 = vst.msk [vmem:[#allocation2 + $0x499] sm:$0xff] %vm197_vm1, %v483_v32 }
 0x24a   : > { %14712 = vmatprep.mubr.msk.bf16.mxu0 %vm197_vm1, %v2958_v47  ;;  %v2981_v47 = vshll.u32 %v18757_v43, 16  ;;  %582 = vst.msk [vmem:[#allocation2 + $0x371] sm:$0xff] %vm197_vm1, %v453_v26  ;;  %585 = vst.msk [vmem:[#allocation2 + $0x389] sm:$0xff] %vm197_vm1, %v456_v5  ;;  %v5724_v32 = vld [vmem:[#allocation2 + $0x2a0] sm:$0x3] }
 0x24b   : > { %v6070_v3 = vsel %vm691_vm3, %v6065_v63, %v6069_v0  ;;  %v6085_v30 = vshll.u32 %v18778_v16, 16  ;;  %v5719_v63 = vld [vmem:[#allocation2 + $0x278] sm:$0x3]  ;;  %v6093_v0 = vrot.slane %v6091_v20, 1  ;;  %v457_v5 = vld [vmem:[%s17299_s13 + $0x2c0] sm:$0xff] }
 0x24c   : > { %v18808_v24 = vpack.c.bf16 %v5719_v63, %v5719_v63  ;;  %v484_v20 = vld [vmem:[%s17299_s13 + $0x398] sm:$0xff]  ;;  %586 = vst.msk [vmem:[#allocation2 + $0x399] sm:$0xff] %vm197_vm1, %v457_v5 }
 0x24d   : > { %15015 = vmatmul.mubr.msk.bf16.gmra.mrb[8].mxu1 %vm197_vm1, %v6052_v58  ;;  %v450_v58 = vld [vmem:[%s17299_s13 + $0x288] sm:$0xff]  ;;  %v6087_v37 = vrot.slane %v6085_v30, 1  ;;  %613 = vst.msk [vmem:[#allocation2 + $0x4a1] sm:$0xff] %vm197_vm1, %v484_v20  ;;  %v6094_v63 = vor.u32 %v6093_v0, %v6089_v17  ;;  %v6099_v30 = vshrl.u32 %v18577_v54, 16  ;;  %v3023_v0 = vshll.u32 %v18583_v38, 16  ;;  %v488_v20 = vld [vmem:[%s17299_s13 + $0x3b8] sm:$0xff] }
 0x24e   : > { %15018 = vmatprep.mubr.msk.bf16.mxu1 %vm197_vm1, %v6062_v61  ;;  %579 = vst.msk [vmem:[#allocation2 + $0x351] sm:$0xff] %vm197_vm1, %v450_v58  ;;  %v2983_v61 = vrot.slane %v2981_v47, 1  ;;  %v2995_v47 = vshrl.u32 %v18569_v56, 16  ;;  %v6083_v58 = vor.u32 %v6081_v29, %v6079_v42  ;;  %617 = vst.msk [vmem:[#allocation2 + $0x4c9] sm:$0xff] %vm197_vm1, %v488_v20  ;;  %v5729_v20 = vld [vmem:[#allocation2 + $0x2c8] sm:$0x3] }
 0x24f   : > { %v18882_v5 = vpack.c.bf16 %v5729_v20, %v5729_v20  ;;  %v3315_v20 = vrot.slane %v18498_v4, 1  ;;  %v18923_v4 = vld [vmem:[%s20950_s1] sm:$0xf] }
 0x250   : > { %v2997_v42 = vor.u32 %v2995_v47, %v2993_v39  ;;  %v6088_v17 = vsel %vm691_vm3, %v6083_v58, %v6087_v37  ;;  %v487_v47 = vld [vmem:[%s17299_s13 + $0x3b0] sm:$0xff] }
 0x251   : > { %14713 = vmatmul.mubr.msk.bf16.gmra.mrb[12].mxu0 %vm197_vm1, %v2966_v57  ;;  %v2990_v57 = vor.u32 %v2989_v23, %v2985_v44  ;;  %v2984_v44 = vsel %vm691_vm3, %v2979_v62, %v2983_v61  ;;  %v2999_v23 = vshll.u32 %v18791_v51, 16  ;;  %v454_v62 = vld [vmem:[%s17299_s13 + $0x2a8] sm:$0xff]  ;;  %v455_v61 = vld [vmem:[%s17299_s13 + $0x2b0] sm:$0xff]  ;;  %616 = vst.msk [vmem:[#allocation2 + $0x4c1] sm:$0xff] %vm197_vm1, %v487_v47 }
 0x252   : > { %14716 = vmatprep.mubr.msk.bf16.mxu0 %vm197_vm1, %v2976_v7  ;;  %v6095_v7 = vshll.u32 %v18577_v54, 16  ;;  %583 = vst.msk [vmem:[#allocation2 + $0x379] sm:$0xff] %vm197_vm1, %v454_v62  ;;  %584 = vst.msk [vmem:[#allocation2 + $0x381] sm:$0xff] %vm197_vm1, %v455_v61  ;;  %v3025_v62 = vrot.slane %v3023_v0, 1  ;;  %v3027_v61 = vshll.u32 %v18598_v18, 16 }
 0x253   : > { %v2994_v31 = vsel %vm691_vm3, %v2990_v57, %v2993_v39  ;;  %v3001_v29 = vrot.slane %v2999_v23, 1  ;;  %v6103_v57 = vshll.u32 %v18808_v24, 16  ;;  %v486_v39 = vld [vmem:[%s17299_s13 + $0x3a8] sm:$0xff] }
 0x254   : > { %v6097_v25 = vrot.slane %v6095_v7, 1  ;;  %615 = vst.msk [vmem:[#allocation2 + $0x4b9] sm:$0xff] %vm197_vm1, %v486_v39  ;;  %v6125_v39 = vshrl.u32 %v18593_v21, 16 }
 0x255   : > { %15019 = vmatmul.mubr.msk.bf16.gmra.mrb[12].mxu1 %vm197_vm1, %v6070_v3  ;;  %v2619_v3 = vld [vmem:[#allocation2 + $0x160] sm:$0x3]  ;;  %v3002_v23 = vsel %vm691_vm3, %v2997_v42, %v3001_v29  ;;  %v6105_v58 = vrot.slane %v6103_v57, 1  ;;  %v458_v42 = vld [vmem:[%s17299_s13 + $0x2c8] sm:$0xff]  ;;  %v459_v29 = vld [vmem:[%s17299_s13 + $0x2d0] sm:$0xff] }
 0x256   : > { %15022 = vmatprep.mubr.msk.bf16.mxu1 %vm197_vm1, %v6080_v2  ;;  %v18829_v2 = vpack.c.bf16 %v2619_v3, %v2619_v3  ;;  %v6098_v7 = vsel %vm691_vm3, %v6094_v63, %v6097_v25  ;;  %v6101_v26 = vor.u32 %v6099_v30, %v6097_v25  ;;  %v3021_v3 = vshrl.u32 %v18583_v38, 16  ;;  %v2624_v63 = vld [vmem:[#allocation2 + $0x188] sm:$0x3]  ;;  %587 = vst.msk [vmem:[#allocation2 + $0x3a1] sm:$0xff] %vm197_vm1, %v458_v42 }
 0x257   : > { %v6127_v25 = vshll.u32 %v18593_v21, 16  ;;  %v18859_v57 = vpack.c.bf16 %v2624_v63, %v2624_v63  ;;  %588 = vst.msk [vmem:[#allocation2 + $0x3a9] sm:$0xff] %vm197_vm1, %v459_v29 }
 0x258   : > { %v3017_v37 = vshll.u32 %v18829_v2, 16  ;;  %v6106_v0 = vsel %vm691_vm3, %v6101_v26, %v6105_v58  ;;  %v3031_v58 = vshrl.u32 %v18598_v18, 16 }
 0x259   : > { %14717 = vmatmul.mubr.msk.bf16.gmra.mrb[16].mxu0 %vm197_vm1, %v2984_v44  ;;  %v485_v44 = vld [vmem:[%s17299_s13 + $0x3a0] sm:$0xff]  ;;  %v6129_v47 = vrot.slane %v6127_v25, 1 }
 0x25a   : > { %14720 = vmatprep.mubr.msk.bf16.mxu0 %vm197_vm1, %v2994_v31  ;;  %614 = vst.msk [vmem:[#allocation2 + $0x4b1] sm:$0xff] %vm197_vm1, %v485_v44  ;;  %v18846_v31 = vpack.c.bf16 %v5724_v32, %v5724_v32  ;;  %v3019_v30 = vrot.slane %v3017_v37, 1  ;;  %v3026_v32 = vor.u32 %v3025_v62, %v3021_v3  ;;  %v3029_v44 = vrot.slane %v3027_v61, 1  ;;  %v490_v37 = vld [vmem:[%s17299_s13 + $0x3c8] sm:$0xff]  ;;  %v491_v62 = vld [vmem:[%s17299_s13 + $0x3d0] sm:$0xff]  ;;  %v492_v61 = vld [vmem:[%s17299_s13 + $0x3d8] sm:$0xff] }
 0x25b   : > { %v3035_v3 = vshll.u32 %v18859_v57, 16  ;;  %619 = vst.msk [vmem:[#allocation2 + $0x4e1] sm:$0xff] %vm197_vm1, %v490_v37  ;;  %620 = vst.msk [vmem:[#allocation2 + $0x4e9] sm:$0xff] %vm197_vm1, %v491_v62  ;;  %v6415_v37 = vrot.slane %v18611_v48, 1  ;;  %v3319_v48 = vrot.slane %v18507_v8, 1  ;;  %v6420_v8 = vrot.slane %v18637_v15, 1 }
 0x25c   : > { %v3020_v26 = vsel %vm691_vm3, %v18301_v41, %v3019_v30  ;;  %v3030_v25 = vsel %vm691_vm3, %v3026_v32, %v3029_v44  ;;  %621 = vst.msk [vmem:[#allocation2 + $0x4f1] sm:$0xff] %vm197_vm1, %v492_v61  ;;  %v6130_v41 = vor.u32 %v6129_v47, %v6125_v39  ;;  %v3033_v29 = vor.u32 %v3031_v58, %v3029_v44  ;;  %v18940_v58 = vld [vmem:[%s20950_s1] sm:$0xf] }
 0x25d   : > { %15023 = vmatmul.mubr.msk.bf16.gmra.mrb[16].mxu1 %vm197_vm1, %v6088_v17  ;;  %v460_v17 = vld [vmem:[%s17299_s13 + $0x2d8] sm:$0xff]  ;;  %v3037_v30 = vrot.slane %v3035_v3, 1  ;;  %v21117_v15 = vld [vmem:[#allocation16_spill] sm:$0xff] }
 0x25e   : > { %15026 = vmatprep.mubr.msk.bf16.mxu1 %vm197_vm1, %v6098_v7  ;;  %v6121_v7 = vshll.u32 %v18846_v31, 16  ;;  %589 = vst.msk [vmem:[#allocation2 + $0x3b1] sm:$0xff] %vm197_vm1, %v460_v17  ;;  %v6135_v17 = vshrl.u32 %v18620_v22, 16  ;;  %v21116_v3 = vld [vmem:[#allocation15_spill] sm:$0xff] }
 0x25f   : > { %v3038_v32 = vsel %vm691_vm3, %v3033_v29, %v3037_v30  ;;  %v3322_v62 = vrot.slane %v21116_v3, 1  ;;  %v21119_v30 = vld [vmem:[#allocation11_spill] sm:$0xff]  ;;  %v3344_v3 = vrot.slane %v18583_v38, 1 }
 0x260   : > { %v6123_v63 = vrot.slane %v6121_v7, 1 }
 0x261   : > { %14721 = vmatmul.mubr.msk.bf16.gmra.mrb[20].mxu0 %vm197_vm1, %v3002_v23  ;;  %v489_v23 = vld [vmem:[%s17299_s13 + $0x3c0] sm:$0xff] }
 0x262   : > { %14724 = vmatprep.mubr.msk.bf16.mxu0 %vm197_vm1, %v18292_v59  ;;  %v6131_v59 = vshll.u32 %v18620_v22, 16  ;;  %618 = vst.msk [vmem:[#allocation2 + $0x4d9] sm:$0xff] %vm197_vm1, %v489_v23 }
 0x264   : > { %v6133_v42 = vrot.slane %v6131_v59, 1  ;;  %v3314_v59 = vrot.slane %v18477_v28, 1  ;;  %v6418_v28 = vrot.slane %v18515_v45, 1  ;;  %v10219_v45 = vsel %vm902_vm0, %v18688_v36, 0 }
 0x265   : > { %15027 = vmatmul.mubr.msk.bf16.gmra.mrb[20].mxu1 %vm197_vm1, %v6106_v0  ;;  %v6139_v0 = vshll.u32 %v18882_v5, 16  ;;  %v6423_v36 = vrot.slane %v18531_v14, 1  ;;  %v21118_v14 = vld [vmem:[#allocation18_spill] sm:$0xff] }
 0x266   : > { %15030 = vmatprep.mubr.msk.bf16.mxu1 %vm197_vm1, %v18310_v27  ;;  %v6124_v27 = vsel %vm691_vm3, %v18323_v50, %v6123_v63  ;;  %v18893_v7 = vsel %vm691_vm3, %v6130_v41, %v6133_v42  ;;  %v18899_v39 = vor.u32 %v6135_v17, %v6133_v42  ;;  %v3312_v50 = vrot.slane %v18589_v12, 1 }
 0x267   : > { %v6141_v44 = vrot.slane %v6139_v0, 1  ;;  %v3316_v12 = vsel %vm1287_vm4, %v3314_v59, %v3315_v20  ;;  %v6421_v61 = vsel %vm1287_vm4, %v6418_v28, %v6420_v8  ;;  %v3324_v63 = vrot.slane %v18525_v52, 1  ;;  %v21120_v52 = vld [vmem:[#allocation22_spill] sm:$0xff]  ;;  %v9945_v8 = vld [vmem:[#allocation2 + $0x3c8] sm:$0xff] }
 0x268   : > { %v3313_v23 = vsel %vm1287_vm4, %v18335_v40, %v3312_v50  ;;  %v3317_v40 = vrot.slane %v18618_v33, 1  ;;  %v6422_v33 = vrot.slane %v18519_v46, 1  ;;  %v6425_v42 = vrot.slane %v21118_v14, 1 }
 0x269   : > { %14725 = vmatmul.mubr.msk.bf16.gmra.mrb[24].mxu0 %vm197_vm1, %v3020_v26  ;;  %v6142_v47 = vsel %vm691_vm3, %v18899_v39, %v6141_v44  ;;  %v6417_v26 = vrot.slane %v18492_v1, 1  ;;  %v3320_v1 = vrot.slane %v18521_v13, 1  ;;  %v6428_v17 = vrot.slane %v18547_v9, 1  ;;  %v21121_v44 = vld [vmem:[#allocation19_spill] sm:$0xff] }
 0x26a   : > { %14728 = vmatprep.mubr.msk.bf16.mxu0 %vm197_vm1, %v3030_v25  ;;  %v3325_v25 = vrot.slane %v21117_v15, 1  ;;  %v6424_v41 = vsel %vm1287_vm4, %v6422_v33, %v6423_v36  ;;  %v3327_v0 = vrot.slane %v21120_v52, 1  ;;  %v3329_v50 = vrot.slane %v21121_v44, 1  ;;  %v21122_v33 = vld [vmem:[#allocation10_spill] sm:$0xff] }
 0x26b   : > { %v3321_v13 = vsel %vm1287_vm4, %v3319_v48, %v3320_v1  ;;  %v3323_v46 = vsel %vm1287_vm4, %v3320_v1, %v3322_v62  ;;  %v6430_v9 = vrot.slane %v18733_v53, 1  ;;  %v6841_v1 = vld [vmem:[#allocation2 + $0x280] sm:$0xff]  ;;  %v9946_v15 = vld [vmem:[#allocation2 + $0x3d0] sm:$0xff]  ;;  %v6445_v14 = vrot.slane %v18846_v31, 1 }
 0x26c   : > { %v3326_v29 = vsel %vm1287_vm4, %v3324_v63, %v3325_v25 }
 0x26d   : > { %15031 = vmatmul.mubr.msk.bf16.gmra.mrb[24].mxu1 %vm197_vm1, %v6124_v27  ;;  %v6427_v27 = vrot.slane %v21119_v30, 1 }
 0x26e   : > { %15034 = vmatprep.mubr.msk.bf16.mxu1 %vm197_vm1, %v18893_v7 }
 0x26f   : > { %v6429_v59 = vsel %vm1287_vm4, %v6427_v27, %v6428_v17  ;;  %v6447_v27 = vrot.slane %v18593_v21, 1 }
 0x271   : > { %14729 = vmatmul.mubr.msk.bf16.gmra.mrb[28].mxu0 %vm197_vm1, %v3038_v32  ;;  %v6426_v32 = vsel %vm1287_vm4, %v6423_v36, %v6425_v42  ;;  %v3342_v36 = vrot.slane %v18829_v2, 1  ;;  %v6845_v2 = vld [vmem:[#allocation2 + $0x2a0] sm:$0x3] }
 0x272   : > { %14734 = vmatprep.mubr.msk.bf16.mxu0 %vm197_vm1, %v18346_v19  ;;  %v7116_v19 = vsel %vm902_vm0, %v18659_v34, 0  ;;  %v6419_v34 = vsel %vm1287_vm4, %v6417_v26, %v6418_v28  ;;  %v3334_v26 = vrot.slane %v18557_v60, 1  ;;  %v3335_v28 = vrot.slane %v18569_v56, 1  ;;  %v21124_v42 = vld [vmem:[#allocation8_spill] sm:$0xff] }
 0x273   : > { %v3337_v60 = vrot.slane %v18791_v51, 1  ;;  %v9944_v51 = vld [vmem:[#allocation2 + $0x3c0] sm:$0xff]  ;;  %v19033_v44 = vpack.c.bf16 %v6845_v2, %v6845_v2 }
 0x274   : > { %v19014_v63 = vpack.c.bf16 %v9945_v8, %v9944_v51  ;;  %v6853_v51 = vld [vmem:[#allocation2 + $0x2e0] sm:$0xff]  ;;  %v6854_v8 = vld [vmem:[#allocation2 + $0x2e8] sm:$0xff] }
 0x275   : > { %15035 = vmatmul.mubr.msk.bf16.gmra.mrb[28].mxu1 %vm197_vm1, %v6142_v47  ;;  %v3330_v47 = vrot.slane %v18553_v55, 1  ;;  %v3332_v55 = vrot.slane %v18757_v43, 1  ;;  %v6437_v43 = vrot.slane %v18567_v11, 1  ;;  %v6440_v11 = vrot.slane %v18808_v24, 1 }
 0x276   : > { %15040 = vmatprep.mubr.msk.bf16.mxu1 %vm197_vm1, %v18368_v10  ;;  %v6416_v10 = vsel %vm1287_vm4, %v18350_v6, %v6415_v37  ;;  %v3318_v6 = vsel %vm1287_vm4, %v3315_v20, %v3317_v40  ;;  %v3328_v20 = vsel %vm1287_vm4, %v3325_v25, %v3327_v0  ;;  %v6432_v37 = vrot.slane %v18551_v49, 1  ;;  %v9947_v25 = vld [vmem:[#allocation2 + $0x3d8] sm:$0xff]  ;;  %v9949_v0 = vld [vmem:[#allocation2 + $0x3e8] sm:$0xff] }
 0x277   : > { %v3333_v49 = vsel %vm1287_vm4, %v3330_v47, %v3332_v55  ;;  %v3336_v40 = vsel %vm1287_vm4, %v3334_v26, %v3335_v28  ;;  %v3345_v24 = vrot.slane %v18598_v18, 1  ;;  %v19029_v52 = vpack.c.bf16 %v9947_v25, %v9946_v15  ;;  %v9952_v55 = vld [vmem:[#allocation2 + $0x400] sm:$0xff] }
 0x278   : > { %v10012_v31 = vshll.u32 %v19014_v63, 16  ;;  %v19073_v2 = vpack.c.bf16 %v6854_v8, %v6853_v51  ;;  %v10415_v51 = vsel %vm902_vm0, %v18940_v58, 0 }
 0x279   : > { %14735 = vmatmul.mubr.msk.bf16.vlgmr.msra.gmra.mrb[0].mxu0 %vm197_vm1, %v3313_v23  ;;  %v3331_v23 = vsel %vm1287_vm4, %v3329_v50, %v3330_v47  ;;  %v3346_v38 = vsel %vm1287_vm4, %v3344_v3, %v3345_v24  ;;  %v3347_v50 = vrot.slane %v18859_v57, 1  ;;  %v9948_v47 = vld [vmem:[#allocation2 + $0x3e0] sm:$0x3]  ;;  %v10017_v57 = vshll.u32 %v19029_v52, 16  ;;  %v9954_v3 = vld [vmem:[#allocation2 + $0x410] sm:$0xff] }
 0x27a   : > { %15073 = vmatpush3.bf16.msra.mxu0 %v7116_v19  ;;  %14738 = vmatprep.mubr.msk.bf16.mxu0 %vm197_vm1, %v3316_v12  ;;  %v6433_v19 = vrot.slane %v18563_v35, 1  ;;  %v6431_v12 = vsel %vm1287_vm4, %v6428_v17, %v6430_v9  ;;  %v6435_v35 = vrot.slane %v18778_v16, 1  ;;  %v3338_v16 = vsel %vm1287_vm4, %v3335_v28, %v3337_v60 }
 0x27b   : > { %16727 = vmatprep.subr.msk.bf16.mxu0 %vm902_vm0, %v18923_v4  ;;  %v19027_v17 = vrot.slane %v18620_v22, 1  ;;  %v10010_v28 = vshrl.u32 %v19014_v63, 16  ;;  %v3348_v60 = vsel %vm1287_vm4, %v3345_v24, %v3347_v50  ;;  %v9955_v24 = vld [vmem:[#allocation2 + $0x418] sm:$0xff]  ;;  %v9956_v50 = vld [vmem:[#allocation2 + $0x420] sm:$0xff] }
 0x27c   : > { %v6434_v53 = vsel %vm1287_vm4, %v6432_v37, %v6433_v19  ;;  %v6436_v56 = vsel %vm1287_vm4, %v6433_v19, %v6435_v35  ;;  %v6850_v37 = vld [vmem:[#allocation2 + $0x2c8] sm:$0x3]  ;;  %v9951_v19 = vld [vmem:[#allocation2 + $0x3f8] sm:$0xff] }
 0x27d   : > { %15041 = vmatmul.mubr.msk.bf16.vlgmr.msra.gmra.mrb[0].mxu1 %vm197_vm1, %v6416_v10  ;;  %v6438_v10 = vrot.slane %v18577_v54, 1  ;;  %21125 = vst [vmem:[#allocation25_spill] sm:$0xff] %v19027_v17  ;;  %v19043_v26 = vsel %vm1287_vm4, %v6447_v27, %v19027_v17  ;;  %v6852_v35 = vld [vmem:[#allocation2 + $0x2d8] sm:$0xff] }
 0x27e   : > { %15379 = vmatpush3.bf16.msra.mxu1 %v10219_v45  ;;  %15044 = vmatprep.mubr.msk.bf16.mxu1 %vm197_vm1, %v6419_v34  ;;  %v6842_v45 = vld [vmem:[#allocation2 + $0x288] sm:$0xff]  ;;  %v6843_v34 = vld [vmem:[#allocation2 + $0x290] sm:$0xff] }
 0x27f   : > { %16736 = vmatprep.subr.msk.bf16.mxu1 %vm902_vm0, %v18940_v58  ;;  %v6439_v48 = vsel %vm1287_vm4, %v6437_v43, %v6438_v10  ;;  %v19002_v54 = vpack.c.bf16 %v6842_v45, %v6841_v1  ;;  %v6922_v43 = vshll.u32 %v19033_v44, 16  ;;  %v19056_v1 = vpack.c.bf16 %v9952_v55, %v9951_v19 }
 0x281   : > { %14739 = vmatmul.mubr.msk.bf16.gmra.mrb[4].mxu0 %vm197_vm1, %v3318_v6  ;;  %v6844_v6 = vld [vmem:[#allocation2 + $0x298] sm:$0xff]  ;;  %v6907_v18 = vshrl.u32 %v19002_v54, 16  ;;  %v10037_v25 = vshll.u32 %v19056_v1, 16 }
 0x282   : > { %14742 = vmatprep.mubr.msk.bf16.mxu0 %vm197_vm1, %v3321_v13  ;;  %v6441_v13 = vsel %vm1287_vm4, %v6438_v10, %v6440_v11  ;;  %v19011_v62 = vpack.c.bf16 %v6844_v6, %v6843_v34  ;;  %v19049_v10 = vpack.c.bf16 %v9948_v47, %v9948_v47  ;;  %v10019_v6 = vrot.slane %v10017_v57, 1  ;;  %v9957_v47 = vld [vmem:[#allocation2 + $0x428] sm:$0xff] }
 0x283   : > { %v6858_v57 = vld [vmem:[#allocation2 + $0x308] sm:$0xff] }
 0x284   : > { %v6914_v30 = vshll.u32 %v19011_v62, 16 }
 0x285   : > { %15045 = vmatmul.mubr.msk.bf16.gmra.mrb[4].mxu1 %vm197_vm1, %v6421_v61  ;;  %v6909_v61 = vshll.u32 %v19002_v54, 16 }
 0x286   : > { %15048 = vmatprep.mubr.msk.bf16.mxu1 %vm197_vm1, %v6424_v41  ;;  %v21123_v41 = vld [vmem:[#allocation6_spill] sm:$0xff] }
 0x289   : > { %14743 = vmatmul.mubr.msk.bf16.gmra.mrb[8].mxu0 %vm197_vm1, %v3323_v46  ;;  %v3343_v46 = vsel %vm1287_vm4, %v21123_v41, %v3342_v36  ;;  %v10025_v36 = vshll.u32 %v19049_v10, 16  ;;  %v9953_v41 = vld [vmem:[#allocation2 + $0x408] sm:$0x3] }
 0x28a   : > { %14746 = vmatprep.mubr.msk.bf16.mxu0 %vm197_vm1, %v3326_v29  ;;  %v6911_v29 = vrot.slane %v6909_v61, 1 }
 0x28c   : > { %v6912_v9 = vor.u32 %v6911_v29, %v6907_v18  ;;  %v6857_v18 = vld [vmem:[#allocation2 + $0x300] sm:$0xff] }
 0x28d   : > { %15049 = vmatmul.mubr.msk.bf16.gmra.mrb[8].mxu1 %vm197_vm1, %v6426_v32  ;;  %v9950_v32 = vld [vmem:[#allocation2 + $0x3f0] sm:$0xff] }
 0x28e   : > { %15052 = vmatprep.mubr.msk.bf16.mxu1 %vm197_vm1, %v6429_v59  ;;  %v21126_v59 = vld [vmem:[#allocation13_spill] sm:$0xff] }
 0x291   : > { %14747 = vmatmul.mubr.msk.bf16.gmra.mrb[12].mxu0 %vm197_vm1, %v3328_v20  ;;  %v6446_v20 = vsel %vm1287_vm4, %v21126_v59, %v6445_v14  ;;  %v7312_v59 = vsel %vm902_vm0, %v18923_v4, 0  ;;  %v9959_v4 = vld [vmem:[#allocation2 + $0x438] sm:$0xff] }
 0x292   : > { %14750 = vmatprep.mubr.msk.bf16.mxu0 %vm197_vm1, %v3331_v23  ;;  %v6916_v23 = vrot.slane %v6914_v30, 1  ;;  %v19077_v30 = vpack.c.bf16 %v9955_v24, %v9954_v3  ;;  %v9961_v24 = vld [vmem:[#allocation2 + $0x448] sm:$0xff] }
 0x294   : > { %v6917_v45 = vsel %vm691_vm3, %v6912_v9, %v6916_v23  ;;  %v10039_v9 = vrot.slane %v10037_v25, 1 }
 0x295   : > { %15053 = vmatmul.mubr.msk.bf16.gmra.mrb[12].mxu1 %vm197_vm1, %v6431_v12  ;;  %v19039_v12 = vpack.c.bf16 %v9950_v32, %v9949_v0  ;;  %v10027_v0 = vrot.slane %v10025_v36, 1  ;;  %v19080_v32 = vpack.c.bf16 %v9953_v41, %v9953_v41  ;;  %v6861_v41 = vld [vmem:[#allocation2 + $0x320] sm:$0xff] }
 0x296   : > { %15056 = vmatprep.mubr.msk.bf16.mxu1 %vm197_vm1, %v6434_v53  ;;  %v10014_v53 = vrot.slane %v10012_v31, 1 }
 0x297   : > { %21127 = vst [vmem:[#allocation20_spill] sm:$0xff] %v19080_v32 }
 0x298   : > { %v10015_v34 = vor.u32 %v10014_v53, %v10010_v28  ;;  %v6954_v53 = vshll.u32 %v19073_v2, 16 }
 0x299   : > { %14751 = vmatmul.mubr.msk.bf16.gmra.mrb[16].mxu0 %vm197_vm1, %v3333_v49  ;;  %v6851_v49 = vld [vmem:[#allocation2 + $0x2d0] sm:$0xff] }
 0x29a   : > { %14754 = vmatprep.mubr.msk.bf16.mxu0 %vm197_vm1, %v3336_v40  ;;  %v6918_v40 = vshrl.u32 %v19011_v62, 16  ;;  %v19062_v11 = vpack.c.bf16 %v6852_v35, %v6851_v49  ;;  %v10020_v29 = vsel %vm691_vm3, %v10015_v34, %v10019_v6  ;;  %v6859_v49 = vld [vmem:[#allocation2 + $0x310] sm:$0xff]  ;;  %v19090_v35 = vpack.c.bf16 %v9957_v47, %v9956_v50  ;;  %v6860_v50 = vld [vmem:[#allocation2 + $0x318] sm:$0x3] }
 0x29b   : > { %v6956_v3 = vrot.slane %v6954_v53, 1  ;;  %v6864_v53 = vld [vmem:[#allocation2 + $0x338] sm:$0xff] }
 0x29c   : > { %v6947_v55 = vshrl.u32 %v19062_v11, 16 }
 0x29d   : > { %15057 = vmatmul.mubr.msk.bf16.gmra.mrb[16].mxu1 %vm197_vm1, %v6436_v56  ;;  %v6450_v56 = vrot.slane %v18882_v5, 1  ;;  %v6920_v5 = vor.u32 %v6918_v40, %v6916_v23  ;;  %v6855_v23 = vld [vmem:[#allocation2 + $0x2f0] sm:$0x3]  ;;  %v10052_v40 = vshll.u32 %v19077_v30, 16 }
 0x29e   : > { %15060 = vmatprep.mubr.msk.bf16.mxu1 %vm197_vm1, %v6439_v48  ;;  %v19054_v48 = vpack.c.bf16 %v6850_v37, %v6850_v37  ;;  %v19102_v34 = vpack.c.bf16 %v6855_v23, %v6855_v23 }
 0x29f   : > { %v6451_v61 = vsel %vm1287_vm4, %v19027_v17, %v6450_v56  ;;  %v10054_v58 = vrot.slane %v10052_v40, 1  ;;  %v10061_v40 = vshrl.u32 %v19090_v35, 16  ;;  %v9978_v17 = vld [vmem:[#allocation2 + $0x4d0] sm:$0x3] }
 0x2a0   : > { %v6942_v15 = vshll.u32 %v19054_v48, 16  ;;  %21128 = vst [vmem:[#allocation23_spill] sm:$0xff] %v19102_v34 }
 0x2a1   : > { %14755 = vmatmul.mubr.msk.bf16.gmra.mrb[20].mxu0 %vm197_vm1, %v3338_v16  ;;  %v10032_v16 = vshll.u32 %v19039_v12, 16 }
 0x2a2   : > { %14758 = vmatprep.mubr.msk.bf16.mxu0 %vm197_vm1, %v21122_v33  ;;  %v10021_v33 = vshrl.u32 %v19029_v52, 16 }
 0x2a3   : > { %v10034_v14 = vrot.slane %v10032_v16, 1  ;;  %v10045_v16 = vshll.u32 %v19080_v32, 16  ;;  %v6874_v32 = vld [vmem:[#allocation2 + $0x388] sm:$0xff] }
 0x2a4   : > { %v10023_v31 = vor.u32 %v10021_v33, %v10019_v6  ;;  %v9958_v6 = vld [vmem:[#allocation2 + $0x430] sm:$0x3] }
 0x2a5   : > { %15061 = vmatmul.mubr.msk.bf16.gmra.mrb[20].mxu1 %vm197_vm1, %v6441_v13  ;;  %v6924_v13 = vrot.slane %v6922_v43, 1  ;;  %v9960_v43 = vld [vmem:[#allocation2 + $0x440] sm:$0xff]  ;;  %v19120_v25 = vpack.c.bf16 %v9958_v6, %v9958_v6 }
 0x2a6   : > { %15064 = vmatprep.mubr.msk.bf16.mxu1 %vm197_vm1, %v21124_v42  ;;  %v6949_v42 = vshll.u32 %v19062_v11, 16  ;;  %v10028_v56 = vsel %vm691_vm3, %v10023_v31, %v10027_v0 }
 0x2a7   : > { %v6925_v27 = vsel %vm691_vm3, %v6920_v5, %v6924_v13  ;;  %v19110_v5 = vpack.c.bf16 %v6859_v49, %v6858_v57  ;;  %21129 = vst [vmem:[#allocation14_spill] sm:$0xff] %v19120_v25 }
 0x2a8   : > { %v6951_v28 = vrot.slane %v6949_v42, 1  ;;  %v10047_v42 = vrot.slane %v10045_v16, 1 }
 0x2a9   : > { %14759 = vmatmul.mubr.msk.bf16.gmra.mrb[24].mxu0 %vm197_vm1, %v3343_v46  ;;  %v10030_v46 = vshrl.u32 %v19039_v12, 16  ;;  %v6974_v0 = vshll.u32 %v19110_v5, 16 }
 0x2aa   : > { %14762 = vmatprep.mubr.msk.bf16.mxu0 %vm197_vm1, %v3346_v38  ;;  %v6856_v38 = vld [vmem:[#allocation2 + $0x2f8] sm:$0xff]  ;;  %v6952_v36 = vor.u32 %v6951_v28, %v6947_v55  ;;  %v10065_v55 = vshll.u32 %v19120_v25, 16  ;;  %v6863_v28 = vld [vmem:[#allocation2 + $0x330] sm:$0xff] }
 0x2ab   : > { %v19085_v37 = vpack.c.bf16 %v6857_v18, %v6856_v38  ;;  %v10035_v19 = vor.u32 %v10034_v14, %v10030_v46  ;;  %v6862_v46 = vld [vmem:[#allocation2 + $0x328] sm:$0xff]  ;;  %v6958_v38 = vshrl.u32 %v19073_v2, 16  ;;  %v6962_v18 = vshll.u32 %v19102_v34, 16  ;;  %v6873_v34 = vld [vmem:[#allocation2 + $0x380] sm:$0xff] }
 0x2ac   : > { %v6976_v6 = vrot.slane %v6974_v0, 1 }
 0x2ad   : > { %15065 = vmatmul.mubr.msk.bf16.gmra.mrb[24].mxu1 %vm197_vm1, %v6446_v20  ;;  %v6944_v20 = vrot.slane %v6942_v15, 1  ;;  %v6969_v13 = vshll.u32 %v19085_v37, 16  ;;  %v10040_v33 = vsel %vm691_vm3, %v10035_v19, %v10039_v9  ;;  %v19114_v15 = vpack.c.bf16 %v9960_v43, %v9959_v4  ;;  %v9964_v43 = vld [vmem:[#allocation2 + $0x460] sm:$0xff] }
 0x2ae   : > { %15068 = vmatprep.mubr.msk.bf16.mxu1 %vm197_vm1, %v19043_v26  ;;  %v6960_v57 = vor.u32 %v6958_v38, %v6956_v3  ;;  %v6964_v49 = vrot.slane %v6962_v18, 1  ;;  %v19144_v4 = vpack.c.bf16 %v6860_v50, %v6860_v50  ;;  %v6865_v38 = vld [vmem:[#allocation2 + $0x340] sm:$0x3]  ;;  %v9966_v18 = vld [vmem:[#allocation2 + $0x470] sm:$0xff] }
 0x2af   : > { %v6945_v8 = vsel %vm691_vm3, %v18899_v39, %v6944_v20  ;;  %v10057_v39 = vshll.u32 %v19090_v35, 16  ;;  %v6971_v31 = vrot.slane %v6969_v13, 1  ;;  %v10072_v20 = vshll.u32 %v19114_v15, 16  ;;  %v9963_v13 = vld [vmem:[#allocation2 + $0x458] sm:$0x3] }
 0x2b0   : > { %21130 = vst [vmem:[#allocation7_spill] sm:$0xff] %v19144_v4  ;;  %v19161_v50 = vpack.c.bf16 %v9963_v13, %v9963_v13 }
 0x2b1   : > { %14763 = vmatmul.mubr.msk.bf16.gmra.mrb[28].mxu0 %vm197_vm1, %v3348_v60  ;;  %v19096_v60 = vld [vmem:[%s20950_s1 + $0x8] sm:$0xf]  ;;  %v10059_v19 = vrot.slane %v10057_v39, 1 }
 0x2b2   : > { %15074 = vmatprep.mubr.msk.bf16.mxu0 %vm197_vm1, %v6917_v45  ;;  %v10041_v45 = vshrl.u32 %v19056_v1, 16  ;;  %21131 = vst [vmem:[#allocation9_spill] sm:$0xff] %v19161_v50 }
 0x2b4   : > { %v10043_v14 = vor.u32 %v10041_v45, %v10039_v9  ;;  %v19137_v9 = vpack.c.bf16 %v6862_v46, %v6861_v41  ;;  %v6965_v41 = vsel %vm691_vm3, %v6960_v57, %v6964_v49  ;;  %v10063_v46 = vor.u32 %v10061_v40, %v10059_v19  ;;  %v9969_v57 = vld [vmem:[#allocation2 + $0x488] sm:$0xff]  ;;  %v9970_v49 = vld [vmem:[#allocation2 + $0x490] sm:$0xff] }
 0x2b5   : > { %15069 = vmatmul.mubr.msk.bf16.gmra.mrb[28].mxu1 %vm197_vm1, %v6451_v61  ;;  %v9962_v61 = vld [vmem:[#allocation2 + $0x450] sm:$0xff]  ;;  %v19168_v40 = vpack.c.bf16 %v6865_v38, %v6865_v38 }
 0x2b6   : > { %15380 = vmatprep.mubr.msk.bf16.mxu1 %vm197_vm1, %v10020_v29  ;;  %v19127_v29 = vld [vmem:[%s20950_s1 + $0x8] sm:$0xf]  ;;  %v19132_v47 = vpack.c.bf16 %v9962_v61, %v9961_v24  ;;  %v10048_v45 = vsel %vm691_vm3, %v10043_v14, %v10047_v42  ;;  %v6867_v61 = vld [vmem:[#allocation2 + $0x350] sm:$0xff]  ;;  %v6978_v14 = vshrl.u32 %v19110_v5, 16  ;;  %v6982_v42 = vshll.u32 %v19144_v4, 16 }
 0x2b7   : > { %v6866_v24 = vld [vmem:[#allocation2 + $0x348] sm:$0xff]  ;;  %21132 = vst [vmem:[#allocation24_spill] sm:$0xff] %v19168_v40 }
 0x2b9   : > { %15075 = vmatmul.mubr.msk.bf16.vlgmr.msra.gmra.mrb[32].mxu0 %vm197_vm1, %v6925_v27  ;;  %v6967_v27 = vshrl.u32 %v19085_v37, 16 }
 0x2ba   : > { %15107 = vmatpush3.bf16.msra.mxu0 %v7312_v59  ;;  %15078 = vmatprep.mubr.msk.bf16.mxu0 %vm197_vm1, %v18893_v7  ;;  %v10050_v7 = vshrl.u32 %v19077_v30, 16  ;;  %v6957_v59 = vsel %vm691_vm3, %v6952_v36, %v6956_v3  ;;  %v19150_v36 = vpack.c.bf16 %v6864_v53, %v6863_v28  ;;  %v6989_v3 = vshll.u32 %v19137_v9, 16 }
 0x2bb   : > { %16728 = vmatprep.subr.msk.bf16.mxu0 %vm902_vm0, %v19096_v60  ;;  %v6972_v16 = vor.u32 %v6971_v31, %v6967_v27  ;;  %v9967_v27 = vld [vmem:[#allocation2 + $0x478] sm:$0xff] }
 0x2bc   : > { %v10055_v23 = vor.u32 %v10054_v58, %v10050_v7  ;;  %v10067_v58 = vrot.slane %v10065_v55, 1  ;;  %v6987_v55 = vshrl.u32 %v19137_v9, 16  ;;  %v6991_v28 = vrot.slane %v6989_v3, 1  ;;  %v9968_v3 = vld [vmem:[#allocation2 + $0x480] sm:$0x3] }
 0x2bd   : > { %15381 = vmatmul.mubr.msk.bf16.vlgmr.msra.gmra.mrb[32].mxu1 %vm197_vm1, %v10028_v56  ;;  %v9965_v56 = vld [vmem:[#allocation2 + $0x468] sm:$0xff]  ;;  %v6977_v31 = vsel %vm691_vm3, %v6972_v16, %v6976_v6  ;;  %v6994_v53 = vshll.u32 %v19150_v36, 16  ;;  %v6980_v16 = vor.u32 %v6978_v14, %v6976_v6  ;;  %v6998_v6 = vshrl.u32 %v19150_v36, 16 }
 0x2be   : > { %15413 = vmatpush3.bf16.msra.mxu1 %v10415_v51  ;;  %15384 = vmatprep.mubr.msk.bf16.mxu1 %vm197_vm1, %v10040_v33  ;;  %v10077_v51 = vshll.u32 %v19132_v47, 16  ;;  %v10070_v33 = vshrl.u32 %v19114_v15, 16  ;;  %v10060_v7 = vsel %vm691_vm3, %v10055_v23, %v10059_v19  ;;  %v19154_v39 = vpack.c.bf16 %v9965_v56, %v9964_v43 }
 0x2bf   : > { %16737 = vmatprep.subr.msk.bf16.mxu1 %vm902_vm0, %v19127_v29  ;;  %v19163_v23 = vpack.c.bf16 %v6867_v61, %v6866_v24  ;;  %v19170_v43 = vpack.c.bf16 %v9967_v27, %v9966_v18  ;;  %v19181_v61 = vpack.c.bf16 %v9970_v49, %v9969_v57  ;;  %v6996_v38 = vrot.slane %v6994_v53, 1  ;;  %v6870_v53 = vld [vmem:[#allocation2 + $0x368] sm:$0x3] }
 0x2c0   : > { %v10079_v0 = vrot.slane %v10077_v51, 1  ;;  %v10092_v56 = vshll.u32 %v19154_v39, 16  ;;  %v6984_v51 = vrot.slane %v6982_v42, 1  ;;  %v7002_v14 = vshll.u32 %v19168_v40, 16 }
 0x2c1   : > { %15079 = vmatmul.mubr.msk.bf16.gmra.mrb[36].mxu0 %vm197_vm1, %v6945_v8  ;;  %v10074_v8 = vrot.slane %v10072_v20, 1  ;;  %v6869_v20 = vld [vmem:[#allocation2 + $0x360] sm:$0xff]  ;;  %v7009_v24 = vshll.u32 %v19163_v23, 16  ;;  %v10090_v42 = vshrl.u32 %v19154_v39, 16  ;;  %v10097_v27 = vshll.u32 %v19170_v43, 16 }
 0x2c2   : > { %15082 = vmatprep.mubr.msk.bf16.mxu0 %vm197_vm1, %v6957_v59  ;;  %v6868_v59 = vld [vmem:[#allocation2 + $0x358] sm:$0xff]  ;;  %v10094_v18 = vrot.slane %v10092_v56, 1  ;;  %v19189_v57 = vpack.c.bf16 %v9968_v3, %v9968_v3  ;;  %v10112_v56 = vshll.u32 %v19181_v61, 16  ;;  %v7000_v3 = vor.u32 %v6998_v6, %v6996_v38 }
 0x2c3   : > { %v10075_v19 = vor.u32 %v10074_v8, %v10070_v33  ;;  %v19175_v13 = vpack.c.bf16 %v6869_v20, %v6868_v59  ;;  %v10081_v33 = vshrl.u32 %v19132_v47, 16  ;;  %v10085_v8 = vshll.u32 %v19161_v50, 16  ;;  %v6872_v59 = vld [vmem:[#allocation2 + $0x378] sm:$0xff] }
 0x2c4   : > { %v6985_v20 = vsel %vm691_vm3, %v6980_v16, %v6984_v51  ;;  %21133 = vst [vmem:[#allocation12_spill] sm:$0xff] %v19189_v57  ;;  %v7004_v4 = vrot.slane %v7002_v14, 1  ;;  %v10095_v25 = vor.u32 %v10094_v18, %v10090_v42  ;;  %v9973_v14 = vld [vmem:[#allocation2 + $0x4a8] sm:$0x3]  ;;  %v19210_v18 = vpack.c.bf16 %v6874_v32, %v6873_v34 }
 0x2c5   : > { %15385 = vmatmul.mubr.msk.bf16.gmra.mrb[36].mxu1 %vm197_vm1, %v10048_v45  ;;  %v10068_v45 = vsel %vm691_vm3, %v10063_v46, %v10067_v58  ;;  %v9971_v58 = vld [vmem:[#allocation2 + $0x498] sm:$0xff]  ;;  %v9972_v46 = vld [vmem:[#allocation2 + $0x4a0] sm:$0xff]  ;;  %v10083_v40 = vor.u32 %v10081_v33, %v10079_v0  ;;  %v10087_v50 = vrot.slane %v10085_v8, 1  ;;  %v9977_v32 = vld [vmem:[#allocation2 + $0x4c8] sm:$0xff] }
 0x2c6   : > { %15388 = vmatprep.mubr.msk.bf16.mxu1 %vm197_vm1, %v10060_v7  ;;  %v10080_v7 = vsel %vm691_vm3, %v10075_v19, %v10079_v0  ;;  %v7014_v19 = vshll.u32 %v19175_v13, 16  ;;  %v19194_v49 = vpack.c.bf16 %v9972_v46, %v9971_v58  ;;  %v10105_v58 = vshll.u32 %v19189_v57, 16  ;;  %v9974_v0 = vld [vmem:[#allocation2 + $0x4b0] sm:$0xff]  ;;  %v9975_v33 = vld [vmem:[#allocation2 + $0x4b8] sm:$0xff] }
 0x2c7   : > { %v10088_v42 = vsel %vm691_vm3, %v10083_v40, %v10087_v50  ;;  %v9976_v50 = vld [vmem:[#allocation2 + $0x4c0] sm:$0xff] }
 0x2c8   : > { %v7016_v46 = vrot.slane %v7014_v19, 1  ;;  %v10117_v6 = vshll.u32 %v19194_v49, 16  ;;  %v6876_v19 = vld [vmem:[#allocation2 + $0x398] sm:$0xff]  ;;  %v10107_v34 = vrot.slane %v10105_v58, 1  ;;  %v6879_v58 = vld [vmem:[#allocation2 + $0x3b0] sm:$0xff] }
 0x2c9   : > { %15083 = vmatmul.mubr.msk.bf16.gmra.mrb[40].mxu0 %vm197_vm1, %v6965_v41  ;;  %v6992_v41 = vor.u32 %v6991_v28, %v6987_v55  ;;  %v7007_v55 = vshrl.u32 %v19163_v23, 16  ;;  %v7011_v28 = vrot.slane %v7009_v24, 1  ;;  %v10101_v24 = vshrl.u32 %v19170_v43, 16 }
 0x2ca   : > { %15086 = vmatprep.mubr.msk.bf16.mxu0 %vm197_vm1, %v6977_v31  ;;  %v6871_v31 = vld [vmem:[#allocation2 + $0x370] sm:$0xff] }
 0x2cb   : > { %v6997_v16 = vsel %vm691_vm3, %v6992_v41, %v6996_v38  ;;  %v19199_v51 = vpack.c.bf16 %v6872_v59, %v6871_v31  ;;  %v7012_v8 = vor.u32 %v7011_v28, %v7007_v55  ;;  %v10110_v41 = vshrl.u32 %v19181_v61, 16  ;;  %v6877_v55 = vld [vmem:[#allocation2 + $0x3a0] sm:$0xff] }
 0x2cc   : > { %v10114_v38 = vrot.slane %v10112_v56, 1  ;;  %v7005_v31 = vsel %vm691_vm3, %v7000_v3, %v7004_v4 }
 0x2cd   : > { %15389 = vmatmul.mubr.msk.bf16.gmra.mrb[40].mxu1 %vm197_vm1, %v10068_v45  ;;  %v10099_v45 = vrot.slane %v10097_v27, 1  ;;  %v7029_v27 = vshll.u32 %v19199_v51, 16  ;;  %v7017_v4 = vsel %vm691_vm3, %v7012_v8, %v7016_v46  ;;  %v7027_v3 = vshrl.u32 %v19199_v51, 16 }
 0x2ce   : > { %15392 = vmatprep.mubr.msk.bf16.mxu1 %vm197_vm1, %v10080_v7  ;;  %v19204_v7 = vpack.c.bf16 %v6870_v53, %v6870_v53  ;;  %v7018_v53 = vshrl.u32 %v19175_v13, 16  ;;  %v10115_v40 = vor.u32 %v10114_v38, %v10110_v41 }
 0x2cf   : > { %v10100_v59 = vsel %vm691_vm3, %v10095_v25, %v10099_v45  ;;  %v10103_v28 = vor.u32 %v10101_v24, %v10099_v45  ;;  %v10119_v25 = vrot.slane %v10117_v6, 1  ;;  %v7031_v45 = vrot.slane %v7029_v27, 1  ;;  %v9979_v6 = vld [vmem:[#allocation2 + $0x4d8] sm:$0xff] }
 0x2d0   : > { %21134 = vst [vmem:[#allocation21_spill] sm:$0xff] %v19204_v7  ;;  %v7022_v56 = vshll.u32 %v19204_v7, 16  ;;  %v7034_v24 = vshll.u32 %v19210_v18, 16  ;;  %v7020_v8 = vor.u32 %v7018_v53, %v7016_v46 }
 0x2d1   : > { %15087 = vmatmul.mubr.msk.bf16.gmra.mrb[44].mxu0 %vm197_vm1, %v6985_v20  ;;  %v19215_v20 = vpack.c.bf16 %v9975_v33, %v9974_v0  ;;  %v6875_v0 = vld [vmem:[#allocation2 + $0x390] sm:$0x3]  ;;  %v19226_v33 = vpack.c.bf16 %v6877_v55, %v6876_v19  ;;  %v10108_v27 = vsel %vm691_vm3, %v10103_v28, %v10107_v34  ;;  %v10120_v19 = vsel %vm691_vm3, %v10115_v40, %v10119_v25 }
 0x2d2   : > { %15090 = vmatprep.mubr.msk.bf16.mxu0 %vm197_vm1, %v6997_v16  ;;  %v19219_v16 = vpack.c.bf16 %v9973_v14, %v9973_v14  ;;  %v19228_v14 = vpack.c.bf16 %v9977_v32, %v9976_v50  ;;  %v7024_v41 = vrot.slane %v7022_v56, 1  ;;  %v10121_v55 = vshrl.u32 %v19194_v49, 16 }
 0x2d3   : > { %v10132_v7 = vshll.u32 %v19215_v20, 16  ;;  %v19237_v50 = vpack.c.bf16 %v6875_v0, %v6875_v0  ;;  %v7032_v32 = vor.u32 %v7031_v45, %v7027_v3  ;;  %v7036_v57 = vrot.slane %v7034_v24, 1  ;;  %v9982_v0 = vld [vmem:[#allocation2 + $0x4f0] sm:$0xff] }
 0x2d4   : > { %21135 = vst [vmem:[#allocation17_spill] sm:$0xff] %v19219_v16  ;;  %v10125_v38 = vshll.u32 %v19219_v16, 16  ;;  %v7049_v46 = vshll.u32 %v19226_v33, 16  ;;  %v10130_v53 = vshrl.u32 %v19215_v20, 16  ;;  %v10137_v28 = vshll.u32 %v19228_v14, 16  ;;  %v9981_v16 = vld [vmem:[#allocation2 + $0x4e8] sm:$0xff] }
 0x2d5   : > { %15393 = vmatmul.mubr.msk.bf16.gmra.mrb[44].mxu1 %vm197_vm1, %v10088_v42  ;;  %v6878_v42 = vld [vmem:[#allocation2 + $0x3a8] sm:$0xff]  ;;  %21136 = vst [vmem:[#allocation26_spill] sm:$0xff] %v19237_v50  ;;  %v10134_v56 = vrot.slane %v10132_v7, 1  ;;  %v10123_v3 = vor.u32 %v10121_v55, %v10119_v25  ;;  %v7038_v45 = vshrl.u32 %v19210_v18, 16  ;;  %v7042_v24 = vshll.u32 %v19237_v50, 16 }
 0x2d6   : > { %15396 = vmatprep.mubr.msk.bf16.mxu1 %vm197_vm1, %v10100_v59  ;;  %v9980_v59 = vld [vmem:[#allocation2 + $0x4e0] sm:$0xff]  ;;  %v10127_v40 = vrot.slane %v10125_v38, 1  ;;  %v7037_v7 = vsel %vm691_vm3, %v7032_v32, %v7036_v57 }
 0x2d7   : > { %v19244_v34 = vpack.c.bf16 %v9980_v59, %v9979_v6  ;;  %v7051_v6 = vrot.slane %v7049_v46, 1  ;;  %v10135_v38 = vor.u32 %v10134_v56, %v10130_v53  ;;  %v10139_v59 = vrot.slane %v10137_v28, 1 }
 0x2d8   : > { %v7044_v55 = vrot.slane %v7042_v24, 1  ;;  %v10141_v46 = vshrl.u32 %v19228_v14, 16 }
 0x2d9   : > { %15091 = vmatmul.mubr.msk.bf16.gmra.mrb[48].mxu0 %vm197_vm1, %v7005_v31  ;;  %v19239_v31 = vpack.c.bf16 %v6879_v58, %v6878_v42  ;;  %v19250_v42 = vpack.c.bf16 %v9978_v17, %v9978_v17  ;;  %v7047_v58 = vshrl.u32 %v19226_v33, 16  ;;  %v10152_v25 = vshll.u32 %v19244_v34, 16 }
 0x2da   : > { %15094 = vmatprep.mubr.msk.bf16.mxu0 %vm197_vm1, %v7017_v4  ;;  %v7025_v4 = vsel %vm691_vm3, %v7020_v8, %v7024_v41  ;;  %v6880_v41 = vld [vmem:[#allocation2 + $0x3b8] sm:$0x3]  ;;  %v10128_v17 = vsel %vm691_vm3, %v10123_v3, %v10127_v40  ;;  %v10150_v28 = vshrl.u32 %v19244_v34, 16  ;;  %v10143_v24 = vor.u32 %v10141_v46, %v10139_v59 }
 0x2db   : > { %v7054_v8 = vshll.u32 %v19239_v31, 16  ;;  %v19262_v32 = vpack.c.bf16 %v6880_v41, %v6880_v41  ;;  %v10145_v50 = vshll.u32 %v19250_v42, 16  ;;  %v7052_v53 = vor.u32 %v7051_v6, %v7047_v58  ;;  %v9983_v40 = vld [vmem:[#allocation2 + $0x4f8] sm:$0x3] }
 0x2dc   : > { %v7058_v3 = vshrl.u32 %v19239_v31, 16  ;;  %v19275_v6 = vpack.c.bf16 %v9983_v40, %v9983_v40  ;;  %v495_v40 = vld [vmem:[%s17299_s13 + $0x3f0] sm:$0xff] }
 0x2dd   : > { %15397 = vmatmul.mubr.msk.bf16.gmra.mrb[48].mxu1 %vm197_vm1, %v10108_v27  ;;  %v19256_v27 = vpack.c.bf16 %v9982_v0, %v9981_v16  ;;  %v7056_v56 = vrot.slane %v7054_v8, 1  ;;  %v10140_v16 = vsel %vm691_vm3, %v10135_v38, %v10139_v59  ;;  %v10154_v0 = vrot.slane %v10152_v25, 1  ;;  %624 = vst.msk [vmem:[#allocation2 + $0x511] sm:$0xff] %vm197_vm1, %v495_v40 }
 0x2de   : > { %15400 = vmatprep.mubr.msk.bf16.mxu1 %vm197_vm1, %v10120_v19  ;;  %v7040_v19 = vor.u32 %v7038_v45, %v7036_v57  ;;  %v7062_v45 = vshll.u32 %v19262_v32, 16  ;;  %v7520_v40 = vrot.slane %v19150_v36, 1 }
 0x2df   : > { %v7057_v58 = vsel %vm691_vm3, %v7052_v53, %v7056_v56  ;;  %v10155_v8 = vor.u32 %v10154_v0, %v10150_v28  ;;  %v7060_v38 = vor.u32 %v7058_v3, %v7056_v56  ;;  %v13519_v28 = vld [vmem:[%s20950_s1 + $0xc] sm:$0xf]  ;;  %v10692_v0 = vsel %vm902_vm0, %v19127_v29, 0  ;;  %v493_v29 = vld [vmem:[%s17299_s13 + $0x3e0] sm:$0xff] }
 0x2e0   : > { %v7045_v57 = vsel %vm691_vm3, %v7040_v19, %v7044_v55  ;;  %v7064_v25 = vrot.slane %v7062_v45, 1  ;;  %v10161_v19 = vshrl.u32 %v19256_v27, 16  ;;  %v10165_v55 = vshll.u32 %v19275_v6, 16  ;;  %622 = vst.msk [vmem:[#allocation2 + $0x501] sm:$0xff] %vm197_vm1, %v493_v29 }
 0x2e1   : > { %15095 = vmatmul.mubr.msk.bf16.gmra.mrb[52].mxu0 %vm197_vm1, %v7025_v4  ;;  %v10157_v4 = vshll.u32 %v19256_v27, 16  ;;  %v10603_v3 = vrot.slane %v19029_v52, 1  ;;  %v7502_v45 = vrot.slane %v19033_v44, 1  ;;  %v19390_v44 = vld [vmem:[%s20950_s1 + $0x10] sm:$0xf] }
 0x2e2   : > { %15098 = vmatprep.mubr.msk.bf16.mxu0 %vm197_vm1, %v7037_v7  ;;  %v10147_v7 = vrot.slane %v10145_v50, 1  ;;  %v7065_v59 = vsel %vm691_vm3, %v7060_v38, %v7064_v25  ;;  %v10167_v53 = vrot.slane %v10165_v55, 1  ;;  %v10612_v55 = vrot.slane %v19077_v30, 1 }
 0x2e3   : > { %v10159_v41 = vrot.slane %v10157_v4, 1  ;;  %v494_v4 = vld [vmem:[%s17299_s13 + $0x3e8] sm:$0xff] }
 0x2e4   : > { %623 = vst.msk [vmem:[#allocation2 + $0x509] sm:$0xff] %vm197_vm1, %v494_v4  ;;  %v7519_v4 = vrot.slane %v19137_v9, 1 }
 0x2e5   : > { %15401 = vmatmul.mubr.msk.bf16.gmra.mrb[52].mxu1 %vm197_vm1, %v10128_v17  ;;  %v10148_v17 = vsel %vm691_vm3, %v10143_v24, %v10147_v7  ;;  %v10160_v50 = vsel %vm691_vm3, %v10155_v8, %v10159_v41  ;;  %v10163_v46 = vor.u32 %v10161_v19, %v10159_v41  ;;  %v10608_v8 = vrot.slane %v19056_v1, 1 }
 0x2e6   : > { %15404 = vmatprep.mubr.msk.bf16.mxu1 %vm197_vm1, %v10140_v16  ;;  %v7589_v16 = vsel %vm902_vm0, %v19096_v60, 0  ;;  %v13705_v60 = vld [vmem:[%s20950_s1 + $0xc] sm:$0xf]  ;;  %v7507_v41 = vrot.slane %v19054_v48, 1 }
 0x2e7   : > { %v10168_v56 = vsel %vm691_vm3, %v10163_v46, %v10167_v53 }
 0x2e9   : > { %15099 = vmatmul.mubr.msk.bf16.gmra.mrb[56].mxu0 %vm197_vm1, %v7045_v57  ;;  %v496_v57 = vld [vmem:[%s17299_s13 + $0x3f8] sm:$0xff]  ;;  %s13060_s13 = sshll.u32 %s19484_s28, 4  ;;  %s20901_s13 = int_to_ptr.vmem [resolvable:$true] %s13060_s13 }
 0x2ea   : > { %15102 = vmatprep.mubr.msk.bf16.mxu0 %vm197_vm1, %v7057_v58  ;;  %625 = vst.msk [vmem:[#allocation2 + $0x519] sm:$0xff] %vm197_vm1, %v496_v57  ;;  %v10607_v58 = vrot.slane %v19039_v12, 1  ;;  %s16786_s14 = scalar_lea.vmem %s20901_s13, 16384  ;;  %p16793_p0 = scmp.lt.s32.totalorder %s20901_s13, %s16791_s22 }
 0x2eb   : > { %p16787_p11 = scmp.ne.s32.totalorder %s20901_s13, %s16786_s14  ;;  %p16794_p1 = scmp.lt.s32.totalorder %s16792_s23, %s16786_s14 }
 0x2ec   : > { %v10609_v25 = vsel %vm1287_vm4, %v10607_v58, %v10608_v8 }
 0x2ed   : > { %15405 = vmatmul.mubr.msk.bf16.gmra.mrb[56].mxu1 %vm197_vm1, %v10148_v17  ;;  %v19406_v17 = vld [vmem:[%s20950_s1 + $0x10] sm:$0xf]  ;;  %p16788_p12 = pnand %p16787_p11, %p16917_p5  ;;  %p16795_p2 = por %p16794_p1, %p16793_p0 }
 0x2ee   : > { %15408 = vmatprep.mubr.msk.bf16.mxu1 %vm197_vm1, %v10160_v50  ;;  %v10613_v50 = vrot.slane %v19090_v35, 1 }
 0x2ef   : > { %p16789_p13 = pneg %p16788_p12 }
 0x2f1   : > { %15103 = vmatmul.mubr.msk.bf16.gmra.mrb[60].mxu0 %vm197_vm1, %v7065_v59  ;;  %v21139_v59 = vld [vmem:[#allocation23_spill] sm:$0xff]  ;;  %p16796_p3 = pnand %p16795_p2, %p16789_p13 }
 0x2f2   : > { %15108 = vmatprep.mubr.msk.bf16.mxu0 %vm197_vm1, %v19002_v54  ;;  %v7512_v46 = vrot.slane %v21139_v59, 1 }
 0x2f5   : > { %15409 = vmatmul.mubr.msk.bf16.gmra.mrb[60].mxu1 %vm197_vm1, %v10168_v56  ;;  %v7514_v56 = vrot.slane %v19085_v37, 1 }
 0x2f6   : > { %15414 = vmatprep.mubr.msk.bf16.mxu1 %vm197_vm1, %v19014_v63 }
 0x2f9   : > { %15109 = vmatmul.mubr.msk.bf16.vlgmr.msra.gmra.mrb[32].mxu0 %vm197_vm1, %v19011_v62 }
 0x2fa   : > { %15141 = vmatpush3.bf16.msra.mxu0 %v7589_v16  ;;  %15112 = vmatprep.mubr.msk.bf16.mxu0 %vm197_vm1, %v18593_v21  ;;  %v7499_v21 = vrot.slane %v19002_v54, 1  ;;  %v7515_v16 = vrot.slane %v19110_v5, 1 }
 0x2fb   : > { %16729 = vmatprep.subr.msk.bf16.mxu0 %vm902_vm0, %v13519_v28 }
 0x2fd   : > { %15415 = vmatmul.mubr.msk.bf16.vlgmr.msra.gmra.mrb[32].mxu1 %vm197_vm1, %v19029_v52  ;;  %v10605_v52 = vrot.slane %v19049_v10, 1  ;;  %v7509_v10 = vrot.slane %v19062_v11, 1 }
 0x2fe   : > { %15447 = vmatpush3.bf16.msra.mxu1 %v10692_v0  ;;  %15418 = vmatprep.mubr.msk.bf16.mxu1 %vm197_vm1, %v19039_v12  ;;  %v7510_v12 = vrot.slane %v19073_v2, 1 }
 0x2ff   : > { %16738 = vmatprep.subr.msk.bf16.mxu1 %vm902_vm0, %v13705_v60  ;;  %v10606_v38 = vsel %vm1287_vm4, %v10603_v3, %v10605_v52  ;;  %v21144_v52 = vld [vmem:[#allocation12_spill] sm:$0xff] }
 0x300   : > { %v7511_v19 = vsel %vm1287_vm4, %v7509_v10, %v7510_v12  ;;  %v10625_v58 = vrot.slane %v21144_v52, 1  ;;  %v7521_v10 = vsel %vm1287_vm4, %v7519_v4, %v7520_v40 }
 0x301   : > { %15113 = vmatmul.mubr.msk.bf16.gmra.mrb[36].mxu0 %vm197_vm1, %v18620_v22  ;;  %v7500_v22 = vrot.slane %v19011_v62, 1  ;;  %v10602_v62 = vrot.slane %v19014_v63, 1  ;;  %v7899_v63 = vsel %vm902_vm0, %v13519_v28, 0  ;;  %v21140_v28 = vld [vmem:[#allocation14_spill] sm:$0xff] }
 0x302   : > { %15116 = vmatprep.mubr.msk.bf16.mxu0 %vm197_vm1, %v19062_v11  ;;  %v21138_v11 = vld [vmem:[#allocation20_spill] sm:$0xff]  ;;  %v10615_v0 = vrot.slane %v21140_v28, 1 }
 0x303   : > { %v7501_v54 = vsel %vm1287_vm4, %v7499_v21, %v7500_v22  ;;  %v10604_v24 = vsel %vm1287_vm4, %v10602_v62, %v10603_v3  ;;  %v7503_v7 = vsel %vm1287_vm4, %v7500_v22, %v7502_v45  ;;  %v10617_v21 = vrot.slane %v19114_v15, 1  ;;  %v21142_v62 = vld [vmem:[#allocation9_spill] sm:$0xff]  ;;  %v21143_v45 = vld [vmem:[#allocation24_spill] sm:$0xff] }
 0x304   : > { %v10618_v22 = vrot.slane %v19132_v47, 1  ;;  %v10620_v3 = vrot.slane %v21142_v62, 1 }
 0x305   : > { %15419 = vmatmul.mubr.msk.bf16.gmra.mrb[36].mxu1 %vm197_vm1, %v19056_v1  ;;  %v11002_v1 = vsel %vm902_vm0, %v13705_v60, 0  ;;  %v7516_v60 = vsel %vm1287_vm4, %v7514_v56, %v7515_v16 }
 0x306   : > { %15422 = vmatprep.mubr.msk.bf16.mxu1 %vm197_vm1, %v19077_v30  ;;  %v10614_v30 = vsel %vm1287_vm4, %v10612_v55, %v10613_v50 }
 0x309   : > { %15117 = vmatmul.mubr.msk.bf16.gmra.mrb[40].mxu0 %vm197_vm1, %v19073_v2  ;;  %v10610_v2 = vrot.slane %v21138_v11, 1  ;;  %v10621_v11 = vsel %vm1287_vm4, %v10618_v22, %v10620_v3 }
 0x30a   : > { %15120 = vmatprep.mubr.msk.bf16.mxu0 %vm197_vm1, %v19085_v37  ;;  %v19437_v37 = vld [vmem:[%s20951_s2] ss:$0 sm:$0xff] }
 0x30b   : > { %v10611_v53 = vsel %vm1287_vm4, %v10608_v8, %v10610_v2 }
 0x30d   : > { %15423 = vmatmul.mubr.msk.bf16.gmra.mrb[40].mxu1 %vm197_vm1, %v19090_v35  ;;  %v7513_v35 = vsel %vm1287_vm4, %v7510_v12, %v7512_v46 }
 0x30e   : > { %15426 = vmatprep.mubr.msk.bf16.mxu1 %vm197_vm1, %v19114_v15  ;;  %v10616_v15 = vsel %vm1287_vm4, %v10613_v50, %v10615_v0 }
 0x311   : > { %15121 = vmatmul.mubr.msk.bf16.gmra.mrb[44].mxu0 %vm197_vm1, %v19110_v5  ;;  %v21141_v5 = vld [vmem:[#allocation7_spill] sm:$0xff] }
 0x312   : > { %15124 = vmatprep.mubr.msk.bf16.mxu0 %vm197_vm1, %v19137_v9  ;;  %v7517_v29 = vrot.slane %v21141_v5, 1 }
 0x315   : > { %15427 = vmatmul.mubr.msk.bf16.gmra.mrb[44].mxu1 %vm197_vm1, %v19132_v47  ;;  %v19447_v47 = vld [vmem:[%s20952_s3] ss:$0 sm:$0xff] }
 0x316   : > { %15430 = vmatprep.mubr.msk.bf16.mxu1 %vm197_vm1, %v19154_v39 }
 0x319   : > { %15125 = vmatmul.mubr.msk.bf16.gmra.mrb[48].mxu0 %vm197_vm1, %v19150_v36 }
 0x31a   : > { %15128 = vmatprep.mubr.msk.bf16.mxu0 %vm197_vm1, %v19163_v23 }
 0x31d   : > { %15431 = vmatmul.mubr.msk.bf16.gmra.mrb[48].mxu1 %vm197_vm1, %v19170_v43 }
 0x31e   : > { %15434 = vmatprep.mubr.msk.bf16.mxu1 %vm197_vm1, %v19181_v61 }
 0x321   : > { %15129 = vmatmul.mubr.msk.bf16.gmra.mrb[52].mxu0 %vm197_vm1, %v19175_v13 }
 0x322   : > { %15132 = vmatprep.mubr.msk.bf16.mxu0 %vm197_vm1, %v19199_v51 }
 0x325   : > { %15435 = vmatmul.mubr.msk.bf16.gmra.mrb[52].mxu1 %vm197_vm1, %v19194_v49 }
 0x326   : > { %15438 = vmatprep.mubr.msk.bf16.mxu1 %vm197_vm1, %v19215_v20 }
 0x329   : > { %15133 = vmatmul.mubr.msk.bf16.gmra.mrb[56].mxu0 %vm197_vm1, %v19210_v18 }
 0x32a   : > { %15136 = vmatprep.mubr.msk.bf16.mxu0 %vm197_vm1, %v19226_v33 }
 0x32d   : > { %15439 = vmatmul.mubr.msk.bf16.gmra.mrb[56].mxu1 %vm197_vm1, %v19228_v14 }
 0x32e   : > { %15442 = vmatprep.mubr.msk.bf16.mxu1 %vm197_vm1, %v19244_v34 }
 0x331   : > { %15137 = vmatmul.mubr.msk.bf16.gmra.mrb[60].mxu0 %vm197_vm1, %v19239_v31 }
 0x332   : > { %15142 = vmatprep.mubr.msk.bf16.mxu0 %vm197_vm1, %v7501_v54  ;;  %v10619_v54 = vsel %vm1287_vm4, %v10617_v21, %v10618_v22  ;;  %v10627_v21 = vrot.slane %v19181_v61, 1  ;;  %v21146_v61 = vld [vmem:[#allocation17_spill] sm:$0xff] }
 0x335   : > { %15443 = vmatmul.mubr.msk.bf16.gmra.mrb[60].mxu1 %vm197_vm1, %v19256_v27 }
 0x336   : > { %15448 = vmatprep.mubr.msk.bf16.mxu1 %vm197_vm1, %v10604_v24  ;;  %v7522_v24 = vrot.slane %v21143_v45, 1  ;;  %v10630_v45 = vrot.slane %v21146_v61, 1 }
 0x338   : > { %v7523_v2 = vsel %vm1287_vm4, %v7520_v40, %v7522_v24 }
 0x339   : > { %15143 = vmatmul.mubr.msk.bf16.vlgmr.msra.gmra.mrb[32].mxu0 %vm197_vm1, %v7503_v7  ;;  %v10622_v7 = vrot.slane %v19154_v39, 1  ;;  %v7524_v39 = vrot.slane %v19163_v23, 1 }
 0x33a   : > { %15175 = vmatpush3.bf16.msra.mxu0 %v7899_v63  ;;  %15146 = vmatprep.mubr.msk.bf16.mxu0 %vm197_vm1, %v19043_v26  ;;  %v21137_v26 = vld [vmem:[#allocation25_spill] sm:$0xff]  ;;  %v10623_v63 = vrot.slane %v19170_v43, 1  ;;  %v7525_v43 = vrot.slane %v19175_v13, 1 }
 0x33b   : > { %16730 = vmatprep.subr.msk.bf16.mxu0 %vm902_vm0, %v19390_v44  ;;  %v7508_v48 = vsel %vm1287_vm4, %v21137_v26, %v7507_v41 }
 0x33c   : > { %v10624_v59 = vsel %vm1287_vm4, %v10622_v7, %v10623_v63  ;;  %v19477_v23 = vsel %vm1287_vm4, %v10623_v63, %v10625_v58 }
 0x33d   : > { %15449 = vmatmul.mubr.msk.bf16.vlgmr.msra.gmra.mrb[32].mxu1 %vm197_vm1, %v10606_v38  ;;  %v7518_v38 = vsel %vm1287_vm4, %v7515_v16, %v7517_v29  ;;  %v21145_v16 = vld [vmem:[#allocation21_spill] sm:$0xff] }
 0x33e   : > { %15481 = vmatpush3.bf16.msra.mxu1 %v11002_v1  ;;  %15452 = vmatprep.mubr.msk.bf16.mxu1 %vm197_vm1, %v10609_v25 }
 0x33f   : > { %16739 = vmatprep.subr.msk.bf16.mxu1 %vm902_vm0, %v19406_v17 }
 0x341   : > { %15147 = vmatmul.mubr.msk.bf16.gmra.mrb[36].mxu0 %vm197_vm1, %v7508_v48 }
 0x342   : > { %15150 = vmatprep.mubr.msk.bf16.mxu0 %vm197_vm1, %v7511_v19 }
 0x345   : > { %15453 = vmatmul.mubr.msk.bf16.gmra.mrb[36].mxu1 %vm197_vm1, %v10611_v53 }
 0x346   : > { %15456 = vmatprep.mubr.msk.bf16.mxu1 %vm197_vm1, %v10614_v30  ;;  %v7527_v30 = vrot.slane %v21145_v16, 1 }
 0x349   : > { %15151 = vmatmul.mubr.msk.bf16.gmra.mrb[40].mxu0 %vm197_vm1, %v7513_v35 }
 0x34a   : > { %15154 = vmatprep.mubr.msk.bf16.mxu0 %vm197_vm1, %v7516_v60  ;;  %v7526_v60 = vsel %vm1287_vm4, %v7524_v39, %v7525_v43 }
 0x34c   : > { %v14736_v57 = vpop.f32.mrb[0].mxu0 }
 0x34d   : > { %v3604_v9 = vmul.f32 %v14736_v57, %v19437_v37  ;;  %v3436_v36 = vpop.f32.mrb[1].mxu0  ;;  %15457 = vmatmul.mubr.msk.bf16.gmra.mrb[40].mxu1 %vm197_vm1, %v10616_v15  ;;  %v10628_v15 = vrot.slane %v19194_v49, 1  ;;  %v7529_v49 = vrot.slane %v19199_v51, 1  ;;  %v7530_v51 = vrot.slane %v19210_v18, 1 }
 0x34e   : > { %v3602_v8 = vmul.f32 %v19437_v37, %v3436_v36  ;;  %v14737_v41 = vpop.f32.mrb[2].mxu0  ;;  %15460 = vmatprep.mubr.msk.bf16.mxu1 %vm197_vm1, %v10619_v54 }
 0x34f   : > { %v3643_v12 = vadd.f32 %v19447_v47, %v3604_v9  ;;  %v3605_v1 = vmul.f32 %v14737_v41, %v19437_v37  ;;  %v3439_v25 = vpop.f32.mrb[3].mxu0 }
 0x350   : > { %v3641_v26 = vadd.f32 %v19447_v47, %v3602_v8  ;;  %v3603_v48 = vmul.f32 %v19437_v37, %v3439_v25  ;;  %v15042_v50 = vpop.f32.mrb[0].mxu1 }
 0x351   : > { %v3675_v19 = vmax.f32 %v3643_v12, 0.0  ;;  %v3644_v55 = vadd.f32 %v19447_v47, %v3605_v1  ;;  %15155 = vmatmul.mubr.msk.bf16.gmra.mrb[44].mxu0 %vm197_vm1, %v7518_v38  ;;  %v6706_v53 = vmul.f32 %v15042_v50, %v19437_v37  ;;  %v6538_v56 = vpop.f32.mrb[1].mxu1 }
 0x352   : > { %v3673_v13 = vmax.f32 %v3641_v26, 0.0  ;;  %v3642_v46 = vadd.f32 %v19447_v47, %v3603_v48  ;;  %15158 = vmatprep.mubr.msk.bf16.mxu0 %vm197_vm1, %v7521_v10  ;;  %v6704_v28 = vmul.f32 %v19437_v37, %v6538_v56  ;;  %v15043_v0 = vpop.f32.mrb[2].mxu1  ;;  %v7528_v48 = vsel %vm1287_vm4, %v7525_v43, %v7527_v30 }
 0x353   : > { %3707 = vst [vmem:[%s19484_s28 + $0x10] sm:$0xff] %v3675_v19  ;;  %v3676_v35 = vmax.f32 %v3644_v55, 0.0  ;;  %v6745_v5 = vadd.f32 %v19447_v47, %v6706_v53  ;;  %v6707_v4 = vmul.f32 %v15043_v0, %v19437_v37  ;;  %v6541_v40 = vpop.f32.mrb[3].mxu1  ;;  %v19525_v43 = vsel %vm1287_vm4, %v10628_v15, %v10630_v45  ;;  %v21147_v53 = vld [vmem:[#allocation26_spill] sm:$0xff] }
 0x354   : > { %3705 = vst [vmem:[%s19484_s28] sm:$0xff] %v3673_v13  ;;  %v3674_v22 = vmax.f32 %v3642_v46, 0.0  ;;  %v14740_v29 = vpop.f32.mrb[4].mxu0  ;;  %v6743_v57 = vadd.f32 %v19447_v47, %v6704_v28  ;;  %v6705_v3 = vmul.f32 %v19437_v37, %v6541_v40  ;;  %v7532_v56 = vrot.slane %v21147_v53, 1 }
 0x355   : > { %3708 = vst [vmem:[%s19484_s28 + $0x18] sm:$0xff] %v3676_v35  ;;  %v3608_v54 = vmul.f32 %v14740_v29, %v19437_v37  ;;  %v3452_v62 = vpop.f32.mrb[5].mxu0  ;;  %v6777_v24 = vmax.f32 %v6745_v5, 0.0  ;;  %v6746_v9 = vadd.f32 %v19447_v47, %v6707_v4  ;;  %15461 = vmatmul.mubr.msk.bf16.gmra.mrb[44].mxu1 %vm197_vm1, %v10621_v11  ;;  %v10632_v4 = vrot.slane %v19215_v20, 1 }
 0x356   : > { %3706 = vst [vmem:[%s19484_s28 + $0x8] sm:$0xff] %v3674_v22  ;;  %v3606_v36 = vmul.f32 %v19437_v37, %v3452_v62  ;;  %v14741_v7 = vpop.f32.mrb[6].mxu0  ;;  %v6775_v63 = vmax.f32 %v6743_v57, 0.0  ;;  %v6744_v58 = vadd.f32 %v19447_v47, %v6705_v3  ;;  %15464 = vmatprep.mubr.msk.bf16.mxu1 %vm197_vm1, %v10624_v59  ;;  %v10629_v59 = vsel %vm1287_vm4, %v10627_v21, %v10628_v15 }
 0x357   : > { %v3647_v52 = vadd.f32 %v19447_v47, %v3608_v54  ;;  %v3609_v8 = vmul.f32 %v14741_v7, %v19437_v37  ;;  %v3455_v41 = vpop.f32.mrb[7].mxu0  ;;  %13439 = vst [vmem:[%s19484_s28 + $0x110] sm:$0xff] %v6777_v24  ;;  %v6778_v38 = vmax.f32 %v6746_v9, 0.0  ;;  %v10633_v62 = vrot.slane %v19228_v14, 1 }
 0x358   : > { %v3645_v10 = vadd.f32 %v19447_v47, %v3606_v36  ;;  %v3607_v12 = vmul.f32 %v19437_v37, %v3455_v41  ;;  %13437 = vst [vmem:[%s19484_s28 + $0x100] sm:$0xff] %v6775_v63  ;;  %v6776_v25 = vmax.f32 %v6744_v58, 0.0  ;;  %v15046_v26 = vpop.f32.mrb[4].mxu1 }
 0x359   : > { %v3679_v1 = vmax.f32 %v3647_v52, 0.0  ;;  %v3648_v39 = vadd.f32 %v19447_v47, %v3609_v8  ;;  %15159 = vmatmul.mubr.msk.bf16.gmra.mrb[48].mxu0 %vm197_vm1, %v7523_v2  ;;  %13440 = vst [vmem:[%s19484_s28 + $0x118] sm:$0xff] %v6778_v38  ;;  %v6710_v55 = vmul.f32 %v15046_v26, %v19437_v37  ;;  %v6554_v50 = vpop.f32.mrb[5].mxu1  ;;  %v7535_v8 = vrot.slane %v19239_v31, 1 }
 0x35a   : > { %v3677_v11 = vmax.f32 %v3645_v10, 0.0  ;;  %v3646_v19 = vadd.f32 %v19447_v47, %v3607_v12  ;;  %15162 = vmatprep.mubr.msk.bf16.mxu0 %vm197_vm1, %v7526_v60  ;;  %13438 = vst [vmem:[%s19484_s28 + $0x108] sm:$0xff] %v6776_v25  ;;  %v6708_v2 = vmul.f32 %v19437_v37, %v6554_v50  ;;  %v15047_v46 = vpop.f32.mrb[6].mxu1  ;;  %v7531_v60 = vsel %vm1287_vm4, %v7529_v49, %v7530_v51 }
 0x35b   : > { %3711 = vst [vmem:[%s19484_s28 + $0x30] sm:$0xff] %v3679_v1  ;;  %v3680_v13 = vmax.f32 %v3648_v39, 0.0  ;;  %v6749_v30 = vadd.f32 %v19447_v47, %v6710_v55  ;;  %v6711_v28 = vmul.f32 %v15047_v46, %v19437_v37  ;;  %v6557_v0 = vpop.f32.mrb[7].mxu1  ;;  %v10634_v26 = vsel %vm1287_vm4, %v10632_v4, %v10633_v62 }
 0x35c   : > { %3709 = vst [vmem:[%s19484_s28 + $0x20] sm:$0xff] %v3677_v11  ;;  %v3678_v16 = vmax.f32 %v3646_v19, 0.0  ;;  %v14744_v35 = vpop.f32.mrb[8].mxu0  ;;  %v6747_v21 = vadd.f32 %v19447_v47, %v6708_v2  ;;  %v6709_v29 = vmul.f32 %v19437_v37, %v6557_v0  ;;  %v7537_v50 = vrot.slane %v19262_v32, 1 }
 0x35d   : > { %3712 = vst [vmem:[%s19484_s28 + $0x38] sm:$0xff] %v3680_v13  ;;  %v3612_v22 = vmul.f32 %v14744_v35, %v19437_v37  ;;  %v3468_v5 = vpop.f32.mrb[9].mxu0  ;;  %v6781_v40 = vmax.f32 %v6749_v30, 0.0  ;;  %v6750_v15 = vadd.f32 %v19447_v47, %v6711_v28  ;;  %15465 = vmatmul.mubr.msk.bf16.gmra.mrb[48].mxu1 %vm197_vm1, %v19477_v23  ;;  %v7534_v23 = vrot.slane %v19226_v33, 1 }
 0x35e   : > { %3710 = vst [vmem:[%s19484_s28 + $0x28] sm:$0xff] %v3678_v16  ;;  %v3610_v57 = vmul.f32 %v19437_v37, %v3468_v5  ;;  %v14745_v54 = vpop.f32.mrb[10].mxu0  ;;  %v6779_v3 = vmax.f32 %v6747_v21, 0.0  ;;  %v6748_v45 = vadd.f32 %v19447_v47, %v6709_v29  ;;  %15468 = vmatprep.mubr.msk.bf16.mxu1 %vm197_vm1, %v10629_v59  ;;  %v7533_v33 = vsel %vm1287_vm4, %v7530_v51, %v7532_v56 }
 0x35f   : > { %v3651_v61 = vadd.f32 %v19447_v47, %v3612_v22  ;;  %v3613_v20 = vmul.f32 %v14745_v54, %v19437_v37  ;;  %v3471_v24 = vpop.f32.mrb[11].mxu0  ;;  %13443 = vst [vmem:[%s19484_s28 + $0x130] sm:$0xff] %v6781_v40  ;;  %v6782_v9 = vmax.f32 %v6750_v15, 0.0  ;;  %v10637_v30 = vrot.slane %v19244_v34, 1 }
 0x360   : > { %v3649_v36 = vadd.f32 %v19447_v47, %v3610_v57  ;;  %v3611_v7 = vmul.f32 %v19437_v37, %v3471_v24  ;;  %13441 = vst [vmem:[%s19484_s28 + $0x120] sm:$0xff] %v6779_v3  ;;  %v6780_v63 = vmax.f32 %v6748_v45, 0.0  ;;  %v15050_v58 = vpop.f32.mrb[8].mxu1  ;;  %v10638_v34 = vrot.slane %v19256_v27, 1 }
 0x361   : > { %v3683_v49 = vmax.f32 %v3651_v61, 0.0  ;;  %v3652_v52 = vadd.f32 %v19447_v47, %v3613_v20  ;;  %15163 = vmatmul.mubr.msk.bf16.gmra.mrb[52].mxu0 %vm197_vm1, %v7528_v48  ;;  %13444 = vst [vmem:[%s19484_s28 + $0x138] sm:$0xff] %v6782_v9  ;;  %v6714_v10 = vmul.f32 %v15050_v58, %v19437_v37  ;;  %v6570_v12 = vpop.f32.mrb[9].mxu1  ;;  %v10635_v48 = vrot.slane %v19250_v42, 1 }
 0x362   : > { %v3681_v41 = vmax.f32 %v3649_v36, 0.0  ;;  %v3650_v38 = vadd.f32 %v19447_v47, %v3611_v7  ;;  %15166 = vmatprep.mubr.msk.bf16.mxu0 %vm197_vm1, %v7531_v60  ;;  %13442 = vst [vmem:[%s19484_s28 + $0x128] sm:$0xff] %v6780_v63  ;;  %v6712_v25 = vmul.f32 %v19437_v37, %v6570_v12  ;;  %v15051_v39 = vpop.f32.mrb[10].mxu1  ;;  %v7536_v42 = vsel %vm1287_vm4, %v7534_v23, %v7535_v8  ;;  %v7785_v7 = vld [vmem:[#allocation2 + $0x2a8] sm:$0xff]  ;;  %v7786_v23 = vld [vmem:[#allocation2 + $0x2b0] sm:$0xff] }
 0x363   : > { %3715 = vst [vmem:[%s19484_s28 + $0x50] sm:$0xff] %v3683_v49  ;;  %v3684_v1 = vmax.f32 %v3652_v52, 0.0  ;;  %v6753_v18 = vadd.f32 %v19447_v47, %v6714_v10  ;;  %v6715_v51 = vmul.f32 %v15051_v39, %v19437_v37  ;;  %v6573_v55 = vpop.f32.mrb[11].mxu1  ;;  %v10636_v9 = vsel %vm1287_vm4, %v10633_v62, %v10635_v48 }
 0x364   : > { %3713 = vst [vmem:[%s19484_s28 + $0x40] sm:$0xff] %v3681_v41  ;;  %v3682_v11 = vmax.f32 %v3650_v38, 0.0  ;;  %v14748_v19 = vpop.f32.mrb[12].mxu0  ;;  %v6751_v59 = vadd.f32 %v19447_v47, %v6712_v25  ;;  %v6713_v46 = vmul.f32 %v19437_v37, %v6573_v55  ;;  %v7538_v36 = vsel %vm1287_vm4, %v7535_v8, %v7537_v50  ;;  %v10888_v50 = vld [vmem:[#allocation2 + $0x3e8] sm:$0xff] }
 0x365   : > { %3716 = vst [vmem:[%s19484_s28 + $0x58] sm:$0xff] %v3684_v1  ;;  %v3616_v13 = vmul.f32 %v14748_v19, %v19437_v37  ;;  %v3484_v2 = vpop.f32.mrb[13].mxu0  ;;  %v6785_v53 = vmax.f32 %v6753_v18, 0.0  ;;  %v6754_v56 = vadd.f32 %v19447_v47, %v6715_v51  ;;  %15469 = vmatmul.mubr.msk.bf16.gmra.mrb[52].mxu1 %vm197_vm1, %v19525_v43  ;;  %v10639_v14 = vsel %vm1287_vm4, %v10637_v30, %v10638_v34 }
 0x366   : > { %3714 = vst [vmem:[%s19484_s28 + $0x48] sm:$0xff] %v3682_v11  ;;  %v3614_v32 = vmul.f32 %v19437_v37, %v3484_v2  ;;  %v14749_v16 = vpop.f32.mrb[14].mxu0  ;;  %v6783_v35 = vmax.f32 %v6751_v59, 0.0  ;;  %v6752_v0 = vadd.f32 %v19447_v47, %v6713_v46  ;;  %15472 = vmatprep.mubr.msk.bf16.mxu1 %vm197_vm1, %v10634_v26  ;;  %v10640_v10 = vrot.slane %v19275_v6, 1  ;;  %v10889_v59 = vld [vmem:[#allocation2 + $0x3f0] sm:$0xff] }
 0x367   : > { %v3655_v28 = vadd.f32 %v19447_v47, %v3616_v13  ;;  %v3617_v60 = vmul.f32 %v14749_v16, %v19437_v37  ;;  %v3487_v21 = vpop.f32.mrb[15].mxu0  ;;  %13447 = vst [vmem:[%s19484_s28 + $0x150] sm:$0xff] %v6785_v53  ;;  %v6786_v22 = vmax.f32 %v6754_v56, 0.0  ;;  %v19627_v39 = vpack.c.bf16 %v7786_v23, %v7785_v7  ;;  %v7787_v53 = vld [vmem:[#allocation2 + $0x2b8] sm:$0xff]  ;;  %v7788_v56 = vld [vmem:[#allocation2 + $0x2c0] sm:$0xff] }
 0x368   : > { %v3653_v5 = vadd.f32 %v19447_v47, %v3614_v32  ;;  %v3615_v43 = vmul.f32 %v19437_v37, %v3487_v21  ;;  %13445 = vst [vmem:[%s19484_s28 + $0x140] sm:$0xff] %v6783_v35  ;;  %v6784_v4 = vmax.f32 %v6752_v0, 0.0  ;;  %v15054_v15 = vpop.f32.mrb[12].mxu1  ;;  %v7791_v0 = vld [vmem:[#allocation2 + $0x2d8] sm:$0xff]  ;;  %v8288_v7 = vsel %vm902_vm0, %v19390_v44, 0 }
 0x369   : > { %v3687_v29 = vmax.f32 %v3655_v28, 0.0  ;;  %v3656_v40 = vadd.f32 %v19447_v47, %v3617_v60  ;;  %15167 = vmatmul.mubr.msk.bf16.gmra.mrb[56].mxu0 %vm197_vm1, %v7533_v33  ;;  %13448 = vst [vmem:[%s19484_s28 + $0x158] sm:$0xff] %v6786_v22  ;;  %v6718_v3 = vmul.f32 %v15054_v15, %v19437_v37  ;;  %v6586_v61 = vpop.f32.mrb[13].mxu1  ;;  %v7790_v28 = vld [vmem:[#allocation2 + $0x2d0] sm:$0xff] }
 0x36a   : > { %v3685_v57 = vmax.f32 %v3653_v5, 0.0  ;;  %v3654_v54 = vadd.f32 %v19447_v47, %v3615_v43  ;;  %15170 = vmatprep.mubr.msk.bf16.mxu0 %vm197_vm1, %v7536_v42  ;;  %13446 = vst [vmem:[%s19484_s28 + $0x148] sm:$0xff] %v6784_v4  ;;  %v6716_v20 = vmul.f32 %v19437_v37, %v6586_v61  ;;  %v15055_v24 = vpop.f32.mrb[14].mxu1  ;;  %v10641_v5 = vsel %vm1287_vm4, %v10638_v34, %v10640_v10  ;;  %v19680_v10 = vld [vmem:[%s20950_s1 + $0x14] sm:$0xf] }
 0x36b   : > { %3719 = vst [vmem:[%s19484_s28 + $0x70] sm:$0xff] %v3687_v29  ;;  %v3688_v45 = vmax.f32 %v3656_v40, 0.0  ;;  %v6757_v63 = vadd.f32 %v19447_v47, %v6718_v3  ;;  %v6719_v58 = vmul.f32 %v15055_v24, %v19437_v37  ;;  %v6589_v41 = vpop.f32.mrb[15].mxu1  ;;  %v19650_v43 = vpack.c.bf16 %v10889_v59, %v10888_v50 }
 0x36c   : > { %3717 = vst [vmem:[%s19484_s28 + $0x60] sm:$0xff] %v3685_v57  ;;  %v3686_v49 = vmax.f32 %v3654_v54, 0.0  ;;  %v14752_v52 = vpop.f32.mrb[16].mxu0  ;;  %v6755_v31 = vadd.f32 %v19447_v47, %v6716_v20  ;;  %v6717_v38 = vmul.f32 %v19437_v37, %v6589_v41  ;;  %v19655_v54 = vpack.c.bf16 %v7788_v56, %v7787_v53  ;;  %v10890_v41 = vld [vmem:[#allocation2 + $0x3f8] sm:$0xff] }
 0x36d   : > { %3720 = vst [vmem:[%s19484_s28 + $0x78] sm:$0xff] %v3688_v45  ;;  %v3620_v62 = vmul.f32 %v14752_v52, %v19437_v37  ;;  %v3500_v8 = vpop.f32.mrb[17].mxu0  ;;  %v6789_v12 = vmax.f32 %v6757_v63, 0.0  ;;  %v6758_v33 = vadd.f32 %v19447_v47, %v6719_v58  ;;  %15473 = vmatmul.mubr.msk.bf16.gmra.mrb[56].mxu1 %vm197_vm1, %v10636_v9  ;;  %v19661_v45 = vpack.c.bf16 %v7791_v0, %v7790_v28 }
 0x36e   : > { %3718 = vst [vmem:[%s19484_s28 + $0x68] sm:$0xff] %v3686_v49  ;;  %v3618_v1 = vmul.f32 %v19437_v37, %v3500_v8  ;;  %v14753_v25 = vpop.f32.mrb[18].mxu0  ;;  %v6787_v26 = vmax.f32 %v6755_v31, 0.0  ;;  %v6756_v11 = vadd.f32 %v19447_v47, %v6717_v38  ;;  %15476 = vmatprep.mubr.msk.bf16.mxu1 %vm197_vm1, %v10639_v14  ;;  %v10891_v14 = vld [vmem:[#allocation2 + $0x400] sm:$0xff]  ;;  %v10893_v8 = vld [vmem:[#allocation2 + $0x410] sm:$0xff]  ;;  %v10894_v38 = vld [vmem:[#allocation2 + $0x418] sm:$0xff] }
 0x36f   : > { %v3659_v48 = vadd.f32 %v19447_v47, %v3620_v62  ;;  %v3621_v18 = vmul.f32 %v14753_v25, %v19437_v37  ;;  %v3503_v6 = vpop.f32.mrb[19].mxu0  ;;  %13451 = vst [vmem:[%s19484_s28 + $0x170] sm:$0xff] %v6789_v12  ;;  %v6790_v19 = vmax.f32 %v6758_v33, 0.0 }
 0x370   : > { %v3657_v51 = vadd.f32 %v19447_v47, %v3618_v1  ;;  %v3619_v55 = vmul.f32 %v19437_v37, %v3503_v6  ;;  %13449 = vst [vmem:[%s19484_s28 + $0x160] sm:$0xff] %v6787_v26  ;;  %v6788_v2 = vmax.f32 %v6756_v11, 0.0  ;;  %v15058_v42 = vpop.f32.mrb[16].mxu1  ;;  %v19689_v6 = vpack.c.bf16 %v10891_v14, %v10890_v41 }
 0x371   : > { %v3691_v13 = vmax.f32 %v3659_v48, 0.0  ;;  %v3660_v46 = vadd.f32 %v19447_v47, %v3621_v18  ;;  %15171 = vmatmul.mubr.msk.bf16.gmra.mrb[60].mxu0 %vm197_vm1, %v7538_v36  ;;  %13452 = vst [vmem:[%s19484_s28 + $0x178] sm:$0xff] %v6790_v19  ;;  %v6722_v30 = vmul.f32 %v15058_v42, %v19437_v37  ;;  %v6602_v35 = vpop.f32.mrb[17].mxu1  ;;  %v7792_v19 = vld [vmem:[#allocation2 + $0x2e0] sm:$0xff] }
 0x372   : > { %v3689_v32 = vmax.f32 %v3657_v51, 0.0  ;;  %v3658_v16 = vadd.f32 %v19447_v47, %v3619_v55  ;;  %15176 = vmatprep.mubr.msk.bf16.mxu0 %vm197_vm1, %v19627_v39  ;;  %13450 = vst [vmem:[%s19484_s28 + $0x168] sm:$0xff] %v6788_v2  ;;  %v6720_v21 = vmul.f32 %v19437_v37, %v6602_v35  ;;  %v15059_v22 = vpop.f32.mrb[18].mxu1  ;;  %v7793_v51 = vld [vmem:[#allocation2 + $0x2e8] sm:$0xff]  ;;  %v7795_v2 = vld [vmem:[#allocation2 + $0x2f8] sm:$0xff] }
 0x373   : > { %3723 = vst [vmem:[%s19484_s28 + $0x90] sm:$0xff] %v3691_v13  ;;  %v3692_v60 = vmax.f32 %v3660_v46, 0.0  ;;  %v6761_v4 = vadd.f32 %v19447_v47, %v6722_v30  ;;  %v6723_v15 = vmul.f32 %v15059_v22, %v19437_v37  ;;  %v6605_v57 = vpop.f32.mrb[19].mxu1  ;;  %v19696_v13 = vpack.c.bf16 %v10894_v38, %v10893_v8  ;;  %v7796_v46 = vld [vmem:[#allocation2 + $0x300] sm:$0xff]  ;;  %v19714_v22 = vld [vmem:[%s20950_s1 + $0x14] sm:$0xf] }
 0x374   : > { %3721 = vst [vmem:[%s19484_s28 + $0x80] sm:$0xff] %v3689_v32  ;;  %v3690_v29 = vmax.f32 %v3658_v16, 0.0  ;;  %v14756_v40 = vpop.f32.mrb[20].mxu0  ;;  %v6759_v3 = vadd.f32 %v19447_v47, %v6720_v21  ;;  %v6721_v34 = vmul.f32 %v19437_v37, %v6605_v57  ;;  %v11391_v30 = vsel %vm902_vm0, %v19406_v17, 0  ;;  %v7797_v8 = vld [vmem:[#allocation2 + $0x308] sm:$0xff]  ;;  %v7798_v38 = vld [vmem:[#allocation2 + $0x310] sm:$0xff] }
 0x375   : > { %3724 = vst [vmem:[%s19484_s28 + $0x98] sm:$0xff] %v3692_v60  ;;  %v3624_v27 = vmul.f32 %v14756_v40, %v19437_v37  ;;  %v3516_v61 = vpop.f32.mrb[21].mxu0  ;;  %v6793_v20 = vmax.f32 %v6761_v4, 0.0  ;;  %v6762_v24 = vadd.f32 %v19447_v47, %v6723_v15  ;;  %15477 = vmatmul.mubr.msk.bf16.gmra.mrb[60].mxu1 %vm197_vm1, %v10641_v5  ;;  %v19709_v21 = vpack.c.bf16 %v7793_v51, %v7792_v19 }
 0x376   : > { %3722 = vst [vmem:[%s19484_s28 + $0x88] sm:$0xff] %v3690_v29  ;;  %v3622_v9 = vmul.f32 %v19437_v37, %v3516_v61  ;;  %v14757_v36 = vpop.f32.mrb[22].mxu0  ;;  %v6791_v23 = vmax.f32 %v6759_v3, 0.0  ;;  %v6760_v63 = vadd.f32 %v19447_v47, %v6721_v34  ;;  %15482 = vmatprep.mubr.msk.bf16.mxu1 %vm197_vm1, %v19650_v43  ;;  %v19721_v40 = vpack.c.bf16 %v7796_v46, %v7795_v2  ;;  %v10895_v34 = vld [vmem:[#allocation2 + $0x420] sm:$0xff] }
 0x377   : > { %v3663_v49 = vadd.f32 %v19447_v47, %v3624_v27  ;;  %v3625_v52 = vmul.f32 %v14757_v36, %v19437_v37  ;;  %v3519_v58 = vpop.f32.mrb[23].mxu0  ;;  %13455 = vst [vmem:[%s19484_s28 + $0x190] sm:$0xff] %v6793_v20  ;;  %v6794_v31 = vmax.f32 %v6762_v24, 0.0  ;;  %v10896_v20 = vld [vmem:[#allocation2 + $0x428] sm:$0xff] }
 0x378   : > { %v3661_v62 = vadd.f32 %v19447_v47, %v3622_v9  ;;  %v3623_v44 = vmul.f32 %v19437_v37, %v3519_v58  ;;  %13453 = vst [vmem:[%s19484_s28 + $0x180] sm:$0xff] %v6791_v23  ;;  %v6792_v33 = vmax.f32 %v6760_v63, 0.0  ;;  %v15062_v25 = vpop.f32.mrb[20].mxu1  ;;  %v10899_v23 = vld [vmem:[#allocation2 + $0x440] sm:$0xff] }
 0x379   : > { %v3695_v12 = vmax.f32 %v3663_v49, 0.0  ;;  %v3664_v1 = vadd.f32 %v19447_v47, %v3625_v52  ;;  %15177 = vmatmul.mubr.msk.bf16.vlgmr.msra.gmra.mrb[32].mxu0 %vm197_vm1, %v19655_v54  ;;  %13456 = vst [vmem:[%s19484_s28 + $0x198] sm:$0xff] %v6794_v31  ;;  %v6726_v11 = vmul.f32 %v15062_v25, %v19437_v37  ;;  %v6618_v18 = vpop.f32.mrb[21].mxu1 }
 0x37a   : > { %v3693_v26 = vmax.f32 %v3661_v62, 0.0  ;;  %v3662_v48 = vadd.f32 %v19447_v47, %v3623_v44  ;;  %15209 = vmatpush3.bf16.msra.mxu0 %v8288_v7  ;;  %15180 = vmatprep.mubr.msk.bf16.mxu0 %vm197_vm1, %v19661_v45  ;;  %13454 = vst [vmem:[%s19484_s28 + $0x188] sm:$0xff] %v6792_v33  ;;  %v6724_v50 = vmul.f32 %v19437_v37, %v6618_v18  ;;  %v15063_v59 = vpop.f32.mrb[22].mxu1  ;;  %v10898_v7 = vld [vmem:[#allocation2 + $0x438] sm:$0xff] }
 0x37b   : > { %3727 = vst [vmem:[%s19484_s28 + $0xb0] sm:$0xff] %v3695_v12  ;;  %v3696_v55 = vmax.f32 %v3664_v1, 0.0  ;;  %16731 = vmatprep.subr.msk.bf16.mxu0 %vm902_vm0, %v19680_v10  ;;  %v6765_v53 = vadd.f32 %v19447_v47, %v6726_v11  ;;  %v6727_v32 = vmul.f32 %v15063_v59, %v19437_v37  ;;  %v6621_v16 = vpop.f32.mrb[23].mxu1  ;;  %v19740_v44 = vpack.c.bf16 %v10896_v20, %v10895_v34 }
 0x37c   : > { %3725 = vst [vmem:[%s19484_s28 + $0xa0] sm:$0xff] %v3693_v26  ;;  %v3694_v42 = vmax.f32 %v3662_v48, 0.0  ;;  %v14760_v56 = vpop.f32.mrb[24].mxu0  ;;  %v6763_v35 = vadd.f32 %v19447_v47, %v6724_v50  ;;  %v6725_v60 = vmul.f32 %v19437_v37, %v6621_v16  ;;  %v19747_v25 = vpack.c.bf16 %v10899_v23, %v10898_v7  ;;  %v7800_v26 = vld [vmem:[#allocation2 + $0x320] sm:$0xff]  ;;  %v7801_v48 = vld [vmem:[#allocation2 + $0x328] sm:$0xff] }
 0x37d   : > { %3728 = vst [vmem:[%s19484_s28 + $0xb8] sm:$0xff] %v3696_v55  ;;  %v3628_v28 = vmul.f32 %v14760_v56, %v19437_v37  ;;  %v3532_v0 = vpop.f32.mrb[25].mxu0  ;;  %v6797_v5 = vmax.f32 %v6765_v53, 0.0  ;;  %v6766_v17 = vadd.f32 %v19447_v47, %v6727_v32  ;;  %15483 = vmatmul.mubr.msk.bf16.vlgmr.msra.gmra.mrb[32].mxu1 %vm197_vm1, %v19689_v6 }
 0x37e   : > { %3726 = vst [vmem:[%s19484_s28 + $0xa8] sm:$0xff] %v3694_v42  ;;  %v3626_v29 = vmul.f32 %v19437_v37, %v3532_v0  ;;  %v14761_v4 = vpop.f32.mrb[26].mxu0  ;;  %v6795_v15 = vmax.f32 %v6763_v35, 0.0  ;;  %v6764_v3 = vadd.f32 %v19447_v47, %v6725_v60  ;;  %15515 = vmatpush3.bf16.msra.mxu1 %v11391_v30  ;;  %15486 = vmatprep.mubr.msk.bf16.mxu1 %vm197_vm1, %v19696_v13  ;;  %21148 = vst [vmem:[#allocation27_spill] sm:$0xff] %v19747_v25 }
 0x37f   : > { %v3667_v57 = vadd.f32 %v19447_v47, %v3628_v28  ;;  %v3629_v27 = vmul.f32 %v14761_v4, %v19437_v37  ;;  %v3535_v61 = vpop.f32.mrb[27].mxu0  ;;  %13459 = vst [vmem:[%s19484_s28 + $0x1b0] sm:$0xff] %v6797_v5  ;;  %v6798_v24 = vmax.f32 %v6766_v17, 0.0  ;;  %16740 = vmatprep.subr.msk.bf16.mxu1 %vm902_vm0, %v19714_v22  ;;  %v19756_v42 = vpack.c.bf16 %v7798_v38, %v7797_v8  ;;  %v10900_v17 = vld [vmem:[#allocation2 + $0x448] sm:$0xff]  ;;  %v7806_v8 = vld [vmem:[#allocation2 + $0x350] sm:$0xff] }
 0x380   : > { %v3665_v9 = vadd.f32 %v19447_v47, %v3626_v29  ;;  %v3627_v36 = vmul.f32 %v19437_v37, %v3535_v61  ;;  %13457 = vst [vmem:[%s19484_s28 + $0x1a0] sm:$0xff] %v6795_v15  ;;  %v6796_v63 = vmax.f32 %v6764_v3, 0.0  ;;  %v15066_v58 = vpop.f32.mrb[24].mxu1  ;;  %v19763_v30 = vpack.c.bf16 %v7801_v48, %v7800_v26  ;;  %v10901_v29 = vld [vmem:[#allocation2 + $0x450] sm:$0xff]  ;;  %v10903_v3 = vld [vmem:[#allocation2 + $0x460] sm:$0xff] }
 0x381   : > { %v3699_v49 = vmax.f32 %v3667_v57, 0.0  ;;  %v3668_v52 = vadd.f32 %v19447_v47, %v3629_v27  ;;  %15181 = vmatmul.mubr.msk.bf16.gmra.mrb[36].mxu0 %vm197_vm1, %v19709_v21  ;;  %13460 = vst [vmem:[%s19484_s28 + $0x1b8] sm:$0xff] %v6798_v24  ;;  %v6730_v31 = vmul.f32 %v15066_v58, %v19437_v37  ;;  %v6634_v62 = vpop.f32.mrb[25].mxu1  ;;  %v10904_v27 = vld [vmem:[#allocation2 + $0x468] sm:$0xff] }
 0x382   : > { %v3697_v41 = vmax.f32 %v3665_v9, 0.0  ;;  %v3666_v14 = vadd.f32 %v19447_v47, %v3627_v36  ;;  %15184 = vmatprep.mubr.msk.bf16.mxu0 %vm197_vm1, %v19721_v40  ;;  %13458 = vst [vmem:[%s19484_s28 + $0x1a8] sm:$0xff] %v6796_v63  ;;  %v6728_v33 = vmul.f32 %v19437_v37, %v6634_v62  ;;  %v15067_v1 = vpop.f32.mrb[26].mxu1  ;;  %v7802_v63 = vld [vmem:[#allocation2 + $0x330] sm:$0xff]  ;;  %v7805_v62 = vld [vmem:[#allocation2 + $0x348] sm:$0xff] }
 0x383   : > { %3731 = vst [vmem:[%s19484_s28 + $0xd0] sm:$0xff] %v3699_v49  ;;  %v3700_v12 = vmax.f32 %v3668_v52, 0.0  ;;  %v6769_v18 = vadd.f32 %v19447_v47, %v6730_v31  ;;  %v6731_v51 = vmul.f32 %v15067_v1, %v19437_v37  ;;  %v6637_v55 = vpop.f32.mrb[27].mxu1  ;;  %v19780_v49 = vpack.c.bf16 %v10901_v29, %v10900_v17  ;;  %v7803_v52 = vld [vmem:[#allocation2 + $0x338] sm:$0xff]  ;;  %v10911_v29 = vld [vmem:[#allocation2 + $0x4a0] sm:$0xff] }
 0x384   : > { %3729 = vst [vmem:[%s19484_s28 + $0xc0] sm:$0xff] %v3697_v41  ;;  %v3698_v11 = vmax.f32 %v3666_v14, 0.0  ;;  %v14764_v19 = vpop.f32.mrb[28].mxu0  ;;  %v6767_v50 = vadd.f32 %v19447_v47, %v6728_v33  ;;  %v6729_v46 = vmul.f32 %v19437_v37, %v6637_v55  ;;  %v19787_v31 = vpack.c.bf16 %v10904_v27, %v10903_v3  ;;  %v10910_v17 = vld [vmem:[#allocation2 + $0x498] sm:$0xff]  ;;  %v7812_v3 = vld [vmem:[#allocation2 + $0x380] sm:$0xff]  ;;  %v7813_v27 = vld [vmem:[#allocation2 + $0x388] sm:$0xff] }
 0x385   : > { %3732 = vst [vmem:[%s19484_s28 + $0xd8] sm:$0xff] %v3700_v12  ;;  %v3632_v59 = vmul.f32 %v14764_v19, %v19437_v37  ;;  %v3548_v2 = vpop.f32.mrb[29].mxu0  ;;  %v6801_v53 = vmax.f32 %v6769_v18, 0.0  ;;  %v6770_v56 = vadd.f32 %v19447_v47, %v6731_v51  ;;  %15487 = vmatmul.mubr.msk.bf16.gmra.mrb[36].mxu1 %vm197_vm1, %v19740_v44  ;;  %v19801_v51 = vpack.c.bf16 %v7806_v8, %v7805_v62  ;;  %v7820_v62 = vld [vmem:[#allocation2 + $0x3c0] sm:$0xff]  ;;  %v7821_v8 = vld [vmem:[#allocation2 + $0x3c8] sm:$0xff] }
 0x386   : > { %3730 = vst [vmem:[%s19484_s28 + $0xc8] sm:$0xff] %v3698_v11  ;;  %v3630_v32 = vmul.f32 %v19437_v37, %v3548_v2  ;;  %v14765_v16 = vpop.f32.mrb[30].mxu0  ;;  %v6799_v35 = vmax.f32 %v6767_v50, 0.0  ;;  %v6768_v0 = vadd.f32 %v19447_v47, %v6729_v46  ;;  %15490 = vmatprep.mubr.msk.bf16.mxu1 %vm197_vm1, %v19747_v25  ;;  %v19795_v11 = vpack.c.bf16 %v7803_v52, %v7802_v63  ;;  %v10908_v46 = vld [vmem:[#allocation2 + $0x488] sm:$0xff]  ;;  %v10919_v63 = vld [vmem:[#allocation2 + $0x4e0] sm:$0xff] }
 0x387   : > { %v3671_v28 = vadd.f32 %v19447_v47, %v3632_v59  ;;  %v3633_v60 = vmul.f32 %v14765_v16, %v19437_v37  ;;  %v3551_v5 = vpop.f32.mrb[31].mxu0  ;;  %13463 = vst [vmem:[%s19484_s28 + $0x1d0] sm:$0xff] %v6801_v53  ;;  %v6802_v4 = vmax.f32 %v6770_v56, 0.0  ;;  %v10906_v59 = vld [vmem:[#allocation2 + $0x478] sm:$0xff]  ;;  %v10909_v53 = vld [vmem:[#allocation2 + $0x490] sm:$0xff]  ;;  %v7808_v16 = vld [vmem:[#allocation2 + $0x360] sm:$0xff] }
 0x388   : > { %v3669_v15 = vadd.f32 %v19447_v47, %v3630_v32  ;;  %v3631_v57 = vmul.f32 %v19437_v37, %v3551_v5  ;;  %13461 = vst [vmem:[%s19484_s28 + $0x1c0] sm:$0xff] %v6799_v35  ;;  %v6800_v34 = vmax.f32 %v6768_v0, 0.0  ;;  %v15070_v24 = vpop.f32.mrb[28].mxu1  ;;  %v19816_v35 = vpack.c.bf16 %v10909_v53, %v10908_v46  ;;  %v7811_v0 = vld [vmem:[#allocation2 + $0x378] sm:$0xff]  ;;  %v7822_v53 = vld [vmem:[#allocation2 + $0x3d0] sm:$0xff] }
 0x389   : > { %v3703_v61 = vmax.f32 %v3671_v28, 0.0  ;;  %v3672_v20 = vadd.f32 %v19447_v47, %v3633_v60  ;;  %15185 = vmatmul.mubr.msk.bf16.gmra.mrb[40].mxu0 %vm197_vm1, %v19756_v42  ;;  %13464 = vst [vmem:[%s19484_s28 + $0x1d8] sm:$0xff] %v6802_v4  ;;  %v6734_v7 = vmul.f32 %v15070_v24, %v19437_v37  ;;  %v6650_v23 = vpop.f32.mrb[29].mxu1  ;;  %v7810_v28 = vld [vmem:[#allocation2 + $0x370] sm:$0xff]  ;;  %v19834_v24 = vpack.c.bf16 %v7813_v27, %v7812_v3 }
 0x38a   : > { %v3701_v9 = vmax.f32 %v3669_v15, 0.0  ;;  %v3670_v36 = vadd.f32 %v19447_v47, %v3631_v57  ;;  %15188 = vmatprep.mubr.msk.bf16.mxu0 %vm197_vm1, %v19763_v30  ;;  %13462 = vst [vmem:[%s19484_s28 + $0x1c8] sm:$0xff] %v6800_v34  ;;  %v6732_v41 = vmul.f32 %v19437_v37, %v6650_v23  ;;  %v15071_v14 = vpop.f32.mrb[30].mxu1  ;;  %21149 = vst [vmem:[#allocation28_spill] sm:$0xff] %v19816_v35  ;;  %v10913_v4 = vld [vmem:[#allocation2 + $0x4b0] sm:$0xff]  ;;  %v10914_v15 = vld [vmem:[#allocation2 + $0x4b8] sm:$0xff] }
 0x38b   : > { %3735 = vst [vmem:[%s19484_s28 + $0xf0] sm:$0xff] %v3703_v61  ;;  %v3704_v58 = vmax.f32 %v3672_v20, 0.0  ;;  %v6773_v12 = vadd.f32 %v19447_v47, %v6734_v7  ;;  %v6735_v33 = vmul.f32 %v15071_v14, %v19437_v37  ;;  %v6653_v1 = vpop.f32.mrb[31].mxu1  ;;  %v19822_v5 = vpack.c.bf16 %v7811_v0, %v7810_v28  ;;  %v7815_v34 = vld [vmem:[#allocation2 + $0x398] sm:$0xff]  ;;  %v7816_v20 = vld [vmem:[#allocation2 + $0x3a0] sm:$0xff]  ;;  %v10916_v7 = vld [vmem:[#allocation2 + $0x4c8] sm:$0xff] }
 0x38c   : > { %3733 = vst [vmem:[%s19484_s28 + $0xe0] sm:$0xff] %v3701_v9  ;;  %v3702_v38 = vmax.f32 %v3670_v36, 0.0  ;;  %v6771_v26 = vadd.f32 %v19447_v47, %v6732_v41  ;;  %v6733_v48 = vmul.f32 %v19437_v37, %v6653_v1  ;;  %v10905_v37 = vld [vmem:[#allocation2 + $0x470] sm:$0xff]  ;;  %v19828_v57 = vpack.c.bf16 %v10911_v29, %v10910_v17  ;;  %v10915_v36 = vld [vmem:[#allocation2 + $0x4c0] sm:$0xff]  ;;  %v10918_v23 = vld [vmem:[#allocation2 + $0x4d8] sm:$0xff] }
 0x38d   : > { %3736 = vst [vmem:[%s19484_s28 + $0xf8] sm:$0xff] %v3704_v58  ;;  %v6805_v18 = vmax.f32 %v6773_v12, 0.0  ;;  %v6774_v19 = vadd.f32 %v19447_v47, %v6735_v33  ;;  %15491 = vmatmul.mubr.msk.bf16.gmra.mrb[40].mxu1 %vm197_vm1, %v19780_v49  ;;  %v19811_v32 = vpack.c.bf16 %v10906_v59, %v10905_v37  ;;  %v19832_v61 = vpack.c.bf16 %v10914_v15, %v10913_v4  ;;  %v7817_v58 = vld [vmem:[#allocation2 + $0x3a8] sm:$0xff]  ;;  %v7818_v41 = vld [vmem:[#allocation2 + $0x3b0] sm:$0xff] }
 0x38e   : > { %3734 = vst [vmem:[%s19484_s28 + $0xe8] sm:$0xff] %v3702_v38  ;;  %v6803_v55 = vmax.f32 %v6771_v26, 0.0  ;;  %v6772_v50 = vadd.f32 %v19447_v47, %v6733_v48  ;;  %15494 = vmatprep.mubr.msk.bf16.mxu1 %vm197_vm1, %v19787_v31  ;;  %v7807_v47 = vld [vmem:[#allocation2 + $0x358] sm:$0xff]  ;;  %v19838_v9 = vpack.c.bf16 %v7816_v20, %v7815_v34  ;;  %v19844_v52 = vpack.c.bf16 %v10916_v7, %v10915_v36  ;;  %v7789_v1 = vld [vmem:[#allocation2 + $0x2c8] sm:$0x3]  ;;  %v10921_v48 = vld [vmem:[#allocation2 + $0x4f0] sm:$0xff] }
 0x38f   : > { %13467 = vst [vmem:[%s19484_s28 + $0x1f0] sm:$0xff] %v6805_v18  ;;  %v6806_v2 = vmax.f32 %v6774_v19, 0.0  ;;  %v19818_v60 = vpack.c.bf16 %v7808_v16, %v7807_v47  ;;  %v19848_v14 = vpack.c.bf16 %v10919_v63, %v10918_v23  ;;  %v8096_v38 = vshll.u32 %v19627_v39, 16  ;;  %v10920_v26 = vld [vmem:[#allocation2 + $0x4e8] sm:$0xff]  ;;  %v10925_v36 = vld [vmem:[#allocation2 + $0x510] sm:$0xff]  ;;  %v10926_v7 = vld [vmem:[#allocation2 + $0x518] sm:$0xff] }
 0x390   : > { %13465 = vst [vmem:[%s19484_s28 + $0x1e0] sm:$0xff] %v6803_v55  ;;  %v6804_v56 = vmax.f32 %v6772_v50, 0.0  ;;  %v19851_v12 = vpack.c.bf16 %v7818_v41, %v7817_v58  ;;  %v19855_v33 = vpack.c.bf16 %v7821_v8, %v7820_v62  ;;  %v8094_v18 = vshrl.u32 %v19627_v39, 16  ;;  %v10923_v50 = vld [vmem:[#allocation2 + $0x500] sm:$0xff]  ;;  %v10924_v37 = vld [vmem:[#allocation2 + $0x508] sm:$0xff] }
 0x391   : > { %15189 = vmatmul.mubr.msk.bf16.gmra.mrb[44].mxu0 %vm197_vm1, %v19795_v11  ;;  %13468 = vst [vmem:[%s19484_s28 + $0x1f8] sm:$0xff] %v6806_v2  ;;  %21150 = vst [vmem:[#allocation29_spill] sm:$0xff] %v19848_v14  ;;  %v8098_v19 = vrot.slane %v8096_v38, 1  ;;  %v8100_v55 = vshll.u32 %v19655_v54, 16  ;;  %v11199_v59 = vshll.u32 %v19650_v43, 16  ;;  %v19864_v2 = vpack.c.bf16 %v7789_v1, %v7789_v1 }
 0x392   : > { %15192 = vmatprep.mubr.msk.bf16.mxu0 %vm197_vm1, %v19801_v51  ;;  %13466 = vst [vmem:[%s19484_s28 + $0x1e8] sm:$0xff] %v6804_v56  ;;  %21151 = vst [vmem:[#allocation15_spill] sm:$0xff] %v19851_v12  ;;  %v19866_v46 = vpack.c.bf16 %v10921_v48, %v10920_v26  ;;  %v7823_v56 = vld [vmem:[#allocation2 + $0x3d8] sm:$0xff]  ;;  %v10892_v47 = vld [vmem:[#allocation2 + $0x408] sm:$0x3]  ;;  %v19870_v16 = vpack.c.bf16 %v10924_v37, %v10923_v50  ;;  %v8114_v17 = vshll.u32 %v19661_v45, 16 }
 0x393   : > { %v8099_v28 = vor.u32 %v8098_v19, %v8094_v18  ;;  %v8102_v0 = vrot.slane %v8100_v55, 1  ;;  %v11197_v29 = vshrl.u32 %v19650_v43, 16  ;;  %v11201_v4 = vrot.slane %v11199_v59, 1  ;;  %v7794_v62 = vld [vmem:[#allocation2 + $0x2f0] sm:$0x3] }
 0x394   : > { %v11203_v15 = vshll.u32 %v19689_v6, 16  ;;  %v19875_v3 = vpack.c.bf16 %v7823_v56, %v7822_v53  ;;  %v8104_v27 = vshrl.u32 %v19655_v54, 16  ;;  %v8108_v34 = vshll.u32 %v19864_v2, 16  ;;  %v10897_v53 = vld [vmem:[#allocation2 + $0x430] sm:$0x3] }
 0x395   : > { %15495 = vmatmul.mubr.msk.bf16.gmra.mrb[44].mxu1 %vm197_vm1, %v19811_v32  ;;  %v19879_v20 = vpack.c.bf16 %v10892_v47, %v10892_v47  ;;  %v8103_v23 = vsel %vm691_vm3, %v8099_v28, %v8102_v0  ;;  %v8112_v63 = vshrl.u32 %v19661_v45, 16  ;;  %v8116_v58 = vrot.slane %v8114_v17, 1 }
 0x396   : > { %15498 = vmatprep.mubr.msk.bf16.mxu1 %vm197_vm1, %v19816_v35  ;;  %v8118_v41 = vshll.u32 %v19709_v21, 16  ;;  %v11202_v8 = vor.u32 %v11201_v4, %v11197_v29  ;;  %v11205_v38 = vrot.slane %v11203_v15, 1  ;;  %v11217_v1 = vshll.u32 %v19696_v13, 16 }
 0x397   : > { %v8106_v26 = vor.u32 %v8104_v27, %v8102_v0  ;;  %v8110_v48 = vrot.slane %v8108_v34, 1  ;;  %v11207_v18 = vshrl.u32 %v19689_v6, 16  ;;  %v11211_v19 = vshll.u32 %v19879_v20, 16 }
 0x398   : > { %v19893_v55 = vpack.c.bf16 %v10926_v7, %v10925_v36  ;;  %v19896_v50 = vpack.c.bf16 %v7794_v62, %v7794_v62  ;;  %v8117_v37 = vor.u32 %v8116_v58, %v8112_v63  ;;  %v8120_v59 = vrot.slane %v8118_v41, 1 }
 0x399   : > { %15193 = vmatmul.mubr.msk.bf16.gmra.mrb[48].mxu0 %vm197_vm1, %v19818_v60  ;;  %v8132_v56 = vshll.u32 %v19721_v40, 16  ;;  %v11206_v47 = vsel %vm691_vm3, %v11202_v8, %v11205_v38  ;;  %v11215_v28 = vshrl.u32 %v19696_v13, 16  ;;  %v11219_v0 = vrot.slane %v11217_v1, 1  ;;  %v19919_v1 = vld [vmem:[%s20950_s1 + $0x18] sm:$0xf] }
 0x39a   : > { %15196 = vmatprep.mubr.msk.bf16.mxu0 %vm197_vm1, %v19822_v5  ;;  %v11221_v17 = vshll.u32 %v19740_v44, 16  ;;  %v8111_v29 = vsel %vm691_vm3, %v8106_v26, %v8110_v48  ;;  %v11209_v4 = vor.u32 %v11207_v18, %v11205_v38  ;;  %v11213_v15 = vrot.slane %v11211_v19, 1 }
 0x39b   : > { %v8597_v27 = vsel %vm902_vm0, %v19680_v10, 0  ;;  %v8122_v34 = vshrl.u32 %v19709_v21, 16  ;;  %v8126_v36 = vshll.u32 %v19896_v50, 16  ;;  %v19909_v7 = vpack.c.bf16 %v10897_v53, %v10897_v53 }
 0x39c   : > { %v8121_v63 = vsel %vm691_vm3, %v8117_v37, %v8120_v59  ;;  %v8130_v58 = vshrl.u32 %v19721_v40, 16  ;;  %v8134_v41 = vrot.slane %v8132_v56, 1  ;;  %v8136_v62 = vshll.u32 %v19756_v42, 16 }
 0x39d   : > { %15499 = vmatmul.mubr.msk.bf16.gmra.mrb[48].mxu1 %vm197_vm1, %v19828_v57  ;;  %21152 = vst [vmem:[#allocation16_spill] sm:$0xff] %v19909_v7  ;;  %v11220_v8 = vor.u32 %v11219_v0, %v11215_v28  ;;  %v11223_v38 = vrot.slane %v11221_v17, 1  ;;  %v11235_v10 = vshll.u32 %v19747_v25, 16  ;;  %v11214_v26 = vsel %vm691_vm3, %v11209_v4, %v11213_v15  ;;  %v10902_v0 = vld [vmem:[#allocation2 + $0x458] sm:$0x3] }
 0x39e   : > { %15502 = vmatprep.mubr.msk.bf16.mxu1 %vm197_vm1, %v19832_v61  ;;  %v8124_v18 = vor.u32 %v8122_v34, %v8120_v59  ;;  %v8128_v19 = vrot.slane %v8126_v36, 1  ;;  %v11225_v37 = vshrl.u32 %v19740_v44, 16  ;;  %v11229_v53 = vshll.u32 %v19909_v7, 16 }
 0x39f   : > { %v11700_v56 = vsel %vm902_vm0, %v19714_v22, 0  ;;  %v8138_v28 = vrot.slane %v8136_v62, 1  ;;  %v8150_v17 = vshll.u32 %v19763_v30, 16  ;;  %v11233_v59 = vshrl.u32 %v19747_v25, 16  ;;  %v19941_v22 = vld [vmem:[%s20950_s1 + $0x18] sm:$0xf] }
 0x3a0   : > { %v11237_v4 = vrot.slane %v11235_v10, 1  ;;  %v11239_v15 = vshll.u32 %v19780_v49, 16  ;;  %v8129_v36 = vsel %vm691_vm3, %v8124_v18, %v8128_v19  ;;  %v8148_v62 = vshrl.u32 %v19763_v30, 16 }
 0x3a1   : > { %15197 = vmatmul.mubr.msk.bf16.gmra.mrb[52].mxu0 %vm197_vm1, %v19834_v24  ;;  %v8154_v10 = vshll.u32 %v19795_v11, 16  ;;  %v11243_v19 = vshrl.u32 %v19780_v49, 16 }
 0x3a2   : > { %15200 = vmatprep.mubr.msk.bf16.mxu0 %vm197_vm1, %v19838_v9  ;;  %v11238_v25 = vor.u32 %v11237_v4, %v11233_v59  ;;  %v11241_v7 = vrot.slane %v11239_v15, 1  ;;  %v11257_v15 = vshll.u32 %v19811_v32, 16 }
 0x3a4   : > { %v19963_v59 = vsel %vm691_vm3, %v11238_v25, %v11241_v7  ;;  %v7809_v25 = vld [vmem:[#allocation2 + $0x368] sm:$0x3] }
 0x3a5   : > { %15503 = vmatmul.mubr.msk.bf16.gmra.mrb[52].mxu1 %vm197_vm1, %v19844_v52  ;;  %21154 = vst [vmem:[#allocation11_spill] sm:$0xff] %v19963_v59 }
 0x3a6   : > { %15506 = vmatprep.mubr.msk.bf16.mxu1 %vm197_vm1, %v19848_v14 }
 0x3a9   : > { %15201 = vmatmul.mubr.msk.bf16.gmra.mrb[56].mxu0 %vm197_vm1, %v19851_v12 }
 0x3aa   : > { %15204 = vmatprep.mubr.msk.bf16.mxu0 %vm197_vm1, %v19855_v33 }
 0x3ad   : > { %15507 = vmatmul.mubr.msk.bf16.gmra.mrb[56].mxu1 %vm197_vm1, %v19866_v46 }
 0x3ae   : > { %15510 = vmatprep.mubr.msk.bf16.mxu1 %vm197_vm1, %v19870_v16 }
 0x3b1   : > { %15205 = vmatmul.mubr.msk.bf16.gmra.mrb[60].mxu0 %vm197_vm1, %v19875_v3 }
 0x3b2   : > { %15210 = vmatprep.mubr.msk.bf16.mxu0 %vm197_vm1, %v8103_v23  ;;  %v7799_v23 = vld [vmem:[#allocation2 + $0x318] sm:$0x3] }
 0x3b3   : > { %v19923_v48 = vpack.c.bf16 %v7799_v23, %v7799_v23  ;;  %v11227_v23 = vor.u32 %v11225_v37, %v11223_v38 }
 0x3b5   : > { %15511 = vmatmul.mubr.msk.bf16.gmra.mrb[60].mxu1 %vm197_vm1, %v19893_v55  ;;  %21153 = vst [vmem:[#allocation18_spill] sm:$0xff] %v19923_v48  ;;  %v8144_v34 = vshll.u32 %v19923_v48, 16  ;;  %v7804_v48 = vld [vmem:[#allocation2 + $0x340] sm:$0x3] }
 0x3b6   : > { %15516 = vmatprep.mubr.msk.bf16.mxu1 %vm197_vm1, %v11206_v47  ;;  %v8135_v47 = vor.u32 %v8134_v41, %v8130_v58  ;;  %v19945_v58 = vpack.c.bf16 %v10902_v0, %v10902_v0  ;;  %v8156_v0 = vrot.slane %v8154_v10, 1 }
 0x3b7   : > { %v8146_v18 = vrot.slane %v8144_v34, 1  ;;  %v19968_v34 = vor.u32 %v11243_v19, %v11241_v7 }
 0x3b8   : > { %v8139_v41 = vsel %vm691_vm3, %v8135_v47, %v8138_v28  ;;  %v11247_v37 = vshll.u32 %v19945_v58, 16 }
 0x3b9   : > { %15211 = vmatmul.mubr.msk.bf16.vlgmr.msra.gmra.mrb[32].mxu0 %vm197_vm1, %v8111_v29  ;;  %v11224_v29 = vsel %vm691_vm3, %v11220_v8, %v11223_v38  ;;  %v8152_v8 = vrot.slane %v8150_v17, 1  ;;  %v10907_v17 = vld [vmem:[#allocation2 + $0x480] sm:$0x3]  ;;  %21155 = vst [vmem:[#allocation22_spill] sm:$0xff] %v19968_v34 }
 0x3ba   : > { %15243 = vmatpush3.bf16.msra.mxu0 %v8597_v27  ;;  %15214 = vmatprep.mubr.msk.bf16.mxu0 %vm197_vm1, %v8121_v63  ;;  %v8140_v27 = vshrl.u32 %v19756_v42, 16  ;;  %v11231_v63 = vrot.slane %v11229_v53, 1  ;;  %v19958_v53 = vpack.c.bf16 %v7804_v48, %v7804_v48  ;;  %v11249_v48 = vrot.slane %v11247_v37, 1 }
 0x3bb   : > { %16732 = vmatprep.subr.msk.bf16.mxu0 %vm902_vm0, %v19919_v1  ;;  %v8153_v47 = vor.u32 %v8152_v8, %v8148_v62  ;;  %v8166_v62 = vshrl.u32 %v19801_v51, 16  ;;  %v8172_v8 = vshll.u32 %v19818_v60, 16 }
 0x3bc   : > { %v8142_v38 = vor.u32 %v8140_v27, %v8138_v28  ;;  %v11251_v28 = vshrl.u32 %v19787_v31, 16 }
 0x3bd   : > { %15517 = vmatmul.mubr.msk.bf16.vlgmr.msra.gmra.mrb[32].mxu1 %vm197_vm1, %v11214_v26  ;;  %v11253_v26 = vshll.u32 %v19787_v31, 16 }
 0x3be   : > { %15549 = vmatpush3.bf16.msra.mxu1 %v11700_v56  ;;  %15520 = vmatprep.mubr.msk.bf16.mxu1 %vm197_vm1, %v11224_v29  ;;  %v11232_v56 = vsel %vm691_vm3, %v11227_v23, %v11231_v63  ;;  %v8168_v29 = vshll.u32 %v19801_v51, 16  ;;  %v8147_v27 = vsel %vm691_vm3, %v8142_v38, %v8146_v18  ;;  %v8162_v23 = vshll.u32 %v19958_v53, 16 }
 0x3bf   : > { %16741 = vmatprep.subr.msk.bf16.mxu1 %vm902_vm0, %v19941_v22  ;;  %v11255_v4 = vrot.slane %v11253_v26, 1  ;;  %v19973_v63 = vpack.c.bf16 %v10907_v17, %v10907_v17  ;;  %v11259_v26 = vrot.slane %v11257_v15, 1  ;;  %v11271_v38 = vshll.u32 %v19816_v35, 16 }
 0x3c0   : > { %v8170_v7 = vrot.slane %v8168_v29, 1  ;;  %v19984_v18 = vpack.c.bf16 %v7809_v25, %v7809_v25  ;;  %v8164_v37 = vrot.slane %v8162_v23, 1  ;;  %v11250_v17 = vsel %vm691_vm3, %v19968_v34, %v11249_v48 }
 0x3c1   : > { %15215 = vmatmul.mubr.msk.bf16.gmra.mrb[36].mxu0 %vm197_vm1, %v8129_v36  ;;  %v8158_v36 = vshrl.u32 %v19795_v11, 16  ;;  %v11256_v10 = vor.u32 %v11255_v4, %v11251_v28  ;;  %v8174_v28 = vrot.slane %v8172_v8, 1  ;;  %v10912_v4 = vld [vmem:[#allocation2 + $0x4a8] sm:$0x3]  ;;  %v8186_v15 = vshll.u32 %v19822_v5, 16 }
 0x3c2   : > { %15218 = vmatprep.mubr.msk.bf16.mxu0 %vm197_vm1, %v8139_v41  ;;  %v19978_v41 = vsel %vm691_vm3, %v8153_v47, %v8156_v0  ;;  %21157 = vst [vmem:[#allocation10_spill] sm:$0xff] %v19984_v18  ;;  %v11265_v47 = vshll.u32 %v19973_v63, 16  ;;  %v8171_v29 = vor.u32 %v8170_v7, %v8166_v62  ;;  %v11269_v25 = vshrl.u32 %v19816_v35, 16 }
 0x3c3   : > { %21156 = vst [vmem:[#allocation19_spill] sm:$0xff] %v19978_v41  ;;  %v19988_v19 = vor.u32 %v8158_v36, %v8156_v0  ;;  %v11273_v0 = vrot.slane %v11271_v38, 1  ;;  %v11275_v36 = vshll.u32 %v19828_v57, 16  ;;  %v8176_v23 = vshrl.u32 %v19818_v60, 16 }
 0x3c4   : > { %v11267_v7 = vrot.slane %v11265_v47, 1  ;;  %v20007_v8 = vpack.c.bf16 %v10912_v4, %v10912_v4  ;;  %v8184_v38 = vshrl.u32 %v19822_v5, 16  ;;  %v8188_v34 = vrot.slane %v8186_v15, 1 }
 0x3c5   : > { %15521 = vmatmul.mubr.msk.bf16.gmra.mrb[36].mxu1 %vm197_vm1, %v11232_v56  ;;  %21158 = vst [vmem:[#allocation6_spill] sm:$0xff] %v19988_v19  ;;  %v11261_v56 = vshrl.u32 %v19811_v32, 16  ;;  %v8165_v48 = vsel %vm691_vm3, %v19988_v19, %v8164_v37  ;;  %v11277_v35 = vrot.slane %v11275_v36, 1  ;;  %v20018_v37 = vor.u32 %v8176_v23, %v8174_v28  ;;  %v10917_v36 = vld [vmem:[#allocation2 + $0x4d0] sm:$0x3] }
 0x3c6   : > { %15524 = vmatprep.mubr.msk.bf16.mxu1 %vm197_vm1, %v19963_v59  ;;  %v8190_v59 = vshll.u32 %v19834_v24, 16  ;;  %v11279_v47 = vshrl.u32 %v19828_v57, 16  ;;  %v10922_v19 = vld [vmem:[#allocation2 + $0x4f8] sm:$0x3] }
 0x3c7   : > { %v20005_v62 = vor.u32 %v11261_v56, %v11259_v26  ;;  %21162 = vst [vmem:[#allocation20_spill] sm:$0xff] %v20018_v37 }
 0x3c9   : > { %15219 = vmatmul.mubr.msk.bf16.gmra.mrb[40].mxu0 %vm197_vm1, %v8147_v27  ;;  %v19996_v27 = vsel %vm691_vm3, %v11256_v10, %v11259_v26  ;;  %21160 = vst [vmem:[#allocation13_spill] sm:$0xff] %v20005_v62  ;;  %v20012_v10 = vsel %vm691_vm3, %v8171_v29, %v8174_v28  ;;  %v11289_v26 = vshll.u32 %v19832_v61, 16  ;;  %v11283_v29 = vshll.u32 %v20007_v8, 16 }
 0x3ca   : > { %15222 = vmatprep.mubr.msk.bf16.mxu0 %vm197_vm1, %v19978_v41  ;;  %21159 = vst [vmem:[#allocation8_spill] sm:$0xff] %v19996_v27  ;;  %v8180_v41 = vshll.u32 %v19984_v18, 16  ;;  %21161 = vst [vmem:[#allocation25_spill] sm:$0xff] %v20012_v10  ;;  %v11274_v18 = vor.u32 %v11273_v0, %v11269_v25  ;;  %v11268_v15 = vsel %vm691_vm3, %v20005_v62, %v11267_v7  ;;  %v8192_v0 = vrot.slane %v8190_v59, 1 }
 0x3cb   : > { %v8189_v25 = vor.u32 %v8188_v34, %v8184_v38  ;;  %v11291_v23 = vrot.slane %v11289_v26, 1  ;;  %v11285_v34 = vrot.slane %v11283_v29, 1  ;;  %v8194_v59 = vshrl.u32 %v19834_v24, 16 }
 0x3cc   : > { %v8182_v56 = vrot.slane %v8180_v41, 1  ;;  %v20030_v28 = vsel %vm691_vm3, %v11274_v18, %v11277_v35  ;;  %v11287_v41 = vshrl.u32 %v19832_v61, 16  ;;  %v20041_v38 = vpack.c.bf16 %v10917_v36, %v10917_v36  ;;  %v7819_v18 = vld [vmem:[#allocation2 + $0x3b8] sm:$0x3] }
 0x3cd   : > { %15525 = vmatmul.mubr.msk.bf16.gmra.mrb[40].mxu1 %vm197_vm1, %v11250_v17  ;;  %v7814_v17 = vld [vmem:[#allocation2 + $0x390] sm:$0x3]  ;;  %21163 = vst [vmem:[#allocation23_spill] sm:$0xff] %v20030_v28  ;;  %v20046_v26 = vsel %vm691_vm3, %v8189_v25, %v8192_v0  ;;  %v20052_v36 = vpack.c.bf16 %v7819_v18, %v7819_v18  ;;  %v11297_v62 = vshrl.u32 %v19844_v52, 16 }
 0x3ce   : > { %15528 = vmatprep.mubr.msk.bf16.mxu1 %vm197_vm1, %v19996_v27  ;;  %v20024_v4 = vpack.c.bf16 %v7814_v17, %v7814_v17  ;;  %v8183_v17 = vsel %vm691_vm3, %v20018_v37, %v8182_v56  ;;  %v20036_v27 = vor.u32 %v11279_v47, %v11277_v35  ;;  %21165 = vst [vmem:[#allocation7_spill] sm:$0xff] %v20041_v38  ;;  %21166 = vst [vmem:[#allocation9_spill] sm:$0xff] %v20046_v26 }
 0x3cf   : > { %v8202_v56 = vshrl.u32 %v19838_v9, 16  ;;  %v8208_v47 = vshll.u32 %v19851_v12, 16  ;;  %v11307_v37 = vshll.u32 %v19848_v14, 16  ;;  %21167 = vst [vmem:[#allocation24_spill] sm:$0xff] %v20052_v36 }
 0x3d0   : > { %21164 = vst [vmem:[#allocation14_spill] sm:$0xff] %v20036_v27  ;;  %v8198_v7 = vshll.u32 %v20024_v4, 16 }
 0x3d1   : > { %15223 = vmatmul.mubr.msk.bf16.gmra.mrb[44].mxu0 %vm197_vm1, %v8165_v48  ;;  %v8204_v48 = vshll.u32 %v19838_v9, 16 }
 0x3d2   : > { %15226 = vmatprep.mubr.msk.bf16.mxu0 %vm197_vm1, %v20012_v10  ;;  %v11293_v10 = vshll.u32 %v19844_v52, 16  ;;  %v8200_v25 = vrot.slane %v8198_v7, 1  ;;  %v8212_v7 = vshrl.u32 %v19851_v12, 16 }
 0x3d3   : > { %v8206_v35 = vrot.slane %v8204_v48, 1  ;;  %v11301_v48 = vshll.u32 %v20041_v38, 16  ;;  %v8216_v38 = vshll.u32 %v20052_v36, 16  ;;  %v8226_v36 = vshll.u32 %v19875_v3, 16 }
 0x3d4   : > { %v11295_v29 = vrot.slane %v11293_v10, 1 }
 0x3d5   : > { %15529 = vmatmul.mubr.msk.bf16.gmra.mrb[44].mxu1 %vm197_vm1, %v11268_v15  ;;  %v11292_v15 = vor.u32 %v11291_v23, %v11287_v41  ;;  %v11286_v41 = vsel %vm691_vm3, %v20036_v27, %v11285_v34  ;;  %v8207_v10 = vor.u32 %v8206_v35, %v8202_v56  ;;  %v8210_v23 = vrot.slane %v8208_v47, 1 }
 0x3d6   : > { %15532 = vmatprep.mubr.msk.bf16.mxu1 %vm197_vm1, %v20030_v28  ;;  %v20056_v28 = vor.u32 %v8194_v59, %v8192_v0  ;;  %v11309_v0 = vrot.slane %v11307_v37, 1  ;;  %v11311_v59 = vshll.u32 %v19866_v46, 16  ;;  %v20073_v56 = vor.u32 %v11297_v62, %v11295_v29 }
 0x3d7   : > { %v20064_v18 = vsel %vm691_vm3, %v11292_v15, %v11295_v29  ;;  %v11303_v35 = vrot.slane %v11301_v48, 1  ;;  %v20075_v47 = vpack.c.bf16 %v10922_v19, %v10922_v19  ;;  %v20080_v37 = vsel %vm691_vm3, %v8207_v10, %v8210_v23 }
 0x3d8   : > { %21168 = vst [vmem:[#allocation12_spill] sm:$0xff] %v20064_v18  ;;  %v8201_v34 = vsel %vm691_vm3, %v20056_v28, %v8200_v25  ;;  %21169 = vst [vmem:[#allocation21_spill] sm:$0xff] %v20080_v37  ;;  %v8220_v15 = vshrl.u32 %v19855_v33, 16  ;;  %v11313_v12 = vrot.slane %v11311_v59, 1  ;;  %v11325_v62 = vshll.u32 %v19870_v16, 16 }
 0x3d9   : > { %15227 = vmatmul.mubr.msk.bf16.gmra.mrb[48].mxu0 %vm197_vm1, %v8183_v17  ;;  %v8222_v17 = vshll.u32 %v19855_v33, 16  ;;  %v20086_v19 = vor.u32 %v8212_v7, %v8210_v23  ;;  %v8218_v29 = vrot.slane %v8216_v38, 1  ;;  %v11315_v25 = vshrl.u32 %v19866_v46, 16 }
 0x3da   : > { %15230 = vmatprep.mubr.msk.bf16.mxu0 %vm197_vm1, %v20046_v26  ;;  %v11305_v26 = vshrl.u32 %v19848_v14, 16  ;;  %v11319_v48 = vshll.u32 %v20075_v47, 16  ;;  %v11323_v23 = vshrl.u32 %v19870_v16, 16  ;;  %v11327_v38 = vrot.slane %v11325_v62, 1 }
 0x3db   : > { %v8224_v27 = vrot.slane %v8222_v17, 1  ;;  %v11329_v7 = vshll.u32 %v19893_v55, 16 }
 0x3dc   : > { %v11310_v14 = vor.u32 %v11309_v0, %v11305_v26  ;;  %v11304_v26 = vsel %vm691_vm3, %v20073_v56, %v11303_v35  ;;  %v8228_v0 = vrot.slane %v8226_v36, 1 }
 0x3dd   : > { %15533 = vmatmul.mubr.msk.bf16.gmra.mrb[48].mxu1 %vm197_vm1, %v11286_v41  ;;  %v7824_v41 = vld [vmem:[#allocation2 + $0x3e0] sm:$0x3]  ;;  %v8225_v17 = vor.u32 %v8224_v27, %v8220_v15  ;;  %v8230_v27 = vshrl.u32 %v19875_v3, 16  ;;  %v11328_v15 = vor.u32 %v11327_v38, %v11323_v23  ;;  %v11331_v62 = vrot.slane %v11329_v7, 1 }
 0x3de   : > { %15536 = vmatprep.mubr.msk.bf16.mxu1 %vm197_vm1, %v20064_v18  ;;  %v20092_v10 = vpack.c.bf16 %v7824_v41, %v7824_v41  ;;  %v20097_v59 = vsel %vm691_vm3, %v11310_v14, %v11313_v12  ;;  %v20104_v41 = vor.u32 %v11315_v25, %v11313_v12  ;;  %v11321_v18 = vrot.slane %v11319_v48, 1 }
 0x3df   : > { %v20111_v14 = vsel %vm691_vm3, %v8225_v17, %v8228_v0  ;;  %v11333_v48 = vshrl.u32 %v19893_v55, 16  ;;  %v8507_v17 = vrot.slane %v19627_v39, 1  ;;  %v8508_v23 = vrot.slane %v19655_v54, 1 }
 0x3e0   : > { %v8234_v36 = vshll.u32 %v20092_v10, 16  ;;  %v11322_v12 = vsel %vm691_vm3, %v20104_v41, %v11321_v18  ;;  %v20127_v38 = vsel %vm691_vm3, %v11328_v15, %v11331_v62  ;;  %v11610_v39 = vrot.slane %v19650_v43, 1 }
 0x3e1   : > { %15231 = vmatmul.mubr.msk.bf16.gmra.mrb[52].mxu0 %vm197_vm1, %v8201_v34  ;;  %v10927_v34 = vld [vmem:[#allocation2 + $0x520] sm:$0x3]  ;;  %v8509_v7 = vsel %vm1287_vm4, %v8507_v17, %v8508_v23  ;;  %v11611_v54 = vrot.slane %v19689_v6, 1  ;;  %v8513_v15 = vrot.slane %v19709_v21, 1  ;;  %v8907_v6 = vsel %vm902_vm0, %v19919_v1, 0 }
 0x3e2   : > { %15234 = vmatprep.mubr.msk.bf16.mxu0 %vm197_vm1, %v20080_v37  ;;  %v8219_v37 = vsel %vm691_vm3, %v20086_v19, %v8218_v29  ;;  %v20113_v35 = vpack.c.bf16 %v10927_v34, %v10927_v34  ;;  %v20120_v29 = vor.u32 %v8230_v27, %v8228_v0  ;;  %v8236_v25 = vrot.slane %v8234_v36, 1  ;;  %v20159_v21 = vld [vmem:[%s20950_s1 + $0x1c] sm:$0xf] }
 0x3e3   : > { %v8510_v34 = vrot.slane %v19864_v2, 1  ;;  %v8512_v36 = vrot.slane %v19661_v45, 1  ;;  %v11613_v2 = vrot.slane %v19879_v20, 1  ;;  %v11616_v45 = vrot.slane %v19740_v44, 1  ;;  %v20175_v17 = vld [vmem:[%s20950_s1 + $0x1c] sm:$0xf] }
 0x3e4   : > { %v8237_v18 = vsel %vm691_vm3, %v20120_v29, %v8236_v25  ;;  %v11615_v25 = vrot.slane %v19696_v13, 1  ;;  %v8515_v1 = vrot.slane %v19896_v50, 1  ;;  %v8518_v13 = vrot.slane %v19756_v42, 1 }
 0x3e5   : > { %15537 = vmatmul.mubr.msk.bf16.gmra.mrb[52].mxu1 %vm197_vm1, %v11304_v26  ;;  %v11337_v26 = vshll.u32 %v20113_v35, 16  ;;  %v8511_v43 = vsel %vm1287_vm4, %v8508_v23, %v8510_v34  ;;  %v11614_v20 = vsel %vm1287_vm4, %v11611_v54, %v11613_v2  ;;  %v12010_v44 = vsel %vm902_vm0, %v19941_v22, 0 }
 0x3e6   : > { %15540 = vmatprep.mubr.msk.bf16.mxu1 %vm197_vm1, %v20097_v59  ;;  %v8516_v50 = vsel %vm1287_vm4, %v8513_v15, %v8515_v1  ;;  %v8522_v34 = vrot.slane %v19763_v30, 1  ;;  %v20211_v2 = vrot.slane %v19811_v32, 1 }
 0x3e7   : > { %v11339_v0 = vrot.slane %v11337_v26, 1  ;;  %v11617_v26 = vsel %vm1287_vm4, %v11615_v25, %v11616_v45 }
 0x3e9   : > { %15235 = vmatmul.mubr.msk.bf16.gmra.mrb[56].mxu0 %vm197_vm1, %v8219_v37  ;;  %v20134_v37 = vor.u32 %v11333_v48, %v11331_v62  ;;  %v11612_v62 = vsel %vm1287_vm4, %v11610_v39, %v11611_v54  ;;  %v8517_v48 = vrot.slane %v19721_v40, 1  ;;  %v21170_v40 = vld [vmem:[#allocation16_spill] sm:$0xff] }
 0x3ea   : > { %15238 = vmatprep.mubr.msk.bf16.mxu0 %vm197_vm1, %v20111_v14  ;;  %v11618_v42 = vrot.slane %v21170_v40, 1 }
 0x3eb   : > { %v11340_v27 = vsel %vm691_vm3, %v20134_v37, %v11339_v0  ;;  %v8519_v23 = vsel %vm1287_vm4, %v8517_v48, %v8518_v13  ;;  %v20184_v0 = vrot.slane %v19780_v49, 1 }
 0x3ec   : > { %v11619_v54 = vsel %vm1287_vm4, %v11616_v45, %v11618_v42  ;;  %v20221_v45 = vrot.slane %v19818_v60, 1 }
 0x3ed   : > { %15541 = vmatmul.mubr.msk.bf16.gmra.mrb[56].mxu1 %vm197_vm1, %v11322_v12  ;;  %v8514_v12 = vsel %vm1287_vm4, %v8512_v36, %v8513_v15 }
 0x3ee   : > { %15544 = vmatprep.mubr.msk.bf16.mxu1 %vm197_vm1, %v20127_v38 }
 0x3f1   : > { %15239 = vmatmul.mubr.msk.bf16.gmra.mrb[60].mxu0 %vm197_vm1, %v8237_v18  ;;  %v21171_v18 = vld [vmem:[#allocation27_spill] sm:$0xff] }
 0x3f2   : > { %15244 = vmatprep.mubr.msk.bf16.mxu0 %vm197_vm1, %v8509_v7  ;;  %v11620_v22 = vrot.slane %v21171_v18, 1  ;;  %v21172_v7 = vld [vmem:[#allocation18_spill] sm:$0xff] }
 0x3f3   : > { %v8520_v39 = vrot.slane %v21172_v7, 1 }
 0x3f4   : > { %v20198_v36 = vsel %vm1287_vm4, %v11620_v22, %v20184_v0 }
 0x3f5   : > { %15545 = vmatmul.mubr.msk.bf16.gmra.mrb[60].mxu1 %vm197_vm1, %v11340_v27  ;;  %v20194_v27 = vrot.slane %v19795_v11, 1  ;;  %v8521_v15 = vsel %vm1287_vm4, %v8518_v13, %v8520_v39  ;;  %v21173_v13 = vld [vmem:[#allocation28_spill] sm:$0xff]  ;;  %v11633_v39 = vrot.slane %v20007_v8, 1  ;;  %v8537_v8 = vrot.slane %v19838_v9, 1 }
 0x3f6   : > { %15550 = vmatprep.mubr.msk.bf16.mxu1 %vm197_vm1, %v11612_v62  ;;  %v11623_v62 = vrot.slane %v19945_v58, 1  ;;  %v8527_v58 = vrot.slane %v19801_v51, 1 }
 0x3f8   : > { %v11624_v25 = vsel %vm1287_vm4, %v20184_v0, %v11623_v62  ;;  %v20235_v48 = vsel %vm1287_vm4, %v8527_v58, %v20221_v45  ;;  %v8535_v62 = vrot.slane %v20024_v4, 1  ;;  %v21177_v4 = vld [vmem:[#allocation7_spill] sm:$0xff] }
 0x3f9   : > { %15245 = vmatmul.mubr.msk.bf16.vlgmr.msra.gmra.mrb[32].mxu0 %vm197_vm1, %v8511_v43  ;;  %v20207_v43 = vsel %vm1287_vm4, %v8522_v34, %v20194_v27  ;;  %v11635_v34 = vrot.slane %v19832_v61, 1 }
 0x3fa   : > { %15277 = vmatpush3.bf16.msra.mxu0 %v8907_v6  ;;  %15248 = vmatprep.mubr.msk.bf16.mxu0 %vm197_vm1, %v8514_v12  ;;  %v11625_v6 = vrot.slane %v19787_v31, 1  ;;  %v8525_v12 = vrot.slane %v19958_v53, 1  ;;  %v11628_v53 = vrot.slane %v19973_v63, 1  ;;  %v8532_v63 = vrot.slane %v19822_v5, 1 }
 0x3fb   : > { %16733 = vmatprep.subr.msk.bf16.mxu0 %vm902_vm0, %v20159_v21 }
 0x3fc   : > { %v20225_v1 = vsel %vm1287_vm4, %v11625_v6, %v20211_v2  ;;  %v11629_v42 = vsel %vm1287_vm4, %v20211_v2, %v11628_v53  ;;  %v11638_v53 = vrot.slane %v21177_v4, 1 }
 0x3fd   : > { %15551 = vmatmul.mubr.msk.bf16.vlgmr.msra.gmra.mrb[32].mxu1 %vm197_vm1, %v11614_v20  ;;  %v8526_v20 = vsel %vm1287_vm4, %v20194_v27, %v8525_v12  ;;  %v21175_v12 = vld [vmem:[#allocation15_spill] sm:$0xff] }
 0x3fe   : > { %15583 = vmatpush3.bf16.msra.mxu1 %v12010_v44  ;;  %15554 = vmatprep.mubr.msk.bf16.mxu1 %vm197_vm1, %v11617_v26  ;;  %v11630_v44 = vrot.slane %v21173_v13, 1  ;;  %v20239_v26 = vrot.slane %v19828_v57, 1 }
 0x3ff   : > { %16742 = vmatprep.subr.msk.bf16.mxu1 %vm902_vm0, %v20175_v17 }
 0x400   : > { %v20253_v22 = vsel %vm1287_vm4, %v11630_v44, %v20239_v26  ;;  %v11634_v6 = vsel %vm1287_vm4, %v20239_v26, %v11633_v39 }
 0x401   : > { %15249 = vmatmul.mubr.msk.bf16.gmra.mrb[36].mxu0 %vm197_vm1, %v8516_v50  ;;  %v21174_v50 = vld [vmem:[#allocation10_spill] sm:$0xff] }
 0x402   : > { %15252 = vmatprep.mubr.msk.bf16.mxu0 %vm197_vm1, %v8519_v23  ;;  %v8530_v40 = vrot.slane %v21174_v50, 1  ;;  %v20249_v23 = vrot.slane %v19834_v24, 1  ;;  %v21178_v50 = vld [vmem:[#allocation29_spill] sm:$0xff] }
 0x404   : > { %v8531_v7 = vsel %vm1287_vm4, %v20221_v45, %v8530_v40  ;;  %v11640_v40 = vrot.slane %v21178_v50, 1 }
 0x405   : > { %15555 = vmatmul.mubr.msk.bf16.gmra.mrb[36].mxu1 %vm197_vm1, %v11619_v54  ;;  %v20263_v54 = vsel %vm1287_vm4, %v8532_v63, %v20249_v23  ;;  %v21180_v63 = vld [vmem:[#allocation24_spill] sm:$0xff] }
 0x406   : > { %15558 = vmatprep.mubr.msk.bf16.mxu1 %vm197_vm1, %v20198_v36 }
 0x409   : > { %15253 = vmatmul.mubr.msk.bf16.gmra.mrb[40].mxu0 %vm197_vm1, %v8521_v15  ;;  %v20267_v15 = vrot.slane %v19844_v52, 1 }
 0x40a   : > { %15256 = vmatprep.mubr.msk.bf16.mxu0 %vm197_vm1, %v20207_v43 }
 0x40b   : > { %v20281_v58 = vsel %vm1287_vm4, %v11635_v34, %v20267_v15  ;;  %v11639_v39 = vsel %vm1287_vm4, %v20267_v15, %v11638_v53  ;;  %v8542_v34 = vrot.slane %v19855_v33, 1  ;;  %v11645_v53 = vrot.slane %v19870_v16, 1 }
 0x40d   : > { %15559 = vmatmul.mubr.msk.bf16.gmra.mrb[40].mxu1 %vm197_vm1, %v11624_v25  ;;  %v20277_v25 = vrot.slane %v21175_v12, 1 }
 0x40e   : > { %15562 = vmatprep.mubr.msk.bf16.mxu1 %vm197_vm1, %v20225_v1 }
 0x40f   : > { %21176 = vst [vmem:[#allocation17_spill] sm:$0xff] %v20277_v25  ;;  %v20291_v44 = vsel %vm1287_vm4, %v8537_v8, %v20277_v25 }
 0x411   : > { %15257 = vmatmul.mubr.msk.bf16.gmra.mrb[44].mxu0 %vm197_vm1, %v8526_v20  ;;  %v8536_v20 = vsel %vm1287_vm4, %v20249_v23, %v8535_v62  ;;  %v20305_v62 = vrot.slane %v19875_v3, 1 }
 0x412   : > { %15260 = vmatprep.mubr.msk.bf16.mxu0 %vm197_vm1, %v20235_v48 }
 0x413   : > { %21181 = vst [vmem:[#allocation16_spill] sm:$0xff] %v20305_v62  ;;  %v20319_v4 = vsel %vm1287_vm4, %v8542_v34, %v20305_v62 }
 0x414   : > { %21183 = vst [vmem:[#allocation18_spill] sm:$0xff] %v20319_v4 }
 0x415   : > { %15563 = vmatmul.mubr.msk.bf16.gmra.mrb[44].mxu1 %vm197_vm1, %v11629_v42  ;;  %v20295_v42 = vrot.slane %v19866_v46, 1 }
 0x416   : > { %15566 = vmatprep.mubr.msk.bf16.mxu1 %vm197_vm1, %v20253_v22 }
 0x417   : > { %21179 = vst [vmem:[#allocation26_spill] sm:$0xff] %v20295_v42 }
 0x419   : > { %15261 = vmatmul.mubr.msk.bf16.gmra.mrb[48].mxu0 %vm197_vm1, %v8531_v7  ;;  %v8540_v7 = vrot.slane %v21180_v63, 1  ;;  %v20323_v63 = vrot.slane %v19893_v55, 1 }
 0x41a   : > { %15264 = vmatprep.mubr.msk.bf16.mxu0 %vm197_vm1, %v20263_v54 }
 0x41b   : > { %v8541_v8 = vsel %vm1287_vm4, %v20277_v25, %v8540_v7  ;;  %v20333_v34 = vsel %vm1287_vm4, %v11645_v53, %v20323_v63  ;;  %v8795_v53 = vld [vmem:[#allocation2 + $0x2e0] sm:$0xff]  ;;  %v11899_v25 = vld [vmem:[#allocation2 + $0x428] sm:$0xff] }
 0x41c   : > { %21184 = vst [vmem:[#allocation28_spill] sm:$0xff] %v20333_v34 }
 0x41d   : > { %15567 = vmatmul.mubr.msk.bf16.gmra.mrb[48].mxu1 %vm197_vm1, %v11634_v6  ;;  %v20309_v6 = vsel %vm1287_vm4, %v11640_v40, %v20295_v42  ;;  %v8545_v40 = vrot.slane %v20092_v10, 1  ;;  %v11648_v10 = vrot.slane %v20113_v35, 1 }
 0x41e   : > { %15570 = vmatprep.mubr.msk.bf16.mxu1 %vm197_vm1, %v20281_v58  ;;  %21182 = vst [vmem:[#allocation27_spill] sm:$0xff] %v20309_v6 }
 0x421   : > { %15265 = vmatmul.mubr.msk.bf16.gmra.mrb[52].mxu0 %vm197_vm1, %v8536_v20  ;;  %v11643_v20 = vrot.slane %v20075_v47, 1  ;;  %v8793_v47 = vld [vmem:[#allocation2 + $0x2d0] sm:$0xff] }
 0x422   : > { %15268 = vmatprep.mubr.msk.bf16.mxu0 %vm197_vm1, %v20291_v44 }
 0x423   : > { %v11644_v7 = vsel %vm1287_vm4, %v20295_v42, %v11643_v20  ;;  %v11897_v20 = vld [vmem:[#allocation2 + $0x418] sm:$0xff]  ;;  %v8796_v42 = vld [vmem:[#allocation2 + $0x2e8] sm:$0xff] }
 0x425   : > { %15571 = vmatmul.mubr.msk.bf16.gmra.mrb[52].mxu1 %vm197_vm1, %v11639_v39  ;;  %v8794_v39 = vld [vmem:[#allocation2 + $0x2d8] sm:$0xff] }
 0x426   : > { %15574 = vmatprep.mubr.msk.bf16.mxu1 %vm197_vm1, %v20309_v6  ;;  %v8546_v6 = vsel %vm1287_vm4, %v20305_v62, %v8545_v40  ;;  %v20350_v62 = vpack.c.bf16 %v8796_v42, %v8795_v53 }
 0x429   : > { %15269 = vmatmul.mubr.msk.bf16.gmra.mrb[56].mxu0 %vm197_vm1, %v8541_v8  ;;  %v20338_v8 = vpack.c.bf16 %v8794_v39, %v8793_v47  ;;  %v8798_v47 = vld [vmem:[#allocation2 + $0x2f8] sm:$0xff]  ;;  %v8799_v39 = vld [vmem:[#allocation2 + $0x300] sm:$0xff] }
 0x42a   : > { %15272 = vmatprep.mubr.msk.bf16.mxu0 %vm197_vm1, %v20319_v4  ;;  %v11896_v4 = vld [vmem:[#allocation2 + $0x410] sm:$0xff]  ;;  %v20353_v35 = vpack.c.bf16 %v8799_v39, %v8798_v47  ;;  %v9112_v39 = vshrl.u32 %v20350_v62, 16 }
 0x42b   : > { %v20348_v40 = vpack.c.bf16 %v11897_v20, %v11896_v4  ;;  %v20362_v4 = vld [vmem:[%s20950_s1 + $0x20] sm:$0xf]  ;;  %v8801_v20 = vld [vmem:[#allocation2 + $0x310] sm:$0xff] }
 0x42d   : > { %15575 = vmatmul.mubr.msk.bf16.gmra.mrb[56].mxu1 %vm197_vm1, %v11644_v7  ;;  %v11649_v7 = vsel %vm1287_vm4, %v20323_v63, %v11648_v10  ;;  %v8800_v10 = vld [vmem:[#allocation2 + $0x308] sm:$0xff] }
 0x42e   : > { %15578 = vmatprep.mubr.msk.bf16.mxu1 %vm197_vm1, %v20333_v34  ;;  %v11898_v34 = vld [vmem:[#allocation2 + $0x420] sm:$0xff]  ;;  %v20374_v53 = vpack.c.bf16 %v8801_v20, %v8800_v10 }
 0x42f   : > { %v20366_v42 = vpack.c.bf16 %v11899_v25, %v11898_v34  ;;  %v11933_v34 = vld [vmem:[#allocation2 + $0x538] sm:$0xff]  ;;  %v11934_v10 = vld [vmem:[#allocation2 + $0x540] sm:$0xff] }
 0x431   : > { %15273 = vmatmul.mubr.msk.bf16.gmra.mrb[60].mxu0 %vm197_vm1, %v8546_v6  ;;  %v9296_v6 = vsel %vm902_vm0, %v20159_v21, 0  ;;  %v12399_v21 = vsel %vm902_vm0, %v20175_v17, 0  ;;  %v12211_v25 = vshll.u32 %v20366_v42, 16 }
 0x432   : > { %15278 = vmatprep.mubr.msk.bf16.mxu0 %vm197_vm1, %v20338_v8 }
 0x435   : > { %15579 = vmatmul.mubr.msk.bf16.gmra.mrb[60].mxu1 %vm197_vm1, %v11649_v7  ;;  %v20379_v7 = vld [vmem:[%s20950_s1 + $0x20] sm:$0xf] }
 0x436   : > { %15584 = vmatprep.mubr.msk.bf16.mxu1 %vm197_vm1, %v20348_v40 }
 0x439   : > { %15279 = vmatmul.mubr.msk.bf16.vlgmr.msra.gmra.mrb[32].mxu0 %vm197_vm1, %v20350_v62 }
 0x43a   : > { %15311 = vmatpush3.bf16.msra.mxu0 %v9296_v6  ;;  %15282 = vmatprep.mubr.msk.bf16.mxu0 %vm197_vm1, %v20353_v35 }
 0x43b   : > { %16734 = vmatprep.subr.msk.bf16.mxu0 %vm902_vm0, %v20362_v4 }
 0x43d   : > { %15585 = vmatmul.mubr.msk.bf16.vlgmr.msra.gmra.mrb[32].mxu1 %vm197_vm1, %v20366_v42 }
 0x43e   : > { %15617 = vmatpush3.bf16.msra.mxu1 %v12399_v21  ;;  %15588 = vmatprep.mubr.msk.bf16.mxu1 %vm197_vm1, %v21171_v18  ;;  %v9120_v21 = vshrl.u32 %v20353_v35, 16 }
 0x43f   : > { %16743 = vmatprep.subr.msk.bf16.mxu1 %vm902_vm0, %v20379_v7 }
 0x441   : > { %15283 = vmatmul.mubr.msk.bf16.gmra.mrb[36].mxu0 %vm197_vm1, %v20374_v53 }
 0x442   : > { %15286 = vmatprep.mubr.msk.bf16.mxu0 %vm197_vm1, %v19763_v30  ;;  %v9104_v30 = vshll.u32 %v20338_v8, 16 }
 0x445   : > { %15589 = vmatmul.mubr.msk.bf16.gmra.mrb[36].mxu1 %vm197_vm1, %v19780_v49  ;;  %v8828_v49 = vld [vmem:[#allocation2 + $0x3e8] sm:$0xff] }
 0x446   : > { %15592 = vmatprep.mubr.msk.bf16.mxu1 %vm197_vm1, %v19787_v31  ;;  %v8829_v31 = vld [vmem:[#allocation2 + $0x3f0] sm:$0xff] }
 0x449   : > { %15287 = vmatmul.mubr.msk.bf16.gmra.mrb[40].mxu0 %vm197_vm1, %v19795_v11  ;;  %v20426_v11 = vpack.c.bf16 %v8829_v31, %v8828_v49  ;;  %v9126_v49 = vshll.u32 %v20374_v53, 16  ;;  %v8802_v31 = vld [vmem:[#allocation2 + $0x318] sm:$0x3] }
 0x44a   : > { %15290 = vmatprep.mubr.msk.bf16.mxu0 %vm197_vm1, %v19801_v51  ;;  %v9102_v51 = vshrl.u32 %v20338_v8, 16 }
 0x44d   : > { %15593 = vmatmul.mubr.msk.bf16.gmra.mrb[40].mxu1 %vm197_vm1, %v19811_v32  ;;  %v9106_v32 = vrot.slane %v9104_v30, 1 }
 0x44e   : > { %15596 = vmatprep.mubr.msk.bf16.mxu1 %vm197_vm1, %v21173_v13  ;;  %v12205_v13 = vshrl.u32 %v20348_v40, 16 }
 0x451   : > { %15291 = vmatmul.mubr.msk.bf16.gmra.mrb[44].mxu0 %vm197_vm1, %v19818_v60  ;;  %v9108_v60 = vshll.u32 %v20350_v62, 16 }
 0x452   : > { %15294 = vmatprep.mubr.msk.bf16.mxu0 %vm197_vm1, %v19822_v5  ;;  %v8797_v5 = vld [vmem:[#allocation2 + $0x2f0] sm:$0x3] }
 0x453   : > { %v20437_v17 = vpack.c.bf16 %v8797_v5, %v8797_v5 }
 0x455   : > { %15597 = vmatmul.mubr.msk.bf16.gmra.mrb[44].mxu1 %vm197_vm1, %v19828_v57  ;;  %v11931_v57 = vld [vmem:[#allocation2 + $0x528] sm:$0xff]  ;;  %v9116_v6 = vshll.u32 %v20437_v17, 16 }
 0x456   : > { %15600 = vmatprep.mubr.msk.bf16.mxu1 %vm197_vm1, %v19832_v61  ;;  %v11932_v61 = vld [vmem:[#allocation2 + $0x530] sm:$0xff] }
 0x457   : > { %v20439_v18 = vpack.c.bf16 %v11932_v61, %v11931_v57  ;;  %v9118_v5 = vrot.slane %v9116_v6, 1  ;;  %v20462_v57 = vpack.c.bf16 %v8802_v31, %v8802_v31  ;;  %v12215_v61 = vshrl.u32 %v20366_v42, 16  ;;  %v8807_v6 = vld [vmem:[#allocation2 + $0x340] sm:$0x3] }
 0x458   : > { %v12708_v31 = vsel %vm902_vm0, %v20379_v7, 0 }
 0x459   : > { %15295 = vmatmul.mubr.msk.bf16.gmra.mrb[48].mxu0 %vm197_vm1, %v19834_v24  ;;  %v12207_v24 = vshll.u32 %v20348_v40, 16 }
 0x45a   : > { %15298 = vmatprep.mubr.msk.bf16.mxu0 %vm197_vm1, %v19838_v9  ;;  %v8830_v9 = vld [vmem:[#allocation2 + $0x3f8] sm:$0xff] }
 0x45d   : > { %15601 = vmatmul.mubr.msk.bf16.gmra.mrb[48].mxu1 %vm197_vm1, %v19844_v52  ;;  %v8831_v52 = vld [vmem:[#allocation2 + $0x400] sm:$0xff] }
 0x45e   : > { %15604 = vmatprep.mubr.msk.bf16.mxu1 %vm197_vm1, %v21178_v50  ;;  %v11900_v50 = vld [vmem:[#allocation2 + $0x430] sm:$0x3] }
 0x45f   : > { %v20453_v20 = vpack.c.bf16 %v11900_v50, %v11900_v50 }
 0x461   : > { %15299 = vmatmul.mubr.msk.bf16.gmra.mrb[52].mxu0 %vm197_vm1, %v21175_v12  ;;  %v12209_v12 = vrot.slane %v12207_v24, 1  ;;  %v12219_v24 = vshll.u32 %v20453_v20, 16 }
 0x462   : > { %15302 = vmatprep.mubr.msk.bf16.mxu0 %vm197_vm1, %v19855_v33  ;;  %v9107_v33 = vor.u32 %v9106_v32, %v9102_v51  ;;  %v12213_v51 = vrot.slane %v12211_v25, 1  ;;  %v20459_v32 = vpack.c.bf16 %v11934_v10, %v11933_v34  ;;  %v9134_v25 = vshll.u32 %v20462_v57, 16 }
 0x463   : > { %v12221_v34 = vrot.slane %v12219_v24, 1 }
 0x464   : > { %v12217_v50 = vor.u32 %v12215_v61, %v12213_v51 }
 0x465   : > { %15605 = vmatmul.mubr.msk.bf16.gmra.mrb[52].mxu1 %vm197_vm1, %v19866_v46  ;;  %v9110_v46 = vrot.slane %v9108_v60, 1 }
 0x466   : > { %15608 = vmatprep.mubr.msk.bf16.mxu1 %vm197_vm1, %v19870_v16  ;;  %v9122_v16 = vshll.u32 %v20353_v35, 16 }
 0x467   : > { %v9111_v47 = vsel %vm691_vm3, %v9107_v33, %v9110_v46  ;;  %v9114_v60 = vor.u32 %v9112_v39, %v9110_v46  ;;  %v9605_v46 = vsel %vm902_vm0, %v20362_v4, 0  ;;  %v9136_v4 = vrot.slane %v9134_v25, 1  ;;  %v21188_v25 = vld [vmem:[#allocation6_spill] sm:$0xff] }
 0x468   : > { %v9124_v30 = vrot.slane %v9122_v16, 1  ;;  %v11905_v16 = vld [vmem:[#allocation2 + $0x458] sm:$0x3] }
 0x469   : > { %15303 = vmatmul.mubr.msk.bf16.gmra.mrb[56].mxu0 %vm197_vm1, %v19875_v3  ;;  %v20444_v3 = vpack.c.bf16 %v8831_v52, %v8830_v9  ;;  %v9128_v52 = vrot.slane %v9126_v49, 1  ;;  %v20476_v39 = vpack.c.bf16 %v11905_v16, %v11905_v16  ;;  %v21187_v16 = vld [vmem:[#allocation22_spill] sm:$0xff] }
 0x46a   : > { %15306 = vmatprep.mubr.msk.bf16.mxu0 %vm197_vm1, %v20426_v11  ;;  %v9125_v9 = vor.u32 %v9124_v30, %v9120_v21  ;;  %v20480_v21 = vpack.c.bf16 %v8807_v6, %v8807_v6  ;;  %v12222_v30 = vsel %vm691_vm3, %v12217_v50, %v12221_v34 }
 0x46b   : > { %v12237_v49 = vshll.u32 %v20476_v39, 16 }
 0x46d   : > { %15609 = vmatmul.mubr.msk.bf16.gmra.mrb[56].mxu1 %vm197_vm1, %v19893_v55  ;;  %v12210_v55 = vor.u32 %v12209_v12, %v12205_v13  ;;  %v9119_v13 = vsel %vm691_vm3, %v9114_v60, %v9118_v5  ;;  %v9130_v12 = vshrl.u32 %v20374_v53, 16  ;;  %v9152_v60 = vshll.u32 %v20480_v21, 16  ;;  %v21185_v5 = vld [vmem:[#allocation11_spill] sm:$0xff] }
 0x46e   : > { %15612 = vmatprep.mubr.msk.bf16.mxu1 %vm197_vm1, %v20439_v18  ;;  %v12239_v61 = vrot.slane %v12237_v49, 1 }
 0x46f   : > { %v12214_v33 = vsel %vm691_vm3, %v12210_v55, %v12213_v51  ;;  %v9132_v10 = vor.u32 %v9130_v12, %v9128_v52  ;;  %v11910_v55 = vld [vmem:[#allocation2 + $0x480] sm:$0x3]  ;;  %v9154_v7 = vrot.slane %v9152_v60, 1  ;;  %v11915_v12 = vld [vmem:[#allocation2 + $0x4a8] sm:$0x3] }
 0x470   : > { %v20491_v24 = vpack.c.bf16 %v11910_v55, %v11910_v55  ;;  %v21191_v55 = vld [vmem:[#allocation13_spill] sm:$0xff] }
 0x471   : > { %15307 = vmatmul.mubr.msk.bf16.gmra.mrb[60].mxu0 %vm197_vm1, %v20444_v3  ;;  %v9137_v51 = vsel %vm691_vm3, %v9132_v10, %v9136_v4  ;;  %v9155_v50 = vsel %vm691_vm3, %v21188_v25, %v9154_v7  ;;  %v20507_v10 = vpack.c.bf16 %v11915_v12, %v11915_v12  ;;  %v8817_v4 = vld [vmem:[#allocation2 + $0x390] sm:$0x3]  ;;  %v21193_v7 = vld [vmem:[#allocation23_spill] sm:$0xff]  ;;  %v21194_v12 = vld [vmem:[#allocation9_spill] sm:$0xff] }
 0x472   : > { %15312 = vmatprep.mubr.msk.bf16.mxu0 %vm197_vm1, %v9111_v47  ;;  %v9129_v47 = vsel %vm691_vm3, %v9125_v9, %v9128_v52  ;;  %v8812_v9 = vld [vmem:[#allocation2 + $0x368] sm:$0x3]  ;;  %v21186_v52 = vld [vmem:[#allocation19_spill] sm:$0xff] }
 0x473   : > { %v12273_v60 = vshll.u32 %v20507_v10, 16 }
 0x475   : > { %15613 = vmatmul.mubr.msk.bf16.gmra.mrb[60].mxu1 %vm197_vm1, %v20459_v32 }
 0x476   : > { %15618 = vmatprep.mubr.msk.bf16.mxu1 %vm197_vm1, %v12214_v33  ;;  %v20496_v33 = vpack.c.bf16 %v8812_v9, %v8812_v9 }
 0x478   : > { %v9170_v34 = vshll.u32 %v20496_v33, 16 }
 0x479   : > { %15313 = vmatmul.mubr.msk.bf16.vlgmr.msra.gmra.mrb[32].mxu0 %vm197_vm1, %v9119_v13  ;;  %v12240_v13 = vsel %vm691_vm3, %v21187_v16, %v12239_v61  ;;  %v21192_v61 = vld [vmem:[#allocation20_spill] sm:$0xff]  ;;  %v12275_v16 = vrot.slane %v12273_v60, 1 }
 0x47a   : > { %15345 = vmatpush3.bf16.msra.mxu0 %v9605_v46  ;;  %15316 = vmatprep.mubr.msk.bf16.mxu0 %vm197_vm1, %v9129_v47  ;;  %v12255_v46 = vshll.u32 %v20491_v24, 16  ;;  %v21189_v47 = vld [vmem:[#allocation8_spill] sm:$0xff]  ;;  %v9172_v49 = vrot.slane %v9170_v34, 1  ;;  %v21195_v34 = vld [vmem:[#allocation14_spill] sm:$0xff] }
 0x47c   : > { %v12257_v6 = vrot.slane %v12255_v46, 1  ;;  %v9173_v9 = vsel %vm691_vm3, %v21192_v61, %v9172_v49  ;;  %v8822_v46 = vld [vmem:[#allocation2 + $0x3b8] sm:$0x3]  ;;  %v21197_v61 = vld [vmem:[#allocation21_spill] sm:$0xff] }
 0x47d   : > { %15619 = vmatmul.mubr.msk.bf16.vlgmr.msra.gmra.mrb[32].mxu1 %vm197_vm1, %v12222_v30  ;;  %v21190_v30 = vld [vmem:[#allocation25_spill] sm:$0xff] }
 0x47e   : > { %15651 = vmatpush3.bf16.msra.mxu1 %v12708_v31  ;;  %15622 = vmatprep.mubr.msk.bf16.mxu1 %vm197_vm1, %v21185_v5  ;;  %v20512_v31 = vpack.c.bf16 %v8817_v4, %v8817_v4  ;;  %v11920_v5 = vld [vmem:[#allocation2 + $0x4d0] sm:$0x3]  ;;  %v11925_v4 = vld [vmem:[#allocation2 + $0x4f8] sm:$0x3] }
 0x47f   : > { %v20539_v60 = vpack.c.bf16 %v11925_v4, %v11925_v4  ;;  %v9234_v4 = vshll.u32 %v20444_v3, 16 }
 0x481   : > { %15317 = vmatmul.mubr.msk.bf16.gmra.mrb[36].mxu0 %vm197_vm1, %v9137_v51  ;;  %v12258_v51 = vsel %vm691_vm3, %v21191_v55, %v12257_v6  ;;  %v21196_v55 = vld [vmem:[#allocation12_spill] sm:$0xff] }
 0x482   : > { %15320 = vmatprep.mubr.msk.bf16.mxu0 %vm197_vm1, %v21186_v52  ;;  %v9188_v52 = vshll.u32 %v20512_v31, 16 }
 0x484   : > { %v9190_v25 = vrot.slane %v9188_v52, 1 }
 0x485   : > { %15623 = vmatmul.mubr.msk.bf16.gmra.mrb[36].mxu1 %vm197_vm1, %v12240_v13  ;;  %v20523_v13 = vpack.c.bf16 %v11920_v5, %v11920_v5  ;;  %v8827_v5 = vld [vmem:[#allocation2 + $0x3e0] sm:$0x3] }
 0x486   : > { %15626 = vmatprep.mubr.msk.bf16.mxu1 %vm197_vm1, %v21189_v47  ;;  %v12276_v47 = vsel %vm691_vm3, %v21195_v34, %v12275_v16  ;;  %v20544_v52 = vpack.c.bf16 %v8827_v5, %v8827_v5  ;;  %v11930_v16 = vld [vmem:[#allocation2 + $0x520] sm:$0x3] }
 0x487   : > { %v12291_v6 = vshll.u32 %v20523_v13, 16  ;;  %v20554_v34 = vpack.c.bf16 %v11930_v16, %v11930_v16  ;;  %v11935_v16 = vld [vmem:[#allocation2 + $0x548] sm:$0x3] }
 0x489   : > { %15321 = vmatmul.mubr.msk.bf16.gmra.mrb[40].mxu0 %vm197_vm1, %v9155_v50  ;;  %v20528_v50 = vpack.c.bf16 %v8822_v46, %v8822_v46  ;;  %v9230_v46 = vshll.u32 %v20426_v11, 16 }
 0x48a   : > { %15324 = vmatprep.mubr.msk.bf16.mxu0 %vm197_vm1, %v21190_v30  ;;  %v9191_v30 = vsel %vm691_vm3, %v20056_v28, %v9190_v25  ;;  %v9224_v25 = vshll.u32 %v20544_v52, 16 }
 0x48b   : > { %v9206_v49 = vshll.u32 %v20528_v50, 16 }
 0x48d   : > { %15627 = vmatmul.mubr.msk.bf16.gmra.mrb[40].mxu1 %vm197_vm1, %v12258_v51  ;;  %v12293_v51 = vrot.slane %v12291_v6, 1  ;;  %v9232_v6 = vrot.slane %v9230_v46, 1 }
 0x48e   : > { %15630 = vmatprep.mubr.msk.bf16.mxu1 %vm197_vm1, %v21193_v7  ;;  %v12309_v7 = vshll.u32 %v20539_v60, 16 }
 0x48f   : > { %v12294_v28 = vsel %vm691_vm3, %v20073_v56, %v12293_v51  ;;  %v9228_v56 = vshrl.u32 %v20426_v11, 16 }
 0x491   : > { %15325 = vmatmul.mubr.msk.bf16.gmra.mrb[44].mxu0 %vm197_vm1, %v9173_v9  ;;  %v9208_v9 = vrot.slane %v9206_v49, 1  ;;  %v12333_v49 = vshll.u32 %v20439_v18, 16  ;;  %v9233_v5 = vor.u32 %v9232_v6, %v9228_v56 }
 0x492   : > { %15328 = vmatprep.mubr.msk.bf16.mxu0 %vm197_vm1, %v21194_v12 }
 0x493   : > { %v9209_v12 = vsel %vm691_vm3, %v20086_v19, %v9208_v9  ;;  %v9226_v19 = vrot.slane %v9224_v25, 1  ;;  %v12331_v9 = vshrl.u32 %v20439_v18, 16 }
 0x495   : > { %15631 = vmatmul.mubr.msk.bf16.gmra.mrb[44].mxu1 %vm197_vm1, %v12276_v47  ;;  %v12311_v47 = vrot.slane %v12309_v7, 1  ;;  %v12337_v7 = vshll.u32 %v20459_v32, 16 }
 0x496   : > { %15634 = vmatprep.mubr.msk.bf16.mxu1 %vm197_vm1, %v21196_v55  ;;  %v12327_v55 = vshll.u32 %v20554_v34, 16 }
 0x497   : > { %v12339_v6 = vrot.slane %v12337_v7, 1  ;;  %v12619_v7 = vrot.slane %v20366_v42, 1  ;;  %v12621_v42 = vrot.slane %v20453_v20, 1  ;;  %v9528_v20 = vrot.slane %v20480_v21, 1  ;;  %v21199_v21 = vld [vmem:[#allocation27_spill] sm:$0xff] }
 0x498   : > { %v12329_v46 = vrot.slane %v12327_v55, 1  ;;  %v9516_v55 = vrot.slane %v20350_v62, 1  ;;  %v9518_v62 = vrot.slane %v20437_v17, 1 }
 0x499   : > { %15329 = vmatmul.mubr.msk.bf16.gmra.mrb[48].mxu0 %vm197_vm1, %v9191_v30  ;;  %v8832_v30 = vld [vmem:[#allocation2 + $0x408] sm:$0x3] }
 0x49a   : > { %15332 = vmatprep.mubr.msk.bf16.mxu0 %vm197_vm1, %v21197_v61  ;;  %v20565_v51 = vpack.c.bf16 %v8832_v30, %v8832_v30  ;;  %v9236_v61 = vrot.slane %v9234_v4, 1  ;;  %v12330_v4 = vsel %vm691_vm3, %v20134_v37, %v12329_v46 }
 0x49c   : > { %v9242_v25 = vshll.u32 %v20565_v51, 16 }
 0x49d   : > { %15635 = vmatmul.mubr.msk.bf16.gmra.mrb[48].mxu1 %vm197_vm1, %v12294_v28  ;;  %v12335_v28 = vrot.slane %v12333_v49, 1  ;;  %v12341_v49 = vshrl.u32 %v20459_v32, 16 }
 0x49e   : > { %15638 = vmatprep.mubr.msk.bf16.mxu1 %vm197_vm1, %v20097_v59  ;;  %v12312_v59 = vsel %vm691_vm3, %v20104_v41, %v12311_v47  ;;  %v9237_v41 = vsel %vm691_vm3, %v9233_v5, %v9236_v61  ;;  %v20579_v47 = vpack.c.bf16 %v11935_v16, %v11935_v16  ;;  %v9244_v30 = vrot.slane %v9242_v25, 1 }
 0x49f   : > { %v12336_v56 = vor.u32 %v12335_v28, %v12331_v9  ;;  %v12343_v37 = vor.u32 %v12341_v49, %v12339_v6  ;;  %v12618_v28 = vrot.slane %v20348_v40, 1  ;;  %v9520_v16 = vrot.slane %v20353_v35, 1 }
 0x4a0   : > { %v9519_v40 = vsel %vm1287_vm4, %v9516_v55, %v9518_v62  ;;  %v9523_v35 = vrot.slane %v20462_v57, 1  ;;  %v12626_v25 = vrot.slane %v20476_v39, 1  ;;  %v21198_v39 = vld [vmem:[#allocation17_spill] sm:$0xff] }
 0x4a1   : > { %15333 = vmatmul.mubr.msk.bf16.gmra.mrb[52].mxu0 %vm197_vm1, %v9209_v12  ;;  %v9238_v12 = vshrl.u32 %v20444_v3, 16  ;;  %v12620_v46 = vsel %vm1287_vm4, %v12618_v28, %v12619_v7 }
 0x4a2   : > { %15336 = vmatprep.mubr.msk.bf16.mxu0 %vm197_vm1, %v20111_v14  ;;  %v9227_v14 = vsel %vm691_vm3, %v20120_v29, %v9226_v19  ;;  %v12345_v19 = vshll.u32 %v20579_v47, 16  ;;  %v12627_v57 = vsel %vm1287_vm4, %v20184_v0, %v12626_v25 }
 0x4a3   : > { %v9240_v29 = vor.u32 %v9238_v12, %v9236_v61 }
 0x4a4   : > { %v12347_v9 = vrot.slane %v12345_v19, 1 }
 0x4a5   : > { %15639 = vmatmul.mubr.msk.bf16.gmra.mrb[52].mxu1 %vm197_vm1, %v12312_v59  ;;  %v12340_v59 = vsel %vm691_vm3, %v12336_v56, %v12339_v6  ;;  %v9245_v5 = vsel %vm691_vm3, %v9240_v29, %v9244_v30  ;;  %v12651_v56 = vrot.slane %v20554_v34, 1  ;;  %v20703_v30 = vld [vmem:[%s20952_s3] ss:$0 sm:$0xff] }
 0x4a6   : > { %15642 = vmatprep.mubr.msk.bf16.mxu1 %vm197_vm1, %v20127_v38  ;;  %v9515_v38 = vrot.slane %v20338_v8, 1  ;;  %v12348_v8 = vsel %vm691_vm3, %v12343_v37, %v12347_v9 }
 0x4a8   : > { %v9517_v61 = vsel %vm1287_vm4, %v9515_v38, %v9516_v55 }
 0x4a9   : > { %15337 = vmatmul.mubr.msk.bf16.gmra.mrb[56].mxu0 %vm197_vm1, %v9227_v14  ;;  %v9521_v14 = vrot.slane %v20374_v53, 1  ;;  %v12622_v53 = vsel %vm1287_vm4, %v12619_v7, %v12621_v42 }
 0x4aa   : > { %15340 = vmatprep.mubr.msk.bf16.mxu0 %vm197_vm1, %v9237_v41  ;;  %v9529_v41 = vsel %vm1287_vm4, %v20194_v27, %v9528_v20 }
 0x4ab   : > { %v9522_v12 = vsel %vm1287_vm4, %v9520_v16, %v9521_v14  ;;  %v9524_v17 = vsel %vm1287_vm4, %v9521_v14, %v9523_v35 }
 0x4ad   : > { %15643 = vmatmul.mubr.msk.bf16.gmra.mrb[56].mxu1 %vm197_vm1, %v12330_v4  ;;  %v12654_v4 = vrot.slane %v20459_v32, 1 }
 0x4ae   : > { %15646 = vmatprep.mubr.msk.bf16.mxu1 %vm197_vm1, %v12340_v59 }
 0x4b1   : > { %15341 = vmatmul.mubr.msk.bf16.gmra.mrb[60].mxu0 %vm197_vm1, %v9245_v5 }
 0x4b2   : > { %15346 = vmatprep.mubr.msk.bf16.mxu0 %vm197_vm1, %v9517_v61 }
 0x4b5   : > { %15647 = vmatmul.mubr.msk.bf16.gmra.mrb[60].mxu1 %vm197_vm1, %v12348_v8 }
 0x4b6   : > { %15652 = vmatprep.mubr.msk.bf16.mxu1 %vm197_vm1, %v12620_v46 }
 0x4b9   : > { %15347 = vmatmul.mubr.msk.bf16.vlgmr.msra.gmra.mrb[32].mxu0 %vm197_vm1, %v9519_v40 }
 0x4ba   : > { %15350 = vmatprep.mubr.msk.bf16.mxu0 %vm197_vm1, %v9522_v12 }
 0x4bd   : > { %15653 = vmatmul.mubr.msk.bf16.vlgmr.msra.gmra.mrb[32].mxu1 %vm197_vm1, %v12622_v53 }
 0x4be   : > { %15656 = vmatprep.mubr.msk.bf16.mxu1 %vm197_vm1, %v20198_v36  ;;  %v12631_v36 = vrot.slane %v20491_v24, 1  ;;  %v21200_v24 = vld [vmem:[#allocation18_spill] sm:$0xff] }
 0x4c0   : > { %v12632_v0 = vsel %vm1287_vm4, %v20211_v2, %v12631_v36 }
 0x4c1   : > { %15351 = vmatmul.mubr.msk.bf16.gmra.mrb[36].mxu0 %vm197_vm1, %v9524_v17 }
 0x4c2   : > { %15354 = vmatprep.mubr.msk.bf16.mxu0 %vm197_vm1, %v20207_v43  ;;  %v9533_v43 = vrot.slane %v20496_v33, 1  ;;  %v21201_v33 = vld [vmem:[#allocation26_spill] sm:$0xff] }
 0x4c4   : > { %v9534_v27 = vsel %vm1287_vm4, %v20221_v45, %v9533_v43 }
 0x4c5   : > { %15657 = vmatmul.mubr.msk.bf16.gmra.mrb[36].mxu1 %vm197_vm1, %v12627_v57 }
 0x4c6   : > { %15660 = vmatprep.mubr.msk.bf16.mxu1 %vm197_vm1, %v20225_v1  ;;  %v12636_v1 = vrot.slane %v20507_v10, 1  ;;  %v9550_v10 = vrot.slane %v20426_v11, 1  ;;  %v9553_v11 = vrot.slane %v20565_v51, 1 }
 0x4c8   : > { %v12637_v2 = vsel %vm1287_vm4, %v20239_v26, %v12636_v1 }
 0x4c9   : > { %15355 = vmatmul.mubr.msk.bf16.gmra.mrb[40].mxu0 %vm197_vm1, %v9529_v41 }
 0x4ca   : > { %15358 = vmatprep.mubr.msk.bf16.mxu0 %vm197_vm1, %v20235_v48  ;;  %v9538_v48 = vrot.slane %v20512_v31, 1  ;;  %v9551_v31 = vrot.slane %v20444_v3, 1  ;;  %v12652_v3 = vsel %vm1287_vm4, %v20323_v63, %v12651_v56  ;;  %v20698_v63 = vld [vmem:[%s20951_s2] ss:$0 sm:$0xff] }
 0x4cc   : > { %v9539_v45 = vsel %vm1287_vm4, %v20249_v23, %v9538_v48  ;;  %v9552_v6 = vsel %vm1287_vm4, %v9550_v10, %v9551_v31  ;;  %v9554_v34 = vsel %vm1287_vm4, %v9551_v31, %v9553_v11 }
 0x4cd   : > { %15661 = vmatmul.mubr.msk.bf16.gmra.mrb[40].mxu1 %vm197_vm1, %v12632_v0 }
 0x4ce   : > { %15664 = vmatprep.mubr.msk.bf16.mxu1 %vm197_vm1, %v20253_v22  ;;  %v12641_v22 = vrot.slane %v20523_v13, 1  ;;  %v21202_v13 = vld [vmem:[#allocation16_spill] sm:$0xff] }
 0x4d0   : > { %v12642_v26 = vsel %vm1287_vm4, %v20267_v15, %v12641_v22 }
 0x4d1   : > { %15359 = vmatmul.mubr.msk.bf16.gmra.mrb[44].mxu0 %vm197_vm1, %v9534_v27 }
 0x4d2   : > { %15362 = vmatprep.mubr.msk.bf16.mxu0 %vm197_vm1, %v20263_v54  ;;  %v9543_v54 = vrot.slane %v20528_v50, 1 }
 0x4d4   : > { %v9544_v23 = vsel %vm1287_vm4, %v21198_v39, %v9543_v54 }
 0x4d5   : > { %15665 = vmatmul.mubr.msk.bf16.gmra.mrb[44].mxu1 %vm197_vm1, %v12637_v2 }
 0x4d6   : > { %15668 = vmatprep.mubr.msk.bf16.mxu1 %vm197_vm1, %v20281_v58  ;;  %v12646_v58 = vrot.slane %v20539_v60, 1  ;;  %v21203_v60 = vld [vmem:[#allocation28_spill] sm:$0xff] }
 0x4d8   : > { %v12647_v15 = vsel %vm1287_vm4, %v21201_v33, %v12646_v58 }
 0x4d9   : > { %15363 = vmatmul.mubr.msk.bf16.gmra.mrb[48].mxu0 %vm197_vm1, %v9539_v45 }
 0x4da   : > { %15366 = vmatprep.mubr.msk.bf16.mxu0 %vm197_vm1, %v20291_v44  ;;  %v9548_v44 = vrot.slane %v20544_v52, 1  ;;  %v12653_v52 = vrot.slane %v20439_v18, 1  ;;  %v12656_v18 = vrot.slane %v20579_v47, 1 }
 0x4dc   : > { %v9549_v50 = vsel %vm1287_vm4, %v21202_v13, %v9548_v44  ;;  %v12655_v29 = vsel %vm1287_vm4, %v12653_v52, %v12654_v4  ;;  %v12657_v32 = vsel %vm1287_vm4, %v12654_v4, %v12656_v18 }
 0x4dd   : > { %15669 = vmatmul.mubr.msk.bf16.gmra.mrb[48].mxu1 %vm197_vm1, %v12642_v26 }
 0x4de   : > { %15672 = vmatprep.mubr.msk.bf16.mxu1 %vm197_vm1, %v21199_v21 }
 0x4e1   : > { %15367 = vmatmul.mubr.msk.bf16.gmra.mrb[52].mxu0 %vm197_vm1, %v9544_v23 }
 0x4e2   : > { %15370 = vmatprep.mubr.msk.bf16.mxu0 %vm197_vm1, %v21200_v24 }
 0x4e5   : > { %15673 = vmatmul.mubr.msk.bf16.gmra.mrb[52].mxu1 %vm197_vm1, %v12647_v15 }
 0x4e6   : > { %15676 = vmatprep.mubr.msk.bf16.mxu1 %vm197_vm1, %v21203_v60 }
 0x4e9   : > { %15371 = vmatmul.mubr.msk.bf16.gmra.mrb[56].mxu0 %vm197_vm1, %v9549_v50 }
 0x4ea   : > { %15374 = vmatprep.mubr.msk.bf16.mxu0 %vm197_vm1, %v9552_v6 }
 0x4ed   : > { %15677 = vmatmul.mubr.msk.bf16.gmra.mrb[56].mxu1 %vm197_vm1, %v12652_v3 }
 0x4ee   : > { %15680 = vmatprep.mubr.msk.bf16.mxu1 %vm197_vm1, %v12655_v29 }
 0x4f1   : > { %15375 = vmatmul.mubr.msk.bf16.gmra.mrb[60].mxu0 %vm197_vm1, %v9554_v34 }
 0x4f5   : > { %15681 = vmatmul.mubr.msk.bf16.gmra.mrb[60].mxu1 %vm197_vm1, %v12657_v32 }
 0x58c   : > { %v15348_v51 = vpop.f32.mrb[32].mxu0 }
 0x58d   : > { %v9809_v49 = vmul.f32 %v15348_v51, %v20698_v63  ;;  %v9641_v47 = vpop.f32.mrb[33].mxu0 }
 0x58e   : > { %v9807_v19 = vmul.f32 %v20698_v63, %v9641_v47  ;;  %v15349_v38 = vpop.f32.mrb[34].mxu0 }
 0x58f   : > { %v9848_v55 = vadd.f32 %v20703_v30, %v9809_v49  ;;  %v9810_v59 = vmul.f32 %v15349_v38, %v20698_v63  ;;  %v9644_v5 = vpop.f32.mrb[35].mxu0 }
 0x590   : > { %v9846_v37 = vadd.f32 %v20703_v30, %v9807_v19  ;;  %v9808_v9 = vmul.f32 %v20698_v63, %v9644_v5  ;;  %v15654_v7 = vpop.f32.mrb[32].mxu1 }
 0x591   : > { %v9880_v61 = vmax.f32 %v9848_v55, 0.0  ;;  %v9849_v28 = vadd.f32 %v20703_v30, %v9810_v59  ;;  %v12912_v16 = vmul.f32 %v15654_v7, %v20698_v63  ;;  %v12744_v14 = vpop.f32.mrb[33].mxu1 }
 0x592   : > { %v9878_v62 = vmax.f32 %v9846_v37, 0.0  ;;  %v9847_v8 = vadd.f32 %v20703_v30, %v9808_v9  ;;  %v12910_v40 = vmul.f32 %v20698_v63, %v12744_v14  ;;  %v15655_v42 = vpop.f32.mrb[34].mxu1 }
 0x593   : > { %13625 = vst [vmem:[%s19484_s28 + $0x210] sm:$0xff] %v9880_v61  ;;  %v9881_v46 = vmax.f32 %v9849_v28, 0.0  ;;  %v12951_v35 = vadd.f32 %v20703_v30, %v12912_v16  ;;  %v12913_v17 = vmul.f32 %v15655_v42, %v20698_v63  ;;  %v12747_v25 = vpop.f32.mrb[35].mxu1 }
 0x594   : > { %13623 = vst [vmem:[%s19484_s28 + $0x200] sm:$0xff] %v9878_v62  ;;  %v9879_v12 = vmax.f32 %v9847_v8, 0.0  ;;  %v15352_v53 = vpop.f32.mrb[36].mxu0  ;;  %v12949_v20 = vadd.f32 %v20703_v30, %v12910_v40  ;;  %v12911_v36 = vmul.f32 %v20698_v63, %v12747_v25 }
 0x595   : > { %13626 = vst [vmem:[%s19484_s28 + $0x218] sm:$0xff] %v9881_v46  ;;  %v9813_v57 = vmul.f32 %v15352_v53, %v20698_v63  ;;  %v9657_v41 = vpop.f32.mrb[37].mxu0  ;;  %v12983_v43 = vmax.f32 %v12951_v35, 0.0  ;;  %v12952_v0 = vadd.f32 %v20703_v30, %v12913_v17 }
 0x596   : > { %13624 = vst [vmem:[%s19484_s28 + $0x208] sm:$0xff] %v9879_v12  ;;  %v9811_v27 = vmul.f32 %v20698_v63, %v9657_v41  ;;  %v15353_v1 = vpop.f32.mrb[38].mxu0  ;;  %v12981_v48 = vmax.f32 %v12949_v20, 0.0  ;;  %v12950_v45 = vadd.f32 %v20703_v30, %v12911_v36 }
 0x597   : > { %v9852_v2 = vadd.f32 %v20703_v30, %v9813_v57  ;;  %v9814_v22 = vmul.f32 %v15353_v1, %v20698_v63  ;;  %v9660_v54 = vpop.f32.mrb[39].mxu0  ;;  %13811 = vst [vmem:[%s19484_s28 + $0x310] sm:$0xff] %v12983_v43  ;;  %v12984_v26 = vmax.f32 %v12952_v0, 0.0 }
 0x598   : > { %v9850_v39 = vadd.f32 %v20703_v30, %v9811_v27  ;;  %v9812_v23 = vmul.f32 %v20698_v63, %v9660_v54  ;;  %13809 = vst [vmem:[%s19484_s28 + $0x300] sm:$0xff] %v12981_v48  ;;  %v12982_v58 = vmax.f32 %v12950_v45, 0.0  ;;  %v15658_v44 = vpop.f32.mrb[36].mxu1 }
 0x599   : > { %v9884_v21 = vmax.f32 %v9852_v2, 0.0  ;;  %v9853_v24 = vadd.f32 %v20703_v30, %v9814_v22  ;;  %13812 = vst [vmem:[%s19484_s28 + $0x318] sm:$0xff] %v12984_v26  ;;  %v12916_v10 = vmul.f32 %v15658_v44, %v20698_v63  ;;  %v12760_v31 = vpop.f32.mrb[37].mxu1 }
 0x59a   : > { %v9882_v33 = vmax.f32 %v9850_v39, 0.0  ;;  %v9851_v15 = vadd.f32 %v20703_v30, %v9812_v23  ;;  %13810 = vst [vmem:[%s19484_s28 + $0x308] sm:$0xff] %v12982_v58  ;;  %v12914_v50 = vmul.f32 %v20698_v63, %v12760_v31  ;;  %v15659_v60 = vpop.f32.mrb[38].mxu1 }
 0x59b   : > { %13629 = vst [vmem:[%s19484_s28 + $0x230] sm:$0xff] %v9884_v21  ;;  %v9885_v13 = vmax.f32 %v9853_v24, 0.0  ;;  %v12955_v6 = vadd.f32 %v20703_v30, %v12916_v10  ;;  %v12917_v4 = vmul.f32 %v15659_v60, %v20698_v63  ;;  %v12763_v11 = vpop.f32.mrb[39].mxu1 }
 0x59c   : > { %13627 = vst [vmem:[%s19484_s28 + $0x220] sm:$0xff] %v9882_v33  ;;  %v9883_v56 = vmax.f32 %v9851_v15, 0.0  ;;  %v15356_v52 = vpop.f32.mrb[40].mxu0  ;;  %v12953_v3 = vadd.f32 %v20703_v30, %v12914_v50  ;;  %v12915_v18 = vmul.f32 %v20698_v63, %v12763_v11 }
 0x59d   : > { %13630 = vst [vmem:[%s19484_s28 + $0x238] sm:$0xff] %v9885_v13  ;;  %v9817_v29 = vmul.f32 %v15356_v52, %v20698_v63  ;;  %v9673_v34 = vpop.f32.mrb[41].mxu0  ;;  %v12987_v32 = vmax.f32 %v12955_v6, 0.0  ;;  %v12956_v51 = vadd.f32 %v20703_v30, %v12917_v4 }
 0x59e   : > { %13628 = vst [vmem:[%s19484_s28 + $0x228] sm:$0xff] %v9883_v56  ;;  %v9815_v49 = vmul.f32 %v20698_v63, %v9673_v34  ;;  %v15357_v47 = vpop.f32.mrb[42].mxu0  ;;  %v12985_v19 = vmax.f32 %v12953_v3, 0.0  ;;  %v12954_v55 = vadd.f32 %v20703_v30, %v12915_v18 }
 0x59f   : > { %v9856_v38 = vadd.f32 %v20703_v30, %v9817_v29  ;;  %v9818_v59 = vmul.f32 %v15357_v47, %v20698_v63  ;;  %v9676_v5 = vpop.f32.mrb[43].mxu0  ;;  %13815 = vst [vmem:[%s19484_s28 + $0x330] sm:$0xff] %v12987_v32  ;;  %v12988_v37 = vmax.f32 %v12956_v51, 0.0 }
 0x5a0   : > { %v9854_v9 = vadd.f32 %v20703_v30, %v9815_v49  ;;  %v9816_v61 = vmul.f32 %v20698_v63, %v9676_v5  ;;  %13813 = vst [vmem:[%s19484_s28 + $0x320] sm:$0xff] %v12985_v19  ;;  %v12986_v7 = vmax.f32 %v12954_v55, 0.0  ;;  %v15662_v8 = vpop.f32.mrb[40].mxu1 }
 0x5a1   : > { %v9888_v28 = vmax.f32 %v9856_v38, 0.0  ;;  %v9857_v62 = vadd.f32 %v20703_v30, %v9818_v59  ;;  %13816 = vst [vmem:[%s19484_s28 + $0x338] sm:$0xff] %v12988_v37  ;;  %v12920_v46 = vmul.f32 %v15662_v8, %v20698_v63  ;;  %v12776_v40 = vpop.f32.mrb[41].mxu1 }
 0x5a2   : > { %v9886_v16 = vmax.f32 %v9854_v9, 0.0  ;;  %v9855_v14 = vadd.f32 %v20703_v30, %v9816_v61  ;;  %13814 = vst [vmem:[%s19484_s28 + $0x328] sm:$0xff] %v12986_v7  ;;  %v12918_v12 = vmul.f32 %v20698_v63, %v12776_v40  ;;  %v15663_v35 = vpop.f32.mrb[42].mxu1 }
 0x5a3   : > { %13633 = vst [vmem:[%s19484_s28 + $0x250] sm:$0xff] %v9888_v28  ;;  %v9889_v42 = vmax.f32 %v9857_v62, 0.0  ;;  %v12959_v17 = vadd.f32 %v20703_v30, %v12920_v46  ;;  %v12921_v20 = vmul.f32 %v15663_v35, %v20698_v63  ;;  %v12779_v57 = vpop.f32.mrb[43].mxu1 }
 0x5a4   : > { %13631 = vst [vmem:[%s19484_s28 + $0x240] sm:$0xff] %v9886_v16  ;;  %v9887_v53 = vmax.f32 %v9855_v14, 0.0  ;;  %v15360_v25 = vpop.f32.mrb[44].mxu0  ;;  %v12957_v41 = vadd.f32 %v20703_v30, %v12918_v12  ;;  %v12919_v0 = vmul.f32 %v20698_v63, %v12779_v57 }
 0x5a5   : > { %13634 = vst [vmem:[%s19484_s28 + $0x258] sm:$0xff] %v9889_v42  ;;  %v9821_v36 = vmul.f32 %v15360_v25, %v20698_v63  ;;  %v9689_v43 = vpop.f32.mrb[45].mxu0  ;;  %v12991_v27 = vmax.f32 %v12959_v17, 0.0  ;;  %v12960_v1 = vadd.f32 %v20703_v30, %v12921_v20 }
 0x5a6   : > { %13632 = vst [vmem:[%s19484_s28 + $0x248] sm:$0xff] %v9887_v53  ;;  %v9819_v48 = vmul.f32 %v20698_v63, %v9689_v43  ;;  %v15361_v2 = vpop.f32.mrb[46].mxu0  ;;  %v12989_v45 = vmax.f32 %v12957_v41, 0.0  ;;  %v12958_v54 = vadd.f32 %v20703_v30, %v12919_v0 }
 0x5a7   : > { %v9860_v22 = vadd.f32 %v20703_v30, %v9821_v36  ;;  %v9822_v26 = vmul.f32 %v15361_v2, %v20698_v63  ;;  %v9692_v39 = vpop.f32.mrb[47].mxu0  ;;  %13819 = vst [vmem:[%s19484_s28 + $0x350] sm:$0xff] %v12991_v27  ;;  %v12992_v23 = vmax.f32 %v12960_v1, 0.0 }
 0x5a8   : > { %v9858_v21 = vadd.f32 %v20703_v30, %v9819_v48  ;;  %v9820_v58 = vmul.f32 %v20698_v63, %v9692_v39  ;;  %13817 = vst [vmem:[%s19484_s28 + $0x340] sm:$0xff] %v12989_v45  ;;  %v12990_v44 = vmax.f32 %v12958_v54, 0.0  ;;  %v15666_v15 = vpop.f32.mrb[44].mxu1 }
 0x5a9   : > { %v9892_v24 = vmax.f32 %v9860_v22, 0.0  ;;  %v9861_v33 = vadd.f32 %v20703_v30, %v9822_v26  ;;  %13820 = vst [vmem:[%s19484_s28 + $0x358] sm:$0xff] %v12992_v23  ;;  %v12924_v13 = vmul.f32 %v15666_v15, %v20698_v63  ;;  %v12792_v50 = vpop.f32.mrb[45].mxu1 }
 0x5aa   : > { %v9890_v10 = vmax.f32 %v9858_v21, 0.0  ;;  %v9859_v31 = vadd.f32 %v20703_v30, %v9820_v58  ;;  %13818 = vst [vmem:[%s19484_s28 + $0x348] sm:$0xff] %v12990_v44  ;;  %v12922_v56 = vmul.f32 %v20698_v63, %v12792_v50  ;;  %v15667_v6 = vpop.f32.mrb[46].mxu1 }
 0x5ab   : > { %13637 = vst [vmem:[%s19484_s28 + $0x270] sm:$0xff] %v9892_v24  ;;  %v9893_v60 = vmax.f32 %v9861_v33, 0.0  ;;  %v12963_v4 = vadd.f32 %v20703_v30, %v12924_v13  ;;  %v12925_v3 = vmul.f32 %v15667_v6, %v20698_v63  ;;  %v12795_v29 = vpop.f32.mrb[47].mxu1 }
 0x5ac   : > { %13635 = vst [vmem:[%s19484_s28 + $0x260] sm:$0xff] %v9890_v10  ;;  %v9891_v52 = vmax.f32 %v9859_v31, 0.0  ;;  %v15364_v11 = vpop.f32.mrb[48].mxu0  ;;  %v12961_v34 = vadd.f32 %v20703_v30, %v12922_v56  ;;  %v12923_v51 = vmul.f32 %v20698_v63, %v12795_v29 }
 0x5ad   : > { %13638 = vst [vmem:[%s19484_s28 + $0x278] sm:$0xff] %v9893_v60  ;;  %v9825_v18 = vmul.f32 %v15364_v11, %v20698_v63  ;;  %v9705_v32 = vpop.f32.mrb[49].mxu0  ;;  %v12995_v49 = vmax.f32 %v12963_v4, 0.0  ;;  %v12964_v47 = vadd.f32 %v20703_v30, %v12925_v3 }
 0x5ae   : > { %13636 = vst [vmem:[%s19484_s28 + $0x268] sm:$0xff] %v9891_v52  ;;  %v9823_v19 = vmul.f32 %v20698_v63, %v9705_v32  ;;  %v15365_v38 = vpop.f32.mrb[50].mxu0  ;;  %v12993_v55 = vmax.f32 %v12961_v34, 0.0  ;;  %v12962_v5 = vadd.f32 %v20703_v30, %v12923_v51 }
 0x5af   : > { %v9864_v59 = vadd.f32 %v20703_v30, %v9825_v18  ;;  %v9826_v37 = vmul.f32 %v15365_v38, %v20698_v63  ;;  %v9708_v9 = vpop.f32.mrb[51].mxu0  ;;  %13823 = vst [vmem:[%s19484_s28 + $0x370] sm:$0xff] %v12995_v49  ;;  %v12996_v61 = vmax.f32 %v12964_v47, 0.0 }
 0x5b0   : > { %v9862_v28 = vadd.f32 %v20703_v30, %v9823_v19  ;;  %v9824_v7 = vmul.f32 %v20698_v63, %v9708_v9  ;;  %13821 = vst [vmem:[%s19484_s28 + $0x360] sm:$0xff] %v12993_v55  ;;  %v12994_v8 = vmax.f32 %v12962_v5, 0.0  ;;  %v15670_v14 = vpop.f32.mrb[48].mxu1 }
 0x5b1   : > { %v9896_v62 = vmax.f32 %v9864_v59, 0.0  ;;  %v9865_v16 = vadd.f32 %v20703_v30, %v9826_v37  ;;  %13824 = vst [vmem:[%s19484_s28 + $0x378] sm:$0xff] %v12996_v61  ;;  %v12928_v42 = vmul.f32 %v15670_v14, %v20698_v63  ;;  %v12808_v12 = vpop.f32.mrb[49].mxu1 }
 0x5b2   : > { %v9894_v46 = vmax.f32 %v9862_v28, 0.0  ;;  %v9863_v40 = vadd.f32 %v20703_v30, %v9824_v7  ;;  %13822 = vst [vmem:[%s19484_s28 + $0x368] sm:$0xff] %v12994_v8  ;;  %v12926_v53 = vmul.f32 %v20698_v63, %v12808_v12  ;;  %v15671_v17 = vpop.f32.mrb[50].mxu1 }
 0x5b3   : > { %13641 = vst [vmem:[%s19484_s28 + $0x290] sm:$0xff] %v9896_v62  ;;  %v9897_v35 = vmax.f32 %v9865_v16, 0.0  ;;  %v12967_v20 = vadd.f32 %v20703_v30, %v12928_v42  ;;  %v12929_v41 = vmul.f32 %v15671_v17, %v20698_v63  ;;  %v12811_v36 = vpop.f32.mrb[51].mxu1 }
 0x5b4   : > { %13639 = vst [vmem:[%s19484_s28 + $0x280] sm:$0xff] %v9894_v46  ;;  %v9895_v25 = vmax.f32 %v9863_v40, 0.0  ;;  %v15368_v57 = vpop.f32.mrb[52].mxu0  ;;  %v12965_v43 = vadd.f32 %v20703_v30, %v12926_v53  ;;  %v12927_v1 = vmul.f32 %v20698_v63, %v12811_v36 }
 0x5b5   : > { %13642 = vst [vmem:[%s19484_s28 + $0x298] sm:$0xff] %v9897_v35  ;;  %v9829_v0 = vmul.f32 %v15368_v57, %v20698_v63  ;;  %v9721_v27 = vpop.f32.mrb[53].mxu0  ;;  %v12999_v48 = vmax.f32 %v12967_v20, 0.0  ;;  %v12968_v2 = vadd.f32 %v20703_v30, %v12929_v41 }
 0x5b6   : > { %13640 = vst [vmem:[%s19484_s28 + $0x288] sm:$0xff] %v9895_v25  ;;  %v9827_v45 = vmul.f32 %v20698_v63, %v9721_v27  ;;  %v15369_v22 = vpop.f32.mrb[54].mxu0  ;;  %v12997_v54 = vmax.f32 %v12965_v43, 0.0  ;;  %v12966_v39 = vadd.f32 %v20703_v30, %v12927_v1 }
 0x5b7   : > { %v9868_v26 = vadd.f32 %v20703_v30, %v9829_v0  ;;  %v9830_v23 = vmul.f32 %v15369_v22, %v20698_v63  ;;  %v9724_v21 = vpop.f32.mrb[55].mxu0  ;;  %13827 = vst [vmem:[%s19484_s28 + $0x390] sm:$0xff] %v12999_v48  ;;  %v13000_v58 = vmax.f32 %v12968_v2, 0.0 }
 0x5b8   : > { %v9866_v24 = vadd.f32 %v20703_v30, %v9827_v45  ;;  %v9828_v44 = vmul.f32 %v20698_v63, %v9724_v21  ;;  %13825 = vst [vmem:[%s19484_s28 + $0x380] sm:$0xff] %v12997_v54  ;;  %v12998_v15 = vmax.f32 %v12966_v39, 0.0  ;;  %v15674_v31 = vpop.f32.mrb[52].mxu1 }
 0x5b9   : > { %v9900_v33 = vmax.f32 %v9868_v26, 0.0  ;;  %v9869_v10 = vadd.f32 %v20703_v30, %v9830_v23  ;;  %13828 = vst [vmem:[%s19484_s28 + $0x398] sm:$0xff] %v13000_v58  ;;  %v12932_v60 = vmul.f32 %v15674_v31, %v20698_v63  ;;  %v12824_v56 = vpop.f32.mrb[53].mxu1 }
 0x5ba   : > { %v9898_v13 = vmax.f32 %v9866_v24, 0.0  ;;  %v9867_v50 = vadd.f32 %v20703_v30, %v9828_v44  ;;  %13826 = vst [vmem:[%s19484_s28 + $0x388] sm:$0xff] %v12998_v15  ;;  %v12930_v52 = vmul.f32 %v20698_v63, %v12824_v56  ;;  %v15675_v4 = vpop.f32.mrb[54].mxu1 }
 0x5bb   : > { %13645 = vst [vmem:[%s19484_s28 + $0x2b0] sm:$0xff] %v9900_v33  ;;  %v9901_v6 = vmax.f32 %v9869_v10, 0.0  ;;  %v12971_v3 = vadd.f32 %v20703_v30, %v12932_v60  ;;  %v12933_v34 = vmul.f32 %v15675_v4, %v20698_v63  ;;  %v12827_v18 = vpop.f32.mrb[55].mxu1 }
 0x5bc   : > { %13643 = vst [vmem:[%s19484_s28 + $0x2a0] sm:$0xff] %v9898_v13  ;;  %v9899_v11 = vmax.f32 %v9867_v50, 0.0  ;;  %v15372_v29 = vpop.f32.mrb[56].mxu0  ;;  %v12969_v32 = vadd.f32 %v20703_v30, %v12930_v52  ;;  %v12931_v47 = vmul.f32 %v20698_v63, %v12827_v18 }
 0x5bd   : > { %13646 = vst [vmem:[%s19484_s28 + $0x2b8] sm:$0xff] %v9901_v6  ;;  %v9833_v51 = vmul.f32 %v15372_v29, %v20698_v63  ;;  %v9737_v49 = vpop.f32.mrb[57].mxu0  ;;  %v13003_v19 = vmax.f32 %v12971_v3, 0.0  ;;  %v12972_v38 = vadd.f32 %v20703_v30, %v12933_v34 }
 0x5be   : > { %13644 = vst [vmem:[%s19484_s28 + $0x2a8] sm:$0xff] %v9899_v11  ;;  %v9831_v55 = vmul.f32 %v20698_v63, %v9737_v49  ;;  %v15373_v59 = vpop.f32.mrb[58].mxu0  ;;  %v13001_v5 = vmax.f32 %v12969_v32, 0.0  ;;  %v12970_v9 = vadd.f32 %v20703_v30, %v12931_v47 }
 0x5bf   : > { %v9872_v37 = vadd.f32 %v20703_v30, %v9833_v51  ;;  %v9834_v61 = vmul.f32 %v15373_v59, %v20698_v63  ;;  %v9740_v28 = vpop.f32.mrb[59].mxu0  ;;  %13831 = vst [vmem:[%s19484_s28 + $0x3b0] sm:$0xff] %v13003_v19  ;;  %v13004_v7 = vmax.f32 %v12972_v38, 0.0 }
 0x5c0   : > { %v9870_v62 = vadd.f32 %v20703_v30, %v9831_v55  ;;  %v9832_v8 = vmul.f32 %v20698_v63, %v9740_v28  ;;  %13829 = vst [vmem:[%s19484_s28 + $0x3a0] sm:$0xff] %v13001_v5  ;;  %v13002_v14 = vmax.f32 %v12970_v9, 0.0  ;;  %v15678_v40 = vpop.f32.mrb[56].mxu1 }
 0x5c1   : > { %v9904_v16 = vmax.f32 %v9872_v37, 0.0  ;;  %v9873_v46 = vadd.f32 %v20703_v30, %v9834_v61  ;;  %13832 = vst [vmem:[%s19484_s28 + $0x3b8] sm:$0xff] %v13004_v7  ;;  %v12936_v35 = vmul.f32 %v15678_v40, %v20698_v63  ;;  %v12840_v53 = vpop.f32.mrb[57].mxu1 }
 0x5c2   : > { %v9902_v42 = vmax.f32 %v9870_v62, 0.0  ;;  %v9871_v12 = vadd.f32 %v20703_v30, %v9832_v8  ;;  %13830 = vst [vmem:[%s19484_s28 + $0x3a8] sm:$0xff] %v13002_v14  ;;  %v12934_v25 = vmul.f32 %v20698_v63, %v12840_v53  ;;  %v15679_v20 = vpop.f32.mrb[58].mxu1 }
 0x5c3   : > { %13649 = vst [vmem:[%s19484_s28 + $0x2d0] sm:$0xff] %v9904_v16  ;;  %v9905_v17 = vmax.f32 %v9873_v46, 0.0  ;;  %v12975_v41 = vadd.f32 %v20703_v30, %v12936_v35  ;;  %v12937_v43 = vmul.f32 %v15679_v20, %v20698_v63  ;;  %v12843_v0 = vpop.f32.mrb[59].mxu1 }
 0x5c4   : > { %13647 = vst [vmem:[%s19484_s28 + $0x2c0] sm:$0xff] %v9902_v42  ;;  %v9903_v57 = vmax.f32 %v9871_v12, 0.0  ;;  %v15376_v36 = vpop.f32.mrb[60].mxu0  ;;  %v12973_v27 = vadd.f32 %v20703_v30, %v12934_v25  ;;  %v12935_v2 = vmul.f32 %v20698_v63, %v12843_v0 }
 0x5c5   : > { %13650 = vst [vmem:[%s19484_s28 + $0x2d8] sm:$0xff] %v9905_v17  ;;  %v9837_v1 = vmul.f32 %v15376_v36, %v20698_v63  ;;  %v9753_v48 = vpop.f32.mrb[61].mxu0  ;;  %v13007_v45 = vmax.f32 %v12975_v41, 0.0  ;;  %v12976_v22 = vadd.f32 %v20703_v30, %v12937_v43 }
 0x5c6   : > { %13648 = vst [vmem:[%s19484_s28 + $0x2c8] sm:$0xff] %v9903_v57  ;;  %v9835_v54 = vmul.f32 %v20698_v63, %v9753_v48  ;;  %v15377_v26 = vpop.f32.mrb[62].mxu0  ;;  %v13005_v39 = vmax.f32 %v12973_v27, 0.0  ;;  %v12974_v21 = vadd.f32 %v20703_v30, %v12935_v2 }
 0x5c7   : > { %v9876_v23 = vadd.f32 %v20703_v30, %v9837_v1  ;;  %v9838_v58 = vmul.f32 %v15377_v26, %v20698_v63  ;;  %v9756_v24 = vpop.f32.mrb[63].mxu0  ;;  %13835 = vst [vmem:[%s19484_s28 + $0x3d0] sm:$0xff] %v13007_v45  ;;  %v13008_v44 = vmax.f32 %v12976_v22, 0.0 }
 0x5c8   : > { %v9874_v33 = vadd.f32 %v20703_v30, %v9835_v54  ;;  %v9836_v15 = vmul.f32 %v20698_v63, %v9756_v24  ;;  %13833 = vst [vmem:[%s19484_s28 + $0x3c0] sm:$0xff] %v13005_v39  ;;  %v13006_v31 = vmax.f32 %v12974_v21, 0.0  ;;  %v15682_v50 = vpop.f32.mrb[60].mxu1 }
 0x5c9   : > { %v9908_v10 = vmax.f32 %v9876_v23, 0.0  ;;  %v9877_v13 = vadd.f32 %v20703_v30, %v9838_v58  ;;  %13836 = vst [vmem:[%s19484_s28 + $0x3d8] sm:$0xff] %v13008_v44  ;;  %v12940_v6 = vmul.f32 %v15682_v50, %v20698_v63  ;;  %v12856_v52 = vpop.f32.mrb[61].mxu1 }
 0x5ca   : > { %v9906_v60 = vmax.f32 %v9874_v33, 0.0  ;;  %v9875_v56 = vadd.f32 %v20703_v30, %v9836_v15  ;;  %13834 = vst [vmem:[%s19484_s28 + $0x3c8] sm:$0xff] %v13006_v31  ;;  %v12938_v11 = vmul.f32 %v20698_v63, %v12856_v52  ;;  %v15683_v3 = vpop.f32.mrb[62].mxu1 }
 0x5cb   : > { %13653 = vst [vmem:[%s19484_s28 + $0x2f0] sm:$0xff] %v9908_v10  ;;  %v9909_v4 = vmax.f32 %v9877_v13, 0.0  ;;  %v12979_v34 = vadd.f32 %v20703_v30, %v12940_v6  ;;  %v12941_v18 = vmul.f32 %v15683_v3, %v20698_v63  ;;  %v12859_v32 = vpop.f32.mrb[63].mxu1 }
 0x5cc   : > { %13651 = vst [vmem:[%s19484_s28 + $0x2e0] sm:$0xff] %v9906_v60  ;;  %v9907_v29 = vmax.f32 %v9875_v56, 0.0  ;;  %v12977_v51 = vadd.f32 %v20703_v30, %v12938_v11  ;;  %v12939_v49 = vmul.f32 %v20698_v63, %v12859_v32 }
 0x5cd   : > { %13654 = vst [vmem:[%s19484_s28 + $0x2f8] sm:$0xff] %v9909_v4  ;;  %v13011_v47 = vmax.f32 %v12979_v34, 0.0  ;;  %v12980_v19 = vadd.f32 %v20703_v30, %v12941_v18 }
 0x5ce   : > { %13652 = vst [vmem:[%s19484_s28 + $0x2e8] sm:$0xff] %v9907_v29  ;;  %v13009_v38 = vmax.f32 %v12977_v51, 0.0  ;;  %v12978_v55 = vadd.f32 %v20703_v30, %v12939_v49 }
 0x5cf   : > { %13839 = vst [vmem:[%s19484_s28 + $0x3f0] sm:$0xff] %v13011_v47  ;;  %v13012_v59 = vmax.f32 %v12980_v19, 0.0 }
 0x5d0   : > { %13837 = vst [vmem:[%s19484_s28 + $0x3e0] sm:$0xff] %v13009_v38  ;;  %v13010_v63 = vmax.f32 %v12978_v55, 0.0 }
 0x5d1   : > { %13840 = vst [vmem:[%s19484_s28 + $0x3f8] sm:$0xff] %v13012_v59 }
 0x5d2   : > { %13838 = vst [vmem:[%s19484_s28 + $0x3e8] sm:$0xff] %v13010_v63 }
 0x5d3   : > { %16799 = shalt.err (!%p16796_p3)
}
 0x5d4   : > { %s16800_s12 = scalar_lea.hbm %s20899_s11, 16384  ;;  %s16804_s29 = scalar_lea.hbm %s20953_s4, 32768 }
 0x5d5   : > { %p16801_p4 = scmp.ne.s32.totalorder %s20899_s11, %s16800_s12  ;;  %p16805_p9 = scmp.lt.u32.totalorder %s20899_s11, %s20953_s4 }
 0x5d6   : > { %p16806_p10 = scmp.lt.u32.totalorder %s16804_s29, %s16800_s12  ;;  %p16808_p12 = scmp.lt.u32.totalorder %s16800_s12, %s20899_s11 }
 0x5d7   : > { %p16802_p7 = pnand %p16801_p4, %p16917_p5 }
 0x5d8   : > { %p16807_p11 = por %p16806_p10, %p16805_p9 }
 0x5d9   : > { %p16803_p8 = pneg %p16802_p7 }
 0x5da   : > { %p16809_p13 = por %p16808_p12, %p16807_p11 }
 0x5dc   : > { %p16810_p0 = pnand %p16809_p13, %p16803_p8 }
 0x5de   : > { %16813 = shalt.err (!%p16810_p0)
}
 0x5df   : > { %s16852_s6 = smov 128   ;;  %s16853_s7 = smov 8  }
 0x5e0   : > { %16744 = dma.vmem_to_hbm [thread:$0]  (%p16917_p5), %s20901_s13, 16384, %s20899_s11, %s20908_s19, %s16852_s6, %s16852_s6, %s16853_s7  }
 0x5e1 PF: > { %p16750_p1 = scmp.ge.s32.totalorder %s16848_s18, 2  ;;  %s13075_s8 = sand.u32 1, %s16836_s15  }
 0x5e2   : > { %s13076_s9 = scalar_lea.sflag [#allocation4], %s13075_s8 }
 0x5e3   : > { %p16747_p2 = pnand %p16750_p1, %p16921_p6 }
 0x5e5   : > { %16831 = dma.done.wait (!%p16747_p2), %s13076_s9, 16384  }
 0x5e6   : > { %16833 = vsyncadd (!%p16747_p2), %s13076_s9, 4294950912  ;;  %p14_p3 = scmp.ge.s32.totalorder %s16904_s21, 4   ;;  %s21204_s15 = smov %s16840_s16 }
 0x5e7   : > { %s21205_s16 = smov %s16844_s17  ;;  %s21206_s17 = smov %s16915_s24 }
 0x5e8   : > { %s21207_s18 = smov %s16904_s21  ;;  %16 = sbr.rel (!%p14_p3) target bundleno = 3 (0x3), region = 93 }
 0x5ef   :  { %13081 = vsyncpa [#allocation4], 1 }
 0x5f0   :  { %13083 = vsyncpa [#allocation4 + $0x1], 1 }

</bundles_post_ra>
